<compile_context>
chip_gen: v5e
topology: v5e:2x2
jax: 0.10.0
libtpu: 0.0.40
codegen_flags: <defaults>
</compile_context>

<pallas_src>
import jax
import jax.numpy as jnp
from jax.experimental import pallas as pl
from jax.experimental.pallas import tpu as pltpu

RES_H = 128          # texture height
RES_W = 128          # texture width
LATENT_DIM = 8       # channels


def _grid_sample_kernel(uv_ref, tex_ref, ones_ref, o_ref):
    tm = uv_ref.shape[0]
    uv = uv_ref[...]                       # (TM, 2) f32
    u = uv[:, 0:1]                         # grid x -> width
    v = uv[:, 1:2]                         # grid y -> height

    # align_corners=True pixel coordinates, same op order as grid_sample.
    gx = u * 2.0 - 1.0
    gy = v * 2.0 - 1.0
    ix = (gx + 1.0) * 0.5 * (RES_W - 1)    # (TM, 1)
    iy = (gy + 1.0) * 0.5 * (RES_H - 1)    # (TM, 1)

    lane_w = jax.lax.broadcasted_iota(jnp.int32, (tm, RES_W), 1).astype(jnp.float32)
    lane_h = jax.lax.broadcasted_iota(jnp.int32, (tm, RES_H), 1).astype(jnp.float32)

    # Hat/tent bilinear weights: max(0, 1 - |lane - coord|).  The two nearest
    # integer lanes get exactly (1-frac, frac); every other lane — including
    # all lanes when the coordinate is out of range — gets 0, which reproduces
    # padding_mode='zeros'.  Pure VPU: no floor, no int casts, no one-hot
    # compares, no lane broadcasts of x0 / x0+1.
    wx = jnp.maximum(0.0, 1.0 - jnp.abs(lane_w - ix))    # (TM, W)
    wy = jnp.maximum(0.0, 1.0 - jnp.abs(lane_h - iy))    # (TM, H)

    # H-contraction on the MXU:  V[n, c*W + w] = sum_h wy[n,h] * T[c,h,w].
    V = jnp.dot(wy, tex_ref[...], preferred_element_type=jnp.float32)  # (TM, C*W)

    # Multiply each 128-wide channel lane-group by wx.  Static, 128-aligned
    # lane slices + lane-aligned concatenate -> VPU only, no tile/reshape
    # relayout, no XLU.
    P = jnp.concatenate(
        [V[:, c * RES_W:(c + 1) * RES_W] * wx for c in range(LATENT_DIM)],
        axis=-1)                                                        # (TM, C*W)

    # W-contraction + channel select on the MXU via the constant block-diagonal
    # ones matrix: out[n, c] = sum_w V[n, c*W + w] * wx[n, w].
    # No XLU lane reductions, no width-1 concatenates.
    o_ref[...] = jnp.dot(P, ones_ref[...], preferred_element_type=jnp.float32)


def prepare_texture(latent_texture):
    """(1, C, H, W) parameter -> (H, C*W) MXU-friendly layout. Do once per params."""
    _, c, h, w = latent_texture.shape
    assert (h, w, c) == (RES_H, RES_W, LATENT_DIM), latent_texture.shape
    return (jnp.transpose(latent_texture[0], (1, 0, 2))   # (H, C, W)
            .reshape(h, c * w).astype(jnp.float32))       # tex[h, c*W + w] = T[c,h,w]


def make_reduce_ones():
    """(C*W, C) block-diagonal of ones: column c is 1 on rows [c*W, (c+1)*W)."""
    row_ch = jnp.arange(LATENT_DIM * RES_W, dtype=jnp.int32) // RES_W
    col_ch = jnp.arange(LATENT_DIM, dtype=jnp.int32)
    return (row_ch[:, None] == col_ch[None, :]).astype(jnp.float32)


def _pick_tm(n):
    # Large tiles amortize the ~0.35 us/step overhead, but keep >= 2 grid steps
    # whenever possible so the "parallel" axis can shard across both v7x TCs.
    for tm in (1024, 512, 256, 128):
        if n >= 2 * tm:
            return tm
    return 128


@jax.jit
def latent_texture_forward(uv, tex_flat, reduce_ones):
    """Matches LatentTexture.forward(uv): uv (N,2) -> (N, latent_dim)."""
    n = uv.shape[0]
    tm = _pick_tm(n)
    n_pad = pl.cdiv(n, tm) * tm

    uv_f = uv.astype(jnp.float32)
    if n_pad != n:
        # Pad only the tail; padded rows sample uv=(0,0) and are sliced off.
        uv_f = jnp.pad(uv_f, ((0, n_pad - n), (0, 0)))

    out = pl.pallas_call(
        _grid_sample_kernel,
        out_shape=jax.ShapeDtypeStruct((n_pad, LATENT_DIM), jnp.float32),
        grid_spec=pltpu.PrefetchScalarGridSpec(
            num_scalar_prefetch=0,
            grid=(n_pad // tm,),
            in_specs=[
                pl.BlockSpec((tm, 2), lambda i: (i, 0)),                      # uv tile
                pl.BlockSpec((RES_H, LATENT_DIM * RES_W), lambda i: (0, 0)),  # resident texture
                pl.BlockSpec((LATENT_DIM * RES_W, LATENT_DIM), lambda i: (0, 0)),  # ones reduce
            ],
            out_specs=pl.BlockSpec((tm, LATENT_DIM), lambda i: (i, 0)),
        ),
        compiler_params=pltpu.CompilerParams(
            dimension_semantics=("parallel",),
            vmem_limit_bytes=32 * 1024 * 1024,
        ),
    )(uv_f, tex_flat, reduce_ones)

    return out[:n] if n_pad != n else out


def reference_forward(uv, latent_texture):
    """Pure-JAX grid_sample(bilinear, zeros, align_corners=True) reference."""
    tex = latent_texture[0]                              # (C, H, W)
    ct, ht, wt = tex.shape
    gx = uv[:, 0] * 2.0 - 1.0
    gy = uv[:, 1] * 2.0 - 1.0
    ix = (gx + 1.0) * 0.5 * (wt - 1)
    iy = (gy + 1.0) * 0.5 * (ht - 1)
    x0 = jnp.floor(ix)
    y0 = jnp.floor(iy)
    fx = ix - x0
    fy = iy - y0
    x0i = x0.astype(jnp.int32)
    y0i = y0.astype(jnp.int32)
    x1i = x0i + 1
    y1i = y0i + 1

    def fetch(yi, xi):
        inb = (xi >= 0) & (xi < wt) & (yi >= 0) & (yi < ht)
        xc = jnp.clip(xi, 0, wt - 1)
        yc = jnp.clip(yi, 0, ht - 1)
        vals = tex[:, yc, xc]                            # (C, N)
        return jnp.where(inb[None, :], vals, 0.0)

    v00, v01 = fetch(y0i, x0i), fetch(y0i, x1i)
    v10, v11 = fetch(y1i, x0i), fetch(y1i, x1i)
    out = (v00 * ((1 - fy) * (1 - fx))
           + v01 * ((1 - fy) * fx)
           + v10 * (fy * (1 - fx))
           + v11 * (fy * fx))                            # (C, N)
    return out.T                                         # (N, C)


if __name__ == "__main__":
    key = jax.random.PRNGKey(0)
    kt, ku = jax.random.split(key)

    # Module parameter: latent_texture ~ randn(1, latent_dim, 128, 128)
    latent_texture = jax.random.normal(kt, (1, LATENT_DIM, RES_H, RES_W), jnp.float32)

    # UV samples; include slightly out-of-range values to exercise zeros-padding.
    N = 1337
    uv = jax.random.uniform(ku, (N, 2), jnp.float32, minval=-0.1, maxval=1.1)

    tex_flat = prepare_texture(latent_texture)
    reduce_ones = make_reduce_ones()

    out = latent_texture_forward(uv, tex_flat, reduce_ones)
    out = jax.block_until_ready(out)

    ref = reference_forward(uv, latent_texture)
    assert out.shape == (N, LATENT_DIM), out.shape
    assert jnp.allclose(out, ref, atol=1e-4, rtol=1e-4), (
        float(jnp.max(jnp.abs(out - ref))))

    print("KERNEL_OK")
</pallas_src>

<mosaic_0001>
module attributes {stable_mosaic.version = 11 : i64} {
  func.func @_grid_sample_kernel(%arg0: i32, %arg1: memref<512x2xf32, #tpu.memory_space<vmem>>, %arg2: memref<128x1024xf32, #tpu.memory_space<vmem>>, %arg3: memref<1024x8xf32, #tpu.memory_space<vmem>>, %arg4: memref<512x8xf32, #tpu.memory_space<vmem>>) attributes {dimension_semantics = [#tpu.dimension_semantics<parallel>], iteration_bounds = array<i64: 3>, scalar_prefetch = 0 : i64, scratch_operands = 0 : i64, tpu.core_type = #tpu.core_type<tc>, window_params = [{transform_indices = @transform_0, window_bounds = array<i64: 512, 2>}, {pipeline_mode = #tpu.pipeline_mode<synchronous>, transform_indices = @transform_1, window_bounds = array<i64: 128, 1024>}, {pipeline_mode = #tpu.pipeline_mode<synchronous>, transform_indices = @transform_2, window_bounds = array<i64: 1024, 8>}, {transform_indices = @transform_3, window_bounds = array<i64: 512, 8>}]} {
    %c0 = arith.constant 0 : index
    %c0_0 = arith.constant 0 : index
    %0 = vector.load %arg1[%c0, %c0_0] : memref<512x2xf32, #tpu.memory_space<vmem>>, vector<512x2xf32>
    %1 = vector.extract_strided_slice %0 {offsets = [0, 0], sizes = [512, 1], strides = [1, 1]} : vector<512x2xf32> to vector<512x1xf32>
    %2 = vector.extract_strided_slice %0 {offsets = [0, 1], sizes = [512, 1], strides = [1, 1]} : vector<512x2xf32> to vector<512x1xf32>
    %cst = arith.constant 2.000000e+00 : f32
    %3 = vector.broadcast %cst : f32 to vector<512x1xf32>
    %4 = arith.mulf %1, %3 : vector<512x1xf32>
    %cst_1 = arith.constant 1.000000e+00 : f32
    %5 = vector.broadcast %cst_1 : f32 to vector<512x1xf32>
    %6 = arith.subf %4, %5 : vector<512x1xf32>
    %cst_2 = arith.constant 2.000000e+00 : f32
    %7 = vector.broadcast %cst_2 : f32 to vector<512x1xf32>
    %8 = arith.mulf %2, %7 : vector<512x1xf32>
    %cst_3 = arith.constant 1.000000e+00 : f32
    %9 = vector.broadcast %cst_3 : f32 to vector<512x1xf32>
    %10 = arith.subf %8, %9 : vector<512x1xf32>
    %cst_4 = arith.constant 1.000000e+00 : f32
    %11 = vector.broadcast %cst_4 : f32 to vector<512x1xf32>
    %12 = arith.addf %6, %11 : vector<512x1xf32>
    %cst_5 = arith.constant 5.000000e-01 : f32
    %13 = vector.broadcast %cst_5 : f32 to vector<512x1xf32>
    %14 = arith.mulf %12, %13 : vector<512x1xf32>
    %cst_6 = arith.constant 1.270000e+02 : f32
    %15 = vector.broadcast %cst_6 : f32 to vector<512x1xf32>
    %16 = arith.mulf %14, %15 : vector<512x1xf32>
    %cst_7 = arith.constant 1.000000e+00 : f32
    %17 = vector.broadcast %cst_7 : f32 to vector<512x1xf32>
    %18 = arith.addf %10, %17 : vector<512x1xf32>
    %cst_8 = arith.constant 5.000000e-01 : f32
    %19 = vector.broadcast %cst_8 : f32 to vector<512x1xf32>
    %20 = arith.mulf %18, %19 : vector<512x1xf32>
    %cst_9 = arith.constant 1.270000e+02 : f32
    %21 = vector.broadcast %cst_9 : f32 to vector<512x1xf32>
    %22 = arith.mulf %20, %21 : vector<512x1xf32>
    %23 = tpu.iota {dimensions = array<i32: 1>} : vector<512x128xi32>
    %24 = arith.sitofp %23 : vector<512x128xi32> to vector<512x128xf32>
    %25 = tpu.iota {dimensions = array<i32: 1>} : vector<512x128xi32>
    %26 = arith.sitofp %25 : vector<512x128xi32> to vector<512x128xf32>
    %27 = vector.broadcast %16 : vector<512x1xf32> to vector<512x128xf32>
    %28 = arith.subf %24, %27 : vector<512x128xf32>
    %29 = math.absf %28 : vector<512x128xf32>
    %cst_10 = arith.constant 1.000000e+00 : f32
    %30 = vector.broadcast %cst_10 : f32 to vector<512x128xf32>
    %31 = arith.subf %30, %29 : vector<512x128xf32>
    %cst_11 = arith.constant 0.000000e+00 : f32
    %32 = vector.broadcast %cst_11 : f32 to vector<512x128xf32>
    %33 = arith.maximumf %32, %31 : vector<512x128xf32>
    %34 = vector.broadcast %22 : vector<512x1xf32> to vector<512x128xf32>
    %35 = arith.subf %26, %34 : vector<512x128xf32>
    %36 = math.absf %35 : vector<512x128xf32>
    %cst_12 = arith.constant 1.000000e+00 : f32
    %37 = vector.broadcast %cst_12 : f32 to vector<512x128xf32>
    %38 = arith.subf %37, %36 : vector<512x128xf32>
    %cst_13 = arith.constant 0.000000e+00 : f32
    %39 = vector.broadcast %cst_13 : f32 to vector<512x128xf32>
    %40 = arith.maximumf %39, %38 : vector<512x128xf32>
    %c0_14 = arith.constant 0 : index
    %c0_15 = arith.constant 0 : index
    %41 = vector.load %arg2[%c0_14, %c0_15] : memref<128x1024xf32, #tpu.memory_space<vmem>>, vector<128x1024xf32>
    %cst_16 = arith.constant dense<0.000000e+00> : vector<512x1024xf32>
    %42 = tpu.matmul %40, %41, %cst_16 {dimension_numbers = #tpu.dot_dimension_numbers<[1], [0], [0], [1], [0, 0, 1, 1], [], []>} : vector<512x128xf32>, vector<128x1024xf32>, vector<512x1024xf32> -> vector<512x1024xf32>
    %43 = vector.extract_strided_slice %42 {offsets = [0, 0], sizes = [512, 128], strides = [1, 1]} : vector<512x1024xf32> to vector<512x128xf32>
    %44 = arith.mulf %43, %33 : vector<512x128xf32>
    %45 = vector.extract_strided_slice %42 {offsets = [0, 128], sizes = [512, 128], strides = [1, 1]} : vector<512x1024xf32> to vector<512x128xf32>
    %46 = arith.mulf %45, %33 : vector<512x128xf32>
    %47 = vector.extract_strided_slice %42 {offsets = [0, 256], sizes = [512, 128], strides = [1, 1]} : vector<512x1024xf32> to vector<512x128xf32>
    %48 = arith.mulf %47, %33 : vector<512x128xf32>
    %49 = vector.extract_strided_slice %42 {offsets = [0, 384], sizes = [512, 128], strides = [1, 1]} : vector<512x1024xf32> to vector<512x128xf32>
    %50 = arith.mulf %49, %33 : vector<512x128xf32>
    %51 = vector.extract_strided_slice %42 {offsets = [0, 512], sizes = [512, 128], strides = [1, 1]} : vector<512x1024xf32> to vector<512x128xf32>
    %52 = arith.mulf %51, %33 : vector<512x128xf32>
    %53 = vector.extract_strided_slice %42 {offsets = [0, 640], sizes = [512, 128], strides = [1, 1]} : vector<512x1024xf32> to vector<512x128xf32>
    %54 = arith.mulf %53, %33 : vector<512x128xf32>
    %55 = vector.extract_strided_slice %42 {offsets = [0, 768], sizes = [512, 128], strides = [1, 1]} : vector<512x1024xf32> to vector<512x128xf32>
    %56 = arith.mulf %55, %33 : vector<512x128xf32>
    %57 = vector.extract_strided_slice %42 {offsets = [0, 896], sizes = [512, 128], strides = [1, 1]} : vector<512x1024xf32> to vector<512x128xf32>
    %58 = arith.mulf %57, %33 : vector<512x128xf32>
    %59 = tpu.concatenate %44, %46, %48, %50, %52, %54, %56, %58 in 1 : vector<512x128xf32>, vector<512x128xf32>, vector<512x128xf32>, vector<512x128xf32>, vector<512x128xf32>, vector<512x128xf32>, vector<512x128xf32>, vector<512x128xf32> -> vector<512x1024xf32>
    %c0_17 = arith.constant 0 : index
    %c0_18 = arith.constant 0 : index
    %60 = vector.load %arg3[%c0_17, %c0_18] : memref<1024x8xf32, #tpu.memory_space<vmem>>, vector<1024x8xf32>
    %cst_19 = arith.constant dense<0.000000e+00> : vector<512x8xf32>
    %61 = tpu.matmul %59, %60, %cst_19 {dimension_numbers = #tpu.dot_dimension_numbers<[1], [0], [0], [1], [0, 0, 1, 1], [], []>} : vector<512x1024xf32>, vector<1024x8xf32>, vector<512x8xf32> -> vector<512x8xf32>
    %c0_20 = arith.constant 0 : index
    %c0_21 = arith.constant 0 : index
    %62 = vector.load %arg4[%c0_20, %c0_21] : memref<512x8xf32, #tpu.memory_space<vmem>>, vector<512x8xf32>
    tpu.vector_store %arg4[%c0_20, %c0_21], %61 {strides = array<i32>} : memref<512x8xf32, #tpu.memory_space<vmem>>, vector<512x8xf32>,
    return
  }
  func.func @transform_0(%arg0: i32) -> (i32, i32) {
    %c0_i32 = arith.constant 0 : i32
    %c0_i32_0 = arith.constant 0 : i32
    return %arg0, %c0_i32 : i32, i32
  }
  func.func @transform_1(%arg0: i32) -> (i32, i32) {
    %c0_i32 = arith.constant 0 : i32
    %c0_i32_0 = arith.constant 0 : i32
    %c0_i32_1 = arith.constant 0 : i32
    return %c0_i32, %c0_i32_0 : i32, i32
  }
  func.func @transform_2(%arg0: i32) -> (i32, i32) {
    %c0_i32 = arith.constant 0 : i32
    %c0_i32_0 = arith.constant 0 : i32
    %c0_i32_1 = arith.constant 0 : i32
    return %c0_i32, %c0_i32_0 : i32, i32
  }
  func.func @transform_3(%arg0: i32) -> (i32, i32) {
    %c0_i32 = arith.constant 0 : i32
    %c0_i32_0 = arith.constant 0 : i32
    return %arg0, %c0_i32 : i32, i32
  }
}

</mosaic_0001>

<bundles_post_ra>
// kernel: latent_texture_forward.1
= control target key start
LH: loop header
LB: loop body
LE: loop exit
PB: predicated region body
PF: predicated region fallthrough
CT: control target
= control target key end

     0   :  { %s6004_s12 = smov 0   ;;  %s10390_s0 = inlined_call_operand.vmem [shape: f32[1536,2], index: 0, kind: input, shape index: {}]   ;;  %s10391_s1 = inlined_call_operand.vmem [shape: f32[128,1024], index: 1, kind: input, shape index: {}]   ;;  %s10392_s2 = inlined_call_operand.vmem [shape: f32[1024,8], index: 2, kind: input, shape index: {}]   ;;  %s10393_s3 = inlined_call_operand.vmem [shape: f32[1536,8], index: 3, kind: output, shape index: {}]  }
   0x1 LB: > { %s5882_s13 = sadd.s32 4294967295, %s5980_s12   ;;  %p5886_p0 = scmp.ge.s32.totalorder %s5980_s12, 1  ;;  %s5980_s12 = sphi %s6004_s12, %s13_s12  }
   0x2   : > { %p138_p1 = scmp.lt.s32.totalorder %s5980_s12, 4 }
   0x4   : > { %p139_p2 = pnand %p5886_p0, %p138_p1 }
   0x6   : > { %142 = sbr.rel (%p139_p2) target bundleno = 2330 (0x91a), region = 32 }
   0xb   : > { %s5887_s14 = sshll.u32 %s5882_s13, 6  ;;  %v10394_v0 = vmov 1   ;;  %vm5761_vm0 = vcmask 64512  }
   0xc   : > { %5969 = vset.pattern.permute.xlu2 %v10394_v0  ;;  %5968 = vset.pattern.permute.xlu1 %v10394_v0  ;;  %p163_p3 = scmp.lt.s32.totalorder %s5887_s14, 191 }
   0xd   : > { %5967 = vset.pattern.permute.xlu0 %v10394_v0 }
   0xe   : > { %s11696_s14 = smov (!%p163_p3, %s5887_s14), 191 }
   0xf   : > { %s5888_s15 = sshll.u32 %s11696_s14, 3 }
  0x10   : > { %s6023_s18 = scalar_lea.vmem %s10390_s0, %s5888_s15  ;;  %s9822_s7 = scalar_lea.vmem %s10393_s3, %s5888_s15 }
  0x11   : > { %v178_v1 = vld [vmem:[%s6023_s18 + $0x20] sm:$0xff]  ;;  %v176_v2 = vld [vmem:[%s6023_s18 + $0x10] sm:$0xff]  ;;  %v179_v7 = vld [vmem:[%s6023_s18 + $0x28] sm:$0xff] }
  0x12   : > { %v174_v3 = vld [vmem:[%s6023_s18] sm:$0xff]  ;;  %v242_v4 = vmul.f32 2.0, %v178_v1  ;;  %v240_v5 = vmul.f32 2.0, %v176_v2  ;;  %v177_v8 = vld [vmem:[%s6023_s18 + $0x18] sm:$0xff]  ;;  %v175_v9 = vld [vmem:[%s6023_s18 + $0x8] sm:$0xff]  ;;  %v243_v10 = vmul.f32 2.0, %v179_v7 }
  0x13   : > { %v238_v6 = vmul.f32 2.0, %v174_v3  ;;  %v241_v11 = vmul.f32 2.0, %v177_v8  ;;  %v239_v12 = vmul.f32 2.0, %v175_v9  ;;  %v182_v16 = vld [vmem:[%s6023_s18 + $0x40] sm:$0xff]  ;;  %v181_v17 = vld [vmem:[%s6023_s18 + $0x38] sm:$0xff]  ;;  %v180_v32 = vld [vmem:[%s6023_s18 + $0x30] sm:$0xff] }
  0x14   : > { %v5895_v13 = vadd.f32 -1.0, %v242_v4  ;;  %v5893_v14 = vadd.f32 -1.0, %v240_v5  ;;  %v5896_v18 = vadd.f32 -1.0, %v243_v10  ;;  %v246_v25 = vmul.f32 2.0, %v182_v16  ;;  %v185_v42 = vld [vmem:[%s6023_s18 + $0x58] sm:$0xff]  ;;  %v184_v43 = vld [vmem:[%s6023_s18 + $0x50] sm:$0xff] }
  0x15   : > { %v5891_v15 = vadd.f32 -1.0, %v238_v6  ;;  %v5894_v19 = vadd.f32 -1.0, %v241_v11  ;;  %v5892_v20 = vadd.f32 -1.0, %v239_v12  ;;  %v245_v26 = vmul.f32 2.0, %v181_v17  ;;  %v183_v45 = vld [vmem:[%s6023_s18 + $0x48] sm:$0xff]  ;;  %v188_v59 = vld [vmem:[%s6023_s18 + $0x70] sm:$0xff] }
  0x16   : > { %v370_v21 = vadd.f32 1.0, %v5895_v13  ;;  %v368_v22 = vadd.f32 1.0, %v5893_v14  ;;  %v371_v24 = vadd.f32 1.0, %v5896_v18  ;;  %v5899_v36 = vadd.f32 -1.0, %v246_v25  ;;  %v187_v62 = vld [vmem:[%s6023_s18 + $0x68] sm:$0xff]  ;;  %v186_v63 = vld [vmem:[%s6023_s18 + $0x60] sm:$0xff] }
  0x17   : > { %v366_v23 = vadd.f32 1.0, %v5891_v15  ;;  %v369_v30 = vadd.f32 1.0, %v5894_v19  ;;  %v367_v31 = vadd.f32 1.0, %v5892_v20  ;;  %v5898_v37 = vadd.f32 -1.0, %v245_v26  ;;  %v191_v14 = vld [vmem:[%s6023_s18 + $0x88] sm:$0xff]  ;;  %v190_v17 = vld [vmem:[%s6023_s18 + $0x80] sm:$0xff] }
  0x18   : > { %v434_v27 = vmul.f32 0.5, %v370_v21  ;;  %v432_v28 = vmul.f32 0.5, %v368_v22  ;;  %v435_v38 = vmul.f32 0.5, %v371_v24  ;;  %v244_v40 = vmul.f32 2.0, %v180_v32  ;;  %v189_v18 = vld [vmem:[%s6023_s18 + $0x78] sm:$0xff]  ;;  %v194_v32 = vld [vmem:[%s6023_s18 + $0xa0] sm:$0xff] }
  0x19   : > { %v430_v29 = vmul.f32 0.5, %v366_v23  ;;  %v433_v39 = vmul.f32 0.5, %v369_v30  ;;  %v431_v41 = vmul.f32 0.5, %v367_v31  ;;  %v374_v46 = vadd.f32 1.0, %v5899_v36  ;;  %v193_v36 = vld [vmem:[%s6023_s18 + $0x98] sm:$0xff] }
  0x1a   : > { %v6034_v33 = vmul.f32 127.0, %v434_v27  ;;  %v6036_v34 = vmul.f32 127.0, %v432_v28  ;;  %v5897_v44 = vadd.f32 -1.0, %v244_v40  ;;  %v373_v47 = vadd.f32 1.0, %v5898_v37 }
  0x1b   : > { %v6038_v35 = vmul.f32 127.0, %v430_v29  ;;  %v6046_v48 = vmul.f32 127.0, %v435_v38  ;;  %v6048_v49 = vmul.f32 127.0, %v433_v39  ;;  %v249_v50 = vmul.f32 2.0, %v185_v42  ;;  %v192_v39 = vld [vmem:[%s6023_s18 + $0x90] sm:$0xff] }
  0x1c   : > { %1154 = vperm.xlu2 %5969, %v6034_v33   ;;  %1146 = vperm.xlu1 %5968, %v6036_v34   ;;  %v248_v51 = vmul.f32 2.0, %v184_v43  ;;  %v6050_v52 = vmul.f32 127.0, %v431_v41  ;;  %v372_v53 = vadd.f32 1.0, %v5897_v44  ;;  %v247_v54 = vmul.f32 2.0, %v183_v45 }
  0x1d   : > { %1138 = vperm.xlu0 %5967, %v6038_v35   ;;  %v438_v55 = vmul.f32 0.5, %v374_v46  ;;  %v437_v56 = vmul.f32 0.5, %v373_v47  ;;  %v5902_v57 = vadd.f32 -1.0, %v249_v50  ;;  %v252_v2 = vmul.f32 2.0, %v188_v59  ;;  %v196_v59 = vld [vmem:[%s6023_s18 + $0xb0] sm:$0xff] }
  0x1e   : > { %v5901_v58 = vadd.f32 -1.0, %v248_v51  ;;  %v436_v60 = vmul.f32 0.5, %v372_v53  ;;  %v5900_v61 = vadd.f32 -1.0, %v247_v54  ;;  %v251_v6 = vmul.f32 2.0, %v187_v62 }
  0x1f   : > { %v6058_v1 = vmul.f32 127.0, %v438_v55  ;;  %v6060_v3 = vmul.f32 127.0, %v437_v56  ;;  %v377_v4 = vadd.f32 1.0, %v5902_v57  ;;  %v250_v9 = vmul.f32 2.0, %v186_v63 }
  0x20   : > { %v376_v5 = vadd.f32 1.0, %v5901_v58  ;;  %v6062_v7 = vmul.f32 127.0, %v436_v60  ;;  %v375_v8 = vadd.f32 1.0, %v5900_v61  ;;  %v5905_v10 = vadd.f32 -1.0, %v252_v2  ;;  %v197_v58 = vld [vmem:[%s6023_s18 + $0xb8] sm:$0xff]  ;;  %v195_v60 = vld [vmem:[%s6023_s18 + $0xa8] sm:$0xff] }
  0x21   : > { %v441_v11 = vmul.f32 0.5, %v377_v4  ;;  %v5904_v13 = vadd.f32 -1.0, %v251_v6  ;;  %v5903_v16 = vadd.f32 -1.0, %v250_v9  ;;  %v255_v20 = vmul.f32 2.0, %v191_v14 }
  0x22   : > { %v440_v12 = vmul.f32 0.5, %v376_v5  ;;  %v439_v15 = vmul.f32 0.5, %v375_v8  ;;  %v380_v19 = vadd.f32 1.0, %v5905_v10  ;;  %v254_v24 = vmul.f32 2.0, %v190_v17  ;;  %v199_v17 = vld [vmem:[%s6023_s18 + $0xc8] sm:$0xff] }
  0x23   : > { %v6070_v21 = vmul.f32 127.0, %v441_v11  ;;  %v379_v23 = vadd.f32 1.0, %v5904_v13  ;;  %v378_v26 = vadd.f32 1.0, %v5903_v16  ;;  %v253_v27 = vmul.f32 2.0, %v189_v18  ;;  %v200_v16 = vld [vmem:[%s6023_s18 + $0xd0] sm:$0xff]  ;;  %v198_v18 = vld [vmem:[%s6023_s18 + $0xc0] sm:$0xff] }
  0x24   : > { %1158 = vperm.xlu2 %5969, %v6046_v48   ;;  %1150 = vperm.xlu1 %5968, %v6048_v49   ;;  %v6072_v22 = vmul.f32 127.0, %v440_v12  ;;  %v6074_v25 = vmul.f32 127.0, %v439_v15  ;;  %v444_v28 = vmul.f32 0.5, %v380_v19  ;;  %v5908_v30 = vadd.f32 -1.0, %v255_v20 }
  0x25   : > { %1142 = vperm.xlu0 %5967, %v6050_v52   ;;  %v443_v29 = vmul.f32 0.5, %v379_v23  ;;  %v5907_v31 = vadd.f32 -1.0, %v254_v24  ;;  %v442_v37 = vmul.f32 0.5, %v378_v26  ;;  %v5906_v38 = vadd.f32 -1.0, %v253_v27 }
  0x26   : > { %v258_v40 = vmul.f32 2.0, %v194_v32  ;;  %v257_v41 = vmul.f32 2.0, %v193_v36  ;;  %v6082_v42 = vmul.f32 127.0, %v444_v28  ;;  %v383_v44 = vadd.f32 1.0, %v5908_v30 }
  0x27   : > { %v6084_v43 = vmul.f32 127.0, %v443_v29  ;;  %v382_v45 = vadd.f32 1.0, %v5907_v31  ;;  %v6086_v46 = vmul.f32 127.0, %v442_v37  ;;  %v381_v47 = vadd.f32 1.0, %v5906_v38  ;;  %v203_v38 = vld [vmem:[%s6023_s18 + $0xe8] sm:$0xff] }
  0x28   : > { %v256_v50 = vmul.f32 2.0, %v192_v39  ;;  %v5911_v51 = vadd.f32 -1.0, %v258_v40  ;;  %v5910_v53 = vadd.f32 -1.0, %v257_v41  ;;  %v447_v54 = vmul.f32 0.5, %v383_v44  ;;  %v202_v39 = vld [vmem:[%s6023_s18 + $0xe0] sm:$0xff]  ;;  %v201_v44 = vld [vmem:[%s6023_s18 + $0xd8] sm:$0xff] }
  0x29   : > { %v446_v55 = vmul.f32 0.5, %v382_v45  ;;  %v445_v56 = vmul.f32 0.5, %v381_v47  ;;  %v261_v4 = vmul.f32 2.0, %v197_v58  ;;  %v260_v5 = vmul.f32 2.0, %v196_v59 }
  0x2a   : > { %v5909_v57 = vadd.f32 -1.0, %v256_v50  ;;  %v386_v61 = vadd.f32 1.0, %v5911_v51  ;;  %v385_v62 = vadd.f32 1.0, %v5910_v53  ;;  %v6094_v63 = vmul.f32 127.0, %v447_v54 }
  0x2b   : > { %v6096_v2 = vmul.f32 127.0, %v446_v55  ;;  %v6098_v6 = vmul.f32 127.0, %v445_v56  ;;  %v259_v9 = vmul.f32 2.0, %v195_v60  ;;  %v5914_v12 = vadd.f32 -1.0, %v261_v4 }
  0x2c   : > { %1170 = vperm.xlu2 %5969, %v6058_v1   ;;  %1166 = vperm.xlu1 %5968, %v6060_v3   ;;  %v384_v8 = vadd.f32 1.0, %v5909_v57  ;;  %v450_v10 = vmul.f32 0.5, %v386_v61  ;;  %v449_v11 = vmul.f32 0.5, %v385_v62  ;;  %v5913_v13 = vadd.f32 -1.0, %v260_v5  ;;  %v206_v62 = vld [vmem:[%s6023_s18 + $0x100] sm:$0xff] }
  0x2d   : > { %1162 = vperm.xlu0 %5967, %v6062_v7   ;;  %v5912_v15 = vadd.f32 -1.0, %v259_v9  ;;  %v389_v23 = vadd.f32 1.0, %v5914_v12  ;;  %v264_v26 = vmul.f32 2.0, %v200_v16  ;;  %v263_v27 = vmul.f32 2.0, %v199_v17  ;;  %v204_v9 = vld [vmem:[%s6023_s18 + $0xf0] sm:$0xff]  ;;  %v1769_v16 = vld [vmem:[%s10391_s1 + $0x3c0] sm:$0xff] }
  0x2e   : > { %v448_v14 = vmul.f32 0.5, %v384_v8  ;;  %v6106_v19 = vmul.f32 127.0, %v450_v10  ;;  %v6108_v20 = vmul.f32 127.0, %v449_v11  ;;  %v388_v24 = vadd.f32 1.0, %v5913_v13  ;;  %v205_v8 = vld [vmem:[%s6023_s18 + $0xf8] sm:$0xff]  ;;  %v1770_v17 = vld [vmem:[%s10391_s1 + $0x3c8] sm:$0xff]  ;;  %1777 = vmatpush.msra.mxu0 %v1769_v16 }
  0x2f   : > { %v387_v29 = vadd.f32 1.0, %v5912_v15  ;;  %v262_v30 = vmul.f32 2.0, %v198_v18  ;;  %v453_v31 = vmul.f32 0.5, %v389_v23  ;;  %v5917_v36 = vadd.f32 -1.0, %v264_v26  ;;  %v1771_v18 = vld [vmem:[%s10391_s1 + $0x3d0] sm:$0xff]  ;;  %1986 = vmatpush.msra.mxu1 %v1770_v17 }
  0x30   : > { %v6110_v28 = vmul.f32 127.0, %v448_v14  ;;  %v452_v32 = vmul.f32 0.5, %v388_v24  ;;  %v5916_v37 = vadd.f32 -1.0, %v263_v27  ;;  %v267_v45 = vmul.f32 2.0, %v203_v38  ;;  %v1772_v27 = vld [vmem:[%s10391_s1 + $0x3d8] sm:$0xff]  ;;  %2195 = vmatpush.msra.mxu2 %v1771_v18 }
  0x31   : > { %v451_v40 = vmul.f32 0.5, %v387_v29  ;;  %v5915_v41 = vadd.f32 -1.0, %v262_v30  ;;  %v266_v47 = vmul.f32 2.0, %v202_v39  ;;  %v6118_v50 = vmul.f32 127.0, %v453_v31  ;;  %2404 = vmatpush.msra.mxu3 %v1772_v27  ;;  %v1761_v29 = vld [vmem:[%s10391_s1 + $0x380] sm:$0xff]  ;;  %v1762_v30 = vld [vmem:[%s10391_s1 + $0x388] sm:$0xff] }
  0x32   : > { %v6120_v51 = vmul.f32 127.0, %v452_v32  ;;  %v392_v53 = vadd.f32 1.0, %v5917_v36  ;;  %v391_v54 = vadd.f32 1.0, %v5916_v37  ;;  %v265_v57 = vmul.f32 2.0, %v201_v44  ;;  %v1763_v31 = vld [vmem:[%s10391_s1 + $0x390] sm:$0xff]  ;;  %v209_v38 = vld [vmem:[%s6023_s18 + $0x118] sm:$0xff]  ;;  %1778 = vmatpush.msra.mxu0 %v1761_v29  ;;  %1987 = vmatpush.msra.mxu1 %v1762_v30 }
  0x33   : > { %v6122_v55 = vmul.f32 127.0, %v451_v40  ;;  %v390_v56 = vadd.f32 1.0, %v5915_v41  ;;  %v5920_v58 = vadd.f32 -1.0, %v267_v45  ;;  %v5919_v59 = vadd.f32 -1.0, %v266_v47  ;;  %v1764_v39 = vld [vmem:[%s10391_s1 + $0x398] sm:$0xff]  ;;  %v1753_v41 = vld [vmem:[%s10391_s1 + $0x340] sm:$0xff]  ;;  %2196 = vmatpush.msra.mxu2 %v1763_v31 }
  0x34   : > { %1182 = vperm.xlu2 %5969, %v6070_v21   ;;  %1178 = vperm.xlu1 %5968, %v6072_v22   ;;  %v456_v60 = vmul.f32 0.5, %v392_v53  ;;  %v455_v61 = vmul.f32 0.5, %v391_v54  ;;  %v5918_v5 = vadd.f32 -1.0, %v265_v57  ;;  %v270_v12 = vmul.f32 2.0, %v206_v62  ;;  %v1754_v44 = vld [vmem:[%s10391_s1 + $0x348] sm:$0xff]  ;;  %v1755_v45 = vld [vmem:[%s10391_s1 + $0x350] sm:$0xff] }
  0x35   : > { %1174 = vperm.xlu0 %5967, %v6074_v25   ;;  %v454_v4 = vmul.f32 0.5, %v390_v56  ;;  %v395_v10 = vadd.f32 1.0, %v5920_v58  ;;  %v394_v11 = vadd.f32 1.0, %v5919_v59  ;;  %v269_v15 = vmul.f32 2.0, %v205_v8  ;;  %v208_v54 = vld [vmem:[%s6023_s18 + $0x110] sm:$0xff]  ;;  %v1756_v56 = vld [vmem:[%s10391_s1 + $0x358] sm:$0xff]  ;;  %2405 = vmatpush.msra.mxu3 %v1764_v39 }
  0x36   : > { %v6130_v13 = vmul.f32 127.0, %v456_v60  ;;  %v6132_v14 = vmul.f32 127.0, %v455_v61  ;;  %v393_v24 = vadd.f32 1.0, %v5918_v5  ;;  %v268_v26 = vmul.f32 2.0, %v204_v9  ;;  %v1745_v57 = vld [vmem:[%s10391_s1 + $0x300] sm:$0xff]  ;;  %v207_v58 = vld [vmem:[%s6023_s18 + $0x108] sm:$0xff]  ;;  %1779 = vmatpush.msra.mxu0 %v1753_v41  ;;  %1988 = vmatpush.msra.mxu1 %v1754_v44 }
  0x37   : > { %v6143_v23 = vmul.f32 127.0, %v454_v4  ;;  %v459_v32 = vmul.f32 0.5, %v395_v10  ;;  %v458_v36 = vmul.f32 0.5, %v394_v11  ;;  %v5923_v37 = vadd.f32 -1.0, %v270_v12  ;;  %v1746_v59 = vld [vmem:[%s10391_s1 + $0x308] sm:$0xff]  ;;  %v1747_v60 = vld [vmem:[%s10391_s1 + $0x310] sm:$0xff]  ;;  %2197 = vmatpush.msra.mxu2 %v1755_v45  ;;  %2406 = vmatpush.msra.mxu3 %v1756_v56 }
  0x38   : > { %v5922_v40 = vadd.f32 -1.0, %v269_v15  ;;  %v457_v47 = vmul.f32 0.5, %v393_v24  ;;  %v5921_v53 = vadd.f32 -1.0, %v268_v26  ;;  %v1748_v5 = vld [vmem:[%s10391_s1 + $0x318] sm:$0xff]  ;;  %v273_v9 = vmul.f32 2.0, %v209_v38  ;;  %1780 = vmatpush.msra.mxu0 %v1745_v57  ;;  %v1737_v11 = vld [vmem:[%s10391_s1 + $0x2c0] sm:$0xff]  ;;  %1989 = vmatpush.msra.mxu1 %v1746_v59 }
  0x39   : > { %v6187_v61 = vmul.f32 127.0, %v459_v32  ;;  %v6189_v62 = vmul.f32 127.0, %v458_v36  ;;  %v398_v4 = vadd.f32 1.0, %v5923_v37  ;;  %v272_v10 = vmul.f32 2.0, %v208_v54  ;;  %v1738_v12 = vld [vmem:[%s10391_s1 + $0x2c8] sm:$0xff]  ;;  %v1739_v15 = vld [vmem:[%s10391_s1 + $0x2d0] sm:$0xff]  ;;  %2198 = vmatpush.msra.mxu2 %v1747_v60  ;;  %2407 = vmatpush.msra.mxu3 %v1748_v5 }
  0x3a   : > { %v397_v8 = vadd.f32 1.0, %v5922_v40  ;;  %v6203_v16 = vmul.f32 127.0, %v457_v47  ;;  %v396_v17 = vadd.f32 1.0, %v5921_v53  ;;  %v271_v18 = vmul.f32 2.0, %v207_v58  ;;  %1781 = vmatpush.msra.mxu0 %v1737_v11  ;;  %v1740_v24 = vld [vmem:[%s10391_s1 + $0x2d8] sm:$0xff]  ;;  %1990 = vmatpush.msra.mxu1 %v1738_v12  ;;  %v1729_v27 = vld [vmem:[%s10391_s1 + $0x280] sm:$0xff] }
  0x3b   : > { %v462_v26 = vmul.f32 0.5, %v398_v4  ;;  %2199 = vmatpush.msra.mxu2 %v1739_v15  ;;  %v1730_v29 = vld [vmem:[%s10391_s1 + $0x288] sm:$0xff]  ;;  %v5926_v31 = vadd.f32 -1.0, %v273_v9  ;;  %v5925_v32 = vadd.f32 -1.0, %v272_v10  ;;  %v212_v36 = vld [vmem:[%s6023_s18 + $0x130] sm:$0xff]  ;;  %v1732_v38 = vld [vmem:[%s10391_s1 + $0x298] sm:$0xff]  ;;  %2408 = vmatpush.msra.mxu3 %v1740_v24 }
  0x3c   : > { %1194 = vperm.xlu2 %5969, %v6082_v42   ;;  %1190 = vperm.xlu1 %5968, %v6084_v43   ;;  %v461_v30 = vmul.f32 0.5, %v397_v8  ;;  %v1731_v37 = vld [vmem:[%s10391_s1 + $0x290] sm:$0xff]  ;;  %v460_v39 = vmul.f32 0.5, %v396_v17  ;;  %v5924_v40 = vadd.f32 -1.0, %v271_v18  ;;  %v211_v41 = vld [vmem:[%s6023_s18 + $0x128] sm:$0xff]  ;;  %v1721_v44 = vld [vmem:[%s10391_s1 + $0x240] sm:$0xff] }
  0x3d   : > { %1186 = vperm.xlu0 %5967, %v6086_v46   ;;  %v1722_v45 = vld [vmem:[%s10391_s1 + $0x248] sm:$0xff]  ;;  %v210_v47 = vld [vmem:[%s6023_s18 + $0x120] sm:$0xff]  ;;  %1782 = vmatpush.msra.mxu0 %v1729_v27  ;;  %v1723_v53 = vld [vmem:[%s10391_s1 + $0x250] sm:$0xff]  ;;  %v6238_v56 = vmul.f32 127.0, %v462_v26  ;;  %v276_v57 = vmul.f32 2.0, %v212_v36  ;;  %v401_v4 = vadd.f32 1.0, %v5926_v31 }
  0x3e   : > { %1991 = vmatpush.msra.mxu1 %v1730_v29  ;;  %v1724_v54 = vld [vmem:[%s10391_s1 + $0x258] sm:$0xff]  ;;  %2200 = vmatpush.msra.mxu2 %v1731_v37  ;;  %v1713_v58 = vld [vmem:[%s10391_s1 + $0x200] sm:$0xff]  ;;  %v1714_v59 = vld [vmem:[%s10391_s1 + $0x208] sm:$0xff]  ;;  %v6246_v60 = vmul.f32 127.0, %v461_v30  ;;  %v400_v5 = vadd.f32 1.0, %v5925_v32  ;;  %v275_v8 = vmul.f32 2.0, %v211_v41 }
  0x3f   : > { %2409 = vmatpush.msra.mxu3 %v1732_v38  ;;  %1783 = vmatpush.msra.mxu0 %v1721_v44  ;;  %v1715_v9 = vld [vmem:[%s10391_s1 + $0x210] sm:$0xff]  ;;  %v1716_v10 = vld [vmem:[%s10391_s1 + $0x218] sm:$0xff]  ;;  %v6254_v11 = vmul.f32 127.0, %v460_v39  ;;  %v399_v12 = vadd.f32 1.0, %v5924_v40  ;;  %v274_v15 = vmul.f32 2.0, %v210_v47  ;;  %v1705_v17 = vld [vmem:[%s10391_s1 + $0x1c0] sm:$0xff] }
  0x40   : > { %1992 = vmatpush.msra.mxu1 %v1722_v45  ;;  %2201 = vmatpush.msra.mxu2 %v1723_v53  ;;  %v5929_v18 = vadd.f32 -1.0, %v276_v57  ;;  %v1706_v24 = vld [vmem:[%s10391_s1 + $0x1c8] sm:$0xff]  ;;  %v1707_v26 = vld [vmem:[%s10391_s1 + $0x1d0] sm:$0xff]  ;;  %v465_v27 = vmul.f32 0.5, %v401_v4  ;;  %v464_v29 = vmul.f32 0.5, %v400_v5  ;;  %v5928_v30 = vadd.f32 -1.0, %v275_v8 }
  0x41   : > { %2410 = vmatpush.msra.mxu3 %v1724_v54  ;;  %1784 = vmatpush.msra.mxu0 %v1713_v58  ;;  %v215_v31 = vld [vmem:[%s6023_s18 + $0x148] sm:$0xff]  ;;  %v1708_v32 = vld [vmem:[%s10391_s1 + $0x1d8] sm:$0xff]  ;;  %v1697_v36 = vld [vmem:[%s10391_s1 + $0x180] sm:$0xff]  ;;  %v463_v37 = vmul.f32 0.5, %v399_v12  ;;  %v5927_v38 = vadd.f32 -1.0, %v274_v15 }
  0x42   : > { %1993 = vmatpush.msra.mxu1 %v1714_v59  ;;  %2202 = vmatpush.msra.mxu2 %v1715_v9  ;;  %v214_v39 = vld [vmem:[%s6023_s18 + $0x140] sm:$0xff]  ;;  %v1698_v40 = vld [vmem:[%s10391_s1 + $0x188] sm:$0xff]  ;;  %v1699_v41 = vld [vmem:[%s10391_s1 + $0x190] sm:$0xff]  ;;  %v404_v53 = vadd.f32 1.0, %v5929_v18  ;;  %v279_v54 = vmul.f32 2.0, %v215_v31  ;;  %v6295_v59 = vmul.f32 127.0, %v465_v27 }
  0x43   : > { %2411 = vmatpush.msra.mxu3 %v1716_v10  ;;  %1785 = vmatpush.msra.mxu0 %v1705_v17  ;;  %v213_v44 = vld [vmem:[%s6023_s18 + $0x138] sm:$0xff]  ;;  %v1689_v47 = vld [vmem:[%s10391_s1 + $0x140] sm:$0xff]  ;;  %v1690_v57 = vld [vmem:[%s10391_s1 + $0x148] sm:$0xff]  ;;  %v6297_v4 = vmul.f32 127.0, %v464_v29  ;;  %v403_v5 = vadd.f32 1.0, %v5928_v30  ;;  %v278_v8 = vmul.f32 2.0, %v214_v39 }
  0x44   : > { %1206 = vperm.xlu2 %5969, %v6094_v63   ;;  %1202 = vperm.xlu1 %5968, %v6096_v2   ;;  %v1700_v45 = vld [vmem:[%s10391_s1 + $0x198] sm:$0xff]  ;;  %v1691_v58 = vld [vmem:[%s10391_s1 + $0x150] sm:$0xff]  ;;  %v1681_v10 = vld [vmem:[%s10391_s1 + $0x100] sm:$0xff]  ;;  %v6305_v12 = vmul.f32 127.0, %v463_v37  ;;  %v402_v15 = vadd.f32 1.0, %v5927_v38  ;;  %v277_v17 = vmul.f32 2.0, %v213_v44 }
  0x45   : > { %1198 = vperm.xlu0 %5967, %v6098_v6   ;;  %1994 = vmatpush.msra.mxu1 %v1706_v24  ;;  %v1692_v9 = vld [vmem:[%s10391_s1 + $0x158] sm:$0xff]  ;;  %v1682_v18 = vld [vmem:[%s10391_s1 + $0x108] sm:$0xff]  ;;  %v468_v24 = vmul.f32 0.5, %v404_v53  ;;  %v1683_v27 = vld [vmem:[%s10391_s1 + $0x110] sm:$0xff]  ;;  %v467_v30 = vmul.f32 0.5, %v403_v5  ;;  %v5931_v31 = vadd.f32 -1.0, %v278_v8 }
  0x46   : > { %2203 = vmatpush.msra.mxu2 %v1707_v26  ;;  %2412 = vmatpush.msra.mxu3 %v1708_v32  ;;  %v5932_v26 = vadd.f32 -1.0, %v279_v54  ;;  %v1684_v29 = vld [vmem:[%s10391_s1 + $0x118] sm:$0xff]  ;;  %v218_v32 = vld [vmem:[%s6023_s18 + $0x160] sm:$0xff]  ;;  %v1674_v37 = vld [vmem:[%s10391_s1 + $0xc8] sm:$0xff]  ;;  %v466_v38 = vmul.f32 0.5, %v402_v15  ;;  %v5930_v39 = vadd.f32 -1.0, %v277_v17 }
  0x47   : > { %1786 = vmatpush.msra.mxu0 %v1697_v36  ;;  %1995 = vmatpush.msra.mxu1 %v1698_v40  ;;  %v1673_v36 = vld [vmem:[%s10391_s1 + $0xc0] sm:$0xff]  ;;  %v217_v40 = vld [vmem:[%s6023_s18 + $0x158] sm:$0xff]  ;;  %v1666_v53 = vld [vmem:[%s10391_s1 + $0x88] sm:$0xff]  ;;  %v6340_v54 = vmul.f32 127.0, %v468_v24  ;;  %v6348_v8 = vmul.f32 127.0, %v467_v30 }
  0x48   : > { %2204 = vmatpush.msra.mxu2 %v1699_v41  ;;  %2413 = vmatpush.msra.mxu3 %v1700_v45  ;;  %v1675_v41 = vld [vmem:[%s10391_s1 + $0xd0] sm:$0xff]  ;;  %v1676_v44 = vld [vmem:[%s10391_s1 + $0xd8] sm:$0xff]  ;;  %v281_v15 = vmul.f32 2.0, %v217_v40  ;;  %v1657_v17 = vld [vmem:[%s10391_s1 + $0x40] sm:$0xff]  ;;  %v6356_v24 = vmul.f32 127.0, %v466_v38 }
  0x49   : > { %1787 = vmatpush.msra.mxu0 %v1689_v47  ;;  %1996 = vmatpush.msra.mxu1 %v1690_v57  ;;  %v216_v45 = vld [vmem:[%s6023_s18 + $0x150] sm:$0xff]  ;;  %v1665_v47 = vld [vmem:[%s10391_s1 + $0x80] sm:$0xff]  ;;  %10518 = vst [vmem:[#allocation2_spill] sm:$0xff] %v6340_v54  ;;  %v407_v57 = vadd.f32 1.0, %v5932_v26  ;;  %v1668_v5 = vld [vmem:[%s10391_s1 + $0x98] sm:$0xff]  ;;  %v405_v26 = vadd.f32 1.0, %v5930_v39 }
  0x4a   : > { %2205 = vmatpush.msra.mxu2 %v1691_v58  ;;  %2414 = vmatpush.msra.mxu3 %v1692_v9  ;;  %v1667_v58 = vld [vmem:[%s10391_s1 + $0x90] sm:$0xff]  ;;  %v406_v9 = vadd.f32 1.0, %v5931_v31  ;;  %v1660_v31 = vld [vmem:[%s10391_s1 + $0x58] sm:$0xff]  ;;  %v5934_v38 = vadd.f32 -1.0, %v281_v15  ;;  %v1650_v40 = vld [vmem:[%s10391_s1 + $0x8] sm:$0xff] }
  0x4b   : > { %1788 = vmatpush.msra.mxu0 %v1681_v10  ;;  %1997 = vmatpush.msra.mxu1 %v1682_v18  ;;  %v282_v10 = vmul.f32 2.0, %v218_v32  ;;  %v1658_v18 = vld [vmem:[%s10391_s1 + $0x48] sm:$0xff]  ;;  %v471_v30 = vmul.f32 0.5, %v407_v57  ;;  %v1649_v32 = vld [vmem:[%s10391_s1] sm:$0xff]  ;;  %v221_v39 = vld [vmem:[%s6023_s18 + $0x178] sm:$0xff] }
  0x4c   : > { %1218 = vperm.xlu2 %5969, %v6106_v19   ;;  %1214 = vperm.xlu1 %5968, %v6108_v20   ;;  %v1652_v57 = vld [vmem:[%s10391_s1 + $0x18] sm:$0xff]  ;;  %v285_v15 = vmul.f32 2.0, %v221_v39  ;;  %v558_v39 = vlaneseq }
  0x4d   : > { %1210 = vperm.xlu0 %5967, %v6110_v28   ;;  %2206 = vmatpush.msra.mxu2 %v1683_v27  ;;  %v280_v27 = vmul.f32 2.0, %v216_v45 }
  0x4e   : > { %2415 = vmatpush.msra.mxu3 %v1684_v29  ;;  %1789 = vmatpush.msra.mxu0 %v1673_v36  ;;  %v1659_v29 = vld [vmem:[%s10391_s1 + $0x50] sm:$0xff]  ;;  %v470_v36 = vmul.f32 0.5, %v406_v9  ;;  %v1776_v9 = vld [vmem:[%s10391_s1 + $0x3f8] sm:$0xff] }
  0x4f   : > { %1998 = vmatpush.msra.mxu1 %v1674_v37  ;;  %2207 = vmatpush.msra.mxu2 %v1675_v41  ;;  %v5935_v37 = vadd.f32 -1.0, %v282_v10  ;;  %v1651_v41 = vld [vmem:[%s10391_s1 + $0x10] sm:$0xff]  ;;  %v5933_v45 = vadd.f32 -1.0, %v280_v27  ;;  %v6391_v10 = vmul.f32 127.0, %v471_v30  ;;  %v409_v27 = vadd.f32 1.0, %v5934_v38 }
  0x50   : > { %2416 = vmatpush.msra.mxu3 %v1676_v44  ;;  %1790 = vmatpush.msra.mxu0 %v1665_v47  ;;  %v469_v44 = vmul.f32 0.5, %v405_v26  ;;  %v220_v47 = vld [vmem:[%s6023_s18 + $0x170] sm:$0xff] }
  0x51   : > { %1999 = vmatpush.msra.mxu1 %v1666_v53  ;;  %2208 = vmatpush.msra.mxu2 %v1667_v58  ;;  %v219_v53 = vld [vmem:[%s6023_s18 + $0x168] sm:$0xff]  ;;  %v1775_v58 = vld [vmem:[%s10391_s1 + $0x3f0] sm:$0xff]  ;;  %10519 = vst [vmem:[#allocation3_spill] sm:$0xff] %v6391_v10  ;;  %v410_v26 = vadd.f32 1.0, %v5935_v37  ;;  %v473_v37 = vmul.f32 0.5, %v409_v27 }
  0x52   : > { %2417 = vmatpush.msra.mxu3 %v1668_v5  ;;  %1791 = vmatpush.msra.mxu0 %v1657_v17  ;;  %v1773_v5 = vld [vmem:[%s10391_s1 + $0x3e0] sm:$0xff]  ;;  %v1774_v17 = vld [vmem:[%s10391_s1 + $0x3e8] sm:$0xff]  ;;  %v283_v30 = vmul.f32 2.0, %v219_v53 }
  0x53   : > { %2000 = vmatpush.msra.mxu1 %v1658_v18  ;;  %2209 = vmatpush.msra.mxu2 %v1659_v29  ;;  %v6396_v18 = vmul.f32 127.0, %v470_v36  ;;  %v284_v29 = vmul.f32 2.0, %v220_v47  ;;  %v474_v36 = vmul.f32 0.5, %v410_v26  ;;  %v223_v47 = vld [vmem:[%s6023_s18 + $0x188] sm:$0xff]  ;;  %v222_v53 = vld [vmem:[%s6023_s18 + $0x180] sm:$0xff] }
  0x54   : > { %1230 = vperm.xlu2 %5969, %v6118_v50   ;;  %1226 = vperm.xlu1 %5968, %v6120_v51   ;;  %v287_v26 = vmul.f32 2.0, %v223_v47  ;;  %v286_v0 = vmul.f32 2.0, %v222_v53 }
  0x55   : > { %1222 = vperm.xlu0 %5967, %v6122_v55   ;;  %2418 = vmatpush.msra.mxu3 %v1660_v31  ;;  %10520 = vst [vmem:[#allocation4_spill] sm:$0xff] %v6396_v18  ;;  %v6398_v31 = vmul.f32 127.0, %v469_v44  ;;  %v5937_v38 = vadd.f32 -1.0, %v284_v29 }
  0x56   : > { %1792 = vmatpush.msra.mxu0 %v1649_v32  ;;  %2001 = vmatpush.msra.mxu1 %v1650_v40  ;;  %v408_v32 = vadd.f32 1.0, %v5933_v45  ;;  %v5938_v40 = vadd.f32 -1.0, %v285_v15  ;;  %v5936_v45 = vadd.f32 -1.0, %v283_v30  ;;  %v6408_v15 = vmul.f32 127.0, %v473_v37 }
  0x57   : > { %2210 = vmatpush.msra.mxu2 %v1651_v41  ;;  %2419 = vmatpush.msra.mxu3 %v1652_v57  ;;  %v224_v41 = vld [vmem:[%s6023_s18 + $0x190] sm:$0xff]  ;;  %v559_v57 = vand.u32 127, %v558_v39 }
  0x58   : > { %2613 = vmatpush.msrb.mxu0 %v1773_v5  ;;  %2822 = vmatpush.msrb.mxu1 %v1774_v17  ;;  %v472_v44 = vmul.f32 0.5, %v408_v32  ;;  %v288_v5 = vmul.f32 2.0, %v224_v41  ;;  %10522 = vst [vmem:[#allocation6_spill] sm:$0xff] %v6408_v15  ;;  %v412_v17 = vadd.f32 1.0, %v5937_v38  ;;  %v411_v29 = vadd.f32 1.0, %v5936_v45  ;;  %v226_v41 = vld [vmem:[%s6023_s18 + $0x1a0] sm:$0xff] }
  0x59   : > { %3031 = vmatpush.msrb.mxu2 %v1775_v58  ;;  %3240 = vmatpush.msrb.mxu3 %v1776_v9  ;;  %v413_v58 = vadd.f32 1.0, %v5938_v40  ;;  %v6406_v9 = vmul.f32 127.0, %v474_v36  ;;  %v5940_v40 = vadd.f32 -1.0, %v287_v26  ;;  %v227_v36 = vld [vmem:[%s6023_s18 + $0x1a8] sm:$0xff]  ;;  %v5939_v38 = vadd.f32 -1.0, %v286_v0 }
  0x5a   : > { %v6410_v27 = vmul.f32 127.0, %v472_v44  ;;  %v5941_v30 = vadd.f32 -1.0, %v288_v5  ;;  %v476_v39 = vmul.f32 0.5, %v412_v17  ;;  %v475_v37 = vmul.f32 0.5, %v411_v29  ;;  %v225_v44 = vld [vmem:[%s6023_s18 + $0x198] sm:$0xff] }
  0x5b   : > { %10521 = vst [vmem:[#allocation5_spill] sm:$0xff] %v6406_v9  ;;  %v477_v32 = vmul.f32 0.5, %v413_v58  ;;  %v291_v58 = vmul.f32 2.0, %v227_v36  ;;  %v415_v17 = vadd.f32 1.0, %v5940_v40  ;;  %v290_v26 = vmul.f32 2.0, %v226_v41 }
  0x5c   : > { %1242 = vperm.xlu2 %5969, %v6130_v13   ;;  %1238 = vperm.xlu1 %5968, %v6132_v14   ;;  %10523 = vst [vmem:[#allocation7_spill] sm:$0xff] %v6410_v27  ;;  %v416_v53 = vadd.f32 1.0, %v5941_v30  ;;  %v6423_v5 = vmul.f32 127.0, %v476_v39  ;;  %v289_v0 = vmul.f32 2.0, %v225_v44  ;;  %v229_v39 = vld [vmem:[%s6023_s18 + $0x1b8] sm:$0xff] }
  0x5d   : > { %1234 = vperm.xlu0 %5967, %v6143_v23   ;;  %v6420_v45 = vmul.f32 127.0, %v477_v32  ;;  %v479_v30 = vmul.f32 0.5, %v415_v17  ;;  %v5943_v36 = vadd.f32 -1.0, %v290_v26 }
  0x5e   : > { %10525 = vst [vmem:[#allocation9_spill] sm:$0xff] %v6423_v5 }
  0x5f   : > { %10524 = vst [vmem:[#allocation8_spill] sm:$0xff] %v6420_v45  ;;  %v418_v26 = vadd.f32 1.0, %v5943_v36 }
  0x64   : > { %1254 = vperm.xlu2 %5969, %v6187_v61   ;;  %1250 = vperm.xlu1 %5968, %v6189_v62  }
  0x65   : > { %1246 = vperm.xlu0 %5967, %v6203_v16  }
  0x6c   : > { %1266 = vperm.xlu2 %5969, %v6238_v56   ;;  %1262 = vperm.xlu1 %5968, %v6246_v60  }
  0x6d   : > { %1258 = vperm.xlu0 %5967, %v6254_v11  }
  0x74   : > { %1278 = vperm.xlu2 %5969, %v6295_v59   ;;  %1274 = vperm.xlu1 %5968, %v6297_v4  }
  0x75   : > { %1270 = vperm.xlu0 %5967, %v6305_v12  }
  0x7c   : > { %1290 = vperm.xlu2 %5969, %v6340_v54   ;;  %1286 = vperm.xlu1 %5968, %v6348_v8   ;;  %v232_v54 = vld [vmem:[%s6023_s18 + $0x1d0] sm:$0xff] }
  0x7d   : > { %1282 = vperm.xlu0 %5967, %v6356_v24  }
  0x84   : > { %1302 = vperm.xlu2 %5969, %v6391_v10   ;;  %1298 = vperm.xlu1 %5968, %v6396_v18   ;;  %v6412_v10 = vcvt.s32.f32 %v559_v57  ;;  %v5944_v18 = vadd.f32 -1.0, %v291_v58 }
  0x85   : > { %1294 = vperm.xlu0 %5967, %v6398_v31  }
  0x86   : > { %v419_v58 = vadd.f32 1.0, %v5944_v18 }
  0x8c   : > { %1314 = vperm.xlu2 %5969, %v6406_v9   ;;  %1310 = vperm.xlu1 %5968, %v6408_v15   ;;  %v6425_v9 = vmul.f32 127.0, %v475_v37  ;;  %v414_v15 = vadd.f32 1.0, %v5939_v38  ;;  %v5942_v37 = vadd.f32 -1.0, %v289_v0  ;;  %v228_v38 = vld [vmem:[%s6023_s18 + $0x1b0] sm:$0xff] }
  0x8d   : > { %1306 = vperm.xlu0 %5967, %v6410_v27   ;;  %v480_v27 = vmul.f32 0.5, %v416_v53  ;;  %v292_v0 = vmul.f32 2.0, %v228_v38  ;;  %v231_v38 = vld [vmem:[%s6023_s18 + $0x1c8] sm:$0xff] }
  0x8e   : > { %10526 = vst [vmem:[#allocation10_spill] sm:$0xff] %v6425_v9  ;;  %v478_v40 = vmul.f32 0.5, %v414_v15  ;;  %v1147_v44 = vpop.permute.xlu1 %1146  ;;  %v6441_v15 = vmul.f32 127.0, %v479_v30  ;;  %v417_v18 = vadd.f32 1.0, %v5942_v37  ;;  %v482_v30 = vmul.f32 0.5, %v418_v26  ;;  %v1766_v26 = vld [vmem:[%s10391_s1 + $0x3a8] sm:$0xff] }
  0x8f   : > { %v1139_v47 = vpop.permute.xlu0 %1138  ;;  %v6435_v53 = vmul.f32 127.0, %v480_v27  ;;  %2823 = vmatpush.msrb.mxu1 %v1766_v26 }
  0x90   : > { %v1393_v57 = vsub.f32 %v6412_v10, %v1139_v47  ;;  %v230_v47 = vld [vmem:[%s6023_s18 + $0x1c0] sm:$0xff]  ;;  %10529 = vst [vmem:[#allocation13_spill] sm:$0xff] %v6441_v15  ;;  %v6445_v27 = vmul.f32 127.0, %v478_v40  ;;  %v481_v36 = vmul.f32 0.5, %v417_v18  ;;  %v5945_v40 = vadd.f32 -1.0, %v292_v0 }
  0x91   : > { %10528 = vst [vmem:[#allocation12_spill] sm:$0xff] %v6435_v53  ;;  %v6471_v0 = vmul.f32 127.0, %v482_v30 }
  0x92   : > { %v1457_v29 = vand.u32 2147483647, %v1393_v57  ;;  %10530 = vst [vmem:[#allocation14_spill] sm:$0xff] %v6445_v27 }
  0x93   : > { %10533 = vst [vmem:[#allocation17_spill] sm:$0xff] %v6471_v0 }
  0x94   : > { %v1521_v32 = vsub.f32 1.0, %v1457_v29  ;;  %1326 = vperm.xlu2 %5969, %v6420_v45   ;;  %1322 = vperm.xlu1 %5968, %v6423_v5   ;;  %v294_v29 = vmul.f32 2.0, %v230_v47  ;;  %v293_v45 = vmul.f32 2.0, %v229_v39  ;;  %v1395_v5 = vsub.f32 %v6412_v10, %v1147_v44 }
  0x95   : > { %1318 = vperm.xlu0 %5967, %v6425_v9   ;;  %v483_v47 = vmul.f32 0.5, %v419_v58 }
  0x96   : > { %v6432_v41 = vmax.f32 %v1521_v32, 0.0  ;;  %v5947_v39 = vadd.f32 -1.0, %v294_v29  ;;  %v5946_v44 = vadd.f32 -1.0, %v293_v45  ;;  %v1767_v45 = vld [vmem:[%s10391_s1 + $0x3b0] sm:$0xff] }
  0x97   : > { %v1143_v57 = vpop.permute.xlu0 %1142  ;;  %v6461_v58 = vmul.f32 127.0, %v483_v47  ;;  %3032 = vmatpush.msrb.mxu2 %v1767_v45  ;;  %v296_v47 = vmul.f32 2.0, %v232_v54  ;;  %v420_v45 = vadd.f32 1.0, %v5945_v40 }
  0x98   : > { %10527 = vst [vmem:[#allocation11_spill] sm:$0xff] %v6432_v41  ;;  %v1394_v17 = vsub.f32 %v6412_v10, %v1143_v57  ;;  %1793 = vmatmul.f32.vlgmr.msra.gmra.mxu0 %v6432_v41  ;;  %2002 = vmatmul.f32.vlgmr.msra.gmra.mxu1 %v6432_v41  ;;  %v1459_v57 = vand.u32 2147483647, %v1395_v5  ;;  %v1765_v5 = vld [vmem:[%s10391_s1 + $0x3a0] sm:$0xff]  ;;  %v422_v29 = vadd.f32 1.0, %v5947_v39  ;;  %v1151_v39 = vpop.permute.xlu1 %1150 }
  0x99   : > { %2211 = vmatmul.f32.vlgmr.msra.gmra.mxu2 %v6432_v41  ;;  %2420 = vmatmul.f32.vlgmr.msra.gmra.mxu3 %v6432_v41  ;;  %v233_v41 = vld [vmem:[%s6023_s18 + $0x1d8] sm:$0xff]  ;;  %10532 = vst [vmem:[#allocation16_spill] sm:$0xff] %v6461_v58  ;;  %v484_v40 = vmul.f32 0.5, %v420_v45 }
  0x9a   : > { %v1458_v32 = vand.u32 2147483647, %v1394_v17  ;;  %v421_v17 = vadd.f32 1.0, %v5946_v44  ;;  %2614 = vmatpush.msrb.mxu0 %v1765_v5  ;;  %v1523_v18 = vsub.f32 1.0, %v1459_v57  ;;  %v6475_v44 = vmul.f32 127.0, %v481_v36 }
  0x9b   : > { %v295_v5 = vmul.f32 2.0, %v231_v38  ;;  %v1396_v57 = vsub.f32 %v6412_v10, %v1151_v39  ;;  %v486_v30 = vmul.f32 0.5, %v422_v29  ;;  %v5949_v36 = vadd.f32 -1.0, %v296_v47  ;;  %v236_v38 = vld [vmem:[%s6023_s18 + $0x1f0] sm:$0xff]  ;;  %v1155_v39 = vpop.permute.xlu2 %1154 }
  0x9c   : > { %v1522_v9 = vsub.f32 1.0, %v1458_v32  ;;  %1338 = vperm.xlu2 %5969, %v6435_v53   ;;  %1334 = vperm.xlu1 %5968, %v6441_v15   ;;  %v297_v32 = vmul.f32 2.0, %v233_v41  ;;  %10534 = vst [vmem:[#allocation18_spill] sm:$0xff] %v6475_v44  ;;  %v485_v53 = vmul.f32 0.5, %v421_v17  ;;  %v6478_v41 = vmax.f32 %v1523_v18, 0.0  ;;  %v235_v15 = vld [vmem:[%s6023_s18 + $0x1e8] sm:$0xff] }
  0x9d   : > { %1330 = vperm.xlu0 %5967, %v6445_v27   ;;  %v234_v27 = vld [vmem:[%s6023_s18 + $0x1e0] sm:$0xff]  ;;  %v1397_v29 = vsub.f32 %v6412_v10, %v1155_v39  ;;  %v6487_v17 = vmul.f32 127.0, %v486_v30  ;;  %v300_v47 = vmul.f32 2.0, %v236_v38  ;;  %v299_v45 = vmul.f32 2.0, %v235_v15 }
  0x9e   : > { %v6452_v37 = vmax.f32 %v1522_v9, 0.0  ;;  %v1768_v9 = vld [vmem:[%s10391_s1 + $0x3b8] sm:$0xff]  ;;  %10535 = vst [vmem:[#allocation19_spill] sm:$0xff] %v6478_v41  ;;  %v5950_v54 = vadd.f32 -1.0, %v297_v32  ;;  %v6489_v26 = vmul.f32 127.0, %v485_v53  ;;  %v424_v32 = vadd.f32 1.0, %v5949_v36 }
  0x9f   : > { %3241 = vmatpush.msrb.mxu3 %v1768_v9  ;;  %v1460_v9 = vand.u32 2147483647, %v1396_v57  ;;  %v298_v30 = vmul.f32 2.0, %v234_v27  ;;  %v1461_v53 = vand.u32 2147483647, %v1397_v29  ;;  %v5953_v36 = vadd.f32 -1.0, %v300_v47 }
  0xa0   : > { %10531 = vst [vmem:[#allocation15_spill] sm:$0xff] %v6452_v37  ;;  %1796 = vmatmul.f32.gmra.mxu0 %v6452_v37  ;;  %2005 = vmatmul.f32.gmra.mxu1 %v6452_v37  ;;  %v425_v18 = vadd.f32 1.0, %v5950_v54  ;;  %v488_v54 = vmul.f32 0.5, %v424_v32  ;;  %v5952_v38 = vadd.f32 -1.0, %v299_v45 }
  0xa1   : > { %2214 = vmatmul.f32.gmra.mxu2 %v6452_v37  ;;  %2423 = vmatmul.f32.gmra.mxu3 %v6452_v37  ;;  %v5948_v37 = vadd.f32 -1.0, %v295_v5  ;;  %v6495_v5 = vmul.f32 127.0, %v484_v40  ;;  %v1524_v39 = vsub.f32 1.0, %v1460_v9  ;;  %v237_v40 = vld [vmem:[%s6023_s18 + $0x1f8] sm:$0xff]  ;;  %v428_v9 = vadd.f32 1.0, %v5953_v36 }
  0xa2   : > { %v427_v29 = vadd.f32 1.0, %v5952_v38  ;;  %v301_v45 = vmul.f32 2.0, %v237_v40  ;;  %v1163_v38 = vpop.permute.xlu0 %1162 }
  0xa3   : > { %v423_v57 = vadd.f32 1.0, %v5948_v37  ;;  %v6507_v37 = vmul.f32 127.0, %v488_v54 }
  0xa4   : > { %1350 = vperm.xlu2 %5969, %v6461_v58   ;;  %1346 = vperm.xlu1 %5968, %v6471_v0   ;;  %v489_v58 = vmul.f32 0.5, %v425_v18  ;;  %v5951_v0 = vadd.f32 -1.0, %v298_v30  ;;  %v1159_v18 = vpop.permute.xlu2 %1158  ;;  %v5954_v54 = vadd.f32 -1.0, %v301_v45 }
  0xa5   : > { %1342 = vperm.xlu0 %5967, %v6475_v44   ;;  %v487_v15 = vmul.f32 0.5, %v423_v57  ;;  %v1525_v44 = vsub.f32 1.0, %v1461_v53  ;;  %v1398_v57 = vsub.f32 %v6412_v10, %v1159_v18 }
  0xa6   : > { %v6505_v27 = vmul.f32 127.0, %v489_v58  ;;  %v426_v47 = vadd.f32 1.0, %v5951_v0  ;;  %v492_v58 = vmul.f32 0.5, %v428_v9  ;;  %v429_v40 = vadd.f32 1.0, %v5954_v54  ;;  %v1758_v54 = vld [vmem:[%s10391_s1 + $0x368] sm:$0xff] }
  0xa7   : > { %v6511_v32 = vmul.f32 127.0, %v487_v15  ;;  %v6514_v30 = vmax.f32 %v1525_v44, 0.0  ;;  %v1462_v36 = vand.u32 2147483647, %v1398_v57  ;;  %v1759_v57 = vld [vmem:[%s10391_s1 + $0x370] sm:$0xff]  ;;  %2824 = vmatpush.msrb.mxu1 %v1758_v54 }
  0xa8   : > { %1799 = vmatmul.f32.gmra.mxu0 %v6478_v41  ;;  %2008 = vmatmul.f32.gmra.mxu1 %v6478_v41  ;;  %v490_v53 = vmul.f32 0.5, %v426_v47  ;;  %v6521_v0 = vmul.f32 127.0, %v492_v58  ;;  %v493_v18 = vmul.f32 0.5, %v429_v40  ;;  %v1757_v58 = vld [vmem:[%s10391_s1 + $0x360] sm:$0xff] }
  0xa9   : > { %2217 = vmatmul.f32.gmra.mxu2 %v6478_v41  ;;  %2426 = vmatmul.f32.gmra.mxu3 %v6478_v41  ;;  %v6500_v41 = vmax.f32 %v1524_v39, 0.0  ;;  %v491_v39 = vmul.f32 0.5, %v427_v29  ;;  %v1526_v9 = vsub.f32 1.0, %v1462_v36  ;;  %v1399_v29 = vsub.f32 %v6412_v10, %v1163_v38 }
  0xaa   : > { %v6527_v15 = vmul.f32 127.0, %v490_v53  ;;  %3033 = vmatpush.msrb.mxu2 %v1759_v57  ;;  %2615 = vmatpush.msrb.mxu0 %v1757_v58  ;;  %v1760_v53 = vld [vmem:[%s10391_s1 + $0x378] sm:$0xff]  ;;  %v6551_v36 = vmul.f32 127.0, %v493_v18 }
  0xab   : > { %v6523_v44 = vmul.f32 127.0, %v491_v39  ;;  %v6533_v47 = vmax.f32 %v1526_v9, 0.0  ;;  %v1463_v45 = vand.u32 2147483647, %v1399_v29  ;;  %v1167_v39 = vpop.permute.xlu1 %1166  ;;  %3242 = vmatpush.msrb.mxu3 %v1760_v53  ;;  %v5983_v9 = vmov 0  }
  0xac   : > { %1362 = vperm.xlu2 %5969, %v6487_v17   ;;  %1358 = vperm.xlu1 %5968, %v6489_v26   ;;  %v1400_v38 = vsub.f32 %v6412_v10, %v1167_v39  ;;  %v1171_v18 = vpop.permute.xlu2 %1170 }
  0xad   : > { %1354 = vperm.xlu0 %5967, %v6495_v5   ;;  %v1527_v40 = vsub.f32 1.0, %v1463_v45  ;;  %v1401_v45 = vsub.f32 %v6412_v10, %v1171_v18 }
  0xae   : > { %v1464_v29 = vand.u32 2147483647, %v1400_v38 }
  0xaf   : > { %v6556_v57 = vmax.f32 %v1527_v40, 0.0 }
  0xb0   : > { %1802 = vmatmul.f32.gmra.mxu0 %v6500_v41  ;;  %2011 = vmatmul.f32.gmra.mxu1 %v6500_v41  ;;  %v1528_v58 = vsub.f32 1.0, %v1464_v29 }
  0xb1   : > { %2220 = vmatmul.f32.gmra.mxu2 %v6500_v41  ;;  %2429 = vmatmul.f32.gmra.mxu3 %v6500_v41 }
  0xb2   : > { %v6565_v39 = vmax.f32 %v1528_v58, 0.0 }
  0xb4   : > { %1374 = vperm.xlu2 %5969, %v6505_v27   ;;  %1370 = vperm.xlu1 %5968, %v6507_v37  }
  0xb5   : > { %1366 = vperm.xlu0 %5967, %v6511_v32  }
  0xb8   : > { %1805 = vmatmul.f32.gmra.mxu0 %v6514_v30  ;;  %2014 = vmatmul.f32.gmra.mxu1 %v6514_v30 }
  0xb9   : > { %2223 = vmatmul.f32.gmra.mxu2 %v6514_v30  ;;  %2432 = vmatmul.f32.gmra.mxu3 %v6514_v30 }
  0xbc   : > { %1386 = vperm.xlu2 %5969, %v6521_v0   ;;  %1382 = vperm.xlu1 %5968, %v6523_v44  }
  0xbd   : > { %1378 = vperm.xlu0 %5967, %v6527_v15  }
  0xc0   : > { %1808 = vmatmul.f32.gmra.mxu0 %v6533_v47  ;;  %2017 = vmatmul.f32.gmra.mxu1 %v6533_v47 }
  0xc1   : > { %2226 = vmatmul.f32.gmra.mxu2 %v6533_v47  ;;  %2435 = vmatmul.f32.gmra.mxu3 %v6533_v47 }
  0xc4   : > { %5971 = vset.pattern.permute.xlu2 %v5983_v9  ;;  %5970 = vset.pattern.permute.xlu1 %v5983_v9 }
  0xc5   : > { %1390 = vperm.xlu0 %5967, %v6551_v36   ;;  %568 = vperm.xlu2 %5971, %v6050_v52   ;;  %v1465_v52 = vand.u32 2147483647, %v1401_v45 }
  0xc6   : > { %563 = vperm.xlu1 %5970, %v6038_v35   ;;  %v1175_v35 = vpop.permute.xlu0 %1174 }
  0xc7   : > { %v1529_v53 = vsub.f32 1.0, %v1465_v52  ;;  %v1402_v54 = vsub.f32 %v6412_v10, %v1175_v35 }
  0xc8   : > { %1811 = vmatmul.f32.gmra.mxu0 %v6556_v57  ;;  %2020 = vmatmul.f32.gmra.mxu1 %v6556_v57 }
  0xc9   : > { %2229 = vmatmul.f32.gmra.mxu2 %v6556_v57  ;;  %2438 = vmatmul.f32.gmra.mxu3 %v6556_v57  ;;  %v1466_v38 = vand.u32 2147483647, %v1402_v54 }
  0xcb   : > { %v1530_v40 = vsub.f32 1.0, %v1466_v38 }
  0xcd   : > { %5972 = vset.pattern.permute.xlu0 %v5983_v9  ;;  %583 = vperm.xlu2 %5971, %v6034_v33   ;;  %v6575_v33 = vmax.f32 %v1529_v53, 0.0  ;;  %v6585_v9 = vmax.f32 %v1530_v40, 0.0 }
  0xce   : > { %578 = vperm.xlu1 %5970, %v6048_v49   ;;  %573 = vperm.xlu0 %5972, %v6036_v34   ;;  %v1179_v34 = vpop.permute.xlu1 %1178  ;;  %v1187_v52 = vpop.permute.xlu0 %1186 }
  0xcf   : > { %v1403_v49 = vsub.f32 %v6412_v10, %v1179_v34  ;;  %v1405_v53 = vsub.f32 %v6412_v10, %v1187_v52 }
  0xd0   : > { %1814 = vmatmul.f32.gmra.mxu0 %v6565_v39  ;;  %2023 = vmatmul.f32.gmra.mxu1 %v6565_v39 }
  0xd1   : > { %2232 = vmatmul.f32.gmra.mxu2 %v6565_v39  ;;  %2441 = vmatmul.f32.gmra.mxu3 %v6565_v39  ;;  %v1469_v54 = vand.u32 2147483647, %v1405_v53 }
  0xd3   : > { %v1533_v38 = vsub.f32 1.0, %v1469_v54 }
  0xd5   : > { %593 = vperm.xlu2 %5971, %v6062_v7   ;;  %v1467_v7 = vand.u32 2147483647, %v1403_v49  ;;  %v6627_v34 = vmax.f32 %v1533_v38, 0.0 }
  0xd6   : > { %588 = vperm.xlu1 %5970, %v6046_v48   ;;  %598 = vperm.xlu0 %5972, %v6060_v3   ;;  %v1751_v48 = vld [vmem:[%s10391_s1 + $0x330] sm:$0xff]  ;;  %v1749_v3 = vld [vmem:[%s10391_s1 + $0x320] sm:$0xff] }
  0xd7   : > { %3034 = vmatpush.msrb.mxu2 %v1751_v48  ;;  %2616 = vmatpush.msrb.mxu0 %v1749_v3  ;;  %v1531_v18 = vsub.f32 1.0, %v1467_v7  ;;  %v1199_v7 = vpop.permute.xlu0 %1198  ;;  %v1742_v48 = vld [vmem:[%s10391_s1 + $0x2e8] sm:$0xff] }
  0xd8   : > { %1817 = vmatmul.f32.gmra.mxu0 %v6575_v33  ;;  %2026 = vmatmul.f32.gmra.mxu1 %v6575_v33 }
  0xd9   : > { %2235 = vmatmul.f32.gmra.mxu2 %v6575_v33  ;;  %2444 = vmatmul.f32.gmra.mxu3 %v6575_v33  ;;  %v6607_v58 = vmax.f32 %v1531_v18, 0.0 }
  0xdd   : > { %608 = vperm.xlu2 %5971, %v6074_v25   ;;  %v1752_v25 = vld [vmem:[%s10391_s1 + $0x338] sm:$0xff] }
  0xde   : > { %603 = vperm.xlu1 %5970, %v6058_v1   ;;  %613 = vperm.xlu0 %5972, %v6072_v22   ;;  %v1750_v1 = vld [vmem:[%s10391_s1 + $0x328] sm:$0xff]  ;;  %v1183_v22 = vpop.permute.xlu2 %1182 }
  0xdf   : > { %v1404_v29 = vsub.f32 %v6412_v10, %v1183_v22  ;;  %3243 = vmatpush.msrb.mxu3 %v1752_v25  ;;  %2825 = vmatpush.msrb.mxu1 %v1750_v1 }
  0xe0   : > { %1820 = vmatmul.f32.gmra.mxu0 %v6585_v9  ;;  %2029 = vmatmul.f32.gmra.mxu1 %v6585_v9 }
  0xe1   : > { %2238 = vmatmul.f32.gmra.mxu2 %v6585_v9  ;;  %2447 = vmatmul.f32.gmra.mxu3 %v6585_v9  ;;  %v1468_v45 = vand.u32 2147483647, %v1404_v29 }
  0xe2   : > { %2826 = vmatpush.msrb.mxu1 %v1742_v48 }
  0xe3   : > { %v1532_v35 = vsub.f32 1.0, %v1468_v45 }
  0xe5   : > { %623 = vperm.xlu2 %5971, %v6086_v46   ;;  %v6617_v46 = vmax.f32 %v1532_v35, 0.0  ;;  %v1211_v35 = vpop.permute.xlu0 %1210 }
  0xe6   : > { %618 = vperm.xlu1 %5970, %v6070_v21   ;;  %628 = vperm.xlu0 %5972, %v6084_v43   ;;  %v1191_v21 = vpop.permute.xlu1 %1190  ;;  %v1411_v54 = vsub.f32 %v6412_v10, %v1211_v35 }
  0xe7   : > { %v1406_v43 = vsub.f32 %v6412_v10, %v1191_v21 }
  0xe8   : > { %1823 = vmatmul.f32.gmra.mxu0 %v6607_v58  ;;  %2032 = vmatmul.f32.gmra.mxu1 %v6607_v58  ;;  %v1475_v38 = vand.u32 2147483647, %v1411_v54 }
  0xe9   : > { %2241 = vmatmul.f32.gmra.mxu2 %v6607_v58  ;;  %2450 = vmatmul.f32.gmra.mxu3 %v6607_v58 }
  0xed   : > { %638 = vperm.xlu2 %5971, %v6098_v6   ;;  %v1470_v6 = vand.u32 2147483647, %v1406_v43 }
  0xee   : > { %633 = vperm.xlu1 %5970, %v6082_v42   ;;  %643 = vperm.xlu0 %5972, %v6096_v2   ;;  %v1195_v42 = vpop.permute.xlu2 %1194  ;;  %v1203_v1 = vpop.permute.xlu1 %1202 }
  0xef   : > { %v1407_v2 = vsub.f32 %v6412_v10, %v1195_v42  ;;  %v1534_v49 = vsub.f32 1.0, %v1470_v6  ;;  %v1409_v22 = vsub.f32 %v6412_v10, %v1203_v1  ;;  %v1735_v6 = vld [vmem:[%s10391_s1 + $0x2b0] sm:$0xff] }
  0xf0   : > { %1826 = vmatmul.f32.gmra.mxu0 %v6617_v46  ;;  %2035 = vmatmul.f32.gmra.mxu1 %v6617_v46 }
  0xf1   : > { %2244 = vmatmul.f32.gmra.mxu2 %v6617_v46  ;;  %2453 = vmatmul.f32.gmra.mxu3 %v6617_v46  ;;  %v6637_v40 = vmax.f32 %v1534_v49, 0.0  ;;  %v1539_v49 = vsub.f32 1.0, %v1475_v38  ;;  %v10556_v38 = vld [vmem:[#allocation7_spill] sm:$0xff] }
  0xf3   : > { %v6731_v48 = vmax.f32 %v1539_v49, 0.0  ;;  %v1725_v49 = vld [vmem:[%s10391_s1 + $0x260] sm:$0xff] }
  0xf5   : > { %653 = vperm.xlu2 %5971, %v6110_v28   ;;  %v1471_v28 = vand.u32 2147483647, %v1407_v2  ;;  %v1733_v2 = vld [vmem:[%s10391_s1 + $0x2a0] sm:$0xff] }
  0xf6   : > { %648 = vperm.xlu1 %5970, %v6094_v63   ;;  %658 = vperm.xlu0 %5972, %v6108_v20   ;;  %v1743_v63 = vld [vmem:[%s10391_s1 + $0x2f0] sm:$0xff]  ;;  %v1741_v20 = vld [vmem:[%s10391_s1 + $0x2e0] sm:$0xff]  ;;  %v1215_v42 = vpop.permute.xlu1 %1214 }
  0xf7   : > { %3035 = vmatpush.msrb.mxu2 %v1743_v63  ;;  %2617 = vmatpush.msrb.mxu0 %v1741_v20 }
  0xf8   : > { %1829 = vmatmul.f32.gmra.mxu0 %v6627_v34  ;;  %2038 = vmatmul.f32.gmra.mxu1 %v6627_v34 }
  0xf9   : > { %2247 = vmatmul.f32.gmra.mxu2 %v6627_v34  ;;  %2456 = vmatmul.f32.gmra.mxu3 %v6627_v34 }
  0xfa   : > { %3036 = vmatpush.msrb.mxu2 %v1735_v6  ;;  %2618 = vmatpush.msrb.mxu0 %v1733_v2  ;;  %v10557_v2 = vld [vmem:[#allocation3_spill] sm:$0xff] }
  0xfc   : > { %2619 = vmatpush.msrb.mxu0 %v1725_v49 }
  0xfd   : > { %668 = vperm.xlu2 %5971, %v6122_v55   ;;  %v1744_v55 = vld [vmem:[%s10391_s1 + $0x2f8] sm:$0xff] }
  0xfe   : > { %663 = vperm.xlu1 %5970, %v6106_v19   ;;  %673 = vperm.xlu0 %5972, %v6120_v51   ;;  %v1535_v19 = vsub.f32 1.0, %v1471_v28  ;;  %v1408_v51 = vsub.f32 %v6412_v10, %v1199_v7 }
  0xff   : > { %3244 = vmatpush.msrb.mxu3 %v1744_v55 }
 0x100   : > { %1832 = vmatmul.f32.gmra.mxu0 %v6637_v40  ;;  %2041 = vmatmul.f32.gmra.mxu1 %v6637_v40  ;;  %v6659_v3 = vmax.f32 %v1535_v19, 0.0  ;;  %v1472_v25 = vand.u32 2147483647, %v1408_v51 }
 0x101   : > { %2250 = vmatmul.f32.gmra.mxu2 %v6637_v40  ;;  %2459 = vmatmul.f32.gmra.mxu3 %v6637_v40 }
 0x102   : > { %v1536_v29 = vsub.f32 1.0, %v1472_v25 }
 0x104   : > { %v6669_v18 = vmax.f32 %v1536_v29, 0.0 }
 0x105   : > { %683 = vperm.xlu2 %5971, %v6143_v23   ;;  %v1473_v23 = vand.u32 2147483647, %v1409_v22 }
 0x106   : > { %678 = vperm.xlu1 %5970, %v6118_v50   ;;  %688 = vperm.xlu0 %5972, %v6132_v14   ;;  %v1207_v50 = vpop.permute.xlu2 %1206 }
 0x107   : > { %v1410_v14 = vsub.f32 %v6412_v10, %v1207_v50  ;;  %v1537_v45 = vsub.f32 1.0, %v1473_v23  ;;  %v10550_v23 = vld [vmem:[#allocation2_spill] sm:$0xff]  ;;  %v10551_v50 = vld [vmem:[#allocation4_spill] sm:$0xff] }
 0x108   : > { %1835 = vmatmul.f32.gmra.mxu0 %v6659_v3  ;;  %2044 = vmatmul.f32.gmra.mxu1 %v6659_v3 }
 0x109   : > { %2253 = vmatmul.f32.gmra.mxu2 %v6659_v3  ;;  %2462 = vmatmul.f32.gmra.mxu3 %v6659_v3 }
 0x10d   : > { %698 = vperm.xlu2 %5971, %v6203_v16  }
 0x10e   : > { %693 = vperm.xlu1 %5970, %v6130_v13   ;;  %703 = vperm.xlu0 %5972, %v6189_v62   ;;  %v1474_v13 = vand.u32 2147483647, %v1410_v14  ;;  %v6683_v62 = vmax.f32 %v1537_v45, 0.0  ;;  %v1219_v19 = vpop.permute.xlu2 %1218  ;;  %v1223_v14 = vpop.permute.xlu0 %1222 }
 0x10f   : > { %v1413_v51 = vsub.f32 %v6412_v10, %v1219_v19 }
 0x110   : > { %1838 = vmatmul.f32.gmra.mxu0 %v6669_v18  ;;  %2047 = vmatmul.f32.gmra.mxu1 %v6669_v18  ;;  %v1538_v53 = vsub.f32 1.0, %v1474_v13  ;;  %v1414_v13 = vsub.f32 %v6412_v10, %v1223_v14  ;;  %v1726_v14 = vld [vmem:[%s10391_s1 + $0x268] sm:$0xff] }
 0x111   : > { %2256 = vmatmul.f32.gmra.mxu2 %v6669_v18  ;;  %2465 = vmatmul.f32.gmra.mxu3 %v6669_v18 }
 0x115   : > { %v6678_v16 = vpop.f32.mrf.mxu0  ;;  %v6680_v52 = vpop.f32.mrf.mxu1  ;;  %713 = vperm.xlu2 %5971, %v6254_v11  }
 0x116   : > { %10536 = vst [vmem:[#allocation20_spill] sm:$0xff] %v6678_v16  ;;  %708 = vperm.xlu1 %5970, %v6187_v61   ;;  %718 = vperm.xlu0 %5972, %v6246_v60   ;;  %v6701_v60 = vmax.f32 %v1538_v53, 0.0 }
 0x117   : > { %10537 = vst [vmem:[#allocation21_spill] sm:$0xff] %v6680_v52  ;;  %v1662_v52 = vld [vmem:[%s10391_s1 + $0x68] sm:$0xff] }
 0x118   : > { %1841 = vmatmul.f32.gmra.mxu0 %v6683_v62  ;;  %2050 = vmatmul.f32.gmra.mxu1 %v6683_v62 }
 0x119   : > { %2259 = vmatmul.f32.gmra.mxu2 %v6683_v62  ;;  %2468 = vmatmul.f32.gmra.mxu3 %v6683_v62 }
 0x11c   : > { %v6692_v11 = vpop.f32.mrf.mxu2  ;;  %v6694_v21 = vpop.f32.mrf.mxu3 }
 0x11d   : > { %10538 = vst [vmem:[#allocation22_spill] sm:$0xff] %v6692_v11  ;;  %v6696_v43 = vpop.f32.mrf.mxu0  ;;  %v6698_v61 = vpop.f32.mrf.mxu1  ;;  %728 = vperm.xlu2 %5971, %v6305_v12   ;;  %v1736_v12 = vld [vmem:[%s10391_s1 + $0x2b8] sm:$0xff] }
 0x11e   : > { %10539 = vst [vmem:[#allocation23_spill] sm:$0xff] %v6694_v21  ;;  %723 = vperm.xlu1 %5970, %v6238_v56   ;;  %733 = vperm.xlu0 %5972, %v6297_v4   ;;  %v1734_v56 = vld [vmem:[%s10391_s1 + $0x2a8] sm:$0xff]  ;;  %v1412_v4 = vsub.f32 %v6412_v10, %v1215_v42  ;;  %v1478_v42 = vand.u32 2147483647, %v1414_v13 }
 0x11f   : > { %10540 = vst [vmem:[#allocation24_spill] sm:$0xff] %v6696_v43  ;;  %3245 = vmatpush.msrb.mxu3 %v1736_v12  ;;  %2827 = vmatpush.msrb.mxu1 %v1734_v56  ;;  %v10558_v12 = vld [vmem:[#allocation6_spill] sm:$0xff]  ;;  %v1227_v56 = vpop.permute.xlu1 %1226 }
 0x120   : > { %10541 = vst [vmem:[#allocation25_spill] sm:$0xff] %v6698_v61  ;;  %1844 = vmatmul.f32.gmra.mxu0 %v6701_v60  ;;  %2053 = vmatmul.f32.gmra.mxu1 %v6701_v60  ;;  %v1476_v55 = vand.u32 2147483647, %v1412_v4  ;;  %v1727_v4 = vld [vmem:[%s10391_s1 + $0x270] sm:$0xff]  ;;  %v1415_v19 = vsub.f32 %v6412_v10, %v1227_v56  ;;  %v1670_v61 = vld [vmem:[%s10391_s1 + $0xa8] sm:$0xff] }
 0x121   : > { %2262 = vmatmul.f32.gmra.mxu2 %v6701_v60  ;;  %2471 = vmatmul.f32.gmra.mxu3 %v6701_v60 }
 0x122   : > { %v1540_v25 = vsub.f32 1.0, %v1476_v55  ;;  %v1728_v55 = vld [vmem:[%s10391_s1 + $0x278] sm:$0xff]  ;;  %3037 = vmatpush.msrb.mxu2 %v1727_v4  ;;  %v1479_v13 = vand.u32 2147483647, %v1415_v19  ;;  %2828 = vmatpush.msrb.mxu1 %v1726_v14  ;;  %v10570_v14 = vld [vmem:[#allocation14_spill] sm:$0xff] }
 0x123   : > { %3246 = vmatpush.msrb.mxu3 %v1728_v55 }
 0x124   : > { %v6722_v28 = vpop.f32.mrf.mxu2  ;;  %v6724_v63 = vpop.f32.mrf.mxu3  ;;  %v6749_v29 = vmax.f32 %v1540_v25, 0.0  ;;  %v1543_v4 = vsub.f32 1.0, %v1479_v13 }
 0x125   : > { %10542 = vst [vmem:[#allocation26_spill] sm:$0xff] %v6722_v28  ;;  %v6726_v20 = vpop.f32.mrf.mxu0  ;;  %v6728_v7 = vpop.f32.mrf.mxu1  ;;  %743 = vperm.xlu2 %5971, %v6356_v24  }
 0x126   : > { %10543 = vst [vmem:[#allocation27_spill] sm:$0xff] %v6724_v63  ;;  %738 = vperm.xlu1 %5970, %v6295_v59   ;;  %748 = vperm.xlu0 %5972, %v6348_v8   ;;  %v1477_v8 = vand.u32 2147483647, %v1413_v51  ;;  %v1542_v51 = vsub.f32 1.0, %v1478_v42  ;;  %v10564_v42 = vld [vmem:[#allocation5_spill] sm:$0xff] }
 0x127   : > { %10544 = vst [vmem:[#allocation28_spill] sm:$0xff] %v6726_v20 }
 0x128   : > { %10545 = vst [vmem:[#allocation29_spill] sm:$0xff] %v6728_v7  ;;  %1847 = vmatmul.f32.gmra.mxu0 %v6731_v48  ;;  %2056 = vmatmul.f32.gmra.mxu1 %v6731_v48  ;;  %v1541_v45 = vsub.f32 1.0, %v1477_v8  ;;  %v1678_v7 = vld [vmem:[%s10391_s1 + $0xe8] sm:$0xff] }
 0x129   : > { %2265 = vmatmul.f32.gmra.mxu2 %v6731_v48  ;;  %2474 = vmatmul.f32.gmra.mxu3 %v6731_v48 }
 0x12a   : > { %v6767_v6 = vmax.f32 %v1541_v45, 0.0  ;;  %v10563_v45 = vld [vmem:[#allocation10_spill] sm:$0xff] }
 0x12c   : > { %v6740_v24 = vpop.f32.mrf.mxu2  ;;  %v6742_v1 = vpop.f32.mrf.mxu3 }
 0x12d   : > { %10546 = vst [vmem:[#allocation30_spill] sm:$0xff] %v6740_v24  ;;  %v6744_v22 = vpop.f32.mrf.mxu0  ;;  %v6746_v59 = vpop.f32.mrf.mxu1  ;;  %758 = vperm.xlu2 %5971, %v6398_v31  }
 0x12e   : > { %10547 = vst [vmem:[#allocation31_spill] sm:$0xff] %v6742_v1  ;;  %753 = vperm.xlu1 %5970, %v10550_v23   ;;  %763 = vperm.xlu0 %5972, %v10551_v50  }
 0x12f   : > { %10548 = vst [vmem:[#allocation32_spill] sm:$0xff] %v6744_v22 }
 0x130   : > { %10549 = vst [vmem:[#allocation33_spill] sm:$0xff] %v6746_v59  ;;  %1850 = vmatmul.f32.gmra.mxu0 %v6749_v29  ;;  %2059 = vmatmul.f32.gmra.mxu1 %v6749_v29  ;;  %v1686_v59 = vld [vmem:[%s10391_s1 + $0x128] sm:$0xff] }
 0x131   : > { %2268 = vmatmul.f32.gmra.mxu2 %v6749_v29  ;;  %2477 = vmatmul.f32.gmra.mxu3 %v6749_v29 }
 0x134   : > { %v6758_v31 = vpop.f32.mrf.mxu2  ;;  %v6760_v35 = vpop.f32.mrf.mxu3 }
 0x135   : > { %10552 = vst [vmem:[#allocation2_spill] sm:$0xff] %v6758_v31  ;;  %v6762_v53 = vpop.f32.mrf.mxu0  ;;  %v6764_v54 = vpop.f32.mrf.mxu1  ;;  %773 = vperm.xlu2 %5971, %v10556_v38   ;;  %v6797_v38 = vmax.f32 %v1542_v51, 0.0 }
 0x136   : > { %10553 = vst [vmem:[#allocation4_spill] sm:$0xff] %v6760_v35  ;;  %768 = vperm.xlu1 %5970, %v10557_v2   ;;  %778 = vperm.xlu0 %5972, %v10558_v12   ;;  %v1231_v2 = vpop.permute.xlu2 %1230  ;;  %v10565_v12 = vld [vmem:[#allocation9_spill] sm:$0xff] }
 0x137   : > { %10554 = vst [vmem:[#allocation34_spill] sm:$0xff] %v6762_v53  ;;  %v1416_v56 = vsub.f32 %v6412_v10, %v1231_v2 }
 0x138   : > { %10555 = vst [vmem:[#allocation35_spill] sm:$0xff] %v6764_v54  ;;  %1853 = vmatmul.f32.gmra.mxu0 %v6767_v6  ;;  %2062 = vmatmul.f32.gmra.mxu1 %v6767_v6  ;;  %v1694_v54 = vld [vmem:[%s10391_s1 + $0x168] sm:$0xff] }
 0x139   : > { %2271 = vmatmul.f32.gmra.mxu2 %v6767_v6  ;;  %2480 = vmatmul.f32.gmra.mxu3 %v6767_v6 }
 0x13c   : > { %v6785_v25 = vpop.f32.mrf.mxu2  ;;  %v6787_v8 = vpop.f32.mrf.mxu3 }
 0x13d   : > { %10559 = vst [vmem:[#allocation7_spill] sm:$0xff] %v6785_v25  ;;  %v6789_v23 = vpop.f32.mrf.mxu0  ;;  %v6791_v50 = vpop.f32.mrf.mxu1  ;;  %788 = vperm.xlu2 %5971, %v10563_v45   ;;  %v1480_v45 = vand.u32 2147483647, %v1416_v56 }
 0x13e   : > { %10560 = vst [vmem:[#allocation3_spill] sm:$0xff] %v6787_v8  ;;  %783 = vperm.xlu1 %5970, %v10564_v42   ;;  %793 = vperm.xlu0 %5972, %v10565_v12   ;;  %v6815_v42 = vmax.f32 %v1543_v4, 0.0  ;;  %v10571_v12 = vld [vmem:[#allocation8_spill] sm:$0xff]  ;;  %v10579_v8 = vld [vmem:[#allocation17_spill] sm:$0xff] }
 0x13f   : > { %10561 = vst [vmem:[#allocation6_spill] sm:$0xff] %v6789_v23  ;;  %v10572_v23 = vld [vmem:[#allocation13_spill] sm:$0xff]  ;;  %v1544_v13 = vsub.f32 1.0, %v1480_v45 }
 0x140   : > { %10562 = vst [vmem:[#allocation36_spill] sm:$0xff] %v6791_v50  ;;  %1856 = vmatmul.f32.gmra.mxu0 %v6797_v38  ;;  %2065 = vmatmul.f32.gmra.mxu1 %v6797_v38  ;;  %v1235_v50 = vpop.permute.xlu0 %1234 }
 0x141   : > { %2274 = vmatmul.f32.gmra.mxu2 %v6797_v38  ;;  %2483 = vmatmul.f32.gmra.mxu3 %v6797_v38  ;;  %v1417_v2 = vsub.f32 %v6412_v10, %v1235_v50 }
 0x144   : > { %v6806_v49 = vpop.f32.mrf.mxu2  ;;  %v6808_v55 = vpop.f32.mrf.mxu3 }
 0x145   : > { %10566 = vst [vmem:[#allocation10_spill] sm:$0xff] %v6806_v49  ;;  %v6810_v19 = vpop.f32.mrf.mxu0  ;;  %v6812_v51 = vpop.f32.mrf.mxu1  ;;  %803 = vperm.xlu2 %5971, %v10570_v14  }
 0x146   : > { %10567 = vst [vmem:[#allocation5_spill] sm:$0xff] %v6808_v55  ;;  %798 = vperm.xlu1 %5970, %v10571_v12   ;;  %808 = vperm.xlu0 %5972, %v10572_v23   ;;  %v10577_v23 = vld [vmem:[#allocation18_spill] sm:$0xff]  ;;  %v10578_v55 = vld [vmem:[#allocation12_spill] sm:$0xff]  ;;  %v1239_v49 = vpop.permute.xlu1 %1238 }
 0x147   : > { %10568 = vst [vmem:[#allocation9_spill] sm:$0xff] %v6810_v19  ;;  %v1481_v19 = vand.u32 2147483647, %v1417_v2  ;;  %v1418_v50 = vsub.f32 %v6412_v10, %v1239_v49  ;;  %v1717_v49 = vld [vmem:[%s10391_s1 + $0x220] sm:$0xff] }
 0x148   : > { %10569 = vst [vmem:[#allocation37_spill] sm:$0xff] %v6812_v51  ;;  %1859 = vmatmul.f32.gmra.mxu0 %v6815_v42  ;;  %2068 = vmatmul.f32.gmra.mxu1 %v6815_v42  ;;  %v6833_v51 = vmax.f32 %v1544_v13, 0.0 }
 0x149   : > { %2277 = vmatmul.f32.gmra.mxu2 %v6815_v42  ;;  %2486 = vmatmul.f32.gmra.mxu3 %v6815_v42  ;;  %v1545_v45 = vsub.f32 1.0, %v1481_v19 }
 0x14a   : > { %2620 = vmatpush.msrb.mxu0 %v1717_v49 }
 0x14c   : > { %v6824_v14 = vpop.f32.mrf.mxu2  ;;  %v6826_v56 = vpop.f32.mrf.mxu3 }
 0x14d   : > { %10573 = vst [vmem:[#allocation14_spill] sm:$0xff] %v6824_v14  ;;  %v6828_v4 = vpop.f32.mrf.mxu0  ;;  %v6830_v12 = vpop.f32.mrf.mxu1  ;;  %818 = vperm.xlu2 %5971, %v10577_v23  }
 0x14e   : > { %10574 = vst [vmem:[#allocation8_spill] sm:$0xff] %v6826_v56  ;;  %813 = vperm.xlu1 %5970, %v10578_v55   ;;  %823 = vperm.xlu0 %5972, %v10579_v8   ;;  %v1482_v8 = vand.u32 2147483647, %v1418_v50  ;;  %v1243_v56 = vpop.permute.xlu2 %1242 }
 0x14f   : > { %10575 = vst [vmem:[#allocation13_spill] sm:$0xff] %v6828_v4  ;;  %v10584_v4 = vld [vmem:[#allocation16_spill] sm:$0xff]  ;;  %v1419_v19 = vsub.f32 %v6412_v10, %v1243_v56 }
 0x150   : > { %10576 = vst [vmem:[#allocation38_spill] sm:$0xff] %v6830_v12  ;;  %1862 = vmatmul.f32.gmra.mxu0 %v6833_v51  ;;  %2071 = vmatmul.f32.gmra.mxu1 %v6833_v51  ;;  %v6851_v12 = vmax.f32 %v1545_v45, 0.0 }
 0x151   : > { %2280 = vmatmul.f32.gmra.mxu2 %v6833_v51  ;;  %2489 = vmatmul.f32.gmra.mxu3 %v6833_v51 }
 0x154   : > { %v6842_v23 = vpop.f32.mrf.mxu2  ;;  %v6844_v13 = vpop.f32.mrf.mxu3 }
 0x155   : > { %10580 = vst [vmem:[#allocation18_spill] sm:$0xff] %v6842_v23  ;;  %v6846_v2 = vpop.f32.mrf.mxu0  ;;  %v6848_v55 = vpop.f32.mrf.mxu1  ;;  %833 = vperm.xlu2 %5971, %v6495_v5   ;;  %v1719_v5 = vld [vmem:[%s10391_s1 + $0x230] sm:$0xff]  ;;  %v1483_v23 = vand.u32 2147483647, %v1419_v19 }
 0x156   : > { %10581 = vst [vmem:[#allocation12_spill] sm:$0xff] %v6844_v13  ;;  %828 = vperm.xlu1 %5970, %v10584_v4   ;;  %838 = vperm.xlu0 %5972, %v6489_v26   ;;  %v1720_v26 = vld [vmem:[%s10391_s1 + $0x238] sm:$0xff]  ;;  %v1546_v4 = vsub.f32 1.0, %v1482_v8  ;;  %v1718_v13 = vld [vmem:[%s10391_s1 + $0x228] sm:$0xff]  ;;  %v1247_v8 = vpop.permute.xlu0 %1246 }
 0x157   : > { %10582 = vst [vmem:[#allocation17_spill] sm:$0xff] %v6846_v2  ;;  %3038 = vmatpush.msrb.mxu2 %v1719_v5  ;;  %3247 = vmatpush.msrb.mxu3 %v1720_v26  ;;  %v1547_v5 = vsub.f32 1.0, %v1483_v23 }
 0x158   : > { %10583 = vst [vmem:[#allocation39_spill] sm:$0xff] %v6848_v55  ;;  %1865 = vmatmul.f32.gmra.mxu0 %v6851_v12  ;;  %2074 = vmatmul.f32.gmra.mxu1 %v6851_v12  ;;  %v6881_v56 = vmax.f32 %v1546_v4, 0.0  ;;  %v1251_v4 = vpop.permute.xlu1 %1250 }
 0x159   : > { %2283 = vmatmul.f32.gmra.mxu2 %v6851_v12  ;;  %2492 = vmatmul.f32.gmra.mxu3 %v6851_v12  ;;  %v1421_v23 = vsub.f32 %v6412_v10, %v1251_v4 }
 0x15a   : > { %2829 = vmatpush.msrb.mxu1 %v1718_v13 }
 0x15c   : > { %v6869_v50 = vpop.f32.mrf.mxu2  ;;  %v6871_v45 = vpop.f32.mrf.mxu3 }
 0x15d   : > { %10585 = vst [vmem:[#allocation16_spill] sm:$0xff] %v6869_v50  ;;  %v6873_v55 = vpop.f32.mrf.mxu0  ;;  %v6875_v2 = vpop.f32.mrf.mxu1  ;;  %848 = vperm.xlu2 %5971, %v6511_v32   ;;  %v1420_v32 = vsub.f32 %v6412_v10, %v1247_v8 }
 0x15e   : > { %10586 = vst [vmem:[#allocation40_spill] sm:$0xff] %v6871_v45  ;;  %843 = vperm.xlu1 %5970, %v6487_v17   ;;  %853 = vperm.xlu0 %5972, %v6507_v37   ;;  %v6899_v37 = vmax.f32 %v1547_v5, 0.0  ;;  %v1702_v45 = vld [vmem:[%s10391_s1 + $0x1a8] sm:$0xff] }
 0x15f   : > { %10587 = vst [vmem:[#allocation41_spill] sm:$0xff] %v6873_v55  ;;  %v1484_v19 = vand.u32 2147483647, %v1420_v32 }
 0x160   : > { %10588 = vst [vmem:[#allocation42_spill] sm:$0xff] %v6875_v2  ;;  %1868 = vmatmul.f32.gmra.mxu0 %v6881_v56  ;;  %2077 = vmatmul.f32.gmra.mxu1 %v6881_v56 }
 0x161   : > { %2286 = vmatmul.f32.gmra.mxu2 %v6881_v56  ;;  %2495 = vmatmul.f32.gmra.mxu3 %v6881_v56  ;;  %v1548_v8 = vsub.f32 1.0, %v1484_v19 }
 0x164   : > { %v6890_v49 = vpop.f32.mrf.mxu2  ;;  %v6892_v26 = vpop.f32.mrf.mxu3 }
 0x165   : > { %10589 = vst [vmem:[#allocation43_spill] sm:$0xff] %v6890_v49  ;;  %v6894_v13 = vpop.f32.mrf.mxu0  ;;  %v6896_v17 = vpop.f32.mrf.mxu1  ;;  %863 = vperm.xlu2 %5971, %v6527_v15  }
 0x166   : > { %10590 = vst [vmem:[#allocation44_spill] sm:$0xff] %v6892_v26  ;;  %858 = vperm.xlu1 %5970, %v6505_v27   ;;  %868 = vperm.xlu0 %5972, %v6523_v44   ;;  %v1485_v44 = vand.u32 2147483647, %v1421_v23  ;;  %v10597_v26 = vmov 1  }
 0x167   : > { %10591 = vst [vmem:[#allocation45_spill] sm:$0xff] %v6894_v13  ;;  %v1255_v13 = vpop.permute.xlu2 %1254 }
 0x168   : > { %10592 = vst [vmem:[#allocation46_spill] sm:$0xff] %v6896_v17  ;;  %1871 = vmatmul.f32.gmra.mxu0 %v6899_v37  ;;  %2080 = vmatmul.f32.gmra.mxu1 %v6899_v37  ;;  %v6917_v17 = vmax.f32 %v1548_v8, 0.0  ;;  %v1422_v19 = vsub.f32 %v6412_v10, %v1255_v13  ;;  %v1549_v4 = vsub.f32 1.0, %v1485_v44  ;;  %v1711_v13 = vld [vmem:[%s10391_s1 + $0x1f0] sm:$0xff]  ;;  %v1709_v44 = vld [vmem:[%s10391_s1 + $0x1e0] sm:$0xff] }
 0x169   : > { %2289 = vmatmul.f32.gmra.mxu2 %v6899_v37  ;;  %2498 = vmatmul.f32.gmra.mxu3 %v6899_v37 }
 0x16a   : > { %3039 = vmatpush.msrb.mxu2 %v1711_v13  ;;  %2621 = vmatpush.msrb.mxu0 %v1709_v44 }
 0x16c   : > { %v6908_v15 = vpop.f32.mrf.mxu2  ;;  %v6910_v5 = vpop.f32.mrf.mxu3 }
 0x16d   : > { %10593 = vst [vmem:[#allocation47_spill] sm:$0xff] %v6908_v15  ;;  %v6912_v32 = vpop.f32.mrf.mxu0  ;;  %v6914_v27 = vpop.f32.mrf.mxu1  ;;  %878 = vperm.xlu2 %5971, %v6551_v36   ;;  %v1710_v15 = vld [vmem:[%s10391_s1 + $0x1e8] sm:$0xff] }
 0x16e   : > { %10594 = vst [vmem:[#allocation48_spill] sm:$0xff] %v6910_v5  ;;  %873 = vperm.xlu1 %5970, %v6521_v0   ;;  %5973 = vset.pattern.permute.xlu0 %v10597_v26  ;;  %v1486_v26 = vand.u32 2147483647, %v1422_v19  ;;  %v1712_v19 = vld [vmem:[%s10391_s1 + $0x1f8] sm:$0xff] }
 0x16f   : > { %10595 = vst [vmem:[#allocation49_spill] sm:$0xff] %v6912_v32  ;;  %v1259_v32 = vpop.permute.xlu0 %1258  ;;  %3248 = vmatpush.msrb.mxu3 %v1712_v19  ;;  %2830 = vmatpush.msrb.mxu1 %v1710_v15 }
 0x170   : > { %10596 = vst [vmem:[#allocation50_spill] sm:$0xff] %v6914_v27  ;;  %1874 = vmatmul.f32.gmra.mxu0 %v6917_v17  ;;  %2083 = vmatmul.f32.gmra.mxu1 %v6917_v17  ;;  %v6934_v27 = vmax.f32 %v1549_v4, 0.0  ;;  %v1550_v4 = vsub.f32 1.0, %v1486_v26 }
 0x171   : > { %2292 = vmatmul.f32.gmra.mxu2 %v6917_v17  ;;  %2501 = vmatmul.f32.gmra.mxu3 %v6917_v17 }
 0x172   : > { %v6961_v49 = vmax.f32 %v1550_v4, 0.0  ;;  %2831 = vmatpush.msrb.mxu1 %v1702_v45 }
 0x174   : > { %v6926_v36 = vpop.f32.mrf.mxu2  ;;  %v6928_v23 = vpop.f32.mrf.mxu3  ;;  %2832 = vmatpush.msrb.mxu1 %v1694_v54 }
 0x175   : > { %10598 = vst [vmem:[#allocation51_spill] sm:$0xff] %v6926_v36  ;;  %v6930_v8 = vpop.f32.mrf.mxu0  ;;  %v6932_v0 = vpop.f32.mrf.mxu1 }
 0x176   : > { %10599 = vst [vmem:[#allocation52_spill] sm:$0xff] %v6928_v23  ;;  %2833 = vmatpush.msrb.mxu1 %v1686_v59 }
 0x177   : > { %10600 = vst [vmem:[#allocation53_spill] sm:$0xff] %v6930_v8 }
 0x178   : > { %10601 = vst [vmem:[#allocation54_spill] sm:$0xff] %v6932_v0  ;;  %1877 = vmatmul.f32.gmra.mxu0 %v6934_v27  ;;  %2086 = vmatmul.f32.gmra.mxu1 %v6934_v27  ;;  %v1423_v0 = vsub.f32 %v6412_v10, %v1259_v32  ;;  %v1263_v32 = vpop.permute.xlu1 %1262 }
 0x179   : > { %2295 = vmatmul.f32.gmra.mxu2 %v6934_v27  ;;  %2504 = vmatmul.f32.gmra.mxu3 %v6934_v27  ;;  %v1424_v13 = vsub.f32 %v6412_v10, %v1263_v32 }
 0x17a   : > { %v1487_v26 = vand.u32 2147483647, %v1423_v0  ;;  %2834 = vmatpush.msrb.mxu1 %v1678_v7 }
 0x17b   : > { %v1488_v15 = vand.u32 2147483647, %v1424_v13 }
 0x17c   : > { %v6950_v8 = vpop.f32.mrf.mxu2  ;;  %v6952_v23 = vpop.f32.mrf.mxu3  ;;  %v1551_v44 = vsub.f32 1.0, %v1487_v26  ;;  %2835 = vmatpush.msrb.mxu1 %v1670_v61 }
 0x17d   : > { %10602 = vst [vmem:[#allocation55_spill] sm:$0xff] %v6950_v8  ;;  %v6954_v36 = vpop.f32.mrf.mxu0  ;;  %v6956_v5 = vpop.f32.mrf.mxu1  ;;  %v1552_v32 = vsub.f32 1.0, %v1488_v15 }
 0x17e   : > { %10603 = vst [vmem:[#allocation56_spill] sm:$0xff] %v6952_v23  ;;  %v1267_v23 = vpop.permute.xlu2 %1266  ;;  %v1271_v8 = vpop.permute.xlu0 %1270  ;;  %2836 = vmatpush.msrb.mxu1 %v1662_v52 }
 0x17f   : > { %10604 = vst [vmem:[#allocation57_spill] sm:$0xff] %v6954_v36  ;;  %v6976_v36 = vmax.f32 %v1551_v44, 0.0  ;;  %v1425_v26 = vsub.f32 %v6412_v10, %v1267_v23  ;;  %v1426_v15 = vsub.f32 %v6412_v10, %v1271_v8  ;;  %v1703_v8 = vld [vmem:[%s10391_s1 + $0x1b0] sm:$0xff] }
 0x180   : > { %10605 = vst [vmem:[#allocation58_spill] sm:$0xff] %v6956_v5  ;;  %1880 = vmatmul.f32.gmra.mxu0 %v6961_v49  ;;  %2089 = vmatmul.f32.gmra.mxu1 %v6961_v49  ;;  %v1275_v2 = vpop.permute.xlu1 %1274 }
 0x181   : > { %2298 = vmatmul.f32.gmra.mxu2 %v6961_v49  ;;  %2507 = vmatmul.f32.gmra.mxu3 %v6961_v49  ;;  %v1489_v44 = vand.u32 2147483647, %v1425_v26 }
 0x182   : > { %3040 = vmatpush.msrb.mxu2 %v1703_v8 }
 0x183   : > { %v1553_v23 = vsub.f32 1.0, %v1489_v44  ;;  %v1701_v44 = vld [vmem:[%s10391_s1 + $0x1a0] sm:$0xff] }
 0x184   : > { %v6968_v19 = vpop.f32.mrf.mxu2  ;;  %v6970_v5 = vpop.f32.mrf.mxu3  ;;  %2622 = vmatpush.msrb.mxu0 %v1701_v44 }
 0x185   : > { %10606 = vst [vmem:[#allocation59_spill] sm:$0xff] %v6968_v19  ;;  %v6972_v4 = vpop.f32.mrf.mxu0  ;;  %v6974_v0 = vpop.f32.mrf.mxu1  ;;  %v6991_v19 = vmax.f32 %v1552_v32, 0.0  ;;  %v7006_v32 = vmax.f32 %v1553_v23, 0.0  ;;  %v1704_v23 = vld [vmem:[%s10391_s1 + $0x1b8] sm:$0xff] }
 0x186   : > { %10607 = vst [vmem:[#allocation60_spill] sm:$0xff] %v6970_v5  ;;  %3249 = vmatpush.msrb.mxu3 %v1704_v23 }
 0x187   : > { %10608 = vst [vmem:[#allocation61_spill] sm:$0xff] %v6972_v4 }
 0x188   : > { %10609 = vst [vmem:[#allocation62_spill] sm:$0xff] %v6974_v0  ;;  %1883 = vmatmul.f32.gmra.mxu0 %v6976_v36  ;;  %2092 = vmatmul.f32.gmra.mxu1 %v6976_v36 }
 0x189   : > { %2301 = vmatmul.f32.gmra.mxu2 %v6976_v36  ;;  %2510 = vmatmul.f32.gmra.mxu3 %v6976_v36 }
 0x18c   : > { %v6983_v5 = vpop.f32.mrf.mxu2  ;;  %v6985_v4 = vpop.f32.mrf.mxu3 }
 0x18d   : > { %10610 = vst [vmem:[#allocation63_spill] sm:$0xff] %v6983_v5  ;;  %v6987_v0 = vpop.f32.mrf.mxu0  ;;  %v6989_v13 = vpop.f32.mrf.mxu1  ;;  %v1490_v5 = vand.u32 2147483647, %v1426_v15  ;;  %v1427_v15 = vsub.f32 %v6412_v10, %v1275_v2 }
 0x18e   : > { %10611 = vst [vmem:[#allocation64_spill] sm:$0xff] %v6985_v4  ;;  %v1279_v2 = vpop.permute.xlu2 %1278 }
 0x18f   : > { %10612 = vst [vmem:[#allocation65_spill] sm:$0xff] %v6987_v0  ;;  %v1491_v50 = vand.u32 2147483647, %v1427_v15 }
 0x190   : > { %10613 = vst [vmem:[#allocation66_spill] sm:$0xff] %v6989_v13  ;;  %1886 = vmatmul.f32.gmra.mxu0 %v6991_v19  ;;  %2095 = vmatmul.f32.gmra.mxu1 %v6991_v19 }
 0x191   : > { %2304 = vmatmul.f32.gmra.mxu2 %v6991_v19  ;;  %2513 = vmatmul.f32.gmra.mxu3 %v6991_v19  ;;  %v1555_v8 = vsub.f32 1.0, %v1491_v50 }
 0x194   : > { %v6998_v4 = vpop.f32.mrf.mxu2  ;;  %v7000_v0 = vpop.f32.mrf.mxu3 }
 0x195   : > { %10614 = vst [vmem:[#allocation67_spill] sm:$0xff] %v6998_v4  ;;  %v7002_v13 = vpop.f32.mrf.mxu0  ;;  %v7004_v26 = vpop.f32.mrf.mxu1 }
 0x196   : > { %10615 = vst [vmem:[#allocation68_spill] sm:$0xff] %v7000_v0 }
 0x197   : > { %10616 = vst [vmem:[#allocation69_spill] sm:$0xff] %v7002_v13 }
 0x198   : > { %10617 = vst [vmem:[#allocation70_spill] sm:$0xff] %v7004_v26  ;;  %1889 = vmatmul.f32.gmra.mxu0 %v7006_v32  ;;  %2098 = vmatmul.f32.gmra.mxu1 %v7006_v32  ;;  %v1554_v26 = vsub.f32 1.0, %v1490_v5  ;;  %v1428_v5 = vsub.f32 %v6412_v10, %v1279_v2 }
 0x199   : > { %2307 = vmatmul.f32.gmra.mxu2 %v7006_v32  ;;  %2516 = vmatmul.f32.gmra.mxu3 %v7006_v32 }
 0x19a   : > { %v7033_v14 = vmax.f32 %v1554_v26, 0.0  ;;  %v1492_v45 = vand.u32 2147483647, %v1428_v5 }
 0x19c   : > { %v7022_v13 = vpop.f32.mrf.mxu2  ;;  %v7024_v0 = vpop.f32.mrf.mxu3  ;;  %v1556_v50 = vsub.f32 1.0, %v1492_v45 }
 0x19d   : > { %10618 = vst [vmem:[#allocation71_spill] sm:$0xff] %v7022_v13  ;;  %v7026_v4 = vpop.f32.mrf.mxu0  ;;  %v7028_v55 = vpop.f32.mrf.mxu1 }
 0x19e   : > { %10619 = vst [vmem:[#allocation72_spill] sm:$0xff] %v7024_v0  ;;  %v1287_v0 = vpop.permute.xlu1 %1286  ;;  %v1291_v13 = vpop.permute.xlu2 %1290 }
 0x19f   : > { %10620 = vst [vmem:[#allocation73_spill] sm:$0xff] %v7026_v4  ;;  %v1283_v4 = vpop.permute.xlu0 %1282 }
 0x1a0   : > { %10621 = vst [vmem:[#allocation74_spill] sm:$0xff] %v7028_v55  ;;  %1892 = vmatmul.f32.gmra.mxu0 %v7033_v14  ;;  %2101 = vmatmul.f32.gmra.mxu1 %v7033_v14  ;;  %v7048_v55 = vmax.f32 %v1555_v8, 0.0  ;;  %v1429_v2 = vsub.f32 %v6412_v10, %v1283_v4  ;;  %v7063_v8 = vmax.f32 %v1556_v50, 0.0  ;;  %v1430_v4 = vsub.f32 %v6412_v10, %v1287_v0  ;;  %v1695_v0 = vld [vmem:[%s10391_s1 + $0x170] sm:$0xff] }
 0x1a1   : > { %2310 = vmatmul.f32.gmra.mxu2 %v7033_v14  ;;  %2519 = vmatmul.f32.gmra.mxu3 %v7033_v14 }
 0x1a2   : > { %3041 = vmatpush.msrb.mxu2 %v1695_v0 }
 0x1a4   : > { %v7040_v44 = vpop.f32.mrf.mxu2  ;;  %v7042_v23 = vpop.f32.mrf.mxu3 }
 0x1a5   : > { %10622 = vst [vmem:[#allocation75_spill] sm:$0xff] %v7040_v44  ;;  %v7044_v15 = vpop.f32.mrf.mxu0  ;;  %v7046_v26 = vpop.f32.mrf.mxu1  ;;  %v1493_v44 = vand.u32 2147483647, %v1429_v2  ;;  %v1494_v2 = vand.u32 2147483647, %v1430_v4  ;;  %v1696_v4 = vld [vmem:[%s10391_s1 + $0x178] sm:$0xff] }
 0x1a6   : > { %10623 = vst [vmem:[#allocation76_spill] sm:$0xff] %v7042_v23  ;;  %3250 = vmatpush.msrb.mxu3 %v1696_v4 }
 0x1a7   : > { %10624 = vst [vmem:[#allocation77_spill] sm:$0xff] %v7044_v15  ;;  %v1557_v45 = vsub.f32 1.0, %v1493_v44  ;;  %v1693_v44 = vld [vmem:[%s10391_s1 + $0x160] sm:$0xff] }
 0x1a8   : > { %10625 = vst [vmem:[#allocation78_spill] sm:$0xff] %v7046_v26  ;;  %1895 = vmatmul.f32.gmra.mxu0 %v7048_v55  ;;  %2104 = vmatmul.f32.gmra.mxu1 %v7048_v55 }
 0x1a9   : > { %2313 = vmatmul.f32.gmra.mxu2 %v7048_v55  ;;  %2522 = vmatmul.f32.gmra.mxu3 %v7048_v55 }
 0x1aa   : > { %2623 = vmatpush.msrb.mxu0 %v1693_v44 }
 0x1ac   : > { %v7055_v23 = vpop.f32.mrf.mxu2  ;;  %v7057_v15 = vpop.f32.mrf.mxu3 }
 0x1ad   : > { %10626 = vst [vmem:[#allocation79_spill] sm:$0xff] %v7055_v23  ;;  %v7059_v26 = vpop.f32.mrf.mxu0  ;;  %v7061_v5 = vpop.f32.mrf.mxu1  ;;  %v7078_v23 = vmax.f32 %v1557_v45, 0.0  ;;  %v1431_v45 = vsub.f32 %v6412_v10, %v1291_v13 }
 0x1ae   : > { %10627 = vst [vmem:[#allocation80_spill] sm:$0xff] %v7057_v15  ;;  %v1295_v13 = vpop.permute.xlu0 %1294 }
 0x1af   : > { %10628 = vst [vmem:[#allocation81_spill] sm:$0xff] %v7059_v26  ;;  %v1495_v53 = vand.u32 2147483647, %v1431_v45  ;;  %v1432_v0 = vsub.f32 %v6412_v10, %v1295_v13 }
 0x1b0   : > { %10629 = vst [vmem:[#allocation82_spill] sm:$0xff] %v7061_v5  ;;  %1898 = vmatmul.f32.gmra.mxu0 %v7063_v8  ;;  %2107 = vmatmul.f32.gmra.mxu1 %v7063_v8 }
 0x1b1   : > { %2316 = vmatmul.f32.gmra.mxu2 %v7063_v8  ;;  %2525 = vmatmul.f32.gmra.mxu3 %v7063_v8 }
 0x1b4   : > { %v7070_v15 = vpop.f32.mrf.mxu2  ;;  %v7072_v26 = vpop.f32.mrf.mxu3 }
 0x1b5   : > { %10630 = vst [vmem:[#allocation83_spill] sm:$0xff] %v7070_v15  ;;  %v7074_v5 = vpop.f32.mrf.mxu0  ;;  %v7076_v50 = vpop.f32.mrf.mxu1 }
 0x1b6   : > { %10631 = vst [vmem:[#allocation84_spill] sm:$0xff] %v7072_v26 }
 0x1b7   : > { %10632 = vst [vmem:[#allocation85_spill] sm:$0xff] %v7074_v5 }
 0x1b8   : > { %10633 = vst [vmem:[#allocation86_spill] sm:$0xff] %v7076_v50  ;;  %1901 = vmatmul.f32.gmra.mxu0 %v7078_v23  ;;  %2110 = vmatmul.f32.gmra.mxu1 %v7078_v23  ;;  %v1558_v50 = vsub.f32 1.0, %v1494_v2  ;;  %v1559_v2 = vsub.f32 1.0, %v1495_v53 }
 0x1b9   : > { %2319 = vmatmul.f32.gmra.mxu2 %v7078_v23  ;;  %2528 = vmatmul.f32.gmra.mxu3 %v7078_v23 }
 0x1ba   : > { %v7105_v35 = vmax.f32 %v1558_v50, 0.0  ;;  %v7120_v54 = vmax.f32 %v1559_v2, 0.0 }
 0x1bc   : > { %v7094_v5 = vpop.f32.mrf.mxu2  ;;  %v7096_v26 = vpop.f32.mrf.mxu3 }
 0x1bd   : > { %10634 = vst [vmem:[#allocation87_spill] sm:$0xff] %v7094_v5  ;;  %v7098_v15 = vpop.f32.mrf.mxu0  ;;  %v7100_v25 = vpop.f32.mrf.mxu1 }
 0x1be   : > { %10635 = vst [vmem:[#allocation88_spill] sm:$0xff] %v7096_v26  ;;  %v1303_v26 = vpop.permute.xlu2 %1302  ;;  %v1307_v5 = vpop.permute.xlu0 %1306 }
 0x1bf   : > { %10636 = vst [vmem:[#allocation89_spill] sm:$0xff] %v7098_v15  ;;  %v1299_v15 = vpop.permute.xlu1 %1298 }
 0x1c0   : > { %10637 = vst [vmem:[#allocation90_spill] sm:$0xff] %v7100_v25  ;;  %1904 = vmatmul.f32.gmra.mxu0 %v7105_v35  ;;  %2113 = vmatmul.f32.gmra.mxu1 %v7105_v35  ;;  %v1496_v25 = vand.u32 2147483647, %v1432_v0  ;;  %v1433_v53 = vsub.f32 %v6412_v10, %v1299_v15 }
 0x1c1   : > { %2322 = vmatmul.f32.gmra.mxu2 %v7105_v35  ;;  %2531 = vmatmul.f32.gmra.mxu3 %v7105_v35 }
 0x1c2   : > { %v1560_v13 = vsub.f32 1.0, %v1496_v25  ;;  %v1497_v0 = vand.u32 2147483647, %v1433_v53  ;;  %v1434_v25 = vsub.f32 %v6412_v10, %v1303_v26  ;;  %v1687_v26 = vld [vmem:[%s10391_s1 + $0x130] sm:$0xff] }
 0x1c3   : > { %3042 = vmatpush.msrb.mxu2 %v1687_v26 }
 0x1c4   : > { %v7112_v44 = vpop.f32.mrf.mxu2  ;;  %v7114_v4 = vpop.f32.mrf.mxu3  ;;  %v1561_v15 = vsub.f32 1.0, %v1497_v0  ;;  %v1685_v0 = vld [vmem:[%s10391_s1 + $0x120] sm:$0xff] }
 0x1c5   : > { %10638 = vst [vmem:[#allocation91_spill] sm:$0xff] %v7112_v44  ;;  %v7116_v45 = vpop.f32.mrf.mxu0  ;;  %v7118_v50 = vpop.f32.mrf.mxu1  ;;  %v7135_v44 = vmax.f32 %v1560_v13, 0.0  ;;  %v1498_v13 = vand.u32 2147483647, %v1434_v25  ;;  %v1688_v25 = vld [vmem:[%s10391_s1 + $0x138] sm:$0xff]  ;;  %2624 = vmatpush.msrb.mxu0 %v1685_v0 }
 0x1c6   : > { %10639 = vst [vmem:[#allocation92_spill] sm:$0xff] %v7114_v4  ;;  %3251 = vmatpush.msrb.mxu3 %v1688_v25 }
 0x1c7   : > { %10640 = vst [vmem:[#allocation93_spill] sm:$0xff] %v7116_v45 }
 0x1c8   : > { %10641 = vst [vmem:[#allocation94_spill] sm:$0xff] %v7118_v50  ;;  %1907 = vmatmul.f32.gmra.mxu0 %v7120_v54  ;;  %2116 = vmatmul.f32.gmra.mxu1 %v7120_v54 }
 0x1c9   : > { %2325 = vmatmul.f32.gmra.mxu2 %v7120_v54  ;;  %2534 = vmatmul.f32.gmra.mxu3 %v7120_v54 }
 0x1cc   : > { %v7127_v4 = vpop.f32.mrf.mxu2  ;;  %v7129_v45 = vpop.f32.mrf.mxu3 }
 0x1cd   : > { %10642 = vst [vmem:[#allocation95_spill] sm:$0xff] %v7127_v4  ;;  %v7131_v50 = vpop.f32.mrf.mxu0  ;;  %v7133_v2 = vpop.f32.mrf.mxu1  ;;  %v7150_v4 = vmax.f32 %v1561_v15, 0.0  ;;  %v1562_v15 = vsub.f32 1.0, %v1498_v13 }
 0x1ce   : > { %10643 = vst [vmem:[#allocation96_spill] sm:$0xff] %v7129_v45 }
 0x1cf   : > { %10644 = vst [vmem:[#allocation97_spill] sm:$0xff] %v7131_v50  ;;  %v7177_v22 = vmax.f32 %v1562_v15, 0.0 }
 0x1d0   : > { %10645 = vst [vmem:[#allocation98_spill] sm:$0xff] %v7133_v2  ;;  %1910 = vmatmul.f32.gmra.mxu0 %v7135_v44  ;;  %2119 = vmatmul.f32.gmra.mxu1 %v7135_v44 }
 0x1d1   : > { %2328 = vmatmul.f32.gmra.mxu2 %v7135_v44  ;;  %2537 = vmatmul.f32.gmra.mxu3 %v7135_v44 }
 0x1d4   : > { %v7142_v45 = vpop.f32.mrf.mxu2  ;;  %v7144_v50 = vpop.f32.mrf.mxu3 }
 0x1d5   : > { %10646 = vst [vmem:[#allocation99_spill] sm:$0xff] %v7142_v45  ;;  %v7146_v2 = vpop.f32.mrf.mxu0  ;;  %v7148_v53 = vpop.f32.mrf.mxu1 }
 0x1d6   : > { %10647 = vst [vmem:[#allocation100_spill] sm:$0xff] %v7144_v50 }
 0x1d7   : > { %10648 = vst [vmem:[#allocation101_spill] sm:$0xff] %v7146_v2 }
 0x1d8   : > { %10649 = vst [vmem:[#allocation102_spill] sm:$0xff] %v7148_v53  ;;  %1913 = vmatmul.f32.gmra.mxu0 %v7150_v4  ;;  %2122 = vmatmul.f32.gmra.mxu1 %v7150_v4  ;;  %v1435_v53 = vsub.f32 %v6412_v10, %v1307_v5  ;;  %v1311_v5 = vpop.permute.xlu1 %1310 }
 0x1d9   : > { %2331 = vmatmul.f32.gmra.mxu2 %v7150_v4  ;;  %2540 = vmatmul.f32.gmra.mxu3 %v7150_v4  ;;  %v1436_v26 = vsub.f32 %v6412_v10, %v1311_v5 }
 0x1da   : > { %v1499_v13 = vand.u32 2147483647, %v1435_v53 }
 0x1db   : > { %v1500_v59 = vand.u32 2147483647, %v1436_v26 }
 0x1dc   : > { %v7166_v2 = vpop.f32.mrf.mxu2  ;;  %v7168_v50 = vpop.f32.mrf.mxu3  ;;  %v1563_v0 = vsub.f32 1.0, %v1499_v13 }
 0x1dd   : > { %10650 = vst [vmem:[#allocation103_spill] sm:$0xff] %v7166_v2  ;;  %v7170_v45 = vpop.f32.mrf.mxu0  ;;  %v7172_v31 = vpop.f32.mrf.mxu1  ;;  %v1564_v5 = vsub.f32 1.0, %v1500_v59 }
 0x1de   : > { %10651 = vst [vmem:[#allocation104_spill] sm:$0xff] %v7168_v50  ;;  %v1315_v50 = vpop.permute.xlu2 %1314  ;;  %v1319_v2 = vpop.permute.xlu0 %1318 }
 0x1df   : > { %10652 = vst [vmem:[#allocation105_spill] sm:$0xff] %v7170_v45  ;;  %v7192_v45 = vmax.f32 %v1563_v0, 0.0  ;;  %v1437_v13 = vsub.f32 %v6412_v10, %v1315_v50  ;;  %v1438_v59 = vsub.f32 %v6412_v10, %v1319_v2  ;;  %v1679_v2 = vld [vmem:[%s10391_s1 + $0xf0] sm:$0xff] }
 0x1e0   : > { %10653 = vst [vmem:[#allocation106_spill] sm:$0xff] %v7172_v31  ;;  %1916 = vmatmul.f32.gmra.mxu0 %v7177_v22  ;;  %2125 = vmatmul.f32.gmra.mxu1 %v7177_v22  ;;  %v1323_v1 = vpop.permute.xlu1 %1322 }
 0x1e1   : > { %2334 = vmatmul.f32.gmra.mxu2 %v7177_v22  ;;  %2543 = vmatmul.f32.gmra.mxu3 %v7177_v22  ;;  %v1501_v0 = vand.u32 2147483647, %v1437_v13 }
 0x1e2   : > { %3043 = vmatpush.msrb.mxu2 %v1679_v2 }
 0x1e3   : > { %v1565_v50 = vsub.f32 1.0, %v1501_v0  ;;  %v1677_v0 = vld [vmem:[%s10391_s1 + $0xe0] sm:$0xff] }
 0x1e4   : > { %v7184_v25 = vpop.f32.mrf.mxu2  ;;  %v7186_v31 = vpop.f32.mrf.mxu3  ;;  %2625 = vmatpush.msrb.mxu0 %v1677_v0 }
 0x1e5   : > { %10654 = vst [vmem:[#allocation107_spill] sm:$0xff] %v7184_v25  ;;  %v7188_v15 = vpop.f32.mrf.mxu0  ;;  %v7190_v53 = vpop.f32.mrf.mxu1  ;;  %v7207_v25 = vmax.f32 %v1564_v5, 0.0  ;;  %v7222_v5 = vmax.f32 %v1565_v50, 0.0  ;;  %v1680_v50 = vld [vmem:[%s10391_s1 + $0xf8] sm:$0xff] }
 0x1e6   : > { %10655 = vst [vmem:[#allocation108_spill] sm:$0xff] %v7186_v31  ;;  %3252 = vmatpush.msrb.mxu3 %v1680_v50 }
 0x1e7   : > { %10656 = vst [vmem:[#allocation109_spill] sm:$0xff] %v7188_v15 }
 0x1e8   : > { %10657 = vst [vmem:[#allocation110_spill] sm:$0xff] %v7190_v53  ;;  %1919 = vmatmul.f32.gmra.mxu0 %v7192_v45  ;;  %2128 = vmatmul.f32.gmra.mxu1 %v7192_v45 }
 0x1e9   : > { %2337 = vmatmul.f32.gmra.mxu2 %v7192_v45  ;;  %2546 = vmatmul.f32.gmra.mxu3 %v7192_v45 }
 0x1ec   : > { %v7199_v31 = vpop.f32.mrf.mxu2  ;;  %v7201_v15 = vpop.f32.mrf.mxu3 }
 0x1ed   : > { %10658 = vst [vmem:[#allocation111_spill] sm:$0xff] %v7199_v31  ;;  %v7203_v53 = vpop.f32.mrf.mxu0  ;;  %v7205_v26 = vpop.f32.mrf.mxu1  ;;  %v1502_v31 = vand.u32 2147483647, %v1438_v59  ;;  %v1439_v59 = vsub.f32 %v6412_v10, %v1323_v1 }
 0x1ee   : > { %10659 = vst [vmem:[#allocation112_spill] sm:$0xff] %v7201_v15  ;;  %v1327_v1 = vpop.permute.xlu2 %1326 }
 0x1ef   : > { %10660 = vst [vmem:[#allocation113_spill] sm:$0xff] %v7203_v53  ;;  %v1503_v20 = vand.u32 2147483647, %v1439_v59 }
 0x1f0   : > { %10661 = vst [vmem:[#allocation114_spill] sm:$0xff] %v7205_v26  ;;  %1922 = vmatmul.f32.gmra.mxu0 %v7207_v25  ;;  %2131 = vmatmul.f32.gmra.mxu1 %v7207_v25 }
 0x1f1   : > { %2340 = vmatmul.f32.gmra.mxu2 %v7207_v25  ;;  %2549 = vmatmul.f32.gmra.mxu3 %v7207_v25  ;;  %v1567_v2 = vsub.f32 1.0, %v1503_v20 }
 0x1f4   : > { %v7214_v15 = vpop.f32.mrf.mxu2  ;;  %v7216_v53 = vpop.f32.mrf.mxu3 }
 0x1f5   : > { %10662 = vst [vmem:[#allocation115_spill] sm:$0xff] %v7214_v15  ;;  %v7218_v26 = vpop.f32.mrf.mxu0  ;;  %v7220_v13 = vpop.f32.mrf.mxu1 }
 0x1f6   : > { %10663 = vst [vmem:[#allocation116_spill] sm:$0xff] %v7216_v53 }
 0x1f7   : > { %10664 = vst [vmem:[#allocation117_spill] sm:$0xff] %v7218_v26 }
 0x1f8   : > { %10665 = vst [vmem:[#allocation118_spill] sm:$0xff] %v7220_v13  ;;  %1925 = vmatmul.f32.gmra.mxu0 %v7222_v5  ;;  %2134 = vmatmul.f32.gmra.mxu1 %v7222_v5  ;;  %v1566_v13 = vsub.f32 1.0, %v1502_v31  ;;  %v1440_v31 = vsub.f32 %v6412_v10, %v1327_v1 }
 0x1f9   : > { %2343 = vmatmul.f32.gmra.mxu2 %v7222_v5  ;;  %2552 = vmatmul.f32.gmra.mxu3 %v7222_v5 }
 0x1fa   : > { %v7249_v63 = vmax.f32 %v1566_v13, 0.0  ;;  %v1504_v7 = vand.u32 2147483647, %v1440_v31 }
 0x1fc   : > { %v7238_v26 = vpop.f32.mrf.mxu2  ;;  %v7240_v53 = vpop.f32.mrf.mxu3  ;;  %v1568_v20 = vsub.f32 1.0, %v1504_v7 }
 0x1fd   : > { %10666 = vst [vmem:[#allocation119_spill] sm:$0xff] %v7238_v26  ;;  %v7242_v15 = vpop.f32.mrf.mxu0  ;;  %v7244_v24 = vpop.f32.mrf.mxu1 }
 0x1fe   : > { %10667 = vst [vmem:[#allocation120_spill] sm:$0xff] %v7240_v53  ;;  %v1335_v53 = vpop.permute.xlu1 %1334  ;;  %v1339_v26 = vpop.permute.xlu2 %1338 }
 0x1ff   : > { %10668 = vst [vmem:[#allocation121_spill] sm:$0xff] %v7242_v15  ;;  %v1331_v15 = vpop.permute.xlu0 %1330 }
 0x200   : > { %10669 = vst [vmem:[#allocation122_spill] sm:$0xff] %v7244_v24  ;;  %1928 = vmatmul.f32.gmra.mxu0 %v7249_v63  ;;  %2137 = vmatmul.f32.gmra.mxu1 %v7249_v63  ;;  %v7264_v24 = vmax.f32 %v1567_v2, 0.0  ;;  %v1441_v1 = vsub.f32 %v6412_v10, %v1331_v15  ;;  %v7279_v2 = vmax.f32 %v1568_v20, 0.0  ;;  %v1442_v15 = vsub.f32 %v6412_v10, %v1335_v53  ;;  %v1671_v53 = vld [vmem:[%s10391_s1 + $0xb0] sm:$0xff] }
 0x201   : > { %2346 = vmatmul.f32.gmra.mxu2 %v7249_v63  ;;  %2555 = vmatmul.f32.gmra.mxu3 %v7249_v63 }
 0x202   : > { %3044 = vmatpush.msrb.mxu2 %v1671_v53 }
 0x204   : > { %v7256_v0 = vpop.f32.mrf.mxu2  ;;  %v7258_v50 = vpop.f32.mrf.mxu3 }
 0x205   : > { %10670 = vst [vmem:[#allocation123_spill] sm:$0xff] %v7256_v0  ;;  %v7260_v59 = vpop.f32.mrf.mxu0  ;;  %v7262_v13 = vpop.f32.mrf.mxu1  ;;  %v1505_v0 = vand.u32 2147483647, %v1441_v1  ;;  %v1506_v1 = vand.u32 2147483647, %v1442_v15  ;;  %v1672_v15 = vld [vmem:[%s10391_s1 + $0xb8] sm:$0xff] }
 0x206   : > { %10671 = vst [vmem:[#allocation124_spill] sm:$0xff] %v7258_v50  ;;  %3253 = vmatpush.msrb.mxu3 %v1672_v15 }
 0x207   : > { %10672 = vst [vmem:[#allocation125_spill] sm:$0xff] %v7260_v59  ;;  %v1569_v7 = vsub.f32 1.0, %v1505_v0  ;;  %v1669_v0 = vld [vmem:[%s10391_s1 + $0xa0] sm:$0xff] }
 0x208   : > { %10673 = vst [vmem:[#allocation126_spill] sm:$0xff] %v7262_v13  ;;  %1931 = vmatmul.f32.gmra.mxu0 %v7264_v24  ;;  %2140 = vmatmul.f32.gmra.mxu1 %v7264_v24 }
 0x209   : > { %2349 = vmatmul.f32.gmra.mxu2 %v7264_v24  ;;  %2558 = vmatmul.f32.gmra.mxu3 %v7264_v24 }
 0x20a   : > { %2626 = vmatpush.msrb.mxu0 %v1669_v0 }
 0x20c   : > { %v7271_v50 = vpop.f32.mrf.mxu2  ;;  %v7273_v59 = vpop.f32.mrf.mxu3 }
 0x20d   : > { %10674 = vst [vmem:[#allocation127_spill] sm:$0xff] %v7271_v50  ;;  %v7275_v13 = vpop.f32.mrf.mxu0  ;;  %v7277_v31 = vpop.f32.mrf.mxu1  ;;  %v7294_v50 = vmax.f32 %v1569_v7, 0.0  ;;  %v1443_v7 = vsub.f32 %v6412_v10, %v1339_v26 }
 0x20e   : > { %10675 = vst [vmem:[#allocation128_spill] sm:$0xff] %v7273_v59  ;;  %v1343_v26 = vpop.permute.xlu0 %1342 }
 0x20f   : > { %10676 = vst [vmem:[#allocation129_spill] sm:$0xff] %v7275_v13  ;;  %v1507_v43 = vand.u32 2147483647, %v1443_v7  ;;  %v1444_v53 = vsub.f32 %v6412_v10, %v1343_v26 }
 0x210   : > { %10677 = vst [vmem:[#allocation130_spill] sm:$0xff] %v7277_v31  ;;  %1934 = vmatmul.f32.gmra.mxu0 %v7279_v2  ;;  %2143 = vmatmul.f32.gmra.mxu1 %v7279_v2 }
 0x211   : > { %2352 = vmatmul.f32.gmra.mxu2 %v7279_v2  ;;  %2561 = vmatmul.f32.gmra.mxu3 %v7279_v2 }
 0x214   : > { %v7286_v59 = vpop.f32.mrf.mxu2  ;;  %v7288_v13 = vpop.f32.mrf.mxu3 }
 0x215   : > { %10678 = vst [vmem:[#allocation131_spill] sm:$0xff] %v7286_v59  ;;  %v7290_v31 = vpop.f32.mrf.mxu0  ;;  %v7292_v20 = vpop.f32.mrf.mxu1 }
 0x216   : > { %10679 = vst [vmem:[#allocation132_spill] sm:$0xff] %v7288_v13 }
 0x217   : > { %10680 = vst [vmem:[#allocation133_spill] sm:$0xff] %v7290_v31 }
 0x218   : > { %10681 = vst [vmem:[#allocation134_spill] sm:$0xff] %v7292_v20  ;;  %1937 = vmatmul.f32.gmra.mxu0 %v7294_v50  ;;  %2146 = vmatmul.f32.gmra.mxu1 %v7294_v50  ;;  %v1570_v20 = vsub.f32 1.0, %v1506_v1  ;;  %v1571_v1 = vsub.f32 1.0, %v1507_v43 }
 0x219   : > { %2355 = vmatmul.f32.gmra.mxu2 %v7294_v50  ;;  %2564 = vmatmul.f32.gmra.mxu3 %v7294_v50 }
 0x21a   : > { %v7321_v21 = vmax.f32 %v1570_v20, 0.0  ;;  %v7336_v61 = vmax.f32 %v1571_v1, 0.0 }
 0x21c   : > { %v7310_v31 = vpop.f32.mrf.mxu2  ;;  %v7312_v13 = vpop.f32.mrf.mxu3 }
 0x21d   : > { %10682 = vst [vmem:[#allocation135_spill] sm:$0xff] %v7310_v31  ;;  %v7314_v59 = vpop.f32.mrf.mxu0  ;;  %v7316_v28 = vpop.f32.mrf.mxu1 }
 0x21e   : > { %10683 = vst [vmem:[#allocation136_spill] sm:$0xff] %v7312_v13  ;;  %v1351_v13 = vpop.permute.xlu2 %1350  ;;  %v1355_v31 = vpop.permute.xlu0 %1354 }
 0x21f   : > { %10684 = vst [vmem:[#allocation137_spill] sm:$0xff] %v7314_v59  ;;  %v1347_v59 = vpop.permute.xlu1 %1346 }
 0x220   : > { %10685 = vst [vmem:[#allocation138_spill] sm:$0xff] %v7316_v28  ;;  %1940 = vmatmul.f32.gmra.mxu0 %v7321_v21  ;;  %2149 = vmatmul.f32.gmra.mxu1 %v7321_v21  ;;  %v1508_v28 = vand.u32 2147483647, %v1444_v53  ;;  %v1445_v43 = vsub.f32 %v6412_v10, %v1347_v59 }
 0x221   : > { %2358 = vmatmul.f32.gmra.mxu2 %v7321_v21  ;;  %2567 = vmatmul.f32.gmra.mxu3 %v7321_v21 }
 0x222   : > { %v1572_v26 = vsub.f32 1.0, %v1508_v28  ;;  %v1509_v53 = vand.u32 2147483647, %v1445_v43  ;;  %v1446_v28 = vsub.f32 %v6412_v10, %v1351_v13  ;;  %v1663_v13 = vld [vmem:[%s10391_s1 + $0x70] sm:$0xff] }
 0x223   : > { %3045 = vmatpush.msrb.mxu2 %v1663_v13 }
 0x224   : > { %v7328_v0 = vpop.f32.mrf.mxu2  ;;  %v7330_v15 = vpop.f32.mrf.mxu3  ;;  %v1573_v59 = vsub.f32 1.0, %v1509_v53  ;;  %v1661_v53 = vld [vmem:[%s10391_s1 + $0x60] sm:$0xff] }
 0x225   : > { %10686 = vst [vmem:[#allocation139_spill] sm:$0xff] %v7328_v0  ;;  %v7332_v7 = vpop.f32.mrf.mxu0  ;;  %v7334_v20 = vpop.f32.mrf.mxu1  ;;  %v7351_v0 = vmax.f32 %v1572_v26, 0.0  ;;  %v1510_v26 = vand.u32 2147483647, %v1446_v28  ;;  %v1664_v28 = vld [vmem:[%s10391_s1 + $0x78] sm:$0xff]  ;;  %2627 = vmatpush.msrb.mxu0 %v1661_v53 }
 0x226   : > { %10687 = vst [vmem:[#allocation140_spill] sm:$0xff] %v7330_v15  ;;  %3254 = vmatpush.msrb.mxu3 %v1664_v28 }
 0x227   : > { %10688 = vst [vmem:[#allocation141_spill] sm:$0xff] %v7332_v7 }
 0x228   : > { %10689 = vst [vmem:[#allocation142_spill] sm:$0xff] %v7334_v20  ;;  %1943 = vmatmul.f32.gmra.mxu0 %v7336_v61  ;;  %2152 = vmatmul.f32.gmra.mxu1 %v7336_v61 }
 0x229   : > { %2361 = vmatmul.f32.gmra.mxu2 %v7336_v61  ;;  %2570 = vmatmul.f32.gmra.mxu3 %v7336_v61 }
 0x22c   : > { %v7343_v15 = vpop.f32.mrf.mxu2  ;;  %v7345_v7 = vpop.f32.mrf.mxu3 }
 0x22d   : > { %10690 = vst [vmem:[#allocation143_spill] sm:$0xff] %v7343_v15  ;;  %v7347_v20 = vpop.f32.mrf.mxu0  ;;  %v7349_v1 = vpop.f32.mrf.mxu1  ;;  %v7366_v15 = vmax.f32 %v1573_v59, 0.0  ;;  %v1574_v59 = vsub.f32 1.0, %v1510_v26 }
 0x22e   : > { %10691 = vst [vmem:[#allocation144_spill] sm:$0xff] %v7345_v7 }
 0x22f   : > { %10692 = vst [vmem:[#allocation145_spill] sm:$0xff] %v7347_v20  ;;  %v7393_v16 = vmax.f32 %v1574_v59, 0.0 }
 0x230   : > { %10693 = vst [vmem:[#allocation146_spill] sm:$0xff] %v7349_v1  ;;  %1946 = vmatmul.f32.gmra.mxu0 %v7351_v0  ;;  %2155 = vmatmul.f32.gmra.mxu1 %v7351_v0 }
 0x231   : > { %2364 = vmatmul.f32.gmra.mxu2 %v7351_v0  ;;  %2573 = vmatmul.f32.gmra.mxu3 %v7351_v0  ;;  %10698 = vst [vmem:[#allocation151_spill] sm:$0xff] %v7366_v15 }
 0x232   : > { %10703 = vst [vmem:[#allocation156_spill] sm:$0xff] %v7393_v16 }
 0x234   : > { %v7358_v7 = vpop.f32.mrf.mxu2  ;;  %v7360_v20 = vpop.f32.mrf.mxu3 }
 0x235   : > { %10694 = vst [vmem:[#allocation147_spill] sm:$0xff] %v7358_v7  ;;  %v7362_v1 = vpop.f32.mrf.mxu0  ;;  %v7364_v43 = vpop.f32.mrf.mxu1 }
 0x236   : > { %10695 = vst [vmem:[#allocation148_spill] sm:$0xff] %v7360_v20 }
 0x237   : > { %10696 = vst [vmem:[#allocation149_spill] sm:$0xff] %v7362_v1 }
 0x238   : > { %10697 = vst [vmem:[#allocation150_spill] sm:$0xff] %v7364_v43  ;;  %1949 = vmatmul.f32.gmra.mxu0 %v7366_v15  ;;  %2158 = vmatmul.f32.gmra.mxu1 %v7366_v15  ;;  %v1447_v43 = vsub.f32 %v6412_v10, %v1355_v31  ;;  %v1359_v31 = vpop.permute.xlu1 %1358 }
 0x239   : > { %2367 = vmatmul.f32.gmra.mxu2 %v7366_v15  ;;  %2576 = vmatmul.f32.gmra.mxu3 %v7366_v15  ;;  %v1448_v13 = vsub.f32 %v6412_v10, %v1359_v31 }
 0x23a   : > { %v1511_v26 = vand.u32 2147483647, %v1447_v43 }
 0x23b   : > { %v1512_v52 = vand.u32 2147483647, %v1448_v13 }
 0x23c   : > { %v7382_v1 = vpop.f32.mrf.mxu2  ;;  %v7384_v20 = vpop.f32.mrf.mxu3  ;;  %v1575_v53 = vsub.f32 1.0, %v1511_v26 }
 0x23d   : > { %10699 = vst [vmem:[#allocation152_spill] sm:$0xff] %v7382_v1  ;;  %v7386_v7 = vpop.f32.mrf.mxu0  ;;  %v7388_v11 = vpop.f32.mrf.mxu1  ;;  %v1576_v31 = vsub.f32 1.0, %v1512_v52 }
 0x23e   : > { %10700 = vst [vmem:[#allocation153_spill] sm:$0xff] %v7384_v20  ;;  %v1363_v20 = vpop.permute.xlu2 %1362  ;;  %v1367_v1 = vpop.permute.xlu0 %1366 }
 0x23f   : > { %10701 = vst [vmem:[#allocation154_spill] sm:$0xff] %v7386_v7  ;;  %v7408_v7 = vmax.f32 %v1575_v53, 0.0  ;;  %v1449_v26 = vsub.f32 %v6412_v10, %v1363_v20  ;;  %v1450_v52 = vsub.f32 %v6412_v10, %v1367_v1  ;;  %v1655_v1 = vld [vmem:[%s10391_s1 + $0x30] sm:$0xff] }
 0x240   : > { %10702 = vst [vmem:[#allocation155_spill] sm:$0xff] %v7388_v11  ;;  %1952 = vmatmul.f32.gmra.mxu0 %v7393_v16  ;;  %2161 = vmatmul.f32.gmra.mxu1 %v7393_v16 }
 0x241   : > { %2370 = vmatmul.f32.gmra.mxu2 %v7393_v16  ;;  %2579 = vmatmul.f32.gmra.mxu3 %v7393_v16  ;;  %10708 = vst [vmem:[#allocation161_spill] sm:$0xff] %v7408_v7  ;;  %v1513_v53 = vand.u32 2147483647, %v1449_v26 }
 0x242   : > { %3046 = vmatpush.msrb.mxu2 %v1655_v1 }
 0x243   : > { %v1577_v20 = vsub.f32 1.0, %v1513_v53  ;;  %v1653_v53 = vld [vmem:[%s10391_s1 + $0x20] sm:$0xff] }
 0x244   : > { %v7400_v28 = vpop.f32.mrf.mxu2  ;;  %v7402_v11 = vpop.f32.mrf.mxu3  ;;  %2628 = vmatpush.msrb.mxu0 %v1653_v53 }
 0x245   : > { %10704 = vst [vmem:[#allocation157_spill] sm:$0xff] %v7400_v28  ;;  %v7404_v59 = vpop.f32.mrf.mxu0  ;;  %v7406_v43 = vpop.f32.mrf.mxu1  ;;  %v7423_v28 = vmax.f32 %v1576_v31, 0.0  ;;  %v7438_v31 = vmax.f32 %v1577_v20, 0.0  ;;  %v1656_v20 = vld [vmem:[%s10391_s1 + $0x38] sm:$0xff] }
 0x246   : > { %10705 = vst [vmem:[#allocation158_spill] sm:$0xff] %v7402_v11  ;;  %3255 = vmatpush.msrb.mxu3 %v1656_v20 }
 0x247   : > { %10706 = vst [vmem:[#allocation159_spill] sm:$0xff] %v7404_v59 }
 0x248   : > { %10707 = vst [vmem:[#allocation160_spill] sm:$0xff] %v7406_v43  ;;  %1955 = vmatmul.f32.gmra.mxu0 %v7408_v7  ;;  %2164 = vmatmul.f32.gmra.mxu1 %v7408_v7 }
 0x249   : > { %2373 = vmatmul.f32.gmra.mxu2 %v7408_v7  ;;  %2582 = vmatmul.f32.gmra.mxu3 %v7408_v7  ;;  %10713 = vst [vmem:[#allocation166_spill] sm:$0xff] %v7423_v28  ;;  %v1371_v7 = vpop.permute.xlu1 %1370 }
 0x24a   : > { %10718 = vst [vmem:[#allocation171_spill] sm:$0xff] %v7438_v31 }
 0x24c   : > { %v7415_v11 = vpop.f32.mrf.mxu2  ;;  %v7417_v59 = vpop.f32.mrf.mxu3 }
 0x24d   : > { %10709 = vst [vmem:[#allocation162_spill] sm:$0xff] %v7415_v11  ;;  %v7419_v43 = vpop.f32.mrf.mxu0  ;;  %v7421_v13 = vpop.f32.mrf.mxu1  ;;  %v1514_v11 = vand.u32 2147483647, %v1450_v52  ;;  %v1451_v52 = vsub.f32 %v6412_v10, %v1371_v7 }
 0x24e   : > { %10710 = vst [vmem:[#allocation163_spill] sm:$0xff] %v7417_v59 }
 0x24f   : > { %10711 = vst [vmem:[#allocation164_spill] sm:$0xff] %v7419_v43  ;;  %v1515_v16 = vand.u32 2147483647, %v1451_v52 }
 0x250   : > { %10712 = vst [vmem:[#allocation165_spill] sm:$0xff] %v7421_v13  ;;  %1958 = vmatmul.f32.gmra.mxu0 %v7423_v28  ;;  %2167 = vmatmul.f32.gmra.mxu1 %v7423_v28 }
 0x251   : > { %2376 = vmatmul.f32.gmra.mxu2 %v7423_v28  ;;  %2585 = vmatmul.f32.gmra.mxu3 %v7423_v28  ;;  %v1654_v28 = vld [vmem:[%s10391_s1 + $0x28] sm:$0xff]  ;;  %v1579_v1 = vsub.f32 1.0, %v1515_v16 }
 0x252   : > { %2837 = vmatpush.msrb.mxu1 %v1654_v28 }
 0x254   : > { %v7430_v59 = vpop.f32.mrf.mxu2  ;;  %v7432_v43 = vpop.f32.mrf.mxu3 }
 0x255   : > { %10714 = vst [vmem:[#allocation167_spill] sm:$0xff] %v7430_v59  ;;  %v7434_v13 = vpop.f32.mrf.mxu0  ;;  %v7436_v26 = vpop.f32.mrf.mxu1 }
 0x256   : > { %10715 = vst [vmem:[#allocation168_spill] sm:$0xff] %v7432_v43 }
 0x257   : > { %10716 = vst [vmem:[#allocation169_spill] sm:$0xff] %v7434_v13 }
 0x258   : > { %10717 = vst [vmem:[#allocation170_spill] sm:$0xff] %v7436_v26  ;;  %1961 = vmatmul.f32.gmra.mxu0 %v7438_v31  ;;  %2170 = vmatmul.f32.gmra.mxu1 %v7438_v31  ;;  %v1578_v26 = vsub.f32 1.0, %v1514_v11  ;;  %v1375_v11 = vpop.permute.xlu2 %1374 }
 0x259   : > { %2379 = vmatmul.f32.gmra.mxu2 %v7438_v31  ;;  %2588 = vmatmul.f32.gmra.mxu3 %v7438_v31  ;;  %v1452_v7 = vsub.f32 %v6412_v10, %v1375_v11 }
 0x25a   : > { %v7465_v15 = vmax.f32 %v1578_v26, 0.0 }
 0x25b   : > { %v1516_v28 = vand.u32 2147483647, %v1452_v7 }
 0x25c   : > { %v7454_v13 = vpop.f32.mrf.mxu2  ;;  %v7456_v43 = vpop.f32.mrf.mxu3  ;;  %10723 = vst [vmem:[#allocation176_spill] sm:$0xff] %v7465_v15 }
 0x25d   : > { %10719 = vst [vmem:[#allocation172_spill] sm:$0xff] %v7454_v13  ;;  %v7458_v59 = vpop.f32.mrf.mxu0  ;;  %v7460_v31 = vpop.f32.mrf.mxu1  ;;  %v1580_v16 = vsub.f32 1.0, %v1516_v28 }
 0x25e   : > { %10720 = vst [vmem:[#allocation173_spill] sm:$0xff] %v7456_v43  ;;  %v1383_v43 = vpop.permute.xlu1 %1382 }
 0x25f   : > { %10721 = vst [vmem:[#allocation174_spill] sm:$0xff] %v7458_v59  ;;  %v1379_v59 = vpop.permute.xlu0 %1378 }
 0x260   : > { %10722 = vst [vmem:[#allocation175_spill] sm:$0xff] %v7460_v31  ;;  %1964 = vmatmul.f32.gmra.mxu0 %v7465_v15  ;;  %2173 = vmatmul.f32.gmra.mxu1 %v7465_v15  ;;  %v7480_v31 = vmax.f32 %v1579_v1, 0.0  ;;  %v1453_v11 = vsub.f32 %v6412_v10, %v1379_v59  ;;  %v7495_v1 = vmax.f32 %v1580_v16, 0.0  ;;  %v1454_v59 = vsub.f32 %v6412_v10, %v1383_v43  ;;  %v1387_v13 = vpop.permute.xlu2 %1386  ;;  %v4008_v43 = vld [vmem:[%s10392_s2 + $0x178] sm:$0xff] }
 0x261   : > { %2382 = vmatmul.f32.gmra.mxu2 %v7465_v15  ;;  %2591 = vmatmul.f32.gmra.mxu3 %v7465_v15 }
 0x262   : > { %10728 = vst [vmem:[#allocation181_spill] sm:$0xff] %v7480_v31  ;;  %4507 = vmatpush.msra.mxu2 %v4008_v43 }
 0x263   : > { %10733 = vst [vmem:[#allocation186_spill] sm:$0xff] %v7495_v1 }
 0x264   : > { %v7472_v53 = vpop.f32.mrf.mxu2  ;;  %v7474_v20 = vpop.f32.mrf.mxu3 }
 0x265   : > { %10724 = vst [vmem:[#allocation177_spill] sm:$0xff] %v7472_v53  ;;  %v7476_v52 = vpop.f32.mrf.mxu0  ;;  %v7478_v26 = vpop.f32.mrf.mxu1  ;;  %v1517_v53 = vand.u32 2147483647, %v1453_v11  ;;  %v1518_v11 = vand.u32 2147483647, %v1454_v59  ;;  %v4024_v59 = vld [vmem:[%s10392_s2 + $0x1f8] sm:$0xff] }
 0x266   : > { %10725 = vst [vmem:[#allocation178_spill] sm:$0xff] %v7474_v20  ;;  %4716 = vmatpush.msra.mxu3 %v4024_v59 }
 0x267   : > { %10726 = vst [vmem:[#allocation179_spill] sm:$0xff] %v7476_v52  ;;  %v1581_v28 = vsub.f32 1.0, %v1517_v53  ;;  %v3976_v53 = vld [vmem:[%s10392_s2 + $0x78] sm:$0xff] }
 0x268   : > { %10727 = vst [vmem:[#allocation180_spill] sm:$0xff] %v7478_v26  ;;  %1967 = vmatmul.f32.gmra.mxu0 %v7480_v31  ;;  %2176 = vmatmul.f32.gmra.mxu1 %v7480_v31 }
 0x269   : > { %2385 = vmatmul.f32.gmra.mxu2 %v7480_v31  ;;  %2594 = vmatmul.f32.gmra.mxu3 %v7480_v31 }
 0x26a   : > { %4089 = vmatpush.msra.mxu0 %v3976_v53 }
 0x26c   : > { %v7487_v20 = vpop.f32.mrf.mxu2  ;;  %v7489_v52 = vpop.f32.mrf.mxu3 }
 0x26d   : > { %10729 = vst [vmem:[#allocation182_spill] sm:$0xff] %v7487_v20  ;;  %v7491_v26 = vpop.f32.mrf.mxu0  ;;  %v7493_v7 = vpop.f32.mrf.mxu1  ;;  %v7510_v20 = vmax.f32 %v1581_v28, 0.0  ;;  %v1455_v28 = vsub.f32 %v6412_v10, %v1387_v13 }
 0x26e   : > { %10730 = vst [vmem:[#allocation183_spill] sm:$0xff] %v7489_v52  ;;  %v1391_v13 = vpop.permute.xlu0 %1390 }
 0x26f   : > { %10731 = vst [vmem:[#allocation184_spill] sm:$0xff] %v7491_v26  ;;  %v1519_v31 = vand.u32 2147483647, %v1455_v28  ;;  %v1456_v43 = vsub.f32 %v6412_v10, %v1391_v13 }
 0x270   : > { %10732 = vst [vmem:[#allocation185_spill] sm:$0xff] %v7493_v7  ;;  %1970 = vmatmul.f32.gmra.mxu0 %v7495_v1  ;;  %2179 = vmatmul.f32.gmra.mxu1 %v7495_v1 }
 0x271   : > { %2388 = vmatmul.f32.gmra.mxu2 %v7495_v1  ;;  %2597 = vmatmul.f32.gmra.mxu3 %v7495_v1  ;;  %10738 = vst [vmem:[#allocation191_spill] sm:$0xff] %v7510_v20  ;;  %v3992_v1 = vld [vmem:[%s10392_s2 + $0xf8] sm:$0xff] }
 0x272   : > { %4298 = vmatpush.msra.mxu1 %v3992_v1 }
 0x274   : > { %v7502_v52 = vpop.f32.mrf.mxu2  ;;  %v7504_v26 = vpop.f32.mrf.mxu3 }
 0x275   : > { %10734 = vst [vmem:[#allocation187_spill] sm:$0xff] %v7502_v52  ;;  %v7506_v7 = vpop.f32.mrf.mxu0  ;;  %v7508_v16 = vpop.f32.mrf.mxu1 }
 0x276   : > { %10735 = vst [vmem:[#allocation188_spill] sm:$0xff] %v7504_v26 }
 0x277   : > { %10736 = vst [vmem:[#allocation189_spill] sm:$0xff] %v7506_v7 }
 0x278   : > { %10737 = vst [vmem:[#allocation190_spill] sm:$0xff] %v7508_v16  ;;  %1973 = vmatmul.f32.gmra.mxu0 %v7510_v20  ;;  %2182 = vmatmul.f32.gmra.mxu1 %v7510_v20  ;;  %v1582_v16 = vsub.f32 1.0, %v1518_v11  ;;  %v1583_v11 = vsub.f32 1.0, %v1519_v31 }
 0x279   : > { %2391 = vmatmul.f32.gmra.mxu2 %v7510_v20  ;;  %2600 = vmatmul.f32.gmra.mxu3 %v7510_v20 }
 0x27a   : > { %v7537_v15 = vmax.f32 %v1582_v16, 0.0  ;;  %v7552_v1 = vmax.f32 %v1583_v11, 0.0 }
 0x27c   : > { %v7526_v7 = vpop.f32.mrf.mxu2  ;;  %v7528_v26 = vpop.f32.mrf.mxu3 }
 0x27d   : > { %v7530_v52 = vpop.f32.mrf.mxu0  ;;  %v7532_v20 = vpop.f32.mrf.mxu1 }
 0x27e   : > { %10739 = vst [vmem:[#allocation192_spill] sm:$0xff] %v7530_v52  ;;  %v10757_v52 = vld [vmem:[#allocation15_spill] sm:$0xff] }
 0x27f   : > { %10740 = vst [vmem:[#allocation193_spill] sm:$0xff] %v7532_v20  ;;  %v1520_v20 = vand.u32 2147483647, %v1456_v43 }
 0x280   : > { %1976 = vmatmul.f32.gmra.mxu0 %v7537_v15  ;;  %2185 = vmatmul.f32.gmra.mxu1 %v7537_v15 }
 0x281   : > { %2394 = vmatmul.f32.gmra.mxu2 %v7537_v15  ;;  %2603 = vmatmul.f32.gmra.mxu3 %v7537_v15  ;;  %v1584_v31 = vsub.f32 1.0, %v1520_v20 }
 0x283   : > { %v7566_v11 = vmax.f32 %v1584_v31, 0.0  ;;  %v4007_v31 = vld [vmem:[%s10392_s2 + $0x170] sm:$0xff] }
 0x284   : > { %v7544_v53 = vpop.f32.mrf.mxu2  ;;  %v7546_v59 = vpop.f32.mrf.mxu3  ;;  %4508 = vmatpush.msra.mxu2 %v4007_v31 }
 0x285   : > { %10741 = vst [vmem:[#allocation194_spill] sm:$0xff] %v7544_v53  ;;  %v7548_v28 = vpop.f32.mrf.mxu0  ;;  %v7550_v16 = vpop.f32.mrf.mxu1 }
 0x286   : > { %10742 = vst [vmem:[#allocation195_spill] sm:$0xff] %v7546_v59 }
 0x287   : > { %10743 = vst [vmem:[#allocation196_spill] sm:$0xff] %v7548_v28 }
 0x288   : > { %10744 = vst [vmem:[#allocation197_spill] sm:$0xff] %v7550_v16  ;;  %1979 = vmatmul.f32.gmra.mxu0 %v7552_v1  ;;  %2188 = vmatmul.f32.gmra.mxu1 %v7552_v1  ;;  %v3991_v16 = vld [vmem:[%s10392_s2 + $0xf0] sm:$0xff] }
 0x289   : > { %2397 = vmatmul.f32.gmra.mxu2 %v7552_v1  ;;  %2606 = vmatmul.f32.gmra.mxu3 %v7552_v1 }
 0x28a   : > { %4299 = vmatpush.msra.mxu1 %v3991_v16 }
 0x28c   : > { %v7558_v13 = vpop.f32.mrf.mxu2  ;;  %v7560_v53 = vpop.f32.mrf.mxu3 }
 0x28d   : > { %10745 = vst [vmem:[#allocation198_spill] sm:$0xff] %v7558_v13  ;;  %v7562_v59 = vpop.f32.mrf.mxu0  ;;  %v7564_v28 = vpop.f32.mrf.mxu1 }
 0x28e   : > { %10746 = vst [vmem:[#allocation199_spill] sm:$0xff] %v7560_v53 }
 0x28f   : > { %10747 = vst [vmem:[#allocation200_spill] sm:$0xff] %v7562_v59  ;;  %v10753_v59 = vld [vmem:[#allocation11_spill] sm:$0xff] }
 0x290   : > { %10748 = vst [vmem:[#allocation201_spill] sm:$0xff] %v7564_v28  ;;  %1982 = vmatmul.f32.gmra.mxu0 %v7566_v11  ;;  %2191 = vmatmul.f32.gmra.mxu1 %v7566_v11 }
 0x291   : > { %2400 = vmatmul.f32.gmra.mxu2 %v7566_v11  ;;  %2609 = vmatmul.f32.gmra.mxu3 %v7566_v11 }
 0x294   : > { %v7572_v43 = vpop.f32.mrf.mxu2  ;;  %v7574_v20 = vpop.f32.mrf.mxu3 }
 0x295   : > { %10749 = vst [vmem:[#allocation202_spill] sm:$0xff] %v7572_v43  ;;  %v7576_v13 = vpop.f32.mrf.mxu0  ;;  %v7578_v53 = vpop.f32.mrf.mxu1 }
 0x296   : > { %10750 = vst [vmem:[#allocation203_spill] sm:$0xff] %v7574_v20  ;;  %v3975_v20 = vld [vmem:[%s10392_s2 + $0x70] sm:$0xff] }
 0x297   : > { %10751 = vst [vmem:[#allocation204_spill] sm:$0xff] %v7576_v13  ;;  %4090 = vmatpush.msra.mxu0 %v3975_v20 }
 0x298   : > { %10752 = vst [vmem:[#allocation205_spill] sm:$0xff] %v7578_v53  ;;  %2629 = vmatmul.f32.vlgmr.msrb.gmra.mxu0 %v10753_v59  ;;  %2838 = vmatmul.f32.vlgmr.msrb.gmra.mxu1 %v10753_v59  ;;  %v4023_v53 = vld [vmem:[%s10392_s2 + $0x1f0] sm:$0xff] }
 0x299   : > { %3047 = vmatmul.f32.vlgmr.msrb.gmra.mxu2 %v10753_v59  ;;  %3256 = vmatmul.f32.vlgmr.msrb.gmra.mxu3 %v10753_v59 }
 0x29a   : > { %4717 = vmatpush.msra.mxu3 %v4023_v53 }
 0x29c   : > { %v7593_v13 = vpop.f32.mrf.mxu2  ;;  %v7595_v43 = vpop.f32.mrf.mxu3 }
 0x29d   : > { %10754 = vst [vmem:[#allocation11_spill] sm:$0xff] %v7595_v43  ;;  %v7597_v59 = vpop.f32.mrf.mxu0  ;;  %v7599_v28 = vpop.f32.mrf.mxu1 }
 0x29e   : > { %10755 = vst [vmem:[#allocation206_spill] sm:$0xff] %v7597_v59  ;;  %v10761_v59 = vld [vmem:[#allocation19_spill] sm:$0xff] }
 0x29f   : > { %10756 = vst [vmem:[#allocation207_spill] sm:$0xff] %v7599_v28 }
 0x2a0   : > { %2632 = vmatmul.f32.gmra.mxu0 %v10757_v52  ;;  %2841 = vmatmul.f32.gmra.mxu1 %v10757_v52 }
 0x2a1   : > { %3050 = vmatmul.f32.gmra.mxu2 %v10757_v52  ;;  %3259 = vmatmul.f32.gmra.mxu3 %v10757_v52 }
 0x2a4   : > { %v7608_v53 = vpop.f32.mrf.mxu2  ;;  %v7610_v20 = vpop.f32.mrf.mxu3 }
 0x2a5   : > { %10758 = vst [vmem:[#allocation15_spill] sm:$0xff] %v7608_v53  ;;  %v7612_v31 = vpop.f32.mrf.mxu0  ;;  %v7614_v28 = vpop.f32.mrf.mxu1 }
 0x2a6   : > { %10759 = vst [vmem:[#allocation208_spill] sm:$0xff] %v7612_v31 }
 0x2a7   : > { %10760 = vst [vmem:[#allocation209_spill] sm:$0xff] %v7614_v28 }
 0x2a8   : > { %2635 = vmatmul.f32.gmra.mxu0 %v10761_v59  ;;  %2844 = vmatmul.f32.gmra.mxu1 %v10761_v59 }
 0x2a9   : > { %3053 = vmatmul.f32.gmra.mxu2 %v10761_v59  ;;  %3262 = vmatmul.f32.gmra.mxu3 %v10761_v59 }
 0x2ac   : > { %v7620_v16 = vpop.f32.mrf.mxu2  ;;  %v7622_v43 = vpop.f32.mrf.mxu3 }
 0x2ad   : > { %10762 = vst [vmem:[#allocation19_spill] sm:$0xff] %v7620_v16  ;;  %v7624_v52 = vpop.f32.mrf.mxu0  ;;  %v7626_v53 = vpop.f32.mrf.mxu1 }
 0x2ae   : > { %10763 = vst [vmem:[#allocation210_spill] sm:$0xff] %v7624_v52  ;;  %v3990_v52 = vld [vmem:[%s10392_s2 + $0xe8] sm:$0xff] }
 0x2af   : > { %10764 = vst [vmem:[#allocation211_spill] sm:$0xff] %v7626_v53  ;;  %4300 = vmatpush.msra.mxu1 %v3990_v52 }
 0x2b0   : > { %2638 = vmatmul.f32.gmra.mxu0 %v6500_v41  ;;  %2847 = vmatmul.f32.gmra.mxu1 %v6500_v41 }
 0x2b1   : > { %3056 = vmatmul.f32.gmra.mxu2 %v6500_v41  ;;  %3265 = vmatmul.f32.gmra.mxu3 %v6500_v41  ;;  %v4006_v41 = vld [vmem:[%s10392_s2 + $0x168] sm:$0xff] }
 0x2b2   : > { %4509 = vmatpush.msra.mxu2 %v4006_v41 }
 0x2b4   : > { %v7632_v28 = vpop.f32.mrf.mxu2  ;;  %v7634_v31 = vpop.f32.mrf.mxu3 }
 0x2b5   : > { %10765 = vst [vmem:[#allocation212_spill] sm:$0xff] %v7632_v28  ;;  %v7636_v59 = vpop.f32.mrf.mxu0  ;;  %v7638_v16 = vpop.f32.mrf.mxu1 }
 0x2b6   : > { %10766 = vst [vmem:[#allocation213_spill] sm:$0xff] %v7634_v31  ;;  %v3974_v31 = vld [vmem:[%s10392_s2 + $0x68] sm:$0xff] }
 0x2b7   : > { %10767 = vst [vmem:[#allocation214_spill] sm:$0xff] %v7636_v59  ;;  %4091 = vmatpush.msra.mxu0 %v3974_v31 }
 0x2b8   : > { %10768 = vst [vmem:[#allocation215_spill] sm:$0xff] %v7638_v16  ;;  %2641 = vmatmul.f32.gmra.mxu0 %v6514_v30  ;;  %2850 = vmatmul.f32.gmra.mxu1 %v6514_v30  ;;  %v4022_v16 = vld [vmem:[%s10392_s2 + $0x1e8] sm:$0xff] }
 0x2b9   : > { %3059 = vmatmul.f32.gmra.mxu2 %v6514_v30  ;;  %3268 = vmatmul.f32.gmra.mxu3 %v6514_v30 }
 0x2ba   : > { %4718 = vmatpush.msra.mxu3 %v4022_v16 }
 0x2bc   : > { %v7653_v59 = vpop.f32.mrf.mxu2  ;;  %v7655_v28 = vpop.f32.mrf.mxu3 }
 0x2bd   : > { %v7657_v30 = vpop.f32.mrf.mxu0  ;;  %v7659_v53 = vpop.f32.mrf.mxu1 }
 0x2be   : > { %10769 = vst [vmem:[#allocation216_spill] sm:$0xff] %v7657_v30 }
 0x2bf   : > { %10770 = vst [vmem:[#allocation217_spill] sm:$0xff] %v7659_v53 }
 0x2c0   : > { %2644 = vmatmul.f32.gmra.mxu0 %v6533_v47  ;;  %2853 = vmatmul.f32.gmra.mxu1 %v6533_v47 }
 0x2c1   : > { %3062 = vmatmul.f32.gmra.mxu2 %v6533_v47  ;;  %3271 = vmatmul.f32.gmra.mxu3 %v6533_v47 }
 0x2c4   : > { %v7668_v31 = vpop.f32.mrf.mxu2  ;;  %v7670_v16 = vpop.f32.mrf.mxu3 }
 0x2c5   : > { %10771 = vst [vmem:[#allocation218_spill] sm:$0xff] %v7668_v31  ;;  %v7672_v41 = vpop.f32.mrf.mxu0  ;;  %v7674_v53 = vpop.f32.mrf.mxu1 }
 0x2c6   : > { %10772 = vst [vmem:[#allocation219_spill] sm:$0xff] %v7672_v41 }
 0x2c7   : > { %10773 = vst [vmem:[#allocation220_spill] sm:$0xff] %v7674_v53 }
 0x2c8   : > { %2647 = vmatmul.f32.gmra.mxu0 %v6556_v57  ;;  %2856 = vmatmul.f32.gmra.mxu1 %v6556_v57 }
 0x2c9   : > { %3065 = vmatmul.f32.gmra.mxu2 %v6556_v57  ;;  %3274 = vmatmul.f32.gmra.mxu3 %v6556_v57 }
 0x2cc   : > { %v7680_v52 = vpop.f32.mrf.mxu2  ;;  %v7682_v30 = vpop.f32.mrf.mxu3 }
 0x2cd   : > { %10774 = vst [vmem:[#allocation221_spill] sm:$0xff] %v7680_v52  ;;  %v7684_v47 = vpop.f32.mrf.mxu0  ;;  %v7686_v31 = vpop.f32.mrf.mxu1 }
 0x2ce   : > { %10775 = vst [vmem:[#allocation222_spill] sm:$0xff] %v7684_v47  ;;  %v3989_v47 = vld [vmem:[%s10392_s2 + $0xe0] sm:$0xff] }
 0x2cf   : > { %10776 = vst [vmem:[#allocation223_spill] sm:$0xff] %v7686_v31  ;;  %4301 = vmatpush.msra.mxu1 %v3989_v47 }
 0x2d0   : > { %2650 = vmatmul.f32.gmra.mxu0 %v6565_v39  ;;  %2859 = vmatmul.f32.gmra.mxu1 %v6565_v39 }
 0x2d1   : > { %3068 = vmatmul.f32.gmra.mxu2 %v6565_v39  ;;  %3277 = vmatmul.f32.gmra.mxu3 %v6565_v39  ;;  %v4005_v39 = vld [vmem:[%s10392_s2 + $0x160] sm:$0xff] }
 0x2d2   : > { %4510 = vmatpush.msra.mxu2 %v4005_v39 }
 0x2d4   : > { %v7692_v53 = vpop.f32.mrf.mxu2  ;;  %v7694_v41 = vpop.f32.mrf.mxu3 }
 0x2d5   : > { %10777 = vst [vmem:[#allocation224_spill] sm:$0xff] %v7692_v53  ;;  %v7696_v57 = vpop.f32.mrf.mxu0  ;;  %v7698_v52 = vpop.f32.mrf.mxu1 }
 0x2d6   : > { %10778 = vst [vmem:[#allocation225_spill] sm:$0xff] %v7694_v41  ;;  %v3973_v41 = vld [vmem:[%s10392_s2 + $0x60] sm:$0xff] }
 0x2d7   : > { %10779 = vst [vmem:[#allocation226_spill] sm:$0xff] %v7696_v57  ;;  %4092 = vmatpush.msra.mxu0 %v3973_v41 }
 0x2d8   : > { %10780 = vst [vmem:[#allocation227_spill] sm:$0xff] %v7698_v52  ;;  %2653 = vmatmul.f32.gmra.mxu0 %v6575_v33  ;;  %2862 = vmatmul.f32.gmra.mxu1 %v6575_v33  ;;  %v4021_v52 = vld [vmem:[%s10392_s2 + $0x1e0] sm:$0xff] }
 0x2d9   : > { %3071 = vmatmul.f32.gmra.mxu2 %v6575_v33  ;;  %3280 = vmatmul.f32.gmra.mxu3 %v6575_v33 }
 0x2da   : > { %4719 = vmatpush.msra.mxu3 %v4021_v52 }
 0x2dc   : > { %v7713_v57 = vpop.f32.mrf.mxu2  ;;  %v7715_v53 = vpop.f32.mrf.mxu3 }
 0x2dd   : > { %v7717_v33 = vpop.f32.mrf.mxu0  ;;  %v7719_v31 = vpop.f32.mrf.mxu1 }
 0x2de   : > { %10781 = vst [vmem:[#allocation228_spill] sm:$0xff] %v7717_v33 }
 0x2df   : > { %10782 = vst [vmem:[#allocation229_spill] sm:$0xff] %v7719_v31 }
 0x2e0   : > { %2656 = vmatmul.f32.gmra.mxu0 %v6585_v9  ;;  %2865 = vmatmul.f32.gmra.mxu1 %v6585_v9 }
 0x2e1   : > { %3074 = vmatmul.f32.gmra.mxu2 %v6585_v9  ;;  %3283 = vmatmul.f32.gmra.mxu3 %v6585_v9 }
 0x2e4   : > { %v7728_v41 = vpop.f32.mrf.mxu2  ;;  %v7730_v52 = vpop.f32.mrf.mxu3 }
 0x2e5   : > { %10783 = vst [vmem:[#allocation230_spill] sm:$0xff] %v7728_v41  ;;  %v7732_v39 = vpop.f32.mrf.mxu0  ;;  %v7734_v31 = vpop.f32.mrf.mxu1 }
 0x2e6   : > { %10784 = vst [vmem:[#allocation231_spill] sm:$0xff] %v7732_v39 }
 0x2e7   : > { %10785 = vst [vmem:[#allocation232_spill] sm:$0xff] %v7734_v31 }
 0x2e8   : > { %2659 = vmatmul.f32.gmra.mxu0 %v6607_v58  ;;  %2868 = vmatmul.f32.gmra.mxu1 %v6607_v58 }
 0x2e9   : > { %3077 = vmatmul.f32.gmra.mxu2 %v6607_v58  ;;  %3286 = vmatmul.f32.gmra.mxu3 %v6607_v58 }
 0x2ec   : > { %v7740_v47 = vpop.f32.mrf.mxu2  ;;  %v7742_v33 = vpop.f32.mrf.mxu3 }
 0x2ed   : > { %10786 = vst [vmem:[#allocation233_spill] sm:$0xff] %v7740_v47  ;;  %v7744_v9 = vpop.f32.mrf.mxu0  ;;  %v7746_v41 = vpop.f32.mrf.mxu1 }
 0x2ee   : > { %10787 = vst [vmem:[#allocation234_spill] sm:$0xff] %v7744_v9  ;;  %v3988_v9 = vld [vmem:[%s10392_s2 + $0xd8] sm:$0xff] }
 0x2ef   : > { %10788 = vst [vmem:[#allocation235_spill] sm:$0xff] %v7746_v41  ;;  %4302 = vmatpush.msra.mxu1 %v3988_v9 }
 0x2f0   : > { %2662 = vmatmul.f32.gmra.mxu0 %v6617_v46  ;;  %2871 = vmatmul.f32.gmra.mxu1 %v6617_v46 }
 0x2f1   : > { %3080 = vmatmul.f32.gmra.mxu2 %v6617_v46  ;;  %3289 = vmatmul.f32.gmra.mxu3 %v6617_v46  ;;  %v4004_v46 = vld [vmem:[%s10392_s2 + $0x158] sm:$0xff] }
 0x2f2   : > { %4511 = vmatpush.msra.mxu2 %v4004_v46 }
 0x2f4   : > { %v7752_v31 = vpop.f32.mrf.mxu2  ;;  %v7754_v39 = vpop.f32.mrf.mxu3 }
 0x2f5   : > { %10789 = vst [vmem:[#allocation236_spill] sm:$0xff] %v7752_v31  ;;  %v7756_v58 = vpop.f32.mrf.mxu0  ;;  %v7758_v47 = vpop.f32.mrf.mxu1 }
 0x2f6   : > { %10790 = vst [vmem:[#allocation237_spill] sm:$0xff] %v7754_v39  ;;  %v3972_v39 = vld [vmem:[%s10392_s2 + $0x58] sm:$0xff] }
 0x2f7   : > { %10791 = vst [vmem:[#allocation238_spill] sm:$0xff] %v7756_v58  ;;  %4093 = vmatpush.msra.mxu0 %v3972_v39 }
 0x2f8   : > { %10792 = vst [vmem:[#allocation239_spill] sm:$0xff] %v7758_v47  ;;  %2665 = vmatmul.f32.gmra.mxu0 %v6627_v34  ;;  %2874 = vmatmul.f32.gmra.mxu1 %v6627_v34  ;;  %v4020_v47 = vld [vmem:[%s10392_s2 + $0x1d8] sm:$0xff] }
 0x2f9   : > { %3083 = vmatmul.f32.gmra.mxu2 %v6627_v34  ;;  %3292 = vmatmul.f32.gmra.mxu3 %v6627_v34 }
 0x2fa   : > { %4720 = vmatpush.msra.mxu3 %v4020_v47 }
 0x2fc   : > { %v7773_v58 = vpop.f32.mrf.mxu2  ;;  %v7775_v31 = vpop.f32.mrf.mxu3 }
 0x2fd   : > { %v7777_v34 = vpop.f32.mrf.mxu0  ;;  %v7779_v41 = vpop.f32.mrf.mxu1 }
 0x2fe   : > { %10793 = vst [vmem:[#allocation240_spill] sm:$0xff] %v7777_v34 }
 0x2ff   : > { %10794 = vst [vmem:[#allocation241_spill] sm:$0xff] %v7779_v41 }
 0x300   : > { %2668 = vmatmul.f32.gmra.mxu0 %v6637_v40  ;;  %2877 = vmatmul.f32.gmra.mxu1 %v6637_v40 }
 0x301   : > { %3086 = vmatmul.f32.gmra.mxu2 %v6637_v40  ;;  %3295 = vmatmul.f32.gmra.mxu3 %v6637_v40 }
 0x304   : > { %v7788_v39 = vpop.f32.mrf.mxu2  ;;  %v7790_v47 = vpop.f32.mrf.mxu3 }
 0x305   : > { %10795 = vst [vmem:[#allocation242_spill] sm:$0xff] %v7788_v39  ;;  %v7792_v46 = vpop.f32.mrf.mxu0  ;;  %v7794_v41 = vpop.f32.mrf.mxu1 }
 0x306   : > { %10796 = vst [vmem:[#allocation243_spill] sm:$0xff] %v7792_v46 }
 0x307   : > { %10797 = vst [vmem:[#allocation244_spill] sm:$0xff] %v7794_v41 }
 0x308   : > { %2671 = vmatmul.f32.gmra.mxu0 %v6659_v3  ;;  %2880 = vmatmul.f32.gmra.mxu1 %v6659_v3 }
 0x309   : > { %3089 = vmatmul.f32.gmra.mxu2 %v6659_v3  ;;  %3298 = vmatmul.f32.gmra.mxu3 %v6659_v3 }
 0x30c   : > { %v7800_v9 = vpop.f32.mrf.mxu2  ;;  %v7802_v34 = vpop.f32.mrf.mxu3 }
 0x30d   : > { %10798 = vst [vmem:[#allocation245_spill] sm:$0xff] %v7800_v9  ;;  %v7804_v40 = vpop.f32.mrf.mxu0  ;;  %v7806_v39 = vpop.f32.mrf.mxu1 }
 0x30e   : > { %10799 = vst [vmem:[#allocation246_spill] sm:$0xff] %v7804_v40  ;;  %v3987_v40 = vld [vmem:[%s10392_s2 + $0xd0] sm:$0xff] }
 0x30f   : > { %10800 = vst [vmem:[#allocation247_spill] sm:$0xff] %v7806_v39  ;;  %4303 = vmatpush.msra.mxu1 %v3987_v40 }
 0x310   : > { %2674 = vmatmul.f32.gmra.mxu0 %v6669_v18  ;;  %2883 = vmatmul.f32.gmra.mxu1 %v6669_v18 }
 0x311   : > { %3092 = vmatmul.f32.gmra.mxu2 %v6669_v18  ;;  %3301 = vmatmul.f32.gmra.mxu3 %v6669_v18  ;;  %v4003_v18 = vld [vmem:[%s10392_s2 + $0x150] sm:$0xff] }
 0x312   : > { %4512 = vmatpush.msra.mxu2 %v4003_v18 }
 0x314   : > { %v7812_v41 = vpop.f32.mrf.mxu2  ;;  %v7814_v46 = vpop.f32.mrf.mxu3 }
 0x315   : > { %10801 = vst [vmem:[#allocation248_spill] sm:$0xff] %v7812_v41  ;;  %v7816_v3 = vpop.f32.mrf.mxu0  ;;  %v7818_v9 = vpop.f32.mrf.mxu1 }
 0x316   : > { %10802 = vst [vmem:[#allocation249_spill] sm:$0xff] %v7814_v46  ;;  %v3971_v46 = vld [vmem:[%s10392_s2 + $0x50] sm:$0xff] }
 0x317   : > { %10803 = vst [vmem:[#allocation250_spill] sm:$0xff] %v7816_v3  ;;  %4094 = vmatpush.msra.mxu0 %v3971_v46 }
 0x318   : > { %10804 = vst [vmem:[#allocation251_spill] sm:$0xff] %v7818_v9  ;;  %2677 = vmatmul.f32.gmra.mxu0 %v6683_v62  ;;  %2886 = vmatmul.f32.gmra.mxu1 %v6683_v62  ;;  %v4019_v9 = vld [vmem:[%s10392_s2 + $0x1d0] sm:$0xff] }
 0x319   : > { %3095 = vmatmul.f32.gmra.mxu2 %v6683_v62  ;;  %3304 = vmatmul.f32.gmra.mxu3 %v6683_v62 }
 0x31a   : > { %4721 = vmatpush.msra.mxu3 %v4019_v9 }
 0x31c   : > { %v7833_v3 = vpop.f32.mrf.mxu2  ;;  %v7835_v41 = vpop.f32.mrf.mxu3 }
 0x31d   : > { %v7837_v62 = vpop.f32.mrf.mxu0  ;;  %v7839_v39 = vpop.f32.mrf.mxu1 }
 0x31e   : > { %10805 = vst [vmem:[#allocation252_spill] sm:$0xff] %v7837_v62 }
 0x31f   : > { %10806 = vst [vmem:[#allocation253_spill] sm:$0xff] %v7839_v39 }
 0x320   : > { %2680 = vmatmul.f32.gmra.mxu0 %v6701_v60  ;;  %2889 = vmatmul.f32.gmra.mxu1 %v6701_v60 }
 0x321   : > { %3098 = vmatmul.f32.gmra.mxu2 %v6701_v60  ;;  %3307 = vmatmul.f32.gmra.mxu3 %v6701_v60 }
 0x324   : > { %v7848_v46 = vpop.f32.mrf.mxu2  ;;  %v7850_v9 = vpop.f32.mrf.mxu3 }
 0x325   : > { %10807 = vst [vmem:[#allocation254_spill] sm:$0xff] %v7848_v46  ;;  %v7852_v18 = vpop.f32.mrf.mxu0  ;;  %v7854_v39 = vpop.f32.mrf.mxu1 }
 0x326   : > { %10808 = vst [vmem:[#allocation255_spill] sm:$0xff] %v7852_v18 }
 0x327   : > { %10809 = vst [vmem:[#allocation256_spill] sm:$0xff] %v7854_v39 }
 0x328   : > { %2683 = vmatmul.f32.gmra.mxu0 %v6731_v48  ;;  %2892 = vmatmul.f32.gmra.mxu1 %v6731_v48 }
 0x329   : > { %3101 = vmatmul.f32.gmra.mxu2 %v6731_v48  ;;  %3310 = vmatmul.f32.gmra.mxu3 %v6731_v48 }
 0x32c   : > { %v7860_v40 = vpop.f32.mrf.mxu2  ;;  %v7862_v62 = vpop.f32.mrf.mxu3 }
 0x32d   : > { %10810 = vst [vmem:[#allocation257_spill] sm:$0xff] %v7860_v40  ;;  %v7864_v60 = vpop.f32.mrf.mxu0  ;;  %v7866_v46 = vpop.f32.mrf.mxu1 }
 0x32e   : > { %10811 = vst [vmem:[#allocation258_spill] sm:$0xff] %v7864_v60  ;;  %v3986_v60 = vld [vmem:[%s10392_s2 + $0xc8] sm:$0xff] }
 0x32f   : > { %10812 = vst [vmem:[#allocation259_spill] sm:$0xff] %v7866_v46  ;;  %4304 = vmatpush.msra.mxu1 %v3986_v60 }
 0x330   : > { %2686 = vmatmul.f32.gmra.mxu0 %v6749_v29  ;;  %2895 = vmatmul.f32.gmra.mxu1 %v6749_v29 }
 0x331   : > { %3104 = vmatmul.f32.gmra.mxu2 %v6749_v29  ;;  %3313 = vmatmul.f32.gmra.mxu3 %v6749_v29  ;;  %v4002_v29 = vld [vmem:[%s10392_s2 + $0x148] sm:$0xff] }
 0x332   : > { %4513 = vmatpush.msra.mxu2 %v4002_v29 }
 0x334   : > { %v7872_v39 = vpop.f32.mrf.mxu2  ;;  %v7874_v18 = vpop.f32.mrf.mxu3 }
 0x335   : > { %10813 = vst [vmem:[#allocation260_spill] sm:$0xff] %v7872_v39  ;;  %v7876_v48 = vpop.f32.mrf.mxu0  ;;  %v7878_v40 = vpop.f32.mrf.mxu1 }
 0x336   : > { %10814 = vst [vmem:[#allocation261_spill] sm:$0xff] %v7874_v18  ;;  %v3970_v18 = vld [vmem:[%s10392_s2 + $0x48] sm:$0xff] }
 0x337   : > { %10815 = vst [vmem:[#allocation262_spill] sm:$0xff] %v7876_v48  ;;  %4095 = vmatpush.msra.mxu0 %v3970_v18 }
 0x338   : > { %10816 = vst [vmem:[#allocation263_spill] sm:$0xff] %v7878_v40  ;;  %2689 = vmatmul.f32.gmra.mxu0 %v6767_v6  ;;  %2898 = vmatmul.f32.gmra.mxu1 %v6767_v6  ;;  %v4018_v40 = vld [vmem:[%s10392_s2 + $0x1c8] sm:$0xff] }
 0x339   : > { %3107 = vmatmul.f32.gmra.mxu2 %v6767_v6  ;;  %3316 = vmatmul.f32.gmra.mxu3 %v6767_v6 }
 0x33a   : > { %4722 = vmatpush.msra.mxu3 %v4018_v40 }
 0x33c   : > { %v7893_v48 = vpop.f32.mrf.mxu2  ;;  %v7895_v39 = vpop.f32.mrf.mxu3 }
 0x33d   : > { %v7897_v6 = vpop.f32.mrf.mxu0  ;;  %v7899_v46 = vpop.f32.mrf.mxu1 }
 0x33e   : > { %10817 = vst [vmem:[#allocation264_spill] sm:$0xff] %v7897_v6 }
 0x33f   : > { %10818 = vst [vmem:[#allocation265_spill] sm:$0xff] %v7899_v46 }
 0x340   : > { %2692 = vmatmul.f32.gmra.mxu0 %v6797_v38  ;;  %2901 = vmatmul.f32.gmra.mxu1 %v6797_v38 }
 0x341   : > { %3110 = vmatmul.f32.gmra.mxu2 %v6797_v38  ;;  %3319 = vmatmul.f32.gmra.mxu3 %v6797_v38 }
 0x344   : > { %v7908_v18 = vpop.f32.mrf.mxu2  ;;  %v7910_v40 = vpop.f32.mrf.mxu3 }
 0x345   : > { %10819 = vst [vmem:[#allocation266_spill] sm:$0xff] %v7908_v18  ;;  %v7912_v29 = vpop.f32.mrf.mxu0  ;;  %v7914_v46 = vpop.f32.mrf.mxu1 }
 0x346   : > { %10820 = vst [vmem:[#allocation267_spill] sm:$0xff] %v7912_v29 }
 0x347   : > { %10821 = vst [vmem:[#allocation268_spill] sm:$0xff] %v7914_v46 }
 0x348   : > { %2695 = vmatmul.f32.gmra.mxu0 %v6815_v42  ;;  %2904 = vmatmul.f32.gmra.mxu1 %v6815_v42 }
 0x349   : > { %3113 = vmatmul.f32.gmra.mxu2 %v6815_v42  ;;  %3322 = vmatmul.f32.gmra.mxu3 %v6815_v42 }
 0x34c   : > { %v7920_v60 = vpop.f32.mrf.mxu2  ;;  %v7922_v6 = vpop.f32.mrf.mxu3 }
 0x34d   : > { %10822 = vst [vmem:[#allocation269_spill] sm:$0xff] %v7920_v60  ;;  %v7924_v38 = vpop.f32.mrf.mxu0  ;;  %v7926_v18 = vpop.f32.mrf.mxu1 }
 0x34e   : > { %10823 = vst [vmem:[#allocation270_spill] sm:$0xff] %v7924_v38  ;;  %v3985_v38 = vld [vmem:[%s10392_s2 + $0xc0] sm:$0xff] }
 0x34f   : > { %10824 = vst [vmem:[#allocation271_spill] sm:$0xff] %v7926_v18  ;;  %4305 = vmatpush.msra.mxu1 %v3985_v38 }
 0x350   : > { %2698 = vmatmul.f32.gmra.mxu0 %v6833_v51  ;;  %2907 = vmatmul.f32.gmra.mxu1 %v6833_v51 }
 0x351   : > { %3116 = vmatmul.f32.gmra.mxu2 %v6833_v51  ;;  %3325 = vmatmul.f32.gmra.mxu3 %v6833_v51  ;;  %v4001_v51 = vld [vmem:[%s10392_s2 + $0x140] sm:$0xff] }
 0x352   : > { %4514 = vmatpush.msra.mxu2 %v4001_v51 }
 0x354   : > { %v7932_v46 = vpop.f32.mrf.mxu2  ;;  %v7934_v29 = vpop.f32.mrf.mxu3 }
 0x355   : > { %10825 = vst [vmem:[#allocation272_spill] sm:$0xff] %v7932_v46  ;;  %v7936_v42 = vpop.f32.mrf.mxu0  ;;  %v7938_v60 = vpop.f32.mrf.mxu1 }
 0x356   : > { %10826 = vst [vmem:[#allocation273_spill] sm:$0xff] %v7934_v29  ;;  %v3969_v29 = vld [vmem:[%s10392_s2 + $0x40] sm:$0xff] }
 0x357   : > { %10827 = vst [vmem:[#allocation274_spill] sm:$0xff] %v7936_v42  ;;  %4096 = vmatpush.msra.mxu0 %v3969_v29 }
 0x358   : > { %10828 = vst [vmem:[#allocation275_spill] sm:$0xff] %v7938_v60  ;;  %2701 = vmatmul.f32.gmra.mxu0 %v6851_v12  ;;  %2910 = vmatmul.f32.gmra.mxu1 %v6851_v12  ;;  %v4017_v60 = vld [vmem:[%s10392_s2 + $0x1c0] sm:$0xff] }
 0x359   : > { %3119 = vmatmul.f32.gmra.mxu2 %v6851_v12  ;;  %3328 = vmatmul.f32.gmra.mxu3 %v6851_v12 }
 0x35a   : > { %4723 = vmatpush.msra.mxu3 %v4017_v60 }
 0x35c   : > { %v7953_v42 = vpop.f32.mrf.mxu2  ;;  %v7955_v46 = vpop.f32.mrf.mxu3 }
 0x35d   : > { %v7957_v12 = vpop.f32.mrf.mxu0  ;;  %v7959_v18 = vpop.f32.mrf.mxu1 }
 0x35e   : > { %10829 = vst [vmem:[#allocation276_spill] sm:$0xff] %v7957_v12 }
 0x35f   : > { %10830 = vst [vmem:[#allocation277_spill] sm:$0xff] %v7959_v18 }
 0x360   : > { %2704 = vmatmul.f32.gmra.mxu0 %v6881_v56  ;;  %2913 = vmatmul.f32.gmra.mxu1 %v6881_v56 }
 0x361   : > { %3122 = vmatmul.f32.gmra.mxu2 %v6881_v56  ;;  %3331 = vmatmul.f32.gmra.mxu3 %v6881_v56 }
 0x364   : > { %v7968_v29 = vpop.f32.mrf.mxu2  ;;  %v7970_v60 = vpop.f32.mrf.mxu3 }
 0x365   : > { %10831 = vst [vmem:[#allocation278_spill] sm:$0xff] %v7968_v29  ;;  %v7972_v51 = vpop.f32.mrf.mxu0  ;;  %v7974_v18 = vpop.f32.mrf.mxu1 }
 0x366   : > { %10832 = vst [vmem:[#allocation279_spill] sm:$0xff] %v7972_v51 }
 0x367   : > { %10833 = vst [vmem:[#allocation280_spill] sm:$0xff] %v7974_v18 }
 0x368   : > { %2707 = vmatmul.f32.gmra.mxu0 %v6899_v37  ;;  %2916 = vmatmul.f32.gmra.mxu1 %v6899_v37 }
 0x369   : > { %3125 = vmatmul.f32.gmra.mxu2 %v6899_v37  ;;  %3334 = vmatmul.f32.gmra.mxu3 %v6899_v37 }
 0x36c   : > { %v7980_v38 = vpop.f32.mrf.mxu2  ;;  %v7982_v12 = vpop.f32.mrf.mxu3 }
 0x36d   : > { %10834 = vst [vmem:[#allocation281_spill] sm:$0xff] %v7980_v38  ;;  %v7984_v56 = vpop.f32.mrf.mxu0  ;;  %v7986_v29 = vpop.f32.mrf.mxu1 }
 0x36e   : > { %10835 = vst [vmem:[#allocation282_spill] sm:$0xff] %v7982_v12  ;;  %v11144_v12 = vld [vmem:[#allocation81_spill] sm:$0xff] }
 0x36f   : > { %10836 = vst [vmem:[#allocation283_spill] sm:$0xff] %v7984_v56  ;;  %v3984_v56 = vld [vmem:[%s10392_s2 + $0xb8] sm:$0xff] }
 0x370   : > { %10837 = vst [vmem:[#allocation284_spill] sm:$0xff] %v7986_v29  ;;  %2710 = vmatmul.f32.gmra.mxu0 %v6917_v17  ;;  %2919 = vmatmul.f32.gmra.mxu1 %v6917_v17 }
 0x371   : > { %3128 = vmatmul.f32.gmra.mxu2 %v6917_v17  ;;  %3337 = vmatmul.f32.gmra.mxu3 %v6917_v17  ;;  %v4000_v17 = vld [vmem:[%s10392_s2 + $0x138] sm:$0xff] }
 0x372   : > { %4515 = vmatpush.msra.mxu2 %v4000_v17  ;;  %4306 = vmatpush.msra.mxu1 %v3984_v56 }
 0x374   : > { %v7992_v18 = vpop.f32.mrf.mxu2  ;;  %v7994_v51 = vpop.f32.mrf.mxu3 }
 0x375   : > { %10838 = vst [vmem:[#allocation285_spill] sm:$0xff] %v7992_v18  ;;  %v7996_v37 = vpop.f32.mrf.mxu0  ;;  %v7998_v38 = vpop.f32.mrf.mxu1 }
 0x376   : > { %10839 = vst [vmem:[#allocation286_spill] sm:$0xff] %v7994_v51  ;;  %v3968_v51 = vld [vmem:[%s10392_s2 + $0x38] sm:$0xff] }
 0x377   : > { %10840 = vst [vmem:[#allocation287_spill] sm:$0xff] %v7996_v37  ;;  %4097 = vmatpush.msra.mxu0 %v3968_v51 }
 0x378   : > { %10841 = vst [vmem:[#allocation288_spill] sm:$0xff] %v7998_v38  ;;  %2713 = vmatmul.f32.gmra.mxu0 %v6934_v27  ;;  %2922 = vmatmul.f32.gmra.mxu1 %v6934_v27  ;;  %v4016_v38 = vld [vmem:[%s10392_s2 + $0x1b8] sm:$0xff] }
 0x379   : > { %3131 = vmatmul.f32.gmra.mxu2 %v6934_v27  ;;  %3340 = vmatmul.f32.gmra.mxu3 %v6934_v27 }
 0x37a   : > { %4724 = vmatpush.msra.mxu3 %v4016_v38 }
 0x37c   : > { %v8013_v37 = vpop.f32.mrf.mxu2  ;;  %v8015_v18 = vpop.f32.mrf.mxu3 }
 0x37d   : > { %10842 = vst [vmem:[#allocation289_spill] sm:$0xff] %v8013_v37  ;;  %v8017_v27 = vpop.f32.mrf.mxu0  ;;  %v8019_v29 = vpop.f32.mrf.mxu1 }
 0x37e   : > { %10843 = vst [vmem:[#allocation290_spill] sm:$0xff] %v8015_v18  ;;  %v11133_v18 = vld [vmem:[#allocation74_spill] sm:$0xff] }
 0x37f   : > { %10844 = vst [vmem:[#allocation291_spill] sm:$0xff] %v8017_v27 }
 0x380   : > { %10845 = vst [vmem:[#allocation292_spill] sm:$0xff] %v8019_v29  ;;  %2716 = vmatmul.f32.gmra.mxu0 %v6961_v49  ;;  %2925 = vmatmul.f32.gmra.mxu1 %v6961_v49 }
 0x381   : > { %3134 = vmatmul.f32.gmra.mxu2 %v6961_v49  ;;  %3343 = vmatmul.f32.gmra.mxu3 %v6961_v49 }
 0x384   : > { %v8028_v51 = vpop.f32.mrf.mxu2  ;;  %v8030_v38 = vpop.f32.mrf.mxu3 }
 0x385   : > { %10846 = vst [vmem:[#allocation293_spill] sm:$0xff] %v8028_v51  ;;  %v8032_v17 = vpop.f32.mrf.mxu0  ;;  %v8034_v29 = vpop.f32.mrf.mxu1 }
 0x386   : > { %10847 = vst [vmem:[#allocation294_spill] sm:$0xff] %v8030_v38 }
 0x387   : > { %10848 = vst [vmem:[#allocation295_spill] sm:$0xff] %v8032_v17 }
 0x388   : > { %10849 = vst [vmem:[#allocation296_spill] sm:$0xff] %v8034_v29  ;;  %2719 = vmatmul.f32.gmra.mxu0 %v6976_v36  ;;  %2928 = vmatmul.f32.gmra.mxu1 %v6976_v36 }
 0x389   : > { %3137 = vmatmul.f32.gmra.mxu2 %v6976_v36  ;;  %3346 = vmatmul.f32.gmra.mxu3 %v6976_v36 }
 0x38c   : > { %v8040_v56 = vpop.f32.mrf.mxu2  ;;  %v8042_v27 = vpop.f32.mrf.mxu3 }
 0x38d   : > { %10850 = vst [vmem:[#allocation297_spill] sm:$0xff] %v8040_v56  ;;  %v8044_v49 = vpop.f32.mrf.mxu0  ;;  %v8046_v51 = vpop.f32.mrf.mxu1 }
 0x38e   : > { %10851 = vst [vmem:[#allocation298_spill] sm:$0xff] %v8042_v27 }
 0x38f   : > { %10852 = vst [vmem:[#allocation299_spill] sm:$0xff] %v8044_v49  ;;  %v3983_v49 = vld [vmem:[%s10392_s2 + $0xb0] sm:$0xff] }
 0x390   : > { %10853 = vst [vmem:[#allocation300_spill] sm:$0xff] %v8046_v51  ;;  %2722 = vmatmul.f32.gmra.mxu0 %v6991_v19  ;;  %2931 = vmatmul.f32.gmra.mxu1 %v6991_v19 }
 0x391   : > { %3140 = vmatmul.f32.gmra.mxu2 %v6991_v19  ;;  %3349 = vmatmul.f32.gmra.mxu3 %v6991_v19  ;;  %v3999_v19 = vld [vmem:[%s10392_s2 + $0x130] sm:$0xff] }
 0x392   : > { %4516 = vmatpush.msra.mxu2 %v3999_v19  ;;  %4307 = vmatpush.msra.mxu1 %v3983_v49 }
 0x394   : > { %v8052_v29 = vpop.f32.mrf.mxu2  ;;  %v8054_v17 = vpop.f32.mrf.mxu3 }
 0x395   : > { %10854 = vst [vmem:[#allocation301_spill] sm:$0xff] %v8052_v29  ;;  %v8056_v36 = vpop.f32.mrf.mxu0  ;;  %v8058_v56 = vpop.f32.mrf.mxu1 }
 0x396   : > { %10855 = vst [vmem:[#allocation302_spill] sm:$0xff] %v8054_v17  ;;  %v3967_v17 = vld [vmem:[%s10392_s2 + $0x30] sm:$0xff] }
 0x397   : > { %10856 = vst [vmem:[#allocation303_spill] sm:$0xff] %v8056_v36  ;;  %4098 = vmatpush.msra.mxu0 %v3967_v17 }
 0x398   : > { %10857 = vst [vmem:[#allocation304_spill] sm:$0xff] %v8058_v56  ;;  %2725 = vmatmul.f32.gmra.mxu0 %v7006_v32  ;;  %2934 = vmatmul.f32.gmra.mxu1 %v7006_v32  ;;  %v4015_v56 = vld [vmem:[%s10392_s2 + $0x1b0] sm:$0xff] }
 0x399   : > { %3143 = vmatmul.f32.gmra.mxu2 %v7006_v32  ;;  %3352 = vmatmul.f32.gmra.mxu3 %v7006_v32 }
 0x39a   : > { %4725 = vmatpush.msra.mxu3 %v4015_v56 }
 0x39c   : > { %v8073_v36 = vpop.f32.mrf.mxu2  ;;  %v8075_v29 = vpop.f32.mrf.mxu3 }
 0x39d   : > { %10858 = vst [vmem:[#allocation305_spill] sm:$0xff] %v8073_v36  ;;  %v8077_v32 = vpop.f32.mrf.mxu0  ;;  %v8079_v51 = vpop.f32.mrf.mxu1  ;;  %v11111_v36 = vld [vmem:[#allocation61_spill] sm:$0xff] }
 0x39e   : > { %10859 = vst [vmem:[#allocation306_spill] sm:$0xff] %v8075_v29 }
 0x39f   : > { %10860 = vst [vmem:[#allocation307_spill] sm:$0xff] %v8077_v32 }
 0x3a0   : > { %10861 = vst [vmem:[#allocation308_spill] sm:$0xff] %v8079_v51  ;;  %2728 = vmatmul.f32.gmra.mxu0 %v7033_v14  ;;  %2937 = vmatmul.f32.gmra.mxu1 %v7033_v14 }
 0x3a1   : > { %3146 = vmatmul.f32.gmra.mxu2 %v7033_v14  ;;  %3355 = vmatmul.f32.gmra.mxu3 %v7033_v14 }
 0x3a4   : > { %v8088_v17 = vpop.f32.mrf.mxu2  ;;  %v8090_v56 = vpop.f32.mrf.mxu3 }
 0x3a5   : > { %10862 = vst [vmem:[#allocation309_spill] sm:$0xff] %v8088_v17  ;;  %v8092_v19 = vpop.f32.mrf.mxu0  ;;  %v8094_v51 = vpop.f32.mrf.mxu1 }
 0x3a6   : > { %10863 = vst [vmem:[#allocation310_spill] sm:$0xff] %v8090_v56 }
 0x3a7   : > { %10864 = vst [vmem:[#allocation311_spill] sm:$0xff] %v8092_v19 }
 0x3a8   : > { %10865 = vst [vmem:[#allocation312_spill] sm:$0xff] %v8094_v51  ;;  %2731 = vmatmul.f32.gmra.mxu0 %v7048_v55  ;;  %2940 = vmatmul.f32.gmra.mxu1 %v7048_v55 }
 0x3a9   : > { %3149 = vmatmul.f32.gmra.mxu2 %v7048_v55  ;;  %3358 = vmatmul.f32.gmra.mxu3 %v7048_v55 }
 0x3ac   : > { %v8100_v49 = vpop.f32.mrf.mxu2  ;;  %v8102_v32 = vpop.f32.mrf.mxu3 }
 0x3ad   : > { %10866 = vst [vmem:[#allocation313_spill] sm:$0xff] %v8100_v49  ;;  %v8104_v14 = vpop.f32.mrf.mxu0  ;;  %v8106_v17 = vpop.f32.mrf.mxu1 }
 0x3ae   : > { %10867 = vst [vmem:[#allocation314_spill] sm:$0xff] %v8102_v32  ;;  %v11084_v32 = vld [vmem:[#allocation49_spill] sm:$0xff] }
 0x3af   : > { %10868 = vst [vmem:[#allocation315_spill] sm:$0xff] %v8104_v14  ;;  %v3982_v14 = vld [vmem:[%s10392_s2 + $0xa8] sm:$0xff] }
 0x3b0   : > { %10869 = vst [vmem:[#allocation316_spill] sm:$0xff] %v8106_v17  ;;  %2734 = vmatmul.f32.gmra.mxu0 %v7063_v8  ;;  %2943 = vmatmul.f32.gmra.mxu1 %v7063_v8 }
 0x3b1   : > { %3152 = vmatmul.f32.gmra.mxu2 %v7063_v8  ;;  %3361 = vmatmul.f32.gmra.mxu3 %v7063_v8  ;;  %v3998_v8 = vld [vmem:[%s10392_s2 + $0x128] sm:$0xff] }
 0x3b2   : > { %4517 = vmatpush.msra.mxu2 %v3998_v8  ;;  %4308 = vmatpush.msra.mxu1 %v3982_v14 }
 0x3b4   : > { %v8112_v51 = vpop.f32.mrf.mxu2  ;;  %v8114_v19 = vpop.f32.mrf.mxu3 }
 0x3b5   : > { %10870 = vst [vmem:[#allocation317_spill] sm:$0xff] %v8112_v51  ;;  %v8116_v55 = vpop.f32.mrf.mxu0  ;;  %v8118_v49 = vpop.f32.mrf.mxu1 }
 0x3b6   : > { %10871 = vst [vmem:[#allocation318_spill] sm:$0xff] %v8114_v19  ;;  %v3966_v19 = vld [vmem:[%s10392_s2 + $0x28] sm:$0xff] }
 0x3b7   : > { %10872 = vst [vmem:[#allocation319_spill] sm:$0xff] %v8116_v55  ;;  %4099 = vmatpush.msra.mxu0 %v3966_v19 }
 0x3b8   : > { %10873 = vst [vmem:[#allocation320_spill] sm:$0xff] %v8118_v49  ;;  %2737 = vmatmul.f32.gmra.mxu0 %v7078_v23  ;;  %2946 = vmatmul.f32.gmra.mxu1 %v7078_v23  ;;  %v4014_v49 = vld [vmem:[%s10392_s2 + $0x1a8] sm:$0xff] }
 0x3b9   : > { %3155 = vmatmul.f32.gmra.mxu2 %v7078_v23  ;;  %3364 = vmatmul.f32.gmra.mxu3 %v7078_v23 }
 0x3ba   : > { %4726 = vmatpush.msra.mxu3 %v4014_v49 }
 0x3bc   : > { %v8133_v55 = vpop.f32.mrf.mxu2  ;;  %v8135_v51 = vpop.f32.mrf.mxu3 }
 0x3bd   : > { %10874 = vst [vmem:[#allocation321_spill] sm:$0xff] %v8133_v55  ;;  %v8137_v23 = vpop.f32.mrf.mxu0  ;;  %v8139_v17 = vpop.f32.mrf.mxu1 }
 0x3be   : > { %10875 = vst [vmem:[#allocation322_spill] sm:$0xff] %v8135_v51 }
 0x3bf   : > { %10876 = vst [vmem:[#allocation323_spill] sm:$0xff] %v8137_v23 }
 0x3c0   : > { %10877 = vst [vmem:[#allocation324_spill] sm:$0xff] %v8139_v17  ;;  %2740 = vmatmul.f32.gmra.mxu0 %v7105_v35  ;;  %2949 = vmatmul.f32.gmra.mxu1 %v7105_v35 }
 0x3c1   : > { %3158 = vmatmul.f32.gmra.mxu2 %v7105_v35  ;;  %3367 = vmatmul.f32.gmra.mxu3 %v7105_v35 }
 0x3c4   : > { %v8148_v19 = vpop.f32.mrf.mxu2  ;;  %v8150_v49 = vpop.f32.mrf.mxu3 }
 0x3c5   : > { %10878 = vst [vmem:[#allocation325_spill] sm:$0xff] %v8148_v19  ;;  %v8152_v8 = vpop.f32.mrf.mxu0  ;;  %v8154_v17 = vpop.f32.mrf.mxu1 }
 0x3c6   : > { %10879 = vst [vmem:[#allocation326_spill] sm:$0xff] %v8150_v49  ;;  %v11059_v49 = vld [vmem:[#allocation17_spill] sm:$0xff] }
 0x3c7   : > { %10880 = vst [vmem:[#allocation327_spill] sm:$0xff] %v8152_v8 }
 0x3c8   : > { %10881 = vst [vmem:[#allocation328_spill] sm:$0xff] %v8154_v17  ;;  %2743 = vmatmul.f32.gmra.mxu0 %v7120_v54  ;;  %2952 = vmatmul.f32.gmra.mxu1 %v7120_v54 }
 0x3c9   : > { %3161 = vmatmul.f32.gmra.mxu2 %v7120_v54  ;;  %3370 = vmatmul.f32.gmra.mxu3 %v7120_v54 }
 0x3cc   : > { %v8160_v14 = vpop.f32.mrf.mxu2  ;;  %v8162_v23 = vpop.f32.mrf.mxu3 }
 0x3cd   : > { %10882 = vst [vmem:[#allocation329_spill] sm:$0xff] %v8160_v14  ;;  %v8164_v35 = vpop.f32.mrf.mxu0  ;;  %v8166_v19 = vpop.f32.mrf.mxu1 }
 0x3ce   : > { %10883 = vst [vmem:[#allocation330_spill] sm:$0xff] %v8162_v23 }
 0x3cf   : > { %10884 = vst [vmem:[#allocation331_spill] sm:$0xff] %v8164_v35  ;;  %v3981_v35 = vld [vmem:[%s10392_s2 + $0xa0] sm:$0xff] }
 0x3d0   : > { %10885 = vst [vmem:[#allocation332_spill] sm:$0xff] %v8166_v19  ;;  %2746 = vmatmul.f32.gmra.mxu0 %v7135_v44  ;;  %2955 = vmatmul.f32.gmra.mxu1 %v7135_v44 }
 0x3d1   : > { %3164 = vmatmul.f32.gmra.mxu2 %v7135_v44  ;;  %3373 = vmatmul.f32.gmra.mxu3 %v7135_v44  ;;  %v3997_v44 = vld [vmem:[%s10392_s2 + $0x120] sm:$0xff] }
 0x3d2   : > { %4518 = vmatpush.msra.mxu2 %v3997_v44  ;;  %4309 = vmatpush.msra.mxu1 %v3981_v35 }
 0x3d4   : > { %v8172_v17 = vpop.f32.mrf.mxu2  ;;  %v8174_v8 = vpop.f32.mrf.mxu3 }
 0x3d5   : > { %10886 = vst [vmem:[#allocation333_spill] sm:$0xff] %v8172_v17  ;;  %v8176_v54 = vpop.f32.mrf.mxu0  ;;  %v8178_v14 = vpop.f32.mrf.mxu1 }
 0x3d6   : > { %10887 = vst [vmem:[#allocation334_spill] sm:$0xff] %v8174_v8  ;;  %v3965_v8 = vld [vmem:[%s10392_s2 + $0x20] sm:$0xff] }
 0x3d7   : > { %10888 = vst [vmem:[#allocation335_spill] sm:$0xff] %v8176_v54  ;;  %4100 = vmatpush.msra.mxu0 %v3965_v8 }
 0x3d8   : > { %10889 = vst [vmem:[#allocation336_spill] sm:$0xff] %v8178_v14  ;;  %2749 = vmatmul.f32.gmra.mxu0 %v7150_v4  ;;  %2958 = vmatmul.f32.gmra.mxu1 %v7150_v4  ;;  %v4013_v14 = vld [vmem:[%s10392_s2 + $0x1a0] sm:$0xff] }
 0x3d9   : > { %3167 = vmatmul.f32.gmra.mxu2 %v7150_v4  ;;  %3376 = vmatmul.f32.gmra.mxu3 %v7150_v4 }
 0x3da   : > { %4727 = vmatpush.msra.mxu3 %v4013_v14 }
 0x3dc   : > { %v8193_v54 = vpop.f32.mrf.mxu2  ;;  %v8195_v17 = vpop.f32.mrf.mxu3 }
 0x3dd   : > { %10890 = vst [vmem:[#allocation337_spill] sm:$0xff] %v8193_v54  ;;  %v8197_v4 = vpop.f32.mrf.mxu0  ;;  %v8199_v19 = vpop.f32.mrf.mxu1 }
 0x3de   : > { %10891 = vst [vmem:[#allocation338_spill] sm:$0xff] %v8195_v17 }
 0x3df   : > { %10892 = vst [vmem:[#allocation339_spill] sm:$0xff] %v8197_v4 }
 0x3e0   : > { %10893 = vst [vmem:[#allocation340_spill] sm:$0xff] %v8199_v19  ;;  %2752 = vmatmul.f32.gmra.mxu0 %v7177_v22  ;;  %2961 = vmatmul.f32.gmra.mxu1 %v7177_v22 }
 0x3e1   : > { %3170 = vmatmul.f32.gmra.mxu2 %v7177_v22  ;;  %3379 = vmatmul.f32.gmra.mxu3 %v7177_v22 }
 0x3e4   : > { %v8208_v8 = vpop.f32.mrf.mxu2  ;;  %v8210_v14 = vpop.f32.mrf.mxu3 }
 0x3e5   : > { %10894 = vst [vmem:[#allocation341_spill] sm:$0xff] %v8208_v8  ;;  %v8212_v44 = vpop.f32.mrf.mxu0  ;;  %v8214_v19 = vpop.f32.mrf.mxu1 }
 0x3e6   : > { %10895 = vst [vmem:[#allocation342_spill] sm:$0xff] %v8210_v14 }
 0x3e7   : > { %10896 = vst [vmem:[#allocation343_spill] sm:$0xff] %v8212_v44 }
 0x3e8   : > { %10897 = vst [vmem:[#allocation344_spill] sm:$0xff] %v8214_v19  ;;  %2755 = vmatmul.f32.gmra.mxu0 %v7192_v45  ;;  %2964 = vmatmul.f32.gmra.mxu1 %v7192_v45 }
 0x3e9   : > { %3173 = vmatmul.f32.gmra.mxu2 %v7192_v45  ;;  %3382 = vmatmul.f32.gmra.mxu3 %v7192_v45 }
 0x3ec   : > { %v8220_v35 = vpop.f32.mrf.mxu2  ;;  %v8222_v4 = vpop.f32.mrf.mxu3 }
 0x3ed   : > { %10898 = vst [vmem:[#allocation345_spill] sm:$0xff] %v8220_v35  ;;  %v8224_v22 = vpop.f32.mrf.mxu0  ;;  %v8226_v8 = vpop.f32.mrf.mxu1 }
 0x3ee   : > { %10899 = vst [vmem:[#allocation346_spill] sm:$0xff] %v8222_v4 }
 0x3ef   : > { %10900 = vst [vmem:[#allocation347_spill] sm:$0xff] %v8224_v22  ;;  %v3980_v22 = vld [vmem:[%s10392_s2 + $0x98] sm:$0xff] }
 0x3f0   : > { %10901 = vst [vmem:[#allocation348_spill] sm:$0xff] %v8226_v8  ;;  %2758 = vmatmul.f32.gmra.mxu0 %v7207_v25  ;;  %2967 = vmatmul.f32.gmra.mxu1 %v7207_v25 }
 0x3f1   : > { %3176 = vmatmul.f32.gmra.mxu2 %v7207_v25  ;;  %3385 = vmatmul.f32.gmra.mxu3 %v7207_v25  ;;  %v3996_v25 = vld [vmem:[%s10392_s2 + $0x118] sm:$0xff] }
 0x3f2   : > { %4519 = vmatpush.msra.mxu2 %v3996_v25  ;;  %4310 = vmatpush.msra.mxu1 %v3980_v22 }
 0x3f4   : > { %v8232_v19 = vpop.f32.mrf.mxu2  ;;  %v8234_v44 = vpop.f32.mrf.mxu3 }
 0x3f5   : > { %10902 = vst [vmem:[#allocation349_spill] sm:$0xff] %v8232_v19  ;;  %v8236_v45 = vpop.f32.mrf.mxu0  ;;  %v8238_v35 = vpop.f32.mrf.mxu1 }
 0x3f6   : > { %10903 = vst [vmem:[#allocation350_spill] sm:$0xff] %v8234_v44  ;;  %v3964_v44 = vld [vmem:[%s10392_s2 + $0x18] sm:$0xff] }
 0x3f7   : > { %10904 = vst [vmem:[#allocation351_spill] sm:$0xff] %v8236_v45  ;;  %4101 = vmatpush.msra.mxu0 %v3964_v44 }
 0x3f8   : > { %10905 = vst [vmem:[#allocation352_spill] sm:$0xff] %v8238_v35  ;;  %2761 = vmatmul.f32.gmra.mxu0 %v7222_v5  ;;  %2970 = vmatmul.f32.gmra.mxu1 %v7222_v5  ;;  %v4012_v35 = vld [vmem:[%s10392_s2 + $0x198] sm:$0xff] }
 0x3f9   : > { %3179 = vmatmul.f32.gmra.mxu2 %v7222_v5  ;;  %3388 = vmatmul.f32.gmra.mxu3 %v7222_v5 }
 0x3fa   : > { %4728 = vmatpush.msra.mxu3 %v4012_v35 }
 0x3fc   : > { %v8253_v45 = vpop.f32.mrf.mxu2  ;;  %v8255_v19 = vpop.f32.mrf.mxu3 }
 0x3fd   : > { %10906 = vst [vmem:[#allocation353_spill] sm:$0xff] %v8253_v45  ;;  %v8257_v5 = vpop.f32.mrf.mxu0  ;;  %v8259_v8 = vpop.f32.mrf.mxu1 }
 0x3fe   : > { %10907 = vst [vmem:[#allocation354_spill] sm:$0xff] %v8255_v19 }
 0x3ff   : > { %10908 = vst [vmem:[#allocation355_spill] sm:$0xff] %v8257_v5 }
 0x400   : > { %10909 = vst [vmem:[#allocation356_spill] sm:$0xff] %v8259_v8  ;;  %2764 = vmatmul.f32.gmra.mxu0 %v7249_v63  ;;  %2973 = vmatmul.f32.gmra.mxu1 %v7249_v63 }
 0x401   : > { %3182 = vmatmul.f32.gmra.mxu2 %v7249_v63  ;;  %3391 = vmatmul.f32.gmra.mxu3 %v7249_v63 }
 0x404   : > { %v8268_v44 = vpop.f32.mrf.mxu2  ;;  %v8270_v35 = vpop.f32.mrf.mxu3 }
 0x405   : > { %10910 = vst [vmem:[#allocation357_spill] sm:$0xff] %v8268_v44  ;;  %v8272_v25 = vpop.f32.mrf.mxu0  ;;  %v8274_v8 = vpop.f32.mrf.mxu1 }
 0x406   : > { %10911 = vst [vmem:[#allocation358_spill] sm:$0xff] %v8270_v35 }
 0x407   : > { %10912 = vst [vmem:[#allocation359_spill] sm:$0xff] %v8272_v25 }
 0x408   : > { %10913 = vst [vmem:[#allocation360_spill] sm:$0xff] %v8274_v8  ;;  %2767 = vmatmul.f32.gmra.mxu0 %v7264_v24  ;;  %2976 = vmatmul.f32.gmra.mxu1 %v7264_v24 }
 0x409   : > { %3185 = vmatmul.f32.gmra.mxu2 %v7264_v24  ;;  %3394 = vmatmul.f32.gmra.mxu3 %v7264_v24 }
 0x40c   : > { %v8280_v22 = vpop.f32.mrf.mxu2  ;;  %v8282_v5 = vpop.f32.mrf.mxu3 }
 0x40d   : > { %10914 = vst [vmem:[#allocation361_spill] sm:$0xff] %v8280_v22  ;;  %v8284_v63 = vpop.f32.mrf.mxu0  ;;  %v8286_v44 = vpop.f32.mrf.mxu1 }
 0x40e   : > { %10915 = vst [vmem:[#allocation362_spill] sm:$0xff] %v8282_v5 }
 0x40f   : > { %10916 = vst [vmem:[#allocation363_spill] sm:$0xff] %v8284_v63  ;;  %v3979_v63 = vld [vmem:[%s10392_s2 + $0x90] sm:$0xff] }
 0x410   : > { %10917 = vst [vmem:[#allocation364_spill] sm:$0xff] %v8286_v44  ;;  %2770 = vmatmul.f32.gmra.mxu0 %v7279_v2  ;;  %2979 = vmatmul.f32.gmra.mxu1 %v7279_v2 }
 0x411   : > { %3188 = vmatmul.f32.gmra.mxu2 %v7279_v2  ;;  %3397 = vmatmul.f32.gmra.mxu3 %v7279_v2  ;;  %v3995_v2 = vld [vmem:[%s10392_s2 + $0x110] sm:$0xff] }
 0x412   : > { %4520 = vmatpush.msra.mxu2 %v3995_v2  ;;  %4311 = vmatpush.msra.mxu1 %v3979_v63 }
 0x414   : > { %v8292_v8 = vpop.f32.mrf.mxu2  ;;  %v8294_v25 = vpop.f32.mrf.mxu3 }
 0x415   : > { %10918 = vst [vmem:[#allocation365_spill] sm:$0xff] %v8292_v8  ;;  %v8296_v24 = vpop.f32.mrf.mxu0  ;;  %v8298_v22 = vpop.f32.mrf.mxu1 }
 0x416   : > { %10919 = vst [vmem:[#allocation366_spill] sm:$0xff] %v8294_v25  ;;  %v3963_v25 = vld [vmem:[%s10392_s2 + $0x10] sm:$0xff] }
 0x417   : > { %10920 = vst [vmem:[#allocation367_spill] sm:$0xff] %v8296_v24  ;;  %4102 = vmatpush.msra.mxu0 %v3963_v25 }
 0x418   : > { %10921 = vst [vmem:[#allocation368_spill] sm:$0xff] %v8298_v22  ;;  %2773 = vmatmul.f32.gmra.mxu0 %v7294_v50  ;;  %2982 = vmatmul.f32.gmra.mxu1 %v7294_v50  ;;  %v4011_v22 = vld [vmem:[%s10392_s2 + $0x190] sm:$0xff] }
 0x419   : > { %3191 = vmatmul.f32.gmra.mxu2 %v7294_v50  ;;  %3400 = vmatmul.f32.gmra.mxu3 %v7294_v50 }
 0x41a   : > { %4729 = vmatpush.msra.mxu3 %v4011_v22 }
 0x41c   : > { %v8313_v24 = vpop.f32.mrf.mxu2  ;;  %v8315_v8 = vpop.f32.mrf.mxu3 }
 0x41d   : > { %10922 = vst [vmem:[#allocation369_spill] sm:$0xff] %v8313_v24  ;;  %v8317_v50 = vpop.f32.mrf.mxu0  ;;  %v8319_v44 = vpop.f32.mrf.mxu1 }
 0x41e   : > { %10923 = vst [vmem:[#allocation370_spill] sm:$0xff] %v8315_v8  ;;  %v10995_v8 = vld [vmem:[#allocation20_spill] sm:$0xff] }
 0x41f   : > { %10924 = vst [vmem:[#allocation371_spill] sm:$0xff] %v8317_v50 }
 0x420   : > { %10925 = vst [vmem:[#allocation372_spill] sm:$0xff] %v8319_v44  ;;  %2776 = vmatmul.f32.gmra.mxu0 %v7321_v21  ;;  %2985 = vmatmul.f32.gmra.mxu1 %v7321_v21 }
 0x421   : > { %3194 = vmatmul.f32.gmra.mxu2 %v7321_v21  ;;  %3403 = vmatmul.f32.gmra.mxu3 %v7321_v21 }
 0x424   : > { %v8328_v25 = vpop.f32.mrf.mxu2  ;;  %v8330_v22 = vpop.f32.mrf.mxu3 }
 0x425   : > { %10926 = vst [vmem:[#allocation373_spill] sm:$0xff] %v8328_v25  ;;  %v8332_v2 = vpop.f32.mrf.mxu0  ;;  %v8334_v44 = vpop.f32.mrf.mxu1 }
 0x426   : > { %10927 = vst [vmem:[#allocation374_spill] sm:$0xff] %v8330_v22  ;;  %v10943_v22 = vld [vmem:[#allocation156_spill] sm:$0xff] }
 0x427   : > { %10928 = vst [vmem:[#allocation375_spill] sm:$0xff] %v8332_v2 }
 0x428   : > { %10929 = vst [vmem:[#allocation376_spill] sm:$0xff] %v8334_v44  ;;  %2779 = vmatmul.f32.gmra.mxu0 %v7336_v61  ;;  %2988 = vmatmul.f32.gmra.mxu1 %v7336_v61 }
 0x429   : > { %3197 = vmatmul.f32.gmra.mxu2 %v7336_v61  ;;  %3406 = vmatmul.f32.gmra.mxu3 %v7336_v61 }
 0x42c   : > { %v8340_v63 = vpop.f32.mrf.mxu2  ;;  %v8342_v50 = vpop.f32.mrf.mxu3 }
 0x42d   : > { %10930 = vst [vmem:[#allocation377_spill] sm:$0xff] %v8340_v63  ;;  %v8344_v21 = vpop.f32.mrf.mxu0  ;;  %v8346_v25 = vpop.f32.mrf.mxu1 }
 0x42e   : > { %10931 = vst [vmem:[#allocation378_spill] sm:$0xff] %v8342_v50  ;;  %v10938_v50 = vld [vmem:[#allocation151_spill] sm:$0xff] }
 0x42f   : > { %10932 = vst [vmem:[#allocation379_spill] sm:$0xff] %v8344_v21  ;;  %v3978_v21 = vld [vmem:[%s10392_s2 + $0x88] sm:$0xff] }
 0x430   : > { %10933 = vst [vmem:[#allocation380_spill] sm:$0xff] %v8346_v25  ;;  %2782 = vmatmul.f32.gmra.mxu0 %v7351_v0  ;;  %2991 = vmatmul.f32.gmra.mxu1 %v7351_v0 }
 0x431   : > { %3200 = vmatmul.f32.gmra.mxu2 %v7351_v0  ;;  %3409 = vmatmul.f32.gmra.mxu3 %v7351_v0  ;;  %v3994_v0 = vld [vmem:[%s10392_s2 + $0x108] sm:$0xff] }
 0x432   : > { %4521 = vmatpush.msra.mxu2 %v3994_v0  ;;  %4312 = vmatpush.msra.mxu1 %v3978_v21 }
 0x434   : > { %v8352_v44 = vpop.f32.mrf.mxu2  ;;  %v8354_v2 = vpop.f32.mrf.mxu3 }
 0x435   : > { %10934 = vst [vmem:[#allocation381_spill] sm:$0xff] %v8352_v44  ;;  %v8356_v61 = vpop.f32.mrf.mxu0  ;;  %v8358_v63 = vpop.f32.mrf.mxu1 }
 0x436   : > { %10935 = vst [vmem:[#allocation382_spill] sm:$0xff] %v8354_v2  ;;  %v3962_v2 = vld [vmem:[%s10392_s2 + $0x8] sm:$0xff] }
 0x437   : > { %10936 = vst [vmem:[#allocation383_spill] sm:$0xff] %v8356_v61  ;;  %4103 = vmatpush.msra.mxu0 %v3962_v2 }
 0x438   : > { %10937 = vst [vmem:[#allocation384_spill] sm:$0xff] %v8358_v63  ;;  %2785 = vmatmul.f32.gmra.mxu0 %v10938_v50  ;;  %2994 = vmatmul.f32.gmra.mxu1 %v10938_v50  ;;  %v4010_v63 = vld [vmem:[%s10392_s2 + $0x188] sm:$0xff] }
 0x439   : > { %3203 = vmatmul.f32.gmra.mxu2 %v10938_v50  ;;  %3412 = vmatmul.f32.gmra.mxu3 %v10938_v50 }
 0x43a   : > { %4730 = vmatpush.msra.mxu3 %v4010_v63 }
 0x43c   : > { %v8373_v61 = vpop.f32.mrf.mxu2  ;;  %v8375_v44 = vpop.f32.mrf.mxu3 }
 0x43d   : > { %10939 = vst [vmem:[#allocation151_spill] sm:$0xff] %v8373_v61  ;;  %v8377_v50 = vpop.f32.mrf.mxu0  ;;  %v8379_v25 = vpop.f32.mrf.mxu1  ;;  %v10963_v61 = vld [vmem:[#allocation176_spill] sm:$0xff] }
 0x43e   : > { %10940 = vst [vmem:[#allocation385_spill] sm:$0xff] %v8375_v44 }
 0x43f   : > { %10941 = vst [vmem:[#allocation386_spill] sm:$0xff] %v8377_v50  ;;  %v10948_v50 = vld [vmem:[#allocation161_spill] sm:$0xff] }
 0x440   : > { %10942 = vst [vmem:[#allocation387_spill] sm:$0xff] %v8379_v25  ;;  %2788 = vmatmul.f32.gmra.mxu0 %v10943_v22  ;;  %2997 = vmatmul.f32.gmra.mxu1 %v10943_v22 }
 0x441   : > { %3206 = vmatmul.f32.gmra.mxu2 %v10943_v22  ;;  %3415 = vmatmul.f32.gmra.mxu3 %v10943_v22 }
 0x444   : > { %v8388_v2 = vpop.f32.mrf.mxu2  ;;  %v8390_v63 = vpop.f32.mrf.mxu3 }
 0x445   : > { %10944 = vst [vmem:[#allocation156_spill] sm:$0xff] %v8388_v2  ;;  %v8392_v0 = vpop.f32.mrf.mxu0  ;;  %v8394_v25 = vpop.f32.mrf.mxu1 }
 0x446   : > { %10945 = vst [vmem:[#allocation388_spill] sm:$0xff] %v8390_v63  ;;  %v10953_v63 = vld [vmem:[#allocation166_spill] sm:$0xff] }
 0x447   : > { %10946 = vst [vmem:[#allocation389_spill] sm:$0xff] %v8392_v0 }
 0x448   : > { %10947 = vst [vmem:[#allocation390_spill] sm:$0xff] %v8394_v25  ;;  %2791 = vmatmul.f32.gmra.mxu0 %v10948_v50  ;;  %3000 = vmatmul.f32.gmra.mxu1 %v10948_v50 }
 0x449   : > { %3209 = vmatmul.f32.gmra.mxu2 %v10948_v50  ;;  %3418 = vmatmul.f32.gmra.mxu3 %v10948_v50 }
 0x44c   : > { %v8400_v21 = vpop.f32.mrf.mxu2  ;;  %v8402_v44 = vpop.f32.mrf.mxu3 }
 0x44d   : > { %10949 = vst [vmem:[#allocation161_spill] sm:$0xff] %v8400_v21  ;;  %v8404_v22 = vpop.f32.mrf.mxu0  ;;  %v8406_v2 = vpop.f32.mrf.mxu1 }
 0x44e   : > { %10950 = vst [vmem:[#allocation391_spill] sm:$0xff] %v8402_v44  ;;  %v10958_v44 = vld [vmem:[#allocation171_spill] sm:$0xff] }
 0x44f   : > { %10951 = vst [vmem:[#allocation392_spill] sm:$0xff] %v8404_v22  ;;  %v3977_v22 = vld [vmem:[%s10392_s2 + $0x80] sm:$0xff] }
 0x450   : > { %10952 = vst [vmem:[#allocation393_spill] sm:$0xff] %v8406_v2  ;;  %2794 = vmatmul.f32.gmra.mxu0 %v10953_v63  ;;  %3003 = vmatmul.f32.gmra.mxu1 %v10953_v63 }
 0x451   : > { %3212 = vmatmul.f32.gmra.mxu2 %v10953_v63  ;;  %3421 = vmatmul.f32.gmra.mxu3 %v10953_v63  ;;  %v3993_v63 = vld [vmem:[%s10392_s2 + $0x100] sm:$0xff] }
 0x452   : > { %4522 = vmatpush.msra.mxu2 %v3993_v63  ;;  %4313 = vmatpush.msra.mxu1 %v3977_v22 }
 0x454   : > { %v8412_v25 = vpop.f32.mrf.mxu2  ;;  %v8414_v0 = vpop.f32.mrf.mxu3 }
 0x455   : > { %10954 = vst [vmem:[#allocation166_spill] sm:$0xff] %v8412_v25  ;;  %v8416_v50 = vpop.f32.mrf.mxu0  ;;  %v8418_v21 = vpop.f32.mrf.mxu1 }
 0x456   : > { %10955 = vst [vmem:[#allocation394_spill] sm:$0xff] %v8414_v0  ;;  %v3961_v0 = vld [vmem:[%s10392_s2] sm:$0xff] }
 0x457   : > { %10956 = vst [vmem:[#allocation395_spill] sm:$0xff] %v8416_v50  ;;  %4104 = vmatpush.msra.mxu0 %v3961_v0 }
 0x458   : > { %10957 = vst [vmem:[#allocation396_spill] sm:$0xff] %v8418_v21  ;;  %2797 = vmatmul.f32.gmra.mxu0 %v10958_v44  ;;  %3006 = vmatmul.f32.gmra.mxu1 %v10958_v44  ;;  %v4009_v21 = vld [vmem:[%s10392_s2 + $0x180] sm:$0xff] }
 0x459   : > { %3215 = vmatmul.f32.gmra.mxu2 %v10958_v44  ;;  %3424 = vmatmul.f32.gmra.mxu3 %v10958_v44 }
 0x45a   : > { %4731 = vmatpush.msra.mxu3 %v4009_v21 }
 0x45c   : > { %v8433_v50 = vpop.f32.mrf.mxu2  ;;  %v8435_v25 = vpop.f32.mrf.mxu3 }
 0x45d   : > { %10959 = vst [vmem:[#allocation171_spill] sm:$0xff] %v8433_v50  ;;  %v8437_v44 = vpop.f32.mrf.mxu0  ;;  %v8439_v2 = vpop.f32.mrf.mxu1 }
 0x45e   : > { %10960 = vst [vmem:[#allocation397_spill] sm:$0xff] %v8435_v25 }
 0x45f   : > { %10961 = vst [vmem:[#allocation398_spill] sm:$0xff] %v8437_v44  ;;  %v10968_v44 = vld [vmem:[#allocation181_spill] sm:$0xff] }
 0x460   : > { %10962 = vst [vmem:[#allocation399_spill] sm:$0xff] %v8439_v2  ;;  %2800 = vmatmul.f32.gmra.mxu0 %v10963_v61  ;;  %3009 = vmatmul.f32.gmra.mxu1 %v10963_v61 }
 0x461   : > { %3218 = vmatmul.f32.gmra.mxu2 %v10963_v61  ;;  %3427 = vmatmul.f32.gmra.mxu3 %v10963_v61 }
 0x464   : > { %v8448_v0 = vpop.f32.mrf.mxu2  ;;  %v8450_v21 = vpop.f32.mrf.mxu3 }
 0x465   : > { %10964 = vst [vmem:[#allocation176_spill] sm:$0xff] %v8448_v0  ;;  %v8452_v63 = vpop.f32.mrf.mxu0  ;;  %v8454_v2 = vpop.f32.mrf.mxu1 }
 0x466   : > { %10965 = vst [vmem:[#allocation400_spill] sm:$0xff] %v8450_v21  ;;  %v10973_v21 = vld [vmem:[#allocation186_spill] sm:$0xff] }
 0x467   : > { %10966 = vst [vmem:[#allocation401_spill] sm:$0xff] %v8452_v63 }
 0x468   : > { %10967 = vst [vmem:[#allocation402_spill] sm:$0xff] %v8454_v2  ;;  %2803 = vmatmul.f32.gmra.mxu0 %v10968_v44  ;;  %3012 = vmatmul.f32.gmra.mxu1 %v10968_v44 }
 0x469   : > { %3221 = vmatmul.f32.gmra.mxu2 %v10968_v44  ;;  %3430 = vmatmul.f32.gmra.mxu3 %v10968_v44 }
 0x46c   : > { %v8460_v22 = vpop.f32.mrf.mxu2  ;;  %v8462_v25 = vpop.f32.mrf.mxu3 }
 0x46d   : > { %10969 = vst [vmem:[#allocation181_spill] sm:$0xff] %v8460_v22  ;;  %v8464_v61 = vpop.f32.mrf.mxu0  ;;  %v8466_v0 = vpop.f32.mrf.mxu1 }
 0x46e   : > { %10970 = vst [vmem:[#allocation403_spill] sm:$0xff] %v8462_v25  ;;  %v10978_v25 = vld [vmem:[#allocation191_spill] sm:$0xff] }
 0x46f   : > { %10971 = vst [vmem:[#allocation404_spill] sm:$0xff] %v8464_v61  ;;  %v4056_v61 = vld [vmem:[%s10392_s2 + $0x2f8] sm:$0xff] }
 0x470   : > { %10972 = vst [vmem:[#allocation405_spill] sm:$0xff] %v8466_v0  ;;  %2806 = vmatmul.f32.gmra.mxu0 %v10973_v21  ;;  %3015 = vmatmul.f32.gmra.mxu1 %v10973_v21 }
 0x471   : > { %3224 = vmatmul.f32.gmra.mxu2 %v10973_v21  ;;  %3433 = vmatmul.f32.gmra.mxu3 %v10973_v21  ;;  %v4072_v21 = vld [vmem:[%s10392_s2 + $0x378] sm:$0xff] }
 0x472   : > { %5343 = vmatpush.msrb.mxu2 %v4072_v21  ;;  %5134 = vmatpush.msrb.mxu1 %v4056_v61  ;;  %v569_v61 = vpop.permute.xlu2 %568 }
 0x474   : > { %v8472_v2 = vpop.f32.mrf.mxu2  ;;  %v8474_v63 = vpop.f32.mrf.mxu3 }
 0x475   : > { %10974 = vst [vmem:[#allocation186_spill] sm:$0xff] %v8472_v2  ;;  %v8476_v44 = vpop.f32.mrf.mxu0  ;;  %v8478_v22 = vpop.f32.mrf.mxu1 }
 0x476   : > { %10975 = vst [vmem:[#allocation406_spill] sm:$0xff] %v8474_v63  ;;  %v4040_v63 = vld [vmem:[%s10392_s2 + $0x278] sm:$0xff] }
 0x477   : > { %10976 = vst [vmem:[#allocation407_spill] sm:$0xff] %v8476_v44  ;;  %4925 = vmatpush.msrb.mxu0 %v4040_v63  ;;  %v564_v63 = vpop.permute.xlu1 %563 }
 0x478   : > { %10977 = vst [vmem:[#allocation408_spill] sm:$0xff] %v8478_v22  ;;  %2809 = vmatmul.f32.gmra.mxu0 %v10978_v25  ;;  %3018 = vmatmul.f32.gmra.mxu1 %v10978_v25  ;;  %v4088_v22 = vld [vmem:[%s10392_s2 + $0x3f8] sm:$0xff] }
 0x479   : > { %3227 = vmatmul.f32.gmra.mxu2 %v10978_v25  ;;  %3436 = vmatmul.f32.gmra.mxu3 %v10978_v25 }
 0x47a   : > { %5552 = vmatpush.msrb.mxu3 %v4088_v22 }
 0x47c   : > { %v8493_v44 = vpop.f32.mrf.mxu2  ;;  %v8495_v2 = vpop.f32.mrf.mxu3 }
 0x47d   : > { %10979 = vst [vmem:[#allocation191_spill] sm:$0xff] %v8493_v44  ;;  %v8497_v25 = vpop.f32.mrf.mxu0  ;;  %v8499_v0 = vpop.f32.mrf.mxu1 }
 0x47e   : > { %10980 = vst [vmem:[#allocation409_spill] sm:$0xff] %v8495_v2  ;;  %v881_v2 = vsub.f32 %v6412_v10, %v564_v63  ;;  %v882_v63 = vsub.f32 %v6412_v10, %v569_v61 }
 0x47f   : > { %10981 = vst [vmem:[#allocation410_spill] sm:$0xff] %v8497_v25 }
 0x480   : > { %10982 = vst [vmem:[#allocation411_spill] sm:$0xff] %v8499_v0  ;;  %2812 = vmatmul.f32.gmra.mxu0 %v7537_v15  ;;  %3021 = vmatmul.f32.gmra.mxu1 %v7537_v15 }
 0x481   : > { %3230 = vmatmul.f32.gmra.mxu2 %v7537_v15  ;;  %3439 = vmatmul.f32.gmra.mxu3 %v7537_v15  ;;  %v945_v15 = vand.u32 2147483647, %v881_v2 }
 0x484   : > { %v8508_v22 = vpop.f32.mrf.mxu2  ;;  %v8510_v21 = vpop.f32.mrf.mxu3 }
 0x485   : > { %10983 = vst [vmem:[#allocation412_spill] sm:$0xff] %v8508_v22  ;;  %v8512_v25 = vpop.f32.mrf.mxu0  ;;  %v8514_v0 = vpop.f32.mrf.mxu1 }
 0x486   : > { %10984 = vst [vmem:[#allocation413_spill] sm:$0xff] %v8510_v21 }
 0x487   : > { %10985 = vst [vmem:[#allocation414_spill] sm:$0xff] %v8512_v25 }
 0x488   : > { %10986 = vst [vmem:[#allocation415_spill] sm:$0xff] %v8514_v0  ;;  %2815 = vmatmul.f32.gmra.mxu0 %v7552_v1  ;;  %3024 = vmatmul.f32.gmra.mxu1 %v7552_v1  ;;  %v1009_v0 = vsub.f32 1.0, %v945_v15 }
 0x489   : > { %3233 = vmatmul.f32.gmra.mxu2 %v7552_v1  ;;  %3442 = vmatmul.f32.gmra.mxu3 %v7552_v1  ;;  %v946_v1 = vand.u32 2147483647, %v882_v63 }
 0x48a   : > { %v8534_v2 = vmax.f32 %v1009_v0, 0.0  ;;  %v10997_v0 = vld [vmem:[#allocation22_spill] sm:$0xff] }
 0x48b   : > { %v1010_v15 = vsub.f32 1.0, %v946_v1  ;;  %v4087_v1 = vld [vmem:[%s10392_s2 + $0x3f0] sm:$0xff] }
 0x48c   : > { %v8521_v44 = vpop.f32.mrf.mxu2  ;;  %v8523_v22 = vpop.f32.mrf.mxu3  ;;  %v3449_v24 = vmul.f32 %v10995_v8, %v8534_v2  ;;  %v3577_v5 = vmul.f32 %v10997_v0, %v8534_v2  ;;  %v4039_v8 = vld [vmem:[%s10392_s2 + $0x270] sm:$0xff]  ;;  %5553 = vmatpush.msrb.mxu3 %v4087_v1 }
 0x48d   : > { %10987 = vst [vmem:[#allocation416_spill] sm:$0xff] %v8521_v44  ;;  %v8525_v21 = vpop.f32.mrf.mxu0  ;;  %v8527_v25 = vpop.f32.mrf.mxu1  ;;  %4926 = vmatpush.msrb.mxu0 %v4039_v8  ;;  %v11004_v8 = vld [vmem:[#allocation25_spill] sm:$0xff] }
 0x48e   : > { %10988 = vst [vmem:[#allocation417_spill] sm:$0xff] %v8523_v22  ;;  %v574_v44 = vpop.permute.xlu0 %573 }
 0x48f   : > { %10989 = vst [vmem:[#allocation418_spill] sm:$0xff] %v8525_v21  ;;  %v883_v50 = vsub.f32 %v6412_v10, %v574_v44  ;;  %v4071_v44 = vld [vmem:[%s10392_s2 + $0x370] sm:$0xff] }
 0x490   : > { %10990 = vst [vmem:[#allocation419_spill] sm:$0xff] %v8527_v25  ;;  %2818 = vmatmul.f32.gmra.mxu0 %v7566_v11  ;;  %3027 = vmatmul.f32.gmra.mxu1 %v7566_v11 }
 0x491   : > { %3236 = vmatmul.f32.gmra.mxu2 %v7566_v11  ;;  %3445 = vmatmul.f32.gmra.mxu3 %v7566_v11  ;;  %v10996_v11 = vld [vmem:[#allocation21_spill] sm:$0xff]  ;;  %v947_v0 = vand.u32 2147483647, %v883_v50  ;;  %v11003_v50 = vld [vmem:[#allocation24_spill] sm:$0xff] }
 0x492   : > { %v3513_v63 = vmul.f32 %v10996_v11, %v8534_v2  ;;  %v8562_v11 = vmax.f32 %v1010_v15, 0.0  ;;  %5344 = vmatpush.msrb.mxu2 %v4071_v44 }
 0x494   : > { %v8536_v22 = vpop.f32.mrf.mxu2  ;;  %v8538_v21 = vpop.f32.mrf.mxu3  ;;  %v3450_v44 = vmul.f32 %v11003_v50, %v8562_v11  ;;  %v3514_v1 = vmul.f32 %v11004_v8, %v8562_v11 }
 0x495   : > { %10991 = vst [vmem:[#allocation420_spill] sm:$0xff] %v8536_v22  ;;  %v8540_v25 = vpop.f32.mrf.mxu0  ;;  %v8542_v61 = vpop.f32.mrf.mxu1  ;;  %v10998_v22 = vld [vmem:[#allocation23_spill] sm:$0xff] }
 0x496   : > { %10992 = vst [vmem:[#allocation421_spill] sm:$0xff] %v8538_v21  ;;  %v3641_v35 = vmul.f32 %v10998_v22, %v8534_v2 }
 0x497   : > { %10993 = vst [vmem:[#allocation422_spill] sm:$0xff] %v8540_v25  ;;  %v1011_v25 = vsub.f32 1.0, %v947_v0  ;;  %v584_v0 = vpop.permute.xlu2 %583 }
 0x498   : > { %10994 = vst [vmem:[#allocation423_spill] sm:$0xff] %v8542_v61  ;;  %4105 = vmatmul.f32.vlgmr.msra.gmra.mxu0 %v3449_v24  ;;  %4314 = vmatmul.f32.vlgmr.msra.gmra.mxu1 %v3513_v63  ;;  %v579_v24 = vpop.permute.xlu1 %578  ;;  %v4055_v61 = vld [vmem:[%s10392_s2 + $0x2f0] sm:$0xff] }
 0x499   : > { %4523 = vmatmul.f32.vlgmr.msra.gmra.mxu2 %v3577_v5  ;;  %4732 = vmatmul.f32.vlgmr.msra.gmra.mxu3 %v3641_v35  ;;  %v884_v15 = vsub.f32 %v6412_v10, %v579_v24  ;;  %v8584_v24 = vmax.f32 %v1011_v25, 0.0  ;;  %v11013_v25 = vld [vmem:[#allocation30_spill] sm:$0xff] }
 0x49a   : > { %5135 = vmatpush.msrb.mxu1 %v4055_v61 }
 0x49b   : > { %v948_v21 = vand.u32 2147483647, %v884_v15  ;;  %v3579_v15 = vmul.f32 %v11013_v25, %v8584_v24 }
 0x49c   : > { %v8564_v5 = vpop.f32.mrf.mxu2  ;;  %v8566_v35 = vpop.f32.mrf.mxu3 }
 0x49d   : > { %10999 = vst [vmem:[#allocation20_spill] sm:$0xff] %v8564_v5  ;;  %v8568_v22 = vpop.f32.mrf.mxu0  ;;  %v8570_v63 = vpop.f32.mrf.mxu1  ;;  %v1012_v45 = vsub.f32 1.0, %v948_v21 }
 0x49e   : > { %11000 = vst [vmem:[#allocation21_spill] sm:$0xff] %v8566_v35  ;;  %v11005_v35 = vld [vmem:[#allocation26_spill] sm:$0xff] }
 0x49f   : > { %11001 = vst [vmem:[#allocation22_spill] sm:$0xff] %v8568_v22  ;;  %v3578_v5 = vmul.f32 %v11005_v35, %v8562_v11  ;;  %v11006_v22 = vld [vmem:[#allocation27_spill] sm:$0xff]  ;;  %v885_v35 = vsub.f32 %v6412_v10, %v584_v0 }
 0x4a0   : > { %11002 = vst [vmem:[#allocation23_spill] sm:$0xff] %v8570_v63  ;;  %v3642_v63 = vmul.f32 %v11006_v22, %v8562_v11  ;;  %4108 = vmatmul.f32.gmra.mxu0 %v3450_v44  ;;  %4317 = vmatmul.f32.gmra.mxu1 %v3514_v1  ;;  %v11011_v22 = vld [vmem:[#allocation28_spill] sm:$0xff]  ;;  %v11014_v1 = vld [vmem:[#allocation31_spill] sm:$0xff]  ;;  %v589_v21 = vpop.permute.xlu1 %588 }
 0x4a1   : > { %4526 = vmatmul.f32.gmra.mxu2 %v3578_v5  ;;  %v3451_v44 = vmul.f32 %v11011_v22, %v8584_v24  ;;  %v11012_v5 = vld [vmem:[#allocation29_spill] sm:$0xff]  ;;  %v886_v4 = vsub.f32 %v6412_v10, %v589_v21  ;;  %v594_v21 = vpop.permute.xlu2 %593 }
 0x4a2   : > { %4735 = vmatmul.f32.gmra.mxu3 %v3642_v63  ;;  %v3515_v63 = vmul.f32 %v11012_v5, %v8584_v24 }
 0x4a4   : > { %v8586_v19 = vpop.f32.mrf.mxu2  ;;  %v8588_v50 = vpop.f32.mrf.mxu3 }
 0x4a5   : > { %11007 = vst [vmem:[#allocation24_spill] sm:$0xff] %v8586_v19  ;;  %v8590_v8 = vpop.f32.mrf.mxu0  ;;  %v8592_v61 = vpop.f32.mrf.mxu1  ;;  %v3643_v19 = vmul.f32 %v11014_v1, %v8584_v24  ;;  %v11022_v1 = vld [vmem:[#allocation4_spill] sm:$0xff] }
 0x4a6   : > { %11008 = vst [vmem:[#allocation25_spill] sm:$0xff] %v8588_v50 }
 0x4a7   : > { %11009 = vst [vmem:[#allocation26_spill] sm:$0xff] %v8590_v8  ;;  %v8603_v8 = vmax.f32 %v1012_v45, 0.0  ;;  %v11021_v45 = vld [vmem:[#allocation2_spill] sm:$0xff] }
 0x4a8   : > { %11010 = vst [vmem:[#allocation27_spill] sm:$0xff] %v8592_v61  ;;  %4111 = vmatmul.f32.gmra.mxu0 %v3451_v44  ;;  %4320 = vmatmul.f32.gmra.mxu1 %v3515_v63  ;;  %v949_v61 = vand.u32 2147483647, %v885_v35  ;;  %v11019_v44 = vld [vmem:[#allocation32_spill] sm:$0xff] }
 0x4a9   : > { %4529 = vmatmul.f32.gmra.mxu2 %v3579_v15  ;;  %v3452_v63 = vmul.f32 %v11019_v44, %v8603_v8  ;;  %v3580_v15 = vmul.f32 %v11021_v45, %v8603_v8  ;;  %v11027_v45 = vld [vmem:[#allocation34_spill] sm:$0xff] }
 0x4aa   : > { %4738 = vmatmul.f32.gmra.mxu3 %v3643_v19  ;;  %v1013_v25 = vsub.f32 1.0, %v949_v61  ;;  %v11020_v19 = vld [vmem:[#allocation33_spill] sm:$0xff]  ;;  %v950_v61 = vand.u32 2147483647, %v886_v4  ;;  %v11029_v4 = vld [vmem:[#allocation7_spill] sm:$0xff] }
 0x4ab   : > { %v3516_v35 = vmul.f32 %v11020_v19, %v8603_v8 }
 0x4ac   : > { %v8605_v0 = vpop.f32.mrf.mxu2  ;;  %v8607_v22 = vpop.f32.mrf.mxu3 }
 0x4ad   : > { %11015 = vst [vmem:[#allocation28_spill] sm:$0xff] %v8605_v0  ;;  %v8609_v50 = vpop.f32.mrf.mxu0  ;;  %v8611_v5 = vpop.f32.mrf.mxu1  ;;  %v3644_v0 = vmul.f32 %v11022_v1, %v8603_v8  ;;  %v11030_v1 = vld [vmem:[#allocation3_spill] sm:$0xff] }
 0x4ae   : > { %11016 = vst [vmem:[#allocation29_spill] sm:$0xff] %v8607_v22 }
 0x4af   : > { %11017 = vst [vmem:[#allocation30_spill] sm:$0xff] %v8609_v50 }
 0x4b0   : > { %11018 = vst [vmem:[#allocation31_spill] sm:$0xff] %v8611_v5  ;;  %4114 = vmatmul.f32.gmra.mxu0 %v3452_v63  ;;  %4323 = vmatmul.f32.gmra.mxu1 %v3516_v35  ;;  %v8622_v5 = vmax.f32 %v1013_v25, 0.0  ;;  %v11028_v63 = vld [vmem:[#allocation35_spill] sm:$0xff]  ;;  %v1014_v25 = vsub.f32 1.0, %v950_v61 }
 0x4b1   : > { %4532 = vmatmul.f32.gmra.mxu2 %v3580_v15  ;;  %v4086_v61 = vld [vmem:[%s10392_s2 + $0x3e8] sm:$0xff] }
 0x4b2   : > { %4741 = vmatmul.f32.gmra.mxu3 %v3644_v0  ;;  %v3453_v14 = vmul.f32 %v11027_v45, %v8622_v5  ;;  %v3517_v35 = vmul.f32 %v11028_v63, %v8622_v5  ;;  %v887_v0 = vsub.f32 %v6412_v10, %v594_v21  ;;  %v3581_v15 = vmul.f32 %v11029_v4, %v8622_v5  ;;  %v4070_v45 = vld [vmem:[%s10392_s2 + $0x368] sm:$0xff] }
 0x4b3   : > { %v4038_v63 = vld [vmem:[%s10392_s2 + $0x268] sm:$0xff]  ;;  %v8650_v4 = vmax.f32 %v1014_v25, 0.0  ;;  %5345 = vmatpush.msrb.mxu2 %v4070_v45  ;;  %5554 = vmatpush.msrb.mxu3 %v4086_v61  ;;  %v11035_v25 = vld [vmem:[#allocation6_spill] sm:$0xff] }
 0x4b4   : > { %v8624_v50 = vpop.f32.mrf.mxu2  ;;  %v8626_v44 = vpop.f32.mrf.mxu3  ;;  %v951_v21 = vand.u32 2147483647, %v887_v0  ;;  %4927 = vmatpush.msrb.mxu0 %v4038_v63  ;;  %v11036_v63 = vld [vmem:[#allocation36_spill] sm:$0xff] }
 0x4b5   : > { %11023 = vst [vmem:[#allocation32_spill] sm:$0xff] %v8624_v50  ;;  %v8628_v22 = vpop.f32.mrf.mxu0  ;;  %v8630_v19 = vpop.f32.mrf.mxu1  ;;  %v3645_v50 = vmul.f32 %v11030_v1, %v8622_v5  ;;  %v3454_v45 = vmul.f32 %v11035_v25, %v8650_v4  ;;  %v3518_v61 = vmul.f32 %v11036_v63, %v8650_v4 }
 0x4b6   : > { %11024 = vst [vmem:[#allocation33_spill] sm:$0xff] %v8626_v44  ;;  %v604_v44 = vpop.permute.xlu1 %603 }
 0x4b7   : > { %11025 = vst [vmem:[#allocation2_spill] sm:$0xff] %v8628_v22  ;;  %v1015_v22 = vsub.f32 1.0, %v951_v21 }
 0x4b8   : > { %11026 = vst [vmem:[#allocation4_spill] sm:$0xff] %v8630_v19  ;;  %4117 = vmatmul.f32.gmra.mxu0 %v3453_v14  ;;  %4326 = vmatmul.f32.gmra.mxu1 %v3517_v35  ;;  %v599_v14 = vpop.permute.xlu0 %598  ;;  %v4054_v19 = vld [vmem:[%s10392_s2 + $0x2e8] sm:$0xff] }
 0x4b9   : > { %4535 = vmatmul.f32.gmra.mxu2 %v3581_v15  ;;  %v888_v0 = vsub.f32 %v6412_v10, %v599_v14  ;;  %5136 = vmatpush.msrb.mxu1 %v4054_v19  ;;  %v8672_v21 = vmax.f32 %v1015_v22, 0.0  ;;  %v889_v22 = vsub.f32 %v6412_v10, %v604_v44 }
 0x4ba   : > { %4744 = vmatmul.f32.gmra.mxu3 %v3645_v50 }
 0x4bb   : > { %v952_v14 = vand.u32 2147483647, %v888_v0 }
 0x4bc   : > { %v8652_v50 = vpop.f32.mrf.mxu2  ;;  %v8654_v35 = vpop.f32.mrf.mxu3 }
 0x4bd   : > { %11031 = vst [vmem:[#allocation34_spill] sm:$0xff] %v8652_v50  ;;  %v8656_v15 = vpop.f32.mrf.mxu0  ;;  %v8658_v1 = vpop.f32.mrf.mxu1 }
 0x4be   : > { %11032 = vst [vmem:[#allocation35_spill] sm:$0xff] %v8654_v35  ;;  %v11037_v35 = vld [vmem:[#allocation10_spill] sm:$0xff] }
 0x4bf   : > { %11033 = vst [vmem:[#allocation7_spill] sm:$0xff] %v8656_v15  ;;  %v3582_v50 = vmul.f32 %v11037_v35, %v8650_v4  ;;  %v11038_v15 = vld [vmem:[#allocation5_spill] sm:$0xff] }
 0x4c0   : > { %11034 = vst [vmem:[#allocation3_spill] sm:$0xff] %v8658_v1  ;;  %v3646_v1 = vmul.f32 %v11038_v15, %v8650_v4  ;;  %4120 = vmatmul.f32.gmra.mxu0 %v3454_v45  ;;  %4329 = vmatmul.f32.gmra.mxu1 %v3518_v61  ;;  %v11043_v35 = vld [vmem:[#allocation9_spill] sm:$0xff]  ;;  %v11046_v61 = vld [vmem:[#allocation8_spill] sm:$0xff] }
 0x4c1   : > { %4538 = vmatmul.f32.gmra.mxu2 %v3582_v50  ;;  %v3455_v54 = vmul.f32 %v11043_v35, %v8672_v21  ;;  %v11044_v15 = vld [vmem:[#allocation37_spill] sm:$0xff]  ;;  %v1016_v50 = vsub.f32 1.0, %v952_v14  ;;  %v609_v35 = vpop.permute.xlu2 %608 }
 0x4c2   : > { %4747 = vmatmul.f32.gmra.mxu3 %v3646_v1  ;;  %v3519_v45 = vmul.f32 %v11044_v15, %v8672_v21  ;;  %v11045_v1 = vld [vmem:[#allocation14_spill] sm:$0xff] }
 0x4c3   : > { %v3583_v0 = vmul.f32 %v11045_v1, %v8672_v21  ;;  %v11051_v1 = vld [vmem:[#allocation13_spill] sm:$0xff] }
 0x4c4   : > { %v8674_v17 = vpop.f32.mrf.mxu2  ;;  %v8676_v25 = vpop.f32.mrf.mxu3 }
 0x4c5   : > { %11039 = vst [vmem:[#allocation6_spill] sm:$0xff] %v8674_v17  ;;  %v8678_v63 = vpop.f32.mrf.mxu0  ;;  %v8680_v19 = vpop.f32.mrf.mxu1  ;;  %v3647_v17 = vmul.f32 %v11046_v61, %v8672_v21  ;;  %v11054_v61 = vld [vmem:[#allocation12_spill] sm:$0xff] }
 0x4c6   : > { %11040 = vst [vmem:[#allocation36_spill] sm:$0xff] %v8676_v25 }
 0x4c7   : > { %11041 = vst [vmem:[#allocation10_spill] sm:$0xff] %v8678_v63  ;;  %v953_v63 = vand.u32 2147483647, %v889_v22 }
 0x4c8   : > { %11042 = vst [vmem:[#allocation5_spill] sm:$0xff] %v8680_v19  ;;  %4123 = vmatmul.f32.gmra.mxu0 %v3455_v54  ;;  %4332 = vmatmul.f32.gmra.mxu1 %v3519_v45  ;;  %v8691_v19 = vmax.f32 %v1016_v50, 0.0  ;;  %v11052_v54 = vld [vmem:[#allocation38_spill] sm:$0xff] }
 0x4c9   : > { %4541 = vmatmul.f32.gmra.mxu2 %v3583_v0  ;;  %v1017_v0 = vsub.f32 1.0, %v953_v63  ;;  %v11053_v50 = vld [vmem:[#allocation18_spill] sm:$0xff]  ;;  %v624_v51 = vpop.permute.xlu2 %623 }
 0x4ca   : > { %4750 = vmatmul.f32.gmra.mxu3 %v3647_v17  ;;  %v3456_v23 = vmul.f32 %v11051_v1, %v8691_v19  ;;  %v3520_v45 = vmul.f32 %v11052_v54, %v8691_v19  ;;  %v890_v17 = vsub.f32 %v6412_v10, %v609_v35  ;;  %v3584_v22 = vmul.f32 %v11053_v50, %v8691_v19  ;;  %v614_v1 = vpop.permute.xlu0 %613 }
 0x4cc   : > { %v8693_v25 = vpop.f32.mrf.mxu2  ;;  %v8695_v15 = vpop.f32.mrf.mxu3 }
 0x4cd   : > { %11047 = vst [vmem:[#allocation9_spill] sm:$0xff] %v8693_v25  ;;  %v8697_v14 = vpop.f32.mrf.mxu0  ;;  %v8699_v44 = vpop.f32.mrf.mxu1  ;;  %v3648_v25 = vmul.f32 %v11054_v61, %v8691_v19 }
 0x4ce   : > { %11048 = vst [vmem:[#allocation37_spill] sm:$0xff] %v8695_v15 }
 0x4cf   : > { %11049 = vst [vmem:[#allocation14_spill] sm:$0xff] %v8697_v14  ;;  %v954_v14 = vand.u32 2147483647, %v890_v17 }
 0x4d0   : > { %11050 = vst [vmem:[#allocation8_spill] sm:$0xff] %v8699_v44  ;;  %4126 = vmatmul.f32.gmra.mxu0 %v3456_v23  ;;  %4335 = vmatmul.f32.gmra.mxu1 %v3520_v45  ;;  %v8710_v44 = vmax.f32 %v1017_v0, 0.0  ;;  %v11060_v23 = vld [vmem:[#allocation39_spill] sm:$0xff]  ;;  %v11061_v0 = vld [vmem:[#allocation16_spill] sm:$0xff] }
 0x4d1   : > { %4544 = vmatmul.f32.gmra.mxu2 %v3584_v22  ;;  %v1018_v50 = vsub.f32 1.0, %v954_v14  ;;  %v11062_v22 = vld [vmem:[#allocation40_spill] sm:$0xff]  ;;  %v4069_v14 = vld [vmem:[%s10392_s2 + $0x360] sm:$0xff] }
 0x4d2   : > { %4753 = vmatmul.f32.gmra.mxu3 %v3648_v25  ;;  %v3457_v61 = vmul.f32 %v11059_v49, %v8710_v44  ;;  %v3521_v45 = vmul.f32 %v11060_v23, %v8710_v44  ;;  %v891_v25 = vsub.f32 %v6412_v10, %v614_v1  ;;  %v3585_v17 = vmul.f32 %v11061_v0, %v8710_v44  ;;  %v4037_v49 = vld [vmem:[%s10392_s2 + $0x260] sm:$0xff] }
 0x4d3   : > { %v4085_v1 = vld [vmem:[%s10392_s2 + $0x3e0] sm:$0xff]  ;;  %v8738_v23 = vmax.f32 %v1018_v50, 0.0  ;;  %5346 = vmatpush.msrb.mxu2 %v4069_v14  ;;  %4928 = vmatpush.msrb.mxu0 %v4037_v49  ;;  %v11067_v50 = vld [vmem:[#allocation41_spill] sm:$0xff] }
 0x4d4   : > { %v8712_v15 = vpop.f32.mrf.mxu2  ;;  %v8714_v54 = vpop.f32.mrf.mxu3  ;;  %v955_v0 = vand.u32 2147483647, %v891_v25  ;;  %5555 = vmatpush.msrb.mxu3 %v4085_v1  ;;  %v11068_v25 = vld [vmem:[#allocation42_spill] sm:$0xff] }
 0x4d5   : > { %11055 = vst [vmem:[#allocation13_spill] sm:$0xff] %v8712_v15  ;;  %v8716_v63 = vpop.f32.mrf.mxu0  ;;  %v8718_v35 = vpop.f32.mrf.mxu1  ;;  %v3649_v15 = vmul.f32 %v11062_v22, %v8710_v44  ;;  %v3522_v14 = vmul.f32 %v11068_v25, %v8738_v23  ;;  %v11075_v25 = vld [vmem:[#allocation45_spill] sm:$0xff] }
 0x4d6   : > { %11056 = vst [vmem:[#allocation38_spill] sm:$0xff] %v8714_v54  ;;  %v1019_v49 = vsub.f32 1.0, %v955_v0 }
 0x4d7   : > { %11057 = vst [vmem:[#allocation18_spill] sm:$0xff] %v8716_v63  ;;  %v3458_v63 = vmul.f32 %v11067_v50, %v8738_v23 }
 0x4d8   : > { %11058 = vst [vmem:[#allocation12_spill] sm:$0xff] %v8718_v35  ;;  %4129 = vmatmul.f32.gmra.mxu0 %v3457_v61  ;;  %4338 = vmatmul.f32.gmra.mxu1 %v3521_v45  ;;  %v619_v61 = vpop.permute.xlu1 %618  ;;  %v4053_v35 = vld [vmem:[%s10392_s2 + $0x2e0] sm:$0xff]  ;;  %v8760_v54 = vmax.f32 %v1019_v49, 0.0 }
 0x4d9   : > { %4547 = vmatmul.f32.gmra.mxu2 %v3585_v17  ;;  %v892_v1 = vsub.f32 %v6412_v10, %v619_v61  ;;  %5137 = vmatpush.msrb.mxu1 %v4053_v35 }
 0x4da   : > { %4756 = vmatmul.f32.gmra.mxu3 %v3649_v15 }
 0x4db   : > { %v956_v50 = vand.u32 2147483647, %v892_v1  ;;  %v11078_v1 = vld [vmem:[#allocation48_spill] sm:$0xff] }
 0x4dc   : > { %v8740_v15 = vpop.f32.mrf.mxu2  ;;  %v8742_v45 = vpop.f32.mrf.mxu3 }
 0x4dd   : > { %11063 = vst [vmem:[#allocation17_spill] sm:$0xff] %v8740_v15  ;;  %v8744_v17 = vpop.f32.mrf.mxu0  ;;  %v8746_v22 = vpop.f32.mrf.mxu1 }
 0x4de   : > { %11064 = vst [vmem:[#allocation39_spill] sm:$0xff] %v8742_v45  ;;  %v11069_v45 = vld [vmem:[#allocation43_spill] sm:$0xff] }
 0x4df   : > { %11065 = vst [vmem:[#allocation16_spill] sm:$0xff] %v8744_v17  ;;  %v3586_v15 = vmul.f32 %v11069_v45, %v8738_v23  ;;  %v11070_v17 = vld [vmem:[#allocation44_spill] sm:$0xff]  ;;  %v1020_v45 = vsub.f32 1.0, %v956_v50 }
 0x4e0   : > { %11066 = vst [vmem:[#allocation40_spill] sm:$0xff] %v8746_v22  ;;  %v3650_v22 = vmul.f32 %v11070_v17, %v8738_v23  ;;  %4132 = vmatmul.f32.gmra.mxu0 %v3458_v63  ;;  %4341 = vmatmul.f32.gmra.mxu1 %v3522_v14  ;;  %v3459_v17 = vmul.f32 %v11075_v25, %v8760_v54  ;;  %v11076_v63 = vld [vmem:[#allocation46_spill] sm:$0xff]  ;;  %v11077_v14 = vld [vmem:[#allocation47_spill] sm:$0xff] }
 0x4e1   : > { %4550 = vmatmul.f32.gmra.mxu2 %v3586_v15  ;;  %v3523_v15 = vmul.f32 %v11076_v63, %v8760_v54  ;;  %v3587_v49 = vmul.f32 %v11077_v14, %v8760_v54 }
 0x4e2   : > { %4759 = vmatmul.f32.gmra.mxu3 %v3650_v22  ;;  %v893_v22 = vsub.f32 %v6412_v10, %v624_v51 }
 0x4e4   : > { %v8762_v55 = vpop.f32.mrf.mxu2  ;;  %v8764_v0 = vpop.f32.mrf.mxu3  ;;  %v957_v50 = vand.u32 2147483647, %v893_v22 }
 0x4e5   : > { %11071 = vst [vmem:[#allocation41_spill] sm:$0xff] %v8762_v55  ;;  %v8766_v61 = vpop.f32.mrf.mxu0  ;;  %v8768_v35 = vpop.f32.mrf.mxu1  ;;  %v3651_v55 = vmul.f32 %v11078_v1, %v8760_v54 }
 0x4e6   : > { %11072 = vst [vmem:[#allocation42_spill] sm:$0xff] %v8764_v0  ;;  %v1021_v14 = vsub.f32 1.0, %v957_v50 }
 0x4e7   : > { %11073 = vst [vmem:[#allocation43_spill] sm:$0xff] %v8766_v61  ;;  %v629_v61 = vpop.permute.xlu0 %628 }
 0x4e8   : > { %11074 = vst [vmem:[#allocation44_spill] sm:$0xff] %v8768_v35  ;;  %4135 = vmatmul.f32.gmra.mxu0 %v3459_v17  ;;  %4344 = vmatmul.f32.gmra.mxu1 %v3523_v15  ;;  %v8779_v35 = vmax.f32 %v1020_v45, 0.0  ;;  %v11085_v17 = vld [vmem:[#allocation50_spill] sm:$0xff]  ;;  %v11086_v45 = vld [vmem:[#allocation51_spill] sm:$0xff] }
 0x4e9   : > { %4553 = vmatmul.f32.gmra.mxu2 %v3587_v49  ;;  %v11087_v49 = vld [vmem:[#allocation52_spill] sm:$0xff] }
 0x4ea   : > { %4762 = vmatmul.f32.gmra.mxu3 %v3651_v55  ;;  %11079 = vst [vmem:[#allocation45_spill] sm:$0xff] %v8779_v35  ;;  %v3460_v1 = vmul.f32 %v11084_v32, %v8779_v35  ;;  %v3524_v15 = vmul.f32 %v11085_v17, %v8779_v35  ;;  %v894_v55 = vsub.f32 %v6412_v10, %v629_v61 }
 0x4eb   : > { %v3588_v22 = vmul.f32 %v11086_v45, %v8779_v35  ;;  %v11093_v45 = vld [vmem:[#allocation53_spill] sm:$0xff] }
 0x4ec   : > { %v8781_v25 = vpop.f32.mrf.mxu2  ;;  %v8783_v0 = vpop.f32.mrf.mxu3  ;;  %v958_v50 = vand.u32 2147483647, %v894_v55 }
 0x4ed   : > { %11080 = vst [vmem:[#allocation46_spill] sm:$0xff] %v8781_v25  ;;  %v8785_v63 = vpop.f32.mrf.mxu0  ;;  %v8787_v51 = vpop.f32.mrf.mxu1  ;;  %v3652_v25 = vmul.f32 %v11087_v49, %v8779_v35  ;;  %v11096_v49 = vld [vmem:[#allocation56_spill] sm:$0xff] }
 0x4ee   : > { %11081 = vst [vmem:[#allocation47_spill] sm:$0xff] %v8783_v0 }
 0x4ef   : > { %11082 = vst [vmem:[#allocation48_spill] sm:$0xff] %v8785_v63  ;;  %v634_v63 = vpop.permute.xlu1 %633 }
 0x4f0   : > { %11083 = vst [vmem:[#allocation424_spill] sm:$0xff] %v8787_v51  ;;  %4138 = vmatmul.f32.gmra.mxu0 %v3460_v1  ;;  %4347 = vmatmul.f32.gmra.mxu1 %v3524_v15  ;;  %v8798_v51 = vmax.f32 %v1021_v14, 0.0  ;;  %v11094_v1 = vld [vmem:[#allocation54_spill] sm:$0xff]  ;;  %v11095_v14 = vld [vmem:[#allocation55_spill] sm:$0xff] }
 0x4f1   : > { %4556 = vmatmul.f32.gmra.mxu2 %v3588_v22  ;;  %v1022_v22 = vsub.f32 1.0, %v958_v50  ;;  %v4036_v50 = vld [vmem:[%s10392_s2 + $0x258] sm:$0xff] }
 0x4f2   : > { %4765 = vmatmul.f32.gmra.mxu3 %v3652_v25  ;;  %11088 = vst [vmem:[#allocation49_spill] sm:$0xff] %v8798_v51  ;;  %v3461_v56 = vmul.f32 %v11093_v45, %v8798_v51  ;;  %v3525_v15 = vmul.f32 %v11094_v1, %v8798_v51  ;;  %v895_v25 = vsub.f32 %v6412_v10, %v634_v63  ;;  %v4068_v45 = vld [vmem:[%s10392_s2 + $0x358] sm:$0xff] }
 0x4f3   : > { %v3589_v55 = vmul.f32 %v11095_v14, %v8798_v51  ;;  %v4084_v63 = vld [vmem:[%s10392_s2 + $0x3d8] sm:$0xff]  ;;  %v8826_v1 = vmax.f32 %v1022_v22, 0.0  ;;  %5347 = vmatpush.msrb.mxu2 %v4068_v45  ;;  %4929 = vmatpush.msrb.mxu0 %v4036_v50  ;;  %v11103_v22 = vld [vmem:[#allocation58_spill] sm:$0xff]  ;;  %v11104_v45 = vld [vmem:[#allocation59_spill] sm:$0xff] }
 0x4f4   : > { %v8800_v32 = vpop.f32.mrf.mxu2  ;;  %v8802_v0 = vpop.f32.mrf.mxu3  ;;  %v959_v14 = vand.u32 2147483647, %v895_v25  ;;  %5556 = vmatpush.msrb.mxu3 %v4084_v63  ;;  %v11105_v63 = vld [vmem:[#allocation60_spill] sm:$0xff] }
 0x4f5   : > { %11089 = vst [vmem:[#allocation50_spill] sm:$0xff] %v8800_v32  ;;  %v8804_v17 = vpop.f32.mrf.mxu0  ;;  %v8806_v61 = vpop.f32.mrf.mxu1  ;;  %v3653_v32 = vmul.f32 %v11096_v49, %v8798_v51  ;;  %v3526_v29 = vmul.f32 %v11103_v22, %v8826_v1  ;;  %v3590_v50 = vmul.f32 %v11104_v45, %v8826_v1 }
 0x4f6   : > { %11090 = vst [vmem:[#allocation51_spill] sm:$0xff] %v8802_v0  ;;  %v644_v22 = vpop.permute.xlu0 %643 }
 0x4f7   : > { %11091 = vst [vmem:[#allocation52_spill] sm:$0xff] %v8804_v17  ;;  %v11102_v17 = vld [vmem:[#allocation57_spill] sm:$0xff] }
 0x4f8   : > { %11092 = vst [vmem:[#allocation425_spill] sm:$0xff] %v8806_v61  ;;  %4141 = vmatmul.f32.gmra.mxu0 %v3461_v56  ;;  %4350 = vmatmul.f32.gmra.mxu1 %v3525_v15  ;;  %v639_v56 = vpop.permute.xlu2 %638  ;;  %v1023_v61 = vsub.f32 1.0, %v959_v14  ;;  %v3462_v0 = vmul.f32 %v11102_v17, %v8826_v1 }
 0x4f9   : > { %4559 = vmatmul.f32.gmra.mxu2 %v3589_v55  ;;  %11097 = vst [vmem:[#allocation53_spill] sm:$0xff] %v8826_v1  ;;  %v896_v25 = vsub.f32 %v6412_v10, %v639_v56 }
 0x4fa   : > { %4768 = vmatmul.f32.gmra.mxu3 %v3653_v32  ;;  %v8848_v17 = vmax.f32 %v1023_v61, 0.0  ;;  %v897_v61 = vsub.f32 %v6412_v10, %v644_v22 }
 0x4fb   : > { %v960_v14 = vand.u32 2147483647, %v896_v25 }
 0x4fc   : > { %v8828_v32 = vpop.f32.mrf.mxu2  ;;  %v8830_v15 = vpop.f32.mrf.mxu3  ;;  %11106 = vst [vmem:[#allocation57_spill] sm:$0xff] %v8848_v17 }
 0x4fd   : > { %11098 = vst [vmem:[#allocation54_spill] sm:$0xff] %v8828_v32  ;;  %v8832_v55 = vpop.f32.mrf.mxu0  ;;  %v8834_v49 = vpop.f32.mrf.mxu1  ;;  %v3654_v32 = vmul.f32 %v11105_v63, %v8826_v1 }
 0x4fe   : > { %11099 = vst [vmem:[#allocation55_spill] sm:$0xff] %v8830_v15  ;;  %v1024_v15 = vsub.f32 1.0, %v960_v14  ;;  %v961_v14 = vand.u32 2147483647, %v897_v61 }
 0x4ff   : > { %11100 = vst [vmem:[#allocation56_spill] sm:$0xff] %v8832_v55  ;;  %v4052_v55 = vld [vmem:[%s10392_s2 + $0x2d8] sm:$0xff] }
 0x500   : > { %11101 = vst [vmem:[#allocation426_spill] sm:$0xff] %v8834_v49  ;;  %4144 = vmatmul.f32.gmra.mxu0 %v3462_v0  ;;  %4353 = vmatmul.f32.gmra.mxu1 %v3526_v29  ;;  %v3463_v0 = vmul.f32 %v11111_v36, %v8848_v17  ;;  %v11112_v29 = vld [vmem:[#allocation62_spill] sm:$0xff] }
 0x501   : > { %4562 = vmatmul.f32.gmra.mxu2 %v3590_v50  ;;  %5138 = vmatpush.msrb.mxu1 %v4052_v55  ;;  %v11113_v55 = vld [vmem:[#allocation63_spill] sm:$0xff]  ;;  %v11114_v50 = vld [vmem:[#allocation64_spill] sm:$0xff] }
 0x502   : > { %4771 = vmatmul.f32.gmra.mxu3 %v3654_v32  ;;  %v3527_v32 = vmul.f32 %v11112_v29, %v8848_v17  ;;  %v3591_v25 = vmul.f32 %v11113_v55, %v8848_v17  ;;  %v11120_v55 = vld [vmem:[#allocation65_spill] sm:$0xff] }
 0x504   : > { %v8850_v56 = vpop.f32.mrf.mxu2  ;;  %v8852_v49 = vpop.f32.mrf.mxu3 }
 0x505   : > { %11107 = vst [vmem:[#allocation58_spill] sm:$0xff] %v8850_v56  ;;  %v8854_v45 = vpop.f32.mrf.mxu0  ;;  %v8856_v63 = vpop.f32.mrf.mxu1  ;;  %v3655_v56 = vmul.f32 %v11114_v50, %v8848_v17  ;;  %v11123_v50 = vld [vmem:[#allocation68_spill] sm:$0xff] }
 0x506   : > { %11108 = vst [vmem:[#allocation59_spill] sm:$0xff] %v8852_v49 }
 0x507   : > { %11109 = vst [vmem:[#allocation60_spill] sm:$0xff] %v8854_v45  ;;  %v649_v45 = vpop.permute.xlu1 %648 }
 0x508   : > { %11110 = vst [vmem:[#allocation427_spill] sm:$0xff] %v8856_v63  ;;  %4147 = vmatmul.f32.gmra.mxu0 %v3463_v0  ;;  %4356 = vmatmul.f32.gmra.mxu1 %v3527_v32  ;;  %v8867_v63 = vmax.f32 %v1024_v15, 0.0  ;;  %v11121_v0 = vld [vmem:[#allocation66_spill] sm:$0xff]  ;;  %v898_v15 = vsub.f32 %v6412_v10, %v649_v45 }
 0x509   : > { %4565 = vmatmul.f32.gmra.mxu2 %v3591_v25  ;;  %v1025_v25 = vsub.f32 1.0, %v961_v14 }
 0x50a   : > { %4774 = vmatmul.f32.gmra.mxu3 %v3655_v56  ;;  %11115 = vst [vmem:[#allocation61_spill] sm:$0xff] %v8867_v63  ;;  %v3464_v27 = vmul.f32 %v11120_v55, %v8867_v63  ;;  %v3528_v32 = vmul.f32 %v11121_v0, %v8867_v63  ;;  %v11122_v56 = vld [vmem:[#allocation67_spill] sm:$0xff]  ;;  %v654_v55 = vpop.permute.xlu2 %653 }
 0x50b   : > { %v3592_v61 = vmul.f32 %v11122_v56, %v8867_v63  ;;  %v11127_v56 = vld [vmem:[#allocation69_spill] sm:$0xff] }
 0x50c   : > { %v8869_v36 = vpop.f32.mrf.mxu2  ;;  %v8871_v49 = vpop.f32.mrf.mxu3 }
 0x50d   : > { %11116 = vst [vmem:[#allocation62_spill] sm:$0xff] %v8869_v36  ;;  %v8873_v29 = vpop.f32.mrf.mxu0  ;;  %v8875_v22 = vpop.f32.mrf.mxu1  ;;  %v3656_v36 = vmul.f32 %v11123_v50, %v8867_v63  ;;  %v11128_v50 = vld [vmem:[#allocation70_spill] sm:$0xff]  ;;  %v11132_v63 = vld [vmem:[#allocation73_spill] sm:$0xff] }
 0x50e   : > { %11117 = vst [vmem:[#allocation63_spill] sm:$0xff] %v8871_v49 }
 0x50f   : > { %11118 = vst [vmem:[#allocation64_spill] sm:$0xff] %v8873_v29  ;;  %v962_v29 = vand.u32 2147483647, %v898_v15  ;;  %v11130_v15 = vld [vmem:[#allocation72_spill] sm:$0xff] }
 0x510   : > { %11119 = vst [vmem:[#allocation428_spill] sm:$0xff] %v8875_v22  ;;  %4150 = vmatmul.f32.gmra.mxu0 %v3464_v27  ;;  %4359 = vmatmul.f32.gmra.mxu1 %v3528_v32  ;;  %v8886_v22 = vmax.f32 %v1025_v25, 0.0  ;;  %v899_v32 = vsub.f32 %v6412_v10, %v654_v55  ;;  %v4083_v55 = vld [vmem:[%s10392_s2 + $0x3d0] sm:$0xff] }
 0x511   : > { %4568 = vmatmul.f32.gmra.mxu2 %v3592_v61  ;;  %v1026_v17 = vsub.f32 1.0, %v962_v29  ;;  %v4067_v29 = vld [vmem:[%s10392_s2 + $0x350] sm:$0xff]  ;;  %5557 = vmatpush.msrb.mxu3 %v4083_v55 }
 0x512   : > { %4777 = vmatmul.f32.gmra.mxu3 %v3656_v36  ;;  %11124 = vst [vmem:[#allocation65_spill] sm:$0xff] %v8886_v22  ;;  %v3465_v38 = vmul.f32 %v11127_v56, %v8886_v22  ;;  %v3529_v27 = vmul.f32 %v11128_v50, %v8886_v22  ;;  %v11129_v36 = vld [vmem:[#allocation71_spill] sm:$0xff]  ;;  %v3657_v61 = vmul.f32 %v11130_v15, %v8886_v22  ;;  %v4035_v56 = vld [vmem:[%s10392_s2 + $0x250] sm:$0xff] }
 0x513   : > { %v3593_v25 = vmul.f32 %v11129_v36, %v8886_v22  ;;  %v8910_v50 = vmax.f32 %v1026_v17, 0.0  ;;  %v963_v36 = vand.u32 2147483647, %v899_v32  ;;  %5348 = vmatpush.msrb.mxu2 %v4067_v29  ;;  %4930 = vmatpush.msrb.mxu0 %v4035_v56  ;;  %v11134_v32 = vld [vmem:[#allocation75_spill] sm:$0xff]  ;;  %v4051_v55 = vld [vmem:[%s10392_s2 + $0x2d0] sm:$0xff] }
 0x514   : > { %v8888_v49 = vpop.f32.mrf.mxu2  ;;  %v8890_v0 = vpop.f32.mrf.mxu3  ;;  %5139 = vmatpush.msrb.mxu1 %v4051_v55 }
 0x515   : > { %11125 = vst [vmem:[#allocation66_spill] sm:$0xff] %v8888_v49  ;;  %v4106_v14 = vpop.f32.mrf.mxu0  ;;  %v4315_v45 = vpop.f32.mrf.mxu1  ;;  %v1027_v22 = vsub.f32 1.0, %v963_v36  ;;  %v3466_v1 = vmul.f32 %v11132_v63, %v8910_v50  ;;  %v3530_v37 = vmul.f32 %v11133_v18, %v8910_v50  ;;  %v3594_v29 = vmul.f32 %v11134_v32, %v8910_v50 }
 0x516   : > { %11126 = vst [vmem:[#allocation67_spill] sm:$0xff] %v8890_v0  ;;  %v664_v36 = vpop.permute.xlu1 %663 }
 0x517   : > { %11131 = vst [vmem:[#allocation68_spill] sm:$0xff] %v8910_v50  ;;  %v8926_v63 = vmax.f32 %v1027_v22, 0.0  ;;  %v11140_v22 = vld [vmem:[#allocation79_spill] sm:$0xff] }
 0x518   : > { %4153 = vmatmul.f32.gmra.mxu0 %v3465_v38  ;;  %4362 = vmatmul.f32.gmra.mxu1 %v3529_v27  ;;  %v659_v38 = vpop.permute.xlu0 %658  ;;  %v4316_v27 = vadd.f32 %v4315_v45, %v4106_v14  ;;  %v11135_v14 = vld [vmem:[#allocation76_spill] sm:$0xff] }
 0x519   : > { %4571 = vmatmul.f32.gmra.mxu2 %v3593_v25  ;;  %v900_v17 = vsub.f32 %v6412_v10, %v659_v38  ;;  %v3658_v45 = vmul.f32 %v11135_v14, %v8910_v50  ;;  %11137 = vst [vmem:[#allocation70_spill] sm:$0xff] %v8926_v63 }
 0x51a   : > { %4780 = vmatmul.f32.gmra.mxu3 %v3657_v61 }
 0x51b   : > { %v964_v18 = vand.u32 2147483647, %v900_v17  ;;  %v3595_v17 = vmul.f32 %v11140_v22, %v8926_v63 }
 0x51c   : > { %v4524_v25 = vpop.f32.mrf.mxu2  ;;  %v4733_v15 = vpop.f32.mrf.mxu3 }
 0x51d   : > { %v4525_v61 = vadd.f32 %v4524_v25, %v4316_v27  ;;  %v4109_v0 = vpop.f32.mrf.mxu0  ;;  %v4318_v49 = vpop.f32.mrf.mxu1 }
 0x51e   : > { %v4319_v38 = vadd.f32 %v4318_v49, %v4109_v0 }
 0x51f   : > { %v8921_v56 = vadd.f32 %v4733_v15, %v4525_v61  ;;  %v11138_v61 = vld [vmem:[#allocation77_spill] sm:$0xff] }
 0x520   : > { %4156 = vmatmul.f32.gmra.mxu0 %v3466_v1  ;;  %4365 = vmatmul.f32.gmra.mxu1 %v3530_v37  ;;  %v3467_v50 = vmul.f32 %v11138_v61, %v8926_v63  ;;  %v1028_v37 = vsub.f32 1.0, %v964_v18 }
 0x521   : > { %11136 = vst [vmem:[#allocation69_spill] sm:$0xff] %v8921_v56  ;;  %4574 = vmatmul.f32.gmra.mxu2 %v3594_v29  ;;  %v11139_v56 = vld [vmem:[#allocation78_spill] sm:$0xff]  ;;  %v901_v29 = vsub.f32 %v6412_v10, %v664_v36 }
 0x522   : > { %4783 = vmatmul.f32.gmra.mxu3 %v3658_v45  ;;  %v3531_v1 = vmul.f32 %v11139_v56, %v8926_v63  ;;  %v11141_v45 = vld [vmem:[#allocation80_spill] sm:$0xff]  ;;  %v8939_v55 = vmax.f32 %v1028_v37, 0.0 }
 0x523   : > { %v3659_v49 = vmul.f32 %v11141_v45, %v8926_v63 }
 0x524   : > { %v4527_v27 = vpop.f32.mrf.mxu2  ;;  %11143 = vst [vmem:[#allocation72_spill] sm:$0xff] %v8939_v55  ;;  %v3468_v45 = vmul.f32 %v11144_v12, %v8939_v55 }
 0x525   : > { %v4736_v25 = vpop.f32.mrf.mxu3  ;;  %v4528_v32 = vadd.f32 %v4527_v27, %v4319_v38  ;;  %v4112_v14 = vpop.f32.mrf.mxu0  ;;  %v965_v38 = vand.u32 2147483647, %v901_v29  ;;  %v11147_v29 = vld [vmem:[#allocation84_spill] sm:$0xff] }
 0x526   : > { %v4321_v15 = vpop.f32.mrf.mxu1  ;;  %v669_v27 = vpop.permute.xlu2 %668 }
 0x527   : > { %v8937_v0 = vadd.f32 %v4736_v25, %v4528_v32  ;;  %v4322_v56 = vadd.f32 %v4321_v15, %v4112_v14  ;;  %v1029_v22 = vsub.f32 1.0, %v965_v38  ;;  %v11145_v25 = vld [vmem:[#allocation82_spill] sm:$0xff]  ;;  %v902_v32 = vsub.f32 %v6412_v10, %v669_v27 }
 0x528   : > { %4159 = vmatmul.f32.gmra.mxu0 %v3467_v50  ;;  %4368 = vmatmul.f32.gmra.mxu1 %v3531_v1  ;;  %v3532_v50 = vmul.f32 %v11145_v25, %v8939_v55  ;;  %v11146_v1 = vld [vmem:[#allocation83_spill] sm:$0xff]  ;;  %v3660_v14 = vmul.f32 %v11147_v29, %v8939_v55 }
 0x529   : > { %11142 = vst [vmem:[#allocation71_spill] sm:$0xff] %v8937_v0  ;;  %4577 = vmatmul.f32.gmra.mxu2 %v3595_v17  ;;  %v3596_v37 = vmul.f32 %v11146_v1, %v8939_v55  ;;  %v8952_v17 = vmax.f32 %v1029_v22, 0.0  ;;  %v966_v12 = vand.u32 2147483647, %v902_v32  ;;  %v11150_v0 = vld [vmem:[#allocation85_spill] sm:$0xff]  ;;  %v11152_v22 = vld [vmem:[#allocation87_spill] sm:$0xff] }
 0x52a   : > { %4786 = vmatmul.f32.gmra.mxu3 %v3659_v49  ;;  %v674_v49 = vpop.permute.xlu0 %673  ;;  %v11153_v32 = vld [vmem:[#allocation88_spill] sm:$0xff] }
 0x52b   : > { %11149 = vst [vmem:[#allocation74_spill] sm:$0xff] %v8952_v17  ;;  %v1030_v1 = vsub.f32 1.0, %v966_v12  ;;  %v3469_v29 = vmul.f32 %v11150_v0, %v8952_v17  ;;  %v4066_v0 = vld [vmem:[%s10392_s2 + $0x348] sm:$0xff] }
 0x52c   : > { %v4530_v18 = vpop.f32.mrf.mxu2  ;;  %5349 = vmatpush.msrb.mxu2 %v4066_v0 }
 0x52d   : > { %v4739_v61 = vpop.f32.mrf.mxu3  ;;  %v4531_v36 = vadd.f32 %v4530_v18, %v4322_v56  ;;  %v4115_v51 = vpop.f32.mrf.mxu0  ;;  %v8974_v12 = vmax.f32 %v1030_v1, 0.0 }
 0x52e   : > { %v4324_v35 = vpop.f32.mrf.mxu1 }
 0x52f   : > { %v8950_v15 = vadd.f32 %v4739_v61, %v4531_v36  ;;  %v4325_v38 = vadd.f32 %v4324_v35, %v4115_v51  ;;  %v11151_v61 = vld [vmem:[#allocation86_spill] sm:$0xff]  ;;  %v3661_v35 = vmul.f32 %v11153_v32, %v8952_v17  ;;  %11155 = vst [vmem:[#allocation76_spill] sm:$0xff] %v8974_v12 }
 0x530   : > { %4162 = vmatmul.f32.gmra.mxu0 %v3468_v45  ;;  %4371 = vmatmul.f32.gmra.mxu1 %v3532_v50  ;;  %v3533_v36 = vmul.f32 %v11151_v61, %v8952_v17  ;;  %v903_v45 = vsub.f32 %v6412_v10, %v674_v49  ;;  %v3597_v50 = vmul.f32 %v11152_v22, %v8952_v17  ;;  %v11156_v22 = vld [vmem:[#allocation89_spill] sm:$0xff]  ;;  %v11157_v32 = vld [vmem:[#allocation90_spill] sm:$0xff] }
 0x531   : > { %11148 = vst [vmem:[#allocation73_spill] sm:$0xff] %v8950_v15  ;;  %4580 = vmatmul.f32.gmra.mxu2 %v3596_v37  ;;  %v4034_v37 = vld [vmem:[%s10392_s2 + $0x248] sm:$0xff]  ;;  %v11168_v15 = vld [vmem:[#allocation97_spill] sm:$0xff] }
 0x532   : > { %4789 = vmatmul.f32.gmra.mxu3 %v3660_v14  ;;  %v4082_v14 = vld [vmem:[%s10392_s2 + $0x3c8] sm:$0xff]  ;;  %v967_v49 = vand.u32 2147483647, %v903_v45  ;;  %4931 = vmatpush.msrb.mxu0 %v4034_v37 }
 0x533   : > { %5558 = vmatpush.msrb.mxu3 %v4082_v14  ;;  %v11158_v45 = vld [vmem:[#allocation91_spill] sm:$0xff] }
 0x534   : > { %v4533_v56 = vpop.f32.mrf.mxu2  ;;  %v1031_v17 = vsub.f32 1.0, %v967_v49  ;;  %v3598_v0 = vmul.f32 %v11158_v45, %v8974_v12  ;;  %v4050_v14 = vld [vmem:[%s10392_s2 + $0x2c8] sm:$0xff] }
 0x535   : > { %v4742_v18 = vpop.f32.mrf.mxu3  ;;  %v4534_v27 = vadd.f32 %v4533_v56, %v4325_v38  ;;  %v4118_v25 = vpop.f32.mrf.mxu0  ;;  %5140 = vmatpush.msrb.mxu1 %v4050_v14 }
 0x536   : > { %v4327_v63 = vpop.f32.mrf.mxu1  ;;  %v679_v38 = vpop.permute.xlu1 %678 }
 0x537   : > { %v8963_v51 = vadd.f32 %v4742_v18, %v4534_v27  ;;  %v4328_v56 = vadd.f32 %v4327_v63, %v4118_v25  ;;  %v904_v1 = vsub.f32 %v6412_v10, %v679_v38  ;;  %v11159_v63 = vld [vmem:[#allocation92_spill] sm:$0xff]  ;;  %v684_v38 = vpop.permute.xlu2 %683 }
 0x538   : > { %4165 = vmatmul.f32.gmra.mxu0 %v3469_v29  ;;  %4374 = vmatmul.f32.gmra.mxu1 %v3533_v36  ;;  %v3662_v25 = vmul.f32 %v11159_v63, %v8974_v12 }
 0x539   : > { %11154 = vst [vmem:[#allocation75_spill] sm:$0xff] %v8963_v51  ;;  %4583 = vmatmul.f32.gmra.mxu2 %v3597_v50  ;;  %v3470_v50 = vmul.f32 %v11156_v22, %v8974_v12  ;;  %v968_v49 = vand.u32 2147483647, %v904_v1 }
 0x53a   : > { %4792 = vmatmul.f32.gmra.mxu3 %v3661_v35  ;;  %v3534_v35 = vmul.f32 %v11157_v32, %v8974_v12  ;;  %v11162_v12 = vld [vmem:[#allocation93_spill] sm:$0xff] }
 0x53c   : > { %v4536_v18 = vpop.f32.mrf.mxu2 }
 0x53d   : > { %v4745_v27 = vpop.f32.mrf.mxu3  ;;  %v4537_v29 = vadd.f32 %v4536_v18, %v4328_v56  ;;  %v4121_v61 = vpop.f32.mrf.mxu0  ;;  %v8990_v56 = vmax.f32 %v1031_v17, 0.0  ;;  %v11164_v17 = vld [vmem:[#allocation95_spill] sm:$0xff] }
 0x53e   : > { %v4330_v36 = vpop.f32.mrf.mxu1 }
 0x53f   : > { %v8985_v37 = vadd.f32 %v4745_v27, %v4537_v29  ;;  %11161 = vst [vmem:[#allocation78_spill] sm:$0xff] %v8990_v56  ;;  %v4331_v18 = vadd.f32 %v4330_v36, %v4121_v61  ;;  %v1032_v29 = vsub.f32 1.0, %v968_v49  ;;  %v3599_v1 = vmul.f32 %v11164_v17, %v8990_v56  ;;  %v689_v49 = vpop.permute.xlu0 %688 }
 0x540   : > { %4168 = vmatmul.f32.gmra.mxu0 %v3470_v50  ;;  %4377 = vmatmul.f32.gmra.mxu1 %v3534_v35  ;;  %v11163_v50 = vld [vmem:[#allocation94_spill] sm:$0xff] }
 0x541   : > { %11160 = vst [vmem:[#allocation77_spill] sm:$0xff] %v8985_v37  ;;  %4586 = vmatmul.f32.gmra.mxu2 %v3598_v0  ;;  %v3471_v37 = vmul.f32 %v11162_v12, %v8990_v56  ;;  %v3535_v35 = vmul.f32 %v11163_v50, %v8990_v56  ;;  %v905_v0 = vsub.f32 %v6412_v10, %v684_v38  ;;  %v9003_v14 = vmax.f32 %v1032_v29, 0.0  ;;  %v11170_v29 = vld [vmem:[#allocation99_spill] sm:$0xff] }
 0x542   : > { %4795 = vmatmul.f32.gmra.mxu3 %v3662_v25  ;;  %v11165_v25 = vld [vmem:[#allocation96_spill] sm:$0xff] }
 0x543   : > { %v3663_v61 = vmul.f32 %v11165_v25, %v8990_v56  ;;  %11167 = vst [vmem:[#allocation80_spill] sm:$0xff] %v9003_v14  ;;  %v969_v12 = vand.u32 2147483647, %v905_v0  ;;  %v3472_v25 = vmul.f32 %v11168_v15, %v9003_v14  ;;  %v11171_v0 = vld [vmem:[#allocation100_spill] sm:$0xff] }
 0x544   : > { %v4539_v22 = vpop.f32.mrf.mxu2 }
 0x545   : > { %v4748_v32 = vpop.f32.mrf.mxu3  ;;  %v4540_v45 = vadd.f32 %v4539_v22, %v4331_v18  ;;  %v4124_v63 = vpop.f32.mrf.mxu0  ;;  %v1033_v17 = vsub.f32 1.0, %v969_v12 }
 0x546   : > { %v4333_v27 = vpop.f32.mrf.mxu1 }
 0x547   : > { %v9001_v36 = vadd.f32 %v4748_v32, %v4540_v45  ;;  %v4334_v18 = vadd.f32 %v4333_v27, %v4124_v63  ;;  %v11169_v32 = vld [vmem:[#allocation98_spill] sm:$0xff]  ;;  %v906_v45 = vsub.f32 %v6412_v10, %v689_v49  ;;  %v3664_v63 = vmul.f32 %v11171_v0, %v9003_v14 }
 0x548   : > { %4171 = vmatmul.f32.gmra.mxu0 %v3471_v37  ;;  %4380 = vmatmul.f32.gmra.mxu1 %v3535_v35  ;;  %v3536_v37 = vmul.f32 %v11169_v32, %v9003_v14  ;;  %v3600_v35 = vmul.f32 %v11170_v29, %v9003_v14  ;;  %v11174_v29 = vld [vmem:[#allocation101_spill] sm:$0xff]  ;;  %v4065_v0 = vld [vmem:[%s10392_s2 + $0x340] sm:$0xff] }
 0x549   : > { %11166 = vst [vmem:[#allocation79_spill] sm:$0xff] %v9001_v36  ;;  %4589 = vmatmul.f32.gmra.mxu2 %v3599_v1  ;;  %v9016_v1 = vmax.f32 %v1033_v17, 0.0  ;;  %v970_v15 = vand.u32 2147483647, %v906_v45  ;;  %v11176_v17 = vld [vmem:[#allocation103_spill] sm:$0xff]  ;;  %v11177_v45 = vld [vmem:[#allocation104_spill] sm:$0xff] }
 0x54a   : > { %4798 = vmatmul.f32.gmra.mxu3 %v3663_v61  ;;  %v694_v61 = vpop.permute.xlu1 %693  ;;  %5350 = vmatpush.msrb.mxu2 %v4065_v0 }
 0x54b   : > { %11173 = vst [vmem:[#allocation82_spill] sm:$0xff] %v9016_v1  ;;  %v3473_v36 = vmul.f32 %v11174_v29, %v9016_v1 }
 0x54c   : > { %v4542_v22 = vpop.f32.mrf.mxu2 }
 0x54d   : > { %v4751_v50 = vpop.f32.mrf.mxu3  ;;  %v4543_v38 = vadd.f32 %v4542_v22, %v4334_v18  ;;  %v4127_v51 = vpop.f32.mrf.mxu0 }
 0x54e   : > { %v4336_v55 = vpop.f32.mrf.mxu1 }
 0x54f   : > { %v9014_v27 = vadd.f32 %v4751_v50, %v4543_v38  ;;  %v4337_v12 = vadd.f32 %v4336_v55, %v4127_v51  ;;  %v11175_v50 = vld [vmem:[#allocation102_spill] sm:$0xff]  ;;  %v3665_v55 = vmul.f32 %v11177_v45, %v9016_v1 }
 0x550   : > { %4174 = vmatmul.f32.gmra.mxu0 %v3472_v25  ;;  %4383 = vmatmul.f32.gmra.mxu1 %v3536_v37  ;;  %v3537_v38 = vmul.f32 %v11175_v50, %v9016_v1  ;;  %v1034_v25 = vsub.f32 1.0, %v970_v15  ;;  %v907_v37 = vsub.f32 %v6412_v10, %v694_v61  ;;  %v4081_v15 = vld [vmem:[%s10392_s2 + $0x3c0] sm:$0xff] }
 0x551   : > { %11172 = vst [vmem:[#allocation81_spill] sm:$0xff] %v9014_v27  ;;  %4592 = vmatmul.f32.gmra.mxu2 %v3600_v35  ;;  %v3601_v35 = vmul.f32 %v11176_v17, %v9016_v1  ;;  %5559 = vmatpush.msrb.mxu3 %v4081_v15  ;;  %v4049_v15 = vld [vmem:[%s10392_s2 + $0x2c0] sm:$0xff] }
 0x552   : > { %4801 = vmatmul.f32.gmra.mxu3 %v3664_v63  ;;  %v4033_v63 = vld [vmem:[%s10392_s2 + $0x240] sm:$0xff]  ;;  %v9038_v61 = vmax.f32 %v1034_v25, 0.0  ;;  %5141 = vmatpush.msrb.mxu1 %v4049_v15 }
 0x553   : > { %4932 = vmatpush.msrb.mxu0 %v4033_v63 }
 0x554   : > { %v4545_v18 = vpop.f32.mrf.mxu2  ;;  %11179 = vst [vmem:[#allocation84_spill] sm:$0xff] %v9038_v61 }
 0x555   : > { %v4754_v22 = vpop.f32.mrf.mxu3  ;;  %v4546_v49 = vadd.f32 %v4545_v18, %v4337_v12  ;;  %v4130_v32 = vpop.f32.mrf.mxu0  ;;  %v971_v12 = vand.u32 2147483647, %v907_v37  ;;  %v11182_v37 = vld [vmem:[#allocation107_spill] sm:$0xff] }
 0x556   : > { %v4339_v56 = vpop.f32.mrf.mxu1  ;;  %v3602_v0 = vmul.f32 %v11182_v37, %v9038_v61 }
 0x557   : > { %v9027_v51 = vadd.f32 %v4754_v22, %v4546_v49  ;;  %v4340_v18 = vadd.f32 %v4339_v56, %v4130_v32  ;;  %v1035_v17 = vsub.f32 1.0, %v971_v12  ;;  %v11183_v56 = vld [vmem:[#allocation108_spill] sm:$0xff] }
 0x558   : > { %4177 = vmatmul.f32.gmra.mxu0 %v3473_v36  ;;  %4386 = vmatmul.f32.gmra.mxu1 %v3537_v38  ;;  %v699_v36 = vpop.permute.xlu2 %698  ;;  %v3666_v32 = vmul.f32 %v11183_v56, %v9038_v61 }
 0x559   : > { %11178 = vst [vmem:[#allocation83_spill] sm:$0xff] %v9027_v51  ;;  %4595 = vmatmul.f32.gmra.mxu2 %v3601_v35  ;;  %v11180_v35 = vld [vmem:[#allocation105_spill] sm:$0xff]  ;;  %v908_v25 = vsub.f32 %v6412_v10, %v699_v36  ;;  %v9054_v12 = vmax.f32 %v1035_v17, 0.0  ;;  %v704_v36 = vpop.permute.xlu0 %703  ;;  %v11188_v17 = vld [vmem:[#allocation111_spill] sm:$0xff] }
 0x55a   : > { %4804 = vmatmul.f32.gmra.mxu3 %v3665_v55  ;;  %v3474_v45 = vmul.f32 %v11180_v35, %v9038_v61  ;;  %v11181_v55 = vld [vmem:[#allocation106_spill] sm:$0xff] }
 0x55b   : > { %v3538_v1 = vmul.f32 %v11181_v55, %v9038_v61  ;;  %11185 = vst [vmem:[#allocation86_spill] sm:$0xff] %v9054_v12  ;;  %v11186_v61 = vld [vmem:[#allocation109_spill] sm:$0xff] }
 0x55c   : > { %v4548_v22 = vpop.f32.mrf.mxu2 }
 0x55d   : > { %v4757_v49 = vpop.f32.mrf.mxu3  ;;  %v4549_v29 = vadd.f32 %v4548_v22, %v4340_v18  ;;  %v4133_v50 = vpop.f32.mrf.mxu0  ;;  %v972_v18 = vand.u32 2147483647, %v908_v25  ;;  %v3603_v25 = vmul.f32 %v11188_v17, %v9054_v12  ;;  %v11192_v17 = vld [vmem:[#allocation113_spill] sm:$0xff] }
 0x55e   : > { %v4342_v38 = vpop.f32.mrf.mxu1 }
 0x55f   : > { %v9049_v63 = vadd.f32 %v4757_v49, %v4549_v29  ;;  %v4343_v22 = vadd.f32 %v4342_v38, %v4133_v50  ;;  %v1036_v29 = vsub.f32 1.0, %v972_v18  ;;  %v709_v18 = vpop.permute.xlu1 %708 }
 0x560   : > { %4180 = vmatmul.f32.gmra.mxu0 %v3474_v45  ;;  %4389 = vmatmul.f32.gmra.mxu1 %v3538_v1  ;;  %v11187_v45 = vld [vmem:[#allocation110_spill] sm:$0xff] }
 0x561   : > { %11184 = vst [vmem:[#allocation85_spill] sm:$0xff] %v9049_v63  ;;  %4598 = vmatmul.f32.gmra.mxu2 %v3602_v0  ;;  %v3475_v63 = vmul.f32 %v11186_v61, %v9054_v12  ;;  %v3539_v1 = vmul.f32 %v11187_v45, %v9054_v12  ;;  %v909_v0 = vsub.f32 %v6412_v10, %v704_v36  ;;  %v9067_v15 = vmax.f32 %v1036_v29, 0.0  ;;  %v11194_v29 = vld [vmem:[#allocation115_spill] sm:$0xff] }
 0x562   : > { %4807 = vmatmul.f32.gmra.mxu3 %v3666_v32  ;;  %v11189_v32 = vld [vmem:[#allocation112_spill] sm:$0xff] }
 0x563   : > { %v3667_v50 = vmul.f32 %v11189_v32, %v9054_v12  ;;  %11191 = vst [vmem:[#allocation88_spill] sm:$0xff] %v9067_v15  ;;  %v973_v61 = vand.u32 2147483647, %v909_v0  ;;  %v3476_v27 = vmul.f32 %v11192_v17, %v9067_v15  ;;  %v11195_v0 = vld [vmem:[#allocation116_spill] sm:$0xff] }
 0x564   : > { %v4551_v35 = vpop.f32.mrf.mxu2 }
 0x565   : > { %v4760_v55 = vpop.f32.mrf.mxu3  ;;  %v4552_v37 = vadd.f32 %v4551_v35, %v4343_v22  ;;  %v4136_v56 = vpop.f32.mrf.mxu0 }
 0x566   : > { %v4345_v49 = vpop.f32.mrf.mxu1 }
 0x567   : > { %v9065_v38 = vadd.f32 %v4760_v55, %v4552_v37  ;;  %v4346_v22 = vadd.f32 %v4345_v49, %v4136_v56  ;;  %v11193_v55 = vld [vmem:[#allocation114_spill] sm:$0xff]  ;;  %v3668_v56 = vmul.f32 %v11195_v0, %v9067_v15 }
 0x568   : > { %4183 = vmatmul.f32.gmra.mxu0 %v3475_v63  ;;  %4392 = vmatmul.f32.gmra.mxu1 %v3539_v1  ;;  %v3540_v37 = vmul.f32 %v11193_v55, %v9067_v15  ;;  %v1037_v63 = vsub.f32 1.0, %v973_v61  ;;  %v910_v1 = vsub.f32 %v6412_v10, %v709_v18 }
 0x569   : > { %11190 = vst [vmem:[#allocation87_spill] sm:$0xff] %v9065_v38  ;;  %4601 = vmatmul.f32.gmra.mxu2 %v3603_v25  ;;  %v3604_v25 = vmul.f32 %v11194_v29, %v9067_v15  ;;  %v11198_v38 = vld [vmem:[#allocation117_spill] sm:$0xff] }
 0x56a   : > { %4810 = vmatmul.f32.gmra.mxu3 %v3667_v50  ;;  %v9080_v32 = vmax.f32 %v1037_v63, 0.0  ;;  %v974_v50 = vand.u32 2147483647, %v910_v1  ;;  %v11201_v1 = vld [vmem:[#allocation120_spill] sm:$0xff] }
 0x56c   : > { %v4554_v35 = vpop.f32.mrf.mxu2  ;;  %11197 = vst [vmem:[#allocation90_spill] sm:$0xff] %v9080_v32  ;;  %v1038_v29 = vsub.f32 1.0, %v974_v50  ;;  %v3477_v0 = vmul.f32 %v11198_v38, %v9080_v32  ;;  %v4064_v38 = vld [vmem:[%s10392_s2 + $0x338] sm:$0xff] }
 0x56d   : > { %v4763_v45 = vpop.f32.mrf.mxu3  ;;  %v4555_v36 = vadd.f32 %v4554_v35, %v4346_v22  ;;  %v4139_v51 = vpop.f32.mrf.mxu0  ;;  %5351 = vmatpush.msrb.mxu2 %v4064_v38 }
 0x56e   : > { %v4348_v14 = vpop.f32.mrf.mxu1  ;;  %v714_v22 = vpop.permute.xlu2 %713  ;;  %v9102_v50 = vmax.f32 %v1038_v29, 0.0 }
 0x56f   : > { %v9078_v49 = vadd.f32 %v4763_v45, %v4555_v36  ;;  %v4349_v35 = vadd.f32 %v4348_v14, %v4139_v51  ;;  %v11199_v45 = vld [vmem:[#allocation118_spill] sm:$0xff]  ;;  %v911_v36 = vsub.f32 %v6412_v10, %v714_v22  ;;  %v3669_v14 = vmul.f32 %v11201_v1, %v9080_v32 }
 0x570   : > { %4186 = vmatmul.f32.gmra.mxu0 %v3476_v27  ;;  %4395 = vmatmul.f32.gmra.mxu1 %v3540_v37  ;;  %v3541_v27 = vmul.f32 %v11199_v45, %v9080_v32  ;;  %v11200_v37 = vld [vmem:[#allocation119_spill] sm:$0xff]  ;;  %11203 = vst [vmem:[#allocation92_spill] sm:$0xff] %v9102_v50 }
 0x571   : > { %11196 = vst [vmem:[#allocation89_spill] sm:$0xff] %v9078_v49  ;;  %4604 = vmatmul.f32.gmra.mxu2 %v3604_v25  ;;  %v3605_v63 = vmul.f32 %v11200_v37, %v9080_v32  ;;  %v4032_v25 = vld [vmem:[%s10392_s2 + $0x238] sm:$0xff]  ;;  %v975_v22 = vand.u32 2147483647, %v911_v36  ;;  %v11206_v36 = vld [vmem:[#allocation123_spill] sm:$0xff] }
 0x572   : > { %4813 = vmatmul.f32.gmra.mxu3 %v3668_v56  ;;  %v4080_v56 = vld [vmem:[%s10392_s2 + $0x3b8] sm:$0xff]  ;;  %4933 = vmatpush.msrb.mxu0 %v4032_v25  ;;  %v3606_v38 = vmul.f32 %v11206_v36, %v9102_v50 }
 0x573   : > { %5560 = vmatpush.msrb.mxu3 %v4080_v56  ;;  %v1039_v37 = vsub.f32 1.0, %v975_v22  ;;  %v4048_v56 = vld [vmem:[%s10392_s2 + $0x2b8] sm:$0xff] }
 0x574   : > { %v4557_v61 = vpop.f32.mrf.mxu2  ;;  %5142 = vmatpush.msrb.mxu1 %v4048_v56  ;;  %v11216_v49 = vld [vmem:[#allocation129_spill] sm:$0xff] }
 0x575   : > { %v4766_v17 = vpop.f32.mrf.mxu3  ;;  %v4558_v18 = vadd.f32 %v4557_v61, %v4349_v35  ;;  %v4142_v55 = vpop.f32.mrf.mxu0  ;;  %v9118_v22 = vmax.f32 %v1039_v37, 0.0  ;;  %v11212_v37 = vld [vmem:[#allocation127_spill] sm:$0xff] }
 0x576   : > { %v4351_v12 = vpop.f32.mrf.mxu1  ;;  %v719_v35 = vpop.permute.xlu0 %718 }
 0x577   : > { %v9091_v51 = vadd.f32 %v4766_v17, %v4558_v18  ;;  %v4352_v61 = vadd.f32 %v4351_v12, %v4142_v55  ;;  %v912_v29 = vsub.f32 %v6412_v10, %v719_v35  ;;  %v11207_v12 = vld [vmem:[#allocation124_spill] sm:$0xff]  ;;  %11209 = vst [vmem:[#allocation94_spill] sm:$0xff] %v9118_v22  ;;  %v724_v35 = vpop.permute.xlu1 %723 }
 0x578   : > { %4189 = vmatmul.f32.gmra.mxu0 %v3477_v0  ;;  %4398 = vmatmul.f32.gmra.mxu1 %v3541_v27  ;;  %v3670_v55 = vmul.f32 %v11207_v12, %v9102_v50 }
 0x579   : > { %11202 = vst [vmem:[#allocation91_spill] sm:$0xff] %v9091_v51  ;;  %4607 = vmatmul.f32.gmra.mxu2 %v3605_v63  ;;  %v11204_v63 = vld [vmem:[#allocation121_spill] sm:$0xff] }
 0x57a   : > { %4816 = vmatmul.f32.gmra.mxu3 %v3669_v14  ;;  %v3478_v1 = vmul.f32 %v11204_v63, %v9102_v50  ;;  %v11205_v14 = vld [vmem:[#allocation122_spill] sm:$0xff] }
 0x57b   : > { %v3542_v32 = vmul.f32 %v11205_v14, %v9102_v50 }
 0x57c   : > { %v4560_v17 = vpop.f32.mrf.mxu2 }
 0x57d   : > { %v4769_v18 = vpop.f32.mrf.mxu3  ;;  %v4561_v0 = vadd.f32 %v4560_v17, %v4352_v61  ;;  %v4145_v45 = vpop.f32.mrf.mxu0  ;;  %v976_v61 = vand.u32 2147483647, %v912_v29  ;;  %v3607_v29 = vmul.f32 %v11212_v37, %v9118_v22 }
 0x57e   : > { %v4354_v27 = vpop.f32.mrf.mxu1 }
 0x57f   : > { %v9113_v25 = vadd.f32 %v4769_v18, %v4561_v0  ;;  %v4355_v17 = vadd.f32 %v4354_v27, %v4145_v45  ;;  %v11210_v0 = vld [vmem:[#allocation125_spill] sm:$0xff] }
 0x580   : > { %4192 = vmatmul.f32.gmra.mxu0 %v3478_v1  ;;  %4401 = vmatmul.f32.gmra.mxu1 %v3542_v32  ;;  %v3479_v50 = vmul.f32 %v11210_v0, %v9118_v22  ;;  %v1040_v32 = vsub.f32 1.0, %v976_v61 }
 0x581   : > { %11208 = vst [vmem:[#allocation93_spill] sm:$0xff] %v9113_v25  ;;  %4610 = vmatmul.f32.gmra.mxu2 %v3606_v38  ;;  %v11211_v25 = vld [vmem:[#allocation126_spill] sm:$0xff]  ;;  %v913_v38 = vsub.f32 %v6412_v10, %v724_v35 }
 0x582   : > { %4819 = vmatmul.f32.gmra.mxu3 %v3670_v55  ;;  %v3543_v1 = vmul.f32 %v11211_v25, %v9118_v22  ;;  %v11213_v55 = vld [vmem:[#allocation128_spill] sm:$0xff]  ;;  %v9131_v56 = vmax.f32 %v1040_v32, 0.0 }
 0x583   : > { %v3671_v45 = vmul.f32 %v11213_v55, %v9118_v22 }
 0x584   : > { %v4563_v63 = vpop.f32.mrf.mxu2  ;;  %11215 = vst [vmem:[#allocation96_spill] sm:$0xff] %v9131_v56  ;;  %v3480_v55 = vmul.f32 %v11216_v49, %v9131_v56 }
 0x585   : > { %v4772_v14 = vpop.f32.mrf.mxu3  ;;  %v4564_v36 = vadd.f32 %v4563_v63, %v4355_v17  ;;  %v4148_v12 = vpop.f32.mrf.mxu0  ;;  %v977_v17 = vand.u32 2147483647, %v913_v38  ;;  %v11219_v38 = vld [vmem:[#allocation132_spill] sm:$0xff] }
 0x586   : > { %v4357_v18 = vpop.f32.mrf.mxu1  ;;  %v729_v63 = vpop.permute.xlu2 %728 }
 0x587   : > { %v9129_v27 = vadd.f32 %v4772_v14, %v4564_v36  ;;  %v4358_v25 = vadd.f32 %v4357_v18, %v4148_v12  ;;  %v1041_v37 = vsub.f32 1.0, %v977_v17  ;;  %v11217_v14 = vld [vmem:[#allocation130_spill] sm:$0xff]  ;;  %v914_v36 = vsub.f32 %v6412_v10, %v729_v63 }
 0x588   : > { %4195 = vmatmul.f32.gmra.mxu0 %v3479_v50  ;;  %4404 = vmatmul.f32.gmra.mxu1 %v3543_v1  ;;  %v3544_v50 = vmul.f32 %v11217_v14, %v9131_v56  ;;  %v11218_v1 = vld [vmem:[#allocation131_spill] sm:$0xff]  ;;  %v3672_v12 = vmul.f32 %v11219_v38, %v9131_v56 }
 0x589   : > { %11214 = vst [vmem:[#allocation95_spill] sm:$0xff] %v9129_v27  ;;  %4613 = vmatmul.f32.gmra.mxu2 %v3607_v29  ;;  %v3608_v32 = vmul.f32 %v11218_v1, %v9131_v56  ;;  %v9144_v29 = vmax.f32 %v1041_v37, 0.0  ;;  %v978_v49 = vand.u32 2147483647, %v914_v36  ;;  %v11222_v27 = vld [vmem:[#allocation133_spill] sm:$0xff]  ;;  %v11224_v37 = vld [vmem:[#allocation135_spill] sm:$0xff] }
 0x58a   : > { %4822 = vmatmul.f32.gmra.mxu3 %v3671_v45  ;;  %v734_v45 = vpop.permute.xlu0 %733  ;;  %v11225_v36 = vld [vmem:[#allocation136_spill] sm:$0xff] }
 0x58b   : > { %11221 = vst [vmem:[#allocation98_spill] sm:$0xff] %v9144_v29  ;;  %v1042_v1 = vsub.f32 1.0, %v978_v49  ;;  %v3481_v38 = vmul.f32 %v11222_v27, %v9144_v29  ;;  %v4063_v27 = vld [vmem:[%s10392_s2 + $0x330] sm:$0xff] }
 0x58c   : > { %v4566_v61 = vpop.f32.mrf.mxu2  ;;  %5352 = vmatpush.msrb.mxu2 %v4063_v27 }
 0x58d   : > { %v4775_v0 = vpop.f32.mrf.mxu3  ;;  %v4567_v35 = vadd.f32 %v4566_v61, %v4358_v25  ;;  %v4151_v51 = vpop.f32.mrf.mxu0  ;;  %v9166_v49 = vmax.f32 %v1042_v1, 0.0 }
 0x58e   : > { %v4360_v15 = vpop.f32.mrf.mxu1 }
 0x58f   : > { %v9142_v18 = vadd.f32 %v4775_v0, %v4567_v35  ;;  %v4361_v17 = vadd.f32 %v4360_v15, %v4151_v51  ;;  %v11223_v0 = vld [vmem:[#allocation134_spill] sm:$0xff]  ;;  %v3673_v15 = vmul.f32 %v11225_v36, %v9144_v29  ;;  %11227 = vst [vmem:[#allocation100_spill] sm:$0xff] %v9166_v49 }
 0x590   : > { %4198 = vmatmul.f32.gmra.mxu0 %v3480_v55  ;;  %4407 = vmatmul.f32.gmra.mxu1 %v3544_v50  ;;  %v3545_v35 = vmul.f32 %v11223_v0, %v9144_v29  ;;  %v915_v55 = vsub.f32 %v6412_v10, %v734_v45  ;;  %v3609_v50 = vmul.f32 %v11224_v37, %v9144_v29  ;;  %v11228_v37 = vld [vmem:[#allocation137_spill] sm:$0xff]  ;;  %v11229_v36 = vld [vmem:[#allocation138_spill] sm:$0xff] }
 0x591   : > { %11220 = vst [vmem:[#allocation97_spill] sm:$0xff] %v9142_v18  ;;  %4616 = vmatmul.f32.gmra.mxu2 %v3608_v32  ;;  %v4031_v32 = vld [vmem:[%s10392_s2 + $0x230] sm:$0xff]  ;;  %v11240_v18 = vld [vmem:[#allocation145_spill] sm:$0xff] }
 0x592   : > { %4825 = vmatmul.f32.gmra.mxu3 %v3672_v12  ;;  %v4079_v12 = vld [vmem:[%s10392_s2 + $0x3b0] sm:$0xff]  ;;  %v979_v45 = vand.u32 2147483647, %v915_v55  ;;  %4934 = vmatpush.msrb.mxu0 %v4031_v32  ;;  %v11230_v55 = vld [vmem:[#allocation139_spill] sm:$0xff] }
 0x593   : > { %5561 = vmatpush.msrb.mxu3 %v4079_v12  ;;  %v3610_v27 = vmul.f32 %v11230_v55, %v9166_v49  ;;  %v4047_v12 = vld [vmem:[%s10392_s2 + $0x2b0] sm:$0xff] }
 0x594   : > { %v4569_v25 = vpop.f32.mrf.mxu2  ;;  %v1043_v29 = vsub.f32 1.0, %v979_v45  ;;  %5143 = vmatpush.msrb.mxu1 %v4047_v12 }
 0x595   : > { %v4778_v61 = vpop.f32.mrf.mxu3  ;;  %v4570_v63 = vadd.f32 %v4569_v25, %v4361_v17  ;;  %v4154_v14 = vpop.f32.mrf.mxu0 }
 0x596   : > { %v4363_v22 = vpop.f32.mrf.mxu1  ;;  %v739_v17 = vpop.permute.xlu1 %738 }
 0x597   : > { %v9155_v51 = vadd.f32 %v4778_v61, %v4570_v63  ;;  %v4364_v25 = vadd.f32 %v4363_v22, %v4154_v14  ;;  %v916_v1 = vsub.f32 %v6412_v10, %v739_v17  ;;  %v11231_v22 = vld [vmem:[#allocation140_spill] sm:$0xff]  ;;  %v744_v17 = vpop.permute.xlu2 %743 }
 0x598   : > { %4201 = vmatmul.f32.gmra.mxu0 %v3481_v38  ;;  %4410 = vmatmul.f32.gmra.mxu1 %v3545_v35  ;;  %v3674_v14 = vmul.f32 %v11231_v22, %v9166_v49 }
 0x599   : > { %11226 = vst [vmem:[#allocation99_spill] sm:$0xff] %v9155_v51  ;;  %4619 = vmatmul.f32.gmra.mxu2 %v3609_v50  ;;  %v3482_v50 = vmul.f32 %v11228_v37, %v9166_v49  ;;  %v980_v45 = vand.u32 2147483647, %v916_v1 }
 0x59a   : > { %4828 = vmatmul.f32.gmra.mxu3 %v3673_v15  ;;  %v3546_v15 = vmul.f32 %v11229_v36, %v9166_v49  ;;  %v11234_v49 = vld [vmem:[#allocation141_spill] sm:$0xff] }
 0x59c   : > { %v4572_v61 = vpop.f32.mrf.mxu2 }
 0x59d   : > { %v4781_v63 = vpop.f32.mrf.mxu3  ;;  %v4573_v38 = vadd.f32 %v4572_v61, %v4364_v25  ;;  %v4157_v0 = vpop.f32.mrf.mxu0  ;;  %v9182_v25 = vmax.f32 %v1043_v29, 0.0  ;;  %v11236_v29 = vld [vmem:[#allocation143_spill] sm:$0xff] }
 0x59e   : > { %v4366_v35 = vpop.f32.mrf.mxu1 }
 0x59f   : > { %v9177_v32 = vadd.f32 %v4781_v63, %v4573_v38  ;;  %11233 = vst [vmem:[#allocation102_spill] sm:$0xff] %v9182_v25  ;;  %v4367_v61 = vadd.f32 %v4366_v35, %v4157_v0  ;;  %v1044_v38 = vsub.f32 1.0, %v980_v45  ;;  %v3611_v1 = vmul.f32 %v11236_v29, %v9182_v25  ;;  %v749_v45 = vpop.permute.xlu0 %748 }
 0x5a0   : > { %4204 = vmatmul.f32.gmra.mxu0 %v3482_v50  ;;  %4413 = vmatmul.f32.gmra.mxu1 %v3546_v15  ;;  %v11235_v50 = vld [vmem:[#allocation142_spill] sm:$0xff] }
 0x5a1   : > { %11232 = vst [vmem:[#allocation101_spill] sm:$0xff] %v9177_v32  ;;  %4622 = vmatmul.f32.gmra.mxu2 %v3610_v27  ;;  %v3483_v32 = vmul.f32 %v11234_v49, %v9182_v25  ;;  %v3547_v15 = vmul.f32 %v11235_v50, %v9182_v25  ;;  %v917_v27 = vsub.f32 %v6412_v10, %v744_v17  ;;  %v9195_v12 = vmax.f32 %v1044_v38, 0.0  ;;  %v11242_v38 = vld [vmem:[#allocation147_spill] sm:$0xff] }
 0x5a2   : > { %4831 = vmatmul.f32.gmra.mxu3 %v3674_v14  ;;  %v11237_v14 = vld [vmem:[#allocation144_spill] sm:$0xff] }
 0x5a3   : > { %v3675_v0 = vmul.f32 %v11237_v14, %v9182_v25  ;;  %11239 = vst [vmem:[#allocation104_spill] sm:$0xff] %v9195_v12  ;;  %v981_v49 = vand.u32 2147483647, %v917_v27  ;;  %v3484_v14 = vmul.f32 %v11240_v18, %v9195_v12  ;;  %v11243_v27 = vld [vmem:[#allocation148_spill] sm:$0xff] }
 0x5a4   : > { %v4575_v37 = vpop.f32.mrf.mxu2 }
 0x5a5   : > { %v4784_v36 = vpop.f32.mrf.mxu3  ;;  %v4576_v55 = vadd.f32 %v4575_v37, %v4367_v61  ;;  %v4160_v22 = vpop.f32.mrf.mxu0  ;;  %v1045_v29 = vsub.f32 1.0, %v981_v49 }
 0x5a6   : > { %v4369_v63 = vpop.f32.mrf.mxu1 }
 0x5a7   : > { %v9193_v35 = vadd.f32 %v4784_v36, %v4576_v55  ;;  %v4370_v61 = vadd.f32 %v4369_v63, %v4160_v22  ;;  %v11241_v36 = vld [vmem:[#allocation146_spill] sm:$0xff]  ;;  %v918_v55 = vsub.f32 %v6412_v10, %v749_v45  ;;  %v3676_v22 = vmul.f32 %v11243_v27, %v9195_v12  ;;  %v4062_v27 = vld [vmem:[%s10392_s2 + $0x328] sm:$0xff] }
 0x5a8   : > { %4207 = vmatmul.f32.gmra.mxu0 %v3483_v32  ;;  %4416 = vmatmul.f32.gmra.mxu1 %v3547_v15  ;;  %v3548_v32 = vmul.f32 %v11241_v36, %v9195_v12  ;;  %v3612_v15 = vmul.f32 %v11242_v38, %v9195_v12  ;;  %v11246_v38 = vld [vmem:[#allocation149_spill] sm:$0xff] }
 0x5a9   : > { %11238 = vst [vmem:[#allocation103_spill] sm:$0xff] %v9193_v35  ;;  %4625 = vmatmul.f32.gmra.mxu2 %v3611_v1  ;;  %v9208_v1 = vmax.f32 %v1045_v29, 0.0  ;;  %v982_v18 = vand.u32 2147483647, %v918_v55  ;;  %v11248_v29 = vld [vmem:[#allocation152_spill] sm:$0xff]  ;;  %v11249_v55 = vld [vmem:[#allocation153_spill] sm:$0xff] }
 0x5aa   : > { %4834 = vmatmul.f32.gmra.mxu3 %v3675_v0  ;;  %v754_v0 = vpop.permute.xlu1 %753  ;;  %5353 = vmatpush.msrb.mxu2 %v4062_v27 }
 0x5ab   : > { %11245 = vst [vmem:[#allocation106_spill] sm:$0xff] %v9208_v1  ;;  %v3485_v35 = vmul.f32 %v11246_v38, %v9208_v1 }
 0x5ac   : > { %v4578_v37 = vpop.f32.mrf.mxu2 }
 0x5ad   : > { %v4787_v50 = vpop.f32.mrf.mxu3  ;;  %v4579_v17 = vadd.f32 %v4578_v37, %v4370_v61  ;;  %v4163_v51 = vpop.f32.mrf.mxu0 }
 0x5ae   : > { %v4372_v56 = vpop.f32.mrf.mxu1 }
 0x5af   : > { %v9206_v63 = vadd.f32 %v4787_v50, %v4579_v17  ;;  %v4373_v49 = vadd.f32 %v4372_v56, %v4163_v51  ;;  %v11247_v50 = vld [vmem:[#allocation150_spill] sm:$0xff]  ;;  %v3677_v56 = vmul.f32 %v11249_v55, %v9208_v1 }
 0x5b0   : > { %4210 = vmatmul.f32.gmra.mxu0 %v3484_v14  ;;  %4419 = vmatmul.f32.gmra.mxu1 %v3548_v32  ;;  %v3549_v17 = vmul.f32 %v11247_v50, %v9208_v1  ;;  %v1046_v14 = vsub.f32 1.0, %v982_v18  ;;  %v919_v32 = vsub.f32 %v6412_v10, %v754_v0  ;;  %v4078_v18 = vld [vmem:[%s10392_s2 + $0x3a8] sm:$0xff] }
 0x5b1   : > { %11244 = vst [vmem:[#allocation105_spill] sm:$0xff] %v9206_v63  ;;  %4628 = vmatmul.f32.gmra.mxu2 %v3612_v15  ;;  %v3613_v15 = vmul.f32 %v11248_v29, %v9208_v1  ;;  %5562 = vmatpush.msrb.mxu3 %v4078_v18  ;;  %v4046_v18 = vld [vmem:[%s10392_s2 + $0x2a8] sm:$0xff] }
 0x5b2   : > { %4837 = vmatmul.f32.gmra.mxu3 %v3676_v22  ;;  %v4030_v22 = vld [vmem:[%s10392_s2 + $0x228] sm:$0xff]  ;;  %v9230_v0 = vmax.f32 %v1046_v14, 0.0  ;;  %5144 = vmatpush.msrb.mxu1 %v4046_v18 }
 0x5b3   : > { %4935 = vmatpush.msrb.mxu0 %v4030_v22 }
 0x5b4   : > { %v4581_v61 = vpop.f32.mrf.mxu2  ;;  %11251 = vst [vmem:[#allocation108_spill] sm:$0xff] %v9230_v0 }
 0x5b5   : > { %v4790_v37 = vpop.f32.mrf.mxu3  ;;  %v4582_v45 = vadd.f32 %v4581_v61, %v4373_v49  ;;  %v4166_v36 = vpop.f32.mrf.mxu0  ;;  %v983_v49 = vand.u32 2147483647, %v919_v32  ;;  %v11254_v32 = vld [vmem:[#allocation157_spill] sm:$0xff] }
 0x5b6   : > { %v4375_v25 = vpop.f32.mrf.mxu1  ;;  %v3614_v27 = vmul.f32 %v11254_v32, %v9230_v0 }
 0x5b7   : > { %v9219_v51 = vadd.f32 %v4790_v37, %v4582_v45  ;;  %v4376_v61 = vadd.f32 %v4375_v25, %v4166_v36  ;;  %v1047_v29 = vsub.f32 1.0, %v983_v49  ;;  %v11255_v25 = vld [vmem:[#allocation158_spill] sm:$0xff] }
 0x5b8   : > { %4213 = vmatmul.f32.gmra.mxu0 %v3485_v35  ;;  %4422 = vmatmul.f32.gmra.mxu1 %v3549_v17  ;;  %v759_v35 = vpop.permute.xlu2 %758  ;;  %v3678_v36 = vmul.f32 %v11255_v25, %v9230_v0 }
 0x5b9   : > { %11250 = vst [vmem:[#allocation107_spill] sm:$0xff] %v9219_v51  ;;  %4631 = vmatmul.f32.gmra.mxu2 %v3613_v15  ;;  %v11252_v15 = vld [vmem:[#allocation154_spill] sm:$0xff]  ;;  %v920_v14 = vsub.f32 %v6412_v10, %v759_v35  ;;  %v9246_v49 = vmax.f32 %v1047_v29, 0.0  ;;  %v764_v35 = vpop.permute.xlu0 %763 }
 0x5ba   : > { %4840 = vmatmul.f32.gmra.mxu3 %v3677_v56  ;;  %v3486_v55 = vmul.f32 %v11252_v15, %v9230_v0  ;;  %v11253_v56 = vld [vmem:[#allocation155_spill] sm:$0xff]  ;;  %v11260_v29 = vld [vmem:[#allocation162_spill] sm:$0xff] }
 0x5bb   : > { %v3550_v1 = vmul.f32 %v11253_v56, %v9230_v0  ;;  %11257 = vst [vmem:[#allocation110_spill] sm:$0xff] %v9246_v49  ;;  %v11258_v0 = vld [vmem:[#allocation159_spill] sm:$0xff] }
 0x5bc   : > { %v4584_v37 = vpop.f32.mrf.mxu2 }
 0x5bd   : > { %v4793_v45 = vpop.f32.mrf.mxu3  ;;  %v4585_v38 = vadd.f32 %v4584_v37, %v4376_v61  ;;  %v4169_v50 = vpop.f32.mrf.mxu0  ;;  %v984_v61 = vand.u32 2147483647, %v920_v14  ;;  %v3615_v14 = vmul.f32 %v11260_v29, %v9246_v49  ;;  %v11264_v29 = vld [vmem:[#allocation164_spill] sm:$0xff] }
 0x5be   : > { %v4378_v17 = vpop.f32.mrf.mxu1 }
 0x5bf   : > { %v9241_v22 = vadd.f32 %v4793_v45, %v4585_v38  ;;  %v4379_v37 = vadd.f32 %v4378_v17, %v4169_v50  ;;  %v1048_v38 = vsub.f32 1.0, %v984_v61  ;;  %v769_v61 = vpop.permute.xlu1 %768 }
 0x5c0   : > { %4216 = vmatmul.f32.gmra.mxu0 %v3486_v55  ;;  %4425 = vmatmul.f32.gmra.mxu1 %v3550_v1  ;;  %v11259_v55 = vld [vmem:[#allocation160_spill] sm:$0xff] }
 0x5c1   : > { %11256 = vst [vmem:[#allocation109_spill] sm:$0xff] %v9241_v22  ;;  %4634 = vmatmul.f32.gmra.mxu2 %v3614_v27  ;;  %v3487_v22 = vmul.f32 %v11258_v0, %v9246_v49  ;;  %v3551_v1 = vmul.f32 %v11259_v55, %v9246_v49  ;;  %v921_v27 = vsub.f32 %v6412_v10, %v764_v35  ;;  %v9259_v18 = vmax.f32 %v1048_v38, 0.0  ;;  %v11266_v38 = vld [vmem:[#allocation167_spill] sm:$0xff] }
 0x5c2   : > { %4843 = vmatmul.f32.gmra.mxu3 %v3678_v36  ;;  %v11261_v36 = vld [vmem:[#allocation163_spill] sm:$0xff] }
 0x5c3   : > { %v3679_v50 = vmul.f32 %v11261_v36, %v9246_v49  ;;  %11263 = vst [vmem:[#allocation112_spill] sm:$0xff] %v9259_v18  ;;  %v985_v0 = vand.u32 2147483647, %v921_v27  ;;  %v3488_v63 = vmul.f32 %v11264_v29, %v9259_v18  ;;  %v11267_v27 = vld [vmem:[#allocation168_spill] sm:$0xff] }
 0x5c4   : > { %v4587_v15 = vpop.f32.mrf.mxu2 }
 0x5c5   : > { %v4796_v56 = vpop.f32.mrf.mxu3  ;;  %v4588_v32 = vadd.f32 %v4587_v15, %v4379_v37  ;;  %v4172_v25 = vpop.f32.mrf.mxu0 }
 0x5c6   : > { %v4381_v45 = vpop.f32.mrf.mxu1 }
 0x5c7   : > { %v9257_v17 = vadd.f32 %v4796_v56, %v4588_v32  ;;  %v4382_v37 = vadd.f32 %v4381_v45, %v4172_v25  ;;  %v11265_v56 = vld [vmem:[#allocation165_spill] sm:$0xff]  ;;  %v3680_v25 = vmul.f32 %v11267_v27, %v9259_v18 }
 0x5c8   : > { %4219 = vmatmul.f32.gmra.mxu0 %v3487_v22  ;;  %4428 = vmatmul.f32.gmra.mxu1 %v3551_v1  ;;  %v3552_v32 = vmul.f32 %v11265_v56, %v9259_v18  ;;  %v1049_v22 = vsub.f32 1.0, %v985_v0  ;;  %v922_v1 = vsub.f32 %v6412_v10, %v769_v61 }
 0x5c9   : > { %11262 = vst [vmem:[#allocation111_spill] sm:$0xff] %v9257_v17  ;;  %4637 = vmatmul.f32.gmra.mxu2 %v3615_v14  ;;  %v3616_v14 = vmul.f32 %v11266_v38, %v9259_v18  ;;  %v11270_v17 = vld [vmem:[#allocation169_spill] sm:$0xff] }
 0x5ca   : > { %4846 = vmatmul.f32.gmra.mxu3 %v3679_v50  ;;  %v9272_v36 = vmax.f32 %v1049_v22, 0.0  ;;  %v986_v50 = vand.u32 2147483647, %v922_v1  ;;  %v11273_v1 = vld [vmem:[#allocation173_spill] sm:$0xff] }
 0x5cc   : > { %v4590_v15 = vpop.f32.mrf.mxu2  ;;  %11269 = vst [vmem:[#allocation114_spill] sm:$0xff] %v9272_v36  ;;  %v1050_v38 = vsub.f32 1.0, %v986_v50  ;;  %v3489_v27 = vmul.f32 %v11270_v17, %v9272_v36  ;;  %v4061_v17 = vld [vmem:[%s10392_s2 + $0x320] sm:$0xff] }
 0x5cd   : > { %v4799_v55 = vpop.f32.mrf.mxu3  ;;  %v4591_v35 = vadd.f32 %v4590_v15, %v4382_v37  ;;  %v4175_v51 = vpop.f32.mrf.mxu0  ;;  %5354 = vmatpush.msrb.mxu2 %v4061_v17 }
 0x5ce   : > { %v4384_v12 = vpop.f32.mrf.mxu1  ;;  %v774_v37 = vpop.permute.xlu2 %773  ;;  %v9294_v50 = vmax.f32 %v1050_v38, 0.0 }
 0x5cf   : > { %v9270_v45 = vadd.f32 %v4799_v55, %v4591_v35  ;;  %v4385_v15 = vadd.f32 %v4384_v12, %v4175_v51  ;;  %v11271_v55 = vld [vmem:[#allocation170_spill] sm:$0xff]  ;;  %v923_v35 = vsub.f32 %v6412_v10, %v774_v37  ;;  %v3681_v12 = vmul.f32 %v11273_v1, %v9272_v36 }
 0x5d0   : > { %4222 = vmatmul.f32.gmra.mxu0 %v3488_v63  ;;  %4431 = vmatmul.f32.gmra.mxu1 %v3552_v32  ;;  %v3553_v63 = vmul.f32 %v11271_v55, %v9272_v36  ;;  %v11272_v32 = vld [vmem:[#allocation172_spill] sm:$0xff]  ;;  %11275 = vst [vmem:[#allocation116_spill] sm:$0xff] %v9294_v50 }
 0x5d1   : > { %11268 = vst [vmem:[#allocation113_spill] sm:$0xff] %v9270_v45  ;;  %4640 = vmatmul.f32.gmra.mxu2 %v3616_v14  ;;  %v3617_v22 = vmul.f32 %v11272_v32, %v9272_v36  ;;  %v4029_v14 = vld [vmem:[%s10392_s2 + $0x220] sm:$0xff]  ;;  %v987_v37 = vand.u32 2147483647, %v923_v35  ;;  %v11278_v35 = vld [vmem:[#allocation177_spill] sm:$0xff]  ;;  %v11287_v45 = vld [vmem:[#allocation184_spill] sm:$0xff] }
 0x5d2   : > { %4849 = vmatmul.f32.gmra.mxu3 %v3680_v25  ;;  %v4077_v25 = vld [vmem:[%s10392_s2 + $0x3a0] sm:$0xff]  ;;  %4936 = vmatpush.msrb.mxu0 %v4029_v14  ;;  %v3618_v17 = vmul.f32 %v11278_v35, %v9294_v50 }
 0x5d3   : > { %5563 = vmatpush.msrb.mxu3 %v4077_v25  ;;  %v1051_v32 = vsub.f32 1.0, %v987_v37  ;;  %v4045_v25 = vld [vmem:[%s10392_s2 + $0x2a0] sm:$0xff] }
 0x5d4   : > { %v4593_v0 = vpop.f32.mrf.mxu2  ;;  %5145 = vmatpush.msrb.mxu1 %v4045_v25 }
 0x5d5   : > { %v4802_v29 = vpop.f32.mrf.mxu3  ;;  %v4594_v61 = vadd.f32 %v4593_v0, %v4385_v15  ;;  %v4178_v56 = vpop.f32.mrf.mxu0  ;;  %v9310_v37 = vmax.f32 %v1051_v32, 0.0  ;;  %v11284_v32 = vld [vmem:[#allocation182_spill] sm:$0xff] }
 0x5d6   : > { %v4387_v49 = vpop.f32.mrf.mxu1  ;;  %v779_v15 = vpop.permute.xlu0 %778 }
 0x5d7   : > { %v9283_v51 = vadd.f32 %v4802_v29, %v4594_v61  ;;  %v4388_v0 = vadd.f32 %v4387_v49, %v4178_v56  ;;  %v924_v38 = vsub.f32 %v6412_v10, %v779_v15  ;;  %v11279_v49 = vld [vmem:[#allocation178_spill] sm:$0xff]  ;;  %11281 = vst [vmem:[#allocation118_spill] sm:$0xff] %v9310_v37  ;;  %v784_v15 = vpop.permute.xlu1 %783 }
 0x5d8   : > { %4225 = vmatmul.f32.gmra.mxu0 %v3489_v27  ;;  %4434 = vmatmul.f32.gmra.mxu1 %v3553_v63  ;;  %v3682_v56 = vmul.f32 %v11279_v49, %v9294_v50 }
 0x5d9   : > { %11274 = vst [vmem:[#allocation115_spill] sm:$0xff] %v9283_v51  ;;  %4643 = vmatmul.f32.gmra.mxu2 %v3617_v22  ;;  %v11276_v22 = vld [vmem:[#allocation174_spill] sm:$0xff] }
 0x5da   : > { %4852 = vmatmul.f32.gmra.mxu3 %v3681_v12  ;;  %v3490_v1 = vmul.f32 %v11276_v22, %v9294_v50  ;;  %v11277_v12 = vld [vmem:[#allocation175_spill] sm:$0xff] }
 0x5db   : > { %v3554_v36 = vmul.f32 %v11277_v12, %v9294_v50 }
 0x5dc   : > { %v4596_v29 = vpop.f32.mrf.mxu2 }
 0x5dd   : > { %v4805_v61 = vpop.f32.mrf.mxu3  ;;  %v4597_v27 = vadd.f32 %v4596_v29, %v4388_v0  ;;  %v4181_v55 = vpop.f32.mrf.mxu0  ;;  %v988_v0 = vand.u32 2147483647, %v924_v38  ;;  %v3619_v38 = vmul.f32 %v11284_v32, %v9310_v37 }
 0x5de   : > { %v4390_v63 = vpop.f32.mrf.mxu1 }
 0x5df   : > { %v9305_v14 = vadd.f32 %v4805_v61, %v4597_v27  ;;  %v4391_v29 = vadd.f32 %v4390_v63, %v4181_v55  ;;  %v11282_v27 = vld [vmem:[#allocation179_spill] sm:$0xff] }
 0x5e0   : > { %4228 = vmatmul.f32.gmra.mxu0 %v3490_v1  ;;  %4437 = vmatmul.f32.gmra.mxu1 %v3554_v36  ;;  %v3491_v50 = vmul.f32 %v11282_v27, %v9310_v37  ;;  %v1052_v36 = vsub.f32 1.0, %v988_v0 }
 0x5e1   : > { %11280 = vst [vmem:[#allocation117_spill] sm:$0xff] %v9305_v14  ;;  %4646 = vmatmul.f32.gmra.mxu2 %v3618_v17  ;;  %v11283_v14 = vld [vmem:[#allocation180_spill] sm:$0xff]  ;;  %v925_v17 = vsub.f32 %v6412_v10, %v784_v15 }
 0x5e2   : > { %4855 = vmatmul.f32.gmra.mxu3 %v3682_v56  ;;  %v3555_v1 = vmul.f32 %v11283_v14, %v9310_v37  ;;  %v11285_v56 = vld [vmem:[#allocation183_spill] sm:$0xff]  ;;  %v9323_v25 = vmax.f32 %v1052_v36, 0.0 }
 0x5e3   : > { %v3683_v55 = vmul.f32 %v11285_v56, %v9310_v37 }
 0x5e4   : > { %v4599_v22 = vpop.f32.mrf.mxu2  ;;  %v3492_v56 = vmul.f32 %v11287_v45, %v9323_v25 }
 0x5e5   : > { %v4808_v12 = vpop.f32.mrf.mxu3  ;;  %v4600_v35 = vadd.f32 %v4599_v22, %v4391_v29  ;;  %v4184_v49 = vpop.f32.mrf.mxu0  ;;  %v989_v29 = vand.u32 2147483647, %v925_v17  ;;  %v11290_v17 = vld [vmem:[#allocation188_spill] sm:$0xff] }
 0x5e6   : > { %v4393_v61 = vpop.f32.mrf.mxu1  ;;  %v789_v22 = vpop.permute.xlu2 %788 }
 0x5e7   : > { %v9321_v63 = vadd.f32 %v4808_v12, %v4600_v35  ;;  %v4394_v14 = vadd.f32 %v4393_v61, %v4184_v49  ;;  %v1053_v32 = vsub.f32 1.0, %v989_v29  ;;  %v11288_v12 = vld [vmem:[#allocation185_spill] sm:$0xff]  ;;  %v926_v35 = vsub.f32 %v6412_v10, %v789_v22 }
 0x5e8   : > { %4231 = vmatmul.f32.gmra.mxu0 %v3491_v50  ;;  %4440 = vmatmul.f32.gmra.mxu1 %v3555_v1  ;;  %v3556_v50 = vmul.f32 %v11288_v12, %v9323_v25  ;;  %v11289_v1 = vld [vmem:[#allocation187_spill] sm:$0xff]  ;;  %v3684_v49 = vmul.f32 %v11290_v17, %v9323_v25 }
 0x5e9   : > { %11286 = vst [vmem:[#allocation119_spill] sm:$0xff] %v9321_v63  ;;  %4649 = vmatmul.f32.gmra.mxu2 %v3619_v38  ;;  %v3620_v36 = vmul.f32 %v11289_v1, %v9323_v25  ;;  %v9336_v38 = vmax.f32 %v1053_v32, 0.0  ;;  %v990_v45 = vand.u32 2147483647, %v926_v35  ;;  %v11292_v63 = vld [vmem:[#allocation189_spill] sm:$0xff] }
 0x5ea   : > { %4858 = vmatmul.f32.gmra.mxu3 %v3683_v55  ;;  %v794_v55 = vpop.permute.xlu0 %793 }
 0x5eb   : > { %11291 = vst [vmem:[#allocation120_spill] sm:$0xff] %v9336_v38  ;;  %v1054_v1 = vsub.f32 1.0, %v990_v45  ;;  %v3493_v17 = vmul.f32 %v11292_v63, %v9336_v38  ;;  %v3621_v32 = vmul.f32 %v7526_v7, %v9336_v38  ;;  %v4060_v63 = vld [vmem:[%s10392_s2 + $0x318] sm:$0xff] }
 0x5ec   : > { %v4602_v0 = vpop.f32.mrf.mxu2  ;;  %v4076_v7 = vld [vmem:[%s10392_s2 + $0x398] sm:$0xff]  ;;  %5355 = vmatpush.msrb.mxu2 %v4060_v63 }
 0x5ed   : > { %v4811_v27 = vpop.f32.mrf.mxu3  ;;  %v4603_v15 = vadd.f32 %v4602_v0, %v4394_v14  ;;  %v4187_v51 = vpop.f32.mrf.mxu0  ;;  %v9358_v35 = vmax.f32 %v1054_v1, 0.0  ;;  %5564 = vmatpush.msrb.mxu3 %v4076_v7 }
 0x5ee   : > { %v4396_v18 = vpop.f32.mrf.mxu1 }
 0x5ef   : > { %v9334_v61 = vadd.f32 %v4811_v27, %v4603_v15  ;;  %v4397_v29 = vadd.f32 %v4396_v18, %v4187_v51  ;;  %v11293_v27 = vld [vmem:[#allocation190_spill] sm:$0xff]  ;;  %v3685_v18 = vmul.f32 %v7528_v26, %v9336_v38  ;;  %11295 = vst [vmem:[#allocation122_spill] sm:$0xff] %v9358_v35 }
 0x5f0   : > { %4234 = vmatmul.f32.gmra.mxu0 %v3492_v56  ;;  %4443 = vmatmul.f32.gmra.mxu1 %v3556_v50  ;;  %v3557_v15 = vmul.f32 %v11293_v27, %v9336_v38  ;;  %v927_v56 = vsub.f32 %v6412_v10, %v794_v55  ;;  %v4028_v50 = vld [vmem:[%s10392_s2 + $0x218] sm:$0xff] }
 0x5f1   : > { %4652 = vmatmul.f32.gmra.mxu2 %v3620_v36  ;;  %4937 = vmatpush.msrb.mxu0 %v4028_v50  ;;  %v799_v36 = vpop.permute.xlu1 %798  ;;  %v11297_v27 = vld [vmem:[#allocation193_spill] sm:$0xff] }
 0x5f2   : > { %4861 = vmatmul.f32.gmra.mxu3 %v3684_v49  ;;  %v991_v26 = vand.u32 2147483647, %v927_v56  ;;  %v928_v1 = vsub.f32 %v6412_v10, %v799_v36  ;;  %v11298_v56 = vld [vmem:[#allocation194_spill] sm:$0xff]  ;;  %v4044_v50 = vld [vmem:[%s10392_s2 + $0x298] sm:$0xff]  ;;  %v804_v36 = vpop.permute.xlu2 %803 }
 0x5f3   : > { %5146 = vmatpush.msrb.mxu1 %v4044_v50 }
 0x5f4   : > { %v4605_v14 = vpop.f32.mrf.mxu2 }
 0x5f5   : > { %v4814_v0 = vpop.f32.mrf.mxu3  ;;  %v4606_v22 = vadd.f32 %v4605_v14, %v4397_v29  ;;  %v4190_v12 = vpop.f32.mrf.mxu0 }
 0x5f6   : > { %v4399_v37 = vpop.f32.mrf.mxu1 }
 0x5f7   : > { %v9347_v51 = vadd.f32 %v4814_v0, %v4606_v22  ;;  %v4400_v49 = vadd.f32 %v4399_v37, %v4190_v12  ;;  %v11296_v22 = vld [vmem:[#allocation192_spill] sm:$0xff]  ;;  %v11299_v37 = vld [vmem:[#allocation195_spill] sm:$0xff] }
 0x5f8   : > { %4237 = vmatmul.f32.gmra.mxu0 %v3493_v17  ;;  %4446 = vmatmul.f32.gmra.mxu1 %v3557_v15  ;;  %v3494_v17 = vmul.f32 %v11296_v22, %v9358_v35  ;;  %v3558_v15 = vmul.f32 %v11297_v27, %v9358_v35  ;;  %v3686_v12 = vmul.f32 %v11299_v37, %v9358_v35  ;;  %v11302_v37 = vld [vmem:[#allocation196_spill] sm:$0xff] }
 0x5f9   : > { %11294 = vst [vmem:[#allocation121_spill] sm:$0xff] %v9347_v51  ;;  %4655 = vmatmul.f32.gmra.mxu2 %v3621_v32  ;;  %v1055_v32 = vsub.f32 1.0, %v991_v26  ;;  %v992_v26 = vand.u32 2147483647, %v928_v1  ;;  %v11307_v51 = vld [vmem:[#allocation200_spill] sm:$0xff] }
 0x5fa   : > { %4864 = vmatmul.f32.gmra.mxu3 %v3685_v18  ;;  %v3622_v18 = vmul.f32 %v11298_v56, %v9358_v35 }
 0x5fb   : > { %v9374_v7 = vmax.f32 %v1055_v32, 0.0  ;;  %v11304_v32 = vld [vmem:[#allocation198_spill] sm:$0xff] }
 0x5fc   : > { %v4608_v45 = vpop.f32.mrf.mxu2 }
 0x5fd   : > { %v4817_v55 = vpop.f32.mrf.mxu3  ;;  %v4609_v29 = vadd.f32 %v4608_v45, %v4400_v49  ;;  %v4193_v14 = vpop.f32.mrf.mxu0  ;;  %11301 = vst [vmem:[#allocation124_spill] sm:$0xff] %v9374_v7  ;;  %v3495_v35 = vmul.f32 %v11302_v37, %v9374_v7  ;;  %v3623_v1 = vmul.f32 %v11304_v32, %v9374_v7 }
 0x5fe   : > { %v4402_v0 = vpop.f32.mrf.mxu1 }
 0x5ff   : > { %v9369_v63 = vadd.f32 %v4817_v55, %v4609_v29  ;;  %v4403_v49 = vadd.f32 %v4402_v0, %v4193_v14  ;;  %v1056_v29 = vsub.f32 1.0, %v992_v26 }
 0x600   : > { %4240 = vmatmul.f32.gmra.mxu0 %v3494_v17  ;;  %4449 = vmatmul.f32.gmra.mxu1 %v3558_v15  ;;  %v11303_v17 = vld [vmem:[#allocation197_spill] sm:$0xff] }
 0x601   : > { %11300 = vst [vmem:[#allocation123_spill] sm:$0xff] %v9369_v63  ;;  %4658 = vmatmul.f32.gmra.mxu2 %v3622_v18  ;;  %v3559_v15 = vmul.f32 %v11303_v17, %v9374_v7  ;;  %v929_v18 = vsub.f32 %v6412_v10, %v804_v36  ;;  %v9387_v50 = vmax.f32 %v1056_v29, 0.0  ;;  %v11309_v29 = vld [vmem:[#allocation202_spill] sm:$0xff] }
 0x602   : > { %4867 = vmatmul.f32.gmra.mxu3 %v3686_v12  ;;  %v11305_v12 = vld [vmem:[#allocation199_spill] sm:$0xff] }
 0x603   : > { %v3687_v14 = vmul.f32 %v11305_v12, %v9374_v7  ;;  %v993_v26 = vand.u32 2147483647, %v929_v18  ;;  %v3496_v12 = vmul.f32 %v11307_v51, %v9387_v50  ;;  %v11310_v18 = vld [vmem:[#allocation203_spill] sm:$0xff] }
 0x604   : > { %v4611_v45 = vpop.f32.mrf.mxu2 }
 0x605   : > { %v4820_v22 = vpop.f32.mrf.mxu3  ;;  %v4612_v27 = vadd.f32 %v4611_v45, %v4403_v49  ;;  %v4196_v56 = vpop.f32.mrf.mxu0  ;;  %v1057_v32 = vsub.f32 1.0, %v993_v26 }
 0x606   : > { %v4405_v55 = vpop.f32.mrf.mxu1  ;;  %v809_v49 = vpop.permute.xlu0 %808 }
 0x607   : > { %v9385_v0 = vadd.f32 %v4820_v22, %v4612_v27  ;;  %v4406_v45 = vadd.f32 %v4405_v55, %v4196_v56  ;;  %v11308_v22 = vld [vmem:[#allocation201_spill] sm:$0xff]  ;;  %v930_v27 = vsub.f32 %v6412_v10, %v809_v49  ;;  %v3688_v56 = vmul.f32 %v11310_v18, %v9387_v50  ;;  %v4027_v18 = vld [vmem:[%s10392_s2 + $0x210] sm:$0xff] }
 0x608   : > { %4243 = vmatmul.f32.gmra.mxu0 %v3495_v35  ;;  %4452 = vmatmul.f32.gmra.mxu1 %v3559_v15  ;;  %v3560_v35 = vmul.f32 %v11308_v22, %v9387_v50  ;;  %v3624_v15 = vmul.f32 %v11309_v29, %v9387_v50  ;;  %v11312_v29 = vld [vmem:[#allocation204_spill] sm:$0xff] }
 0x609   : > { %11306 = vst [vmem:[#allocation125_spill] sm:$0xff] %v9385_v0  ;;  %4661 = vmatmul.f32.gmra.mxu2 %v3623_v1  ;;  %v9400_v1 = vmax.f32 %v1057_v32, 0.0  ;;  %v994_v51 = vand.u32 2147483647, %v930_v27  ;;  %v11314_v27 = vld [vmem:[#allocation11_spill] sm:$0xff]  ;;  %4938 = vmatpush.msrb.mxu0 %v4027_v18  ;;  %v4043_v18 = vld [vmem:[%s10392_s2 + $0x290] sm:$0xff] }
 0x60a   : > { %4870 = vmatmul.f32.gmra.mxu3 %v3687_v14  ;;  %v814_v14 = vpop.permute.xlu1 %813  ;;  %5147 = vmatpush.msrb.mxu1 %v4043_v18 }
 0x60b   : > { %11311 = vst [vmem:[#allocation126_spill] sm:$0xff] %v9400_v1  ;;  %v3497_v0 = vmul.f32 %v11312_v29, %v9400_v1  ;;  %v3625_v32 = vmul.f32 %v7593_v13, %v9400_v1  ;;  %v4075_v13 = vld [vmem:[%s10392_s2 + $0x390] sm:$0xff] }
 0x60c   : > { %v4614_v37 = vpop.f32.mrf.mxu2  ;;  %5565 = vmatpush.msrb.mxu3 %v4075_v13 }
 0x60d   : > { %v4823_v17 = vpop.f32.mrf.mxu3  ;;  %v4615_v36 = vadd.f32 %v4614_v37, %v4406_v45  ;;  %v4199_v63 = vpop.f32.mrf.mxu0 }
 0x60e   : > { %v4408_v38 = vpop.f32.mrf.mxu1 }
 0x60f   : > { %v9398_v55 = vadd.f32 %v4823_v17, %v4615_v36  ;;  %v4409_v26 = vadd.f32 %v4408_v38, %v4199_v63  ;;  %v11313_v17 = vld [vmem:[#allocation205_spill] sm:$0xff]  ;;  %v3689_v38 = vmul.f32 %v11314_v27, %v9400_v1  ;;  %v11317_v27 = vld [vmem:[#allocation207_spill] sm:$0xff] }
 0x610   : > { %4246 = vmatmul.f32.gmra.mxu0 %v3496_v12  ;;  %4455 = vmatmul.f32.gmra.mxu1 %v3560_v35  ;;  %v3561_v36 = vmul.f32 %v11313_v17, %v9400_v1  ;;  %v1058_v12 = vsub.f32 1.0, %v994_v51  ;;  %v931_v35 = vsub.f32 %v6412_v10, %v814_v14 }
 0x611   : > { %4664 = vmatmul.f32.gmra.mxu2 %v3624_v15  ;;  %v4059_v15 = vld [vmem:[%s10392_s2 + $0x310] sm:$0xff] }
 0x612   : > { %4873 = vmatmul.f32.gmra.mxu3 %v3688_v56  ;;  %v9422_v56 = vmax.f32 %v1058_v12, 0.0  ;;  %v995_v51 = vand.u32 2147483647, %v931_v35  ;;  %5356 = vmatpush.msrb.mxu2 %v4059_v15  ;;  %v11318_v35 = vld [vmem:[#allocation15_spill] sm:$0xff] }
 0x614   : > { %v4617_v45 = vpop.f32.mrf.mxu2  ;;  %11315 = vst [vmem:[#allocation127_spill] sm:$0xff] %v9422_v56  ;;  %v1059_v17 = vsub.f32 1.0, %v995_v51  ;;  %v3626_v15 = vmul.f32 %v11318_v35, %v9422_v56  ;;  %v11321_v35 = vld [vmem:[#allocation208_spill] sm:$0xff] }
 0x615   : > { %v4826_v37 = vpop.f32.mrf.mxu3  ;;  %v4618_v49 = vadd.f32 %v4617_v45, %v4409_v26  ;;  %v4202_v22 = vpop.f32.mrf.mxu0 }
 0x616   : > { %v4411_v7 = vpop.f32.mrf.mxu1  ;;  %v9438_v13 = vmax.f32 %v1059_v17, 0.0  ;;  %v11323_v17 = vld [vmem:[#allocation19_spill] sm:$0xff] }
 0x617   : > { %v9411_v63 = vadd.f32 %v4826_v37, %v4618_v49  ;;  %v4412_v14 = vadd.f32 %v4411_v7, %v4202_v22  ;;  %v3690_v7 = vmul.f32 %v7610_v20, %v9422_v56 }
 0x618   : > { %4249 = vmatmul.f32.gmra.mxu0 %v3497_v0  ;;  %4458 = vmatmul.f32.gmra.mxu1 %v3561_v36  ;;  %v819_v0 = vpop.permute.xlu2 %818  ;;  %v11316_v36 = vld [vmem:[#allocation206_spill] sm:$0xff]  ;;  %11320 = vst [vmem:[#allocation129_spill] sm:$0xff] %v9438_v13 }
 0x619   : > { %4667 = vmatmul.f32.gmra.mxu2 %v3625_v32  ;;  %v3498_v32 = vmul.f32 %v11316_v36, %v9422_v56  ;;  %v932_v12 = vsub.f32 %v6412_v10, %v819_v0  ;;  %v824_v0 = vpop.permute.xlu0 %823 }
 0x61a   : > { %4876 = vmatmul.f32.gmra.mxu3 %v3689_v38  ;;  %v3562_v38 = vmul.f32 %v11317_v27, %v9422_v56  ;;  %v3499_v56 = vmul.f32 %v11321_v35, %v9438_v13 }
 0x61b   : > { %v996_v51 = vand.u32 2147483647, %v932_v12  ;;  %v3627_v12 = vmul.f32 %v11323_v17, %v9438_v13  ;;  %v11325_v17 = vld [vmem:[#allocation210_spill] sm:$0xff] }
 0x61c   : > { %v4620_v26 = vpop.f32.mrf.mxu2 }
 0x61d   : > { %v4829_v45 = vpop.f32.mrf.mxu3  ;;  %v4621_v37 = vadd.f32 %v4620_v26, %v4412_v14  ;;  %v4205_v49 = vpop.f32.mrf.mxu0 }
 0x61e   : > { %v4414_v29 = vpop.f32.mrf.mxu1 }
 0x61f   : > { %v9433_v22 = vadd.f32 %v4829_v45, %v4621_v37  ;;  %v4415_v14 = vadd.f32 %v4414_v29, %v4205_v49  ;;  %v1060_v37 = vsub.f32 1.0, %v996_v51  ;;  %v3691_v49 = vmul.f32 %v7622_v43, %v9438_v13  ;;  %v829_v51 = vpop.permute.xlu1 %828  ;;  %v11326_v43 = vld [vmem:[#allocation211_spill] sm:$0xff] }
 0x620   : > { %4252 = vmatmul.f32.gmra.mxu0 %v3498_v32  ;;  %4461 = vmatmul.f32.gmra.mxu1 %v3562_v38  ;;  %v11322_v32 = vld [vmem:[#allocation209_spill] sm:$0xff] }
 0x621   : > { %11319 = vst [vmem:[#allocation128_spill] sm:$0xff] %v9433_v22  ;;  %4670 = vmatmul.f32.gmra.mxu2 %v3626_v15  ;;  %v3563_v38 = vmul.f32 %v11322_v32, %v9438_v13  ;;  %v933_v15 = vsub.f32 %v6412_v10, %v824_v0 }
 0x622   : > { %4879 = vmatmul.f32.gmra.mxu3 %v3690_v7  ;;  %v9451_v7 = vmax.f32 %v1060_v37, 0.0  ;;  %v11327_v37 = vld [vmem:[#allocation212_spill] sm:$0xff] }
 0x623   : > { %v997_v18 = vand.u32 2147483647, %v933_v15  ;;  %v11328_v15 = vld [vmem:[#allocation213_spill] sm:$0xff] }
 0x624   : > { %v4623_v26 = vpop.f32.mrf.mxu2  ;;  %v3500_v1 = vmul.f32 %v11325_v17, %v9451_v7 }
 0x625   : > { %v4832_v36 = vpop.f32.mrf.mxu3  ;;  %v4624_v27 = vadd.f32 %v4623_v26, %v4415_v14  ;;  %v4208_v20 = vpop.f32.mrf.mxu0 }
 0x626   : > { %v4417_v45 = vpop.f32.mrf.mxu1 }
 0x627   : > { %v9449_v29 = vadd.f32 %v4832_v36, %v4624_v27  ;;  %v4418_v14 = vadd.f32 %v4417_v45, %v4208_v20  ;;  %v3564_v36 = vmul.f32 %v11326_v43, %v9451_v7  ;;  %v934_v27 = vsub.f32 %v6412_v10, %v829_v51 }
 0x628   : > { %4255 = vmatmul.f32.gmra.mxu0 %v3499_v56  ;;  %4464 = vmatmul.f32.gmra.mxu1 %v3563_v38  ;;  %v1061_v56 = vsub.f32 1.0, %v997_v18  ;;  %v3628_v38 = vmul.f32 %v11327_v37, %v9451_v7  ;;  %v3692_v20 = vmul.f32 %v11328_v15, %v9451_v7 }
 0x629   : > { %11324 = vst [vmem:[#allocation130_spill] sm:$0xff] %v9449_v29  ;;  %4673 = vmatmul.f32.gmra.mxu2 %v3627_v12  ;;  %v11329_v29 = vld [vmem:[#allocation214_spill] sm:$0xff] }
 0x62a   : > { %4882 = vmatmul.f32.gmra.mxu3 %v3691_v49  ;;  %v9464_v12 = vmax.f32 %v1061_v56, 0.0  ;;  %v998_v49 = vand.u32 2147483647, %v934_v27  ;;  %v4026_v56 = vld [vmem:[%s10392_s2 + $0x208] sm:$0xff] }
 0x62b   : > { %4939 = vmatpush.msrb.mxu0 %v4026_v56 }
 0x62c   : > { %v4626_v26 = vpop.f32.mrf.mxu2  ;;  %v1062_v37 = vsub.f32 1.0, %v998_v49  ;;  %v3501_v15 = vmul.f32 %v11329_v29, %v9464_v12  ;;  %v4058_v29 = vld [vmem:[%s10392_s2 + $0x308] sm:$0xff] }
 0x62d   : > { %v4835_v35 = vpop.f32.mrf.mxu3  ;;  %v4627_v0 = vadd.f32 %v4626_v26, %v4418_v14  ;;  %v4211_v32 = vpop.f32.mrf.mxu0  ;;  %5357 = vmatpush.msrb.mxu2 %v4058_v29  ;;  %v4042_v29 = vld [vmem:[%s10392_s2 + $0x288] sm:$0xff] }
 0x62e   : > { %v4420_v22 = vpop.f32.mrf.mxu1  ;;  %v834_v14 = vpop.permute.xlu2 %833  ;;  %v9486_v27 = vmax.f32 %v1062_v37, 0.0  ;;  %5148 = vmatpush.msrb.mxu1 %v4042_v29 }
 0x62f   : > { %v9462_v45 = vadd.f32 %v4835_v35, %v4627_v0  ;;  %v4421_v26 = vadd.f32 %v4420_v22, %v4211_v32  ;;  %v11330_v35 = vld [vmem:[#allocation215_spill] sm:$0xff]  ;;  %v935_v0 = vsub.f32 %v6412_v10, %v834_v14  ;;  %v3693_v22 = vmul.f32 %v7655_v28, %v9464_v12 }
 0x630   : > { %4258 = vmatmul.f32.gmra.mxu0 %v3500_v1  ;;  %4467 = vmatmul.f32.gmra.mxu1 %v3564_v36  ;;  %v3565_v1 = vmul.f32 %v11330_v35, %v9464_v12  ;;  %v3629_v36 = vmul.f32 %v7653_v59, %v9464_v12  ;;  %v4074_v59 = vld [vmem:[%s10392_s2 + $0x388] sm:$0xff]  ;;  %11331 = vst [vmem:[#allocation131_spill] sm:$0xff] %v9486_v27 }
 0x631   : > { %4676 = vmatmul.f32.gmra.mxu2 %v3628_v38  ;;  %v999_v28 = vand.u32 2147483647, %v935_v0  ;;  %v839_v38 = vpop.permute.xlu0 %838  ;;  %5566 = vmatpush.msrb.mxu3 %v4074_v59  ;;  %v11334_v0 = vld [vmem:[#allocation218_spill] sm:$0xff] }
 0x632   : > { %4885 = vmatmul.f32.gmra.mxu3 %v3692_v20  ;;  %v936_v37 = vsub.f32 %v6412_v10, %v839_v38 }
 0x634   : > { %v4629_v18 = vpop.f32.mrf.mxu2  ;;  %v1000_v59 = vand.u32 2147483647, %v936_v37 }
 0x635   : > { %v4838_v17 = vpop.f32.mrf.mxu3  ;;  %v4630_v51 = vadd.f32 %v4629_v18, %v4421_v26  ;;  %v4214_v43 = vpop.f32.mrf.mxu0 }
 0x636   : > { %v4423_v13 = vpop.f32.mrf.mxu1 }
 0x637   : > { %v9475_v32 = vadd.f32 %v4838_v17, %v4630_v51  ;;  %v4424_v20 = vadd.f32 %v4423_v13, %v4214_v43  ;;  %v1063_v51 = vsub.f32 1.0, %v999_v28  ;;  %v3694_v13 = vmul.f32 %v7670_v16, %v9486_v27  ;;  %v844_v28 = vpop.permute.xlu1 %843 }
 0x638   : > { %4261 = vmatmul.f32.gmra.mxu0 %v3501_v15  ;;  %4470 = vmatmul.f32.gmra.mxu1 %v3565_v1  ;;  %v11332_v15 = vld [vmem:[#allocation216_spill] sm:$0xff]  ;;  %v11333_v1 = vld [vmem:[#allocation217_spill] sm:$0xff] }
 0x639   : > { %4679 = vmatmul.f32.gmra.mxu2 %v3629_v36  ;;  %v3502_v35 = vmul.f32 %v11332_v15, %v9486_v27  ;;  %v3566_v36 = vmul.f32 %v11333_v1, %v9486_v27  ;;  %v9502_v56 = vmax.f32 %v1063_v51, 0.0  ;;  %v11339_v51 = vld [vmem:[#allocation221_spill] sm:$0xff] }
 0x63a   : > { %4888 = vmatmul.f32.gmra.mxu3 %v3693_v22  ;;  %v3630_v22 = vmul.f32 %v11334_v0, %v9486_v27  ;;  %v11338_v0 = vld [vmem:[#allocation220_spill] sm:$0xff] }
 0x63b   : > { %11336 = vst [vmem:[#allocation133_spill] sm:$0xff] %v9502_v56  ;;  %v3631_v37 = vmul.f32 %v11339_v51, %v9502_v56 }
 0x63c   : > { %v4632_v49 = vpop.f32.mrf.mxu2 }
 0x63d   : > { %v4841_v14 = vpop.f32.mrf.mxu3  ;;  %v4633_v26 = vadd.f32 %v4632_v49, %v4424_v20  ;;  %v4217_v18 = vpop.f32.mrf.mxu0 }
 0x63e   : > { %v4426_v17 = vpop.f32.mrf.mxu1 }
 0x63f   : > { %v9497_v43 = vadd.f32 %v4841_v14, %v4633_v26  ;;  %v4427_v38 = vadd.f32 %v4426_v17, %v4217_v18  ;;  %v11337_v26 = vld [vmem:[#allocation219_spill] sm:$0xff]  ;;  %v3695_v18 = vmul.f32 %v7682_v30, %v9502_v56 }
 0x640   : > { %4264 = vmatmul.f32.gmra.mxu0 %v3502_v35  ;;  %4473 = vmatmul.f32.gmra.mxu1 %v3566_v36  ;;  %v3503_v1 = vmul.f32 %v11337_v26, %v9502_v56  ;;  %v3567_v35 = vmul.f32 %v11338_v0, %v9502_v56  ;;  %v1064_v36 = vsub.f32 1.0, %v1000_v59 }
 0x641   : > { %11335 = vst [vmem:[#allocation132_spill] sm:$0xff] %v9497_v43  ;;  %4682 = vmatmul.f32.gmra.mxu2 %v3630_v22  ;;  %v937_v22 = vsub.f32 %v6412_v10, %v844_v28  ;;  %v11341_v43 = vld [vmem:[#allocation222_spill] sm:$0xff] }
 0x642   : > { %4891 = vmatmul.f32.gmra.mxu3 %v3694_v13  ;;  %v9515_v13 = vmax.f32 %v1064_v36, 0.0 }
 0x643   : > { %v1001_v29 = vand.u32 2147483647, %v937_v22  ;;  %v11344_v22 = vld [vmem:[#allocation225_spill] sm:$0xff] }
 0x644   : > { %v4635_v20 = vpop.f32.mrf.mxu2  ;;  %v3504_v30 = vmul.f32 %v11341_v43, %v9515_v13 }
 0x645   : > { %v4844_v49 = vpop.f32.mrf.mxu3  ;;  %v4636_v15 = vadd.f32 %v4635_v20, %v4427_v38  ;;  %v4220_v16 = vpop.f32.mrf.mxu0  ;;  %v1065_v51 = vsub.f32 1.0, %v1001_v29 }
 0x646   : > { %v4429_v14 = vpop.f32.mrf.mxu1  ;;  %v849_v38 = vpop.permute.xlu2 %848 }
 0x647   : > { %v9513_v17 = vadd.f32 %v4844_v49, %v4636_v15  ;;  %v4430_v20 = vadd.f32 %v4429_v14, %v4220_v16  ;;  %v11342_v49 = vld [vmem:[#allocation223_spill] sm:$0xff]  ;;  %v3696_v16 = vmul.f32 %v11344_v22, %v9515_v13 }
 0x648   : > { %4267 = vmatmul.f32.gmra.mxu0 %v3503_v1  ;;  %4476 = vmatmul.f32.gmra.mxu1 %v3567_v35  ;;  %v3568_v15 = vmul.f32 %v11342_v49, %v9515_v13  ;;  %v938_v1 = vsub.f32 %v6412_v10, %v849_v38  ;;  %v11343_v35 = vld [vmem:[#allocation224_spill] sm:$0xff] }
 0x649   : > { %11340 = vst [vmem:[#allocation134_spill] sm:$0xff] %v9513_v17  ;;  %4685 = vmatmul.f32.gmra.mxu2 %v3631_v37  ;;  %v3632_v36 = vmul.f32 %v11343_v35, %v9515_v13  ;;  %v9528_v37 = vmax.f32 %v1065_v51, 0.0  ;;  %v11345_v17 = vld [vmem:[#allocation226_spill] sm:$0xff] }
 0x64a   : > { %4894 = vmatmul.f32.gmra.mxu3 %v3695_v18  ;;  %v1002_v43 = vand.u32 2147483647, %v938_v1  ;;  %v854_v18 = vpop.permute.xlu0 %853 }
 0x64b   : > { %v3505_v22 = vmul.f32 %v11345_v17, %v9528_v37  ;;  %v3633_v51 = vmul.f32 %v7713_v57, %v9528_v37  ;;  %v4057_v17 = vld [vmem:[%s10392_s2 + $0x300] sm:$0xff] }
 0x64c   : > { %v4638_v59 = vpop.f32.mrf.mxu2  ;;  %v1066_v35 = vsub.f32 1.0, %v1002_v43  ;;  %v4073_v57 = vld [vmem:[%s10392_s2 + $0x380] sm:$0xff]  ;;  %5358 = vmatpush.msrb.mxu2 %v4057_v17 }
 0x64d   : > { %v4847_v26 = vpop.f32.mrf.mxu3  ;;  %v4639_v28 = vadd.f32 %v4638_v59, %v4430_v20  ;;  %v4223_v0 = vpop.f32.mrf.mxu0  ;;  %5567 = vmatpush.msrb.mxu3 %v4073_v57  ;;  %v4041_v17 = vld [vmem:[%s10392_s2 + $0x280] sm:$0xff] }
 0x64e   : > { %v4432_v27 = vpop.f32.mrf.mxu1  ;;  %v9550_v1 = vmax.f32 %v1066_v35, 0.0  ;;  %5149 = vmatpush.msrb.mxu1 %v4041_v17 }
 0x64f   : > { %v9526_v14 = vadd.f32 %v4847_v26, %v4639_v28  ;;  %v4433_v29 = vadd.f32 %v4432_v27, %v4223_v0  ;;  %v11346_v26 = vld [vmem:[#allocation227_spill] sm:$0xff]  ;;  %v3697_v27 = vmul.f32 %v7715_v53, %v9528_v37 }
 0x650   : > { %4270 = vmatmul.f32.gmra.mxu0 %v3504_v30  ;;  %4479 = vmatmul.f32.gmra.mxu1 %v3568_v15  ;;  %v3569_v28 = vmul.f32 %v11346_v26, %v9528_v37  ;;  %v939_v30 = vsub.f32 %v6412_v10, %v854_v18  ;;  %v4025_v15 = vld [vmem:[%s10392_s2 + $0x200] sm:$0xff]  ;;  %11347 = vst [vmem:[#allocation135_spill] sm:$0xff] %v9550_v1  ;;  %v11349_v26 = vld [vmem:[#allocation229_spill] sm:$0xff] }
 0x651   : > { %4688 = vmatmul.f32.gmra.mxu2 %v3632_v36  ;;  %4940 = vmatpush.msrb.mxu0 %v4025_v15  ;;  %v859_v36 = vpop.permute.xlu1 %858 }
 0x652   : > { %4897 = vmatmul.f32.gmra.mxu3 %v3696_v16  ;;  %v1003_v53 = vand.u32 2147483647, %v939_v30  ;;  %v940_v35 = vsub.f32 %v6412_v10, %v859_v36  ;;  %v11350_v30 = vld [vmem:[#allocation230_spill] sm:$0xff] }
 0x654   : > { %v4641_v20 = vpop.f32.mrf.mxu2  ;;  %v1004_v57 = vand.u32 2147483647, %v940_v35 }
 0x655   : > { %v4850_v59 = vpop.f32.mrf.mxu3  ;;  %v4642_v38 = vadd.f32 %v4641_v20, %v4433_v29  ;;  %v4226_v49 = vpop.f32.mrf.mxu0 }
 0x656   : > { %v4435_v56 = vpop.f32.mrf.mxu1 }
 0x657   : > { %v9539_v0 = vadd.f32 %v4850_v59, %v4642_v38  ;;  %v4436_v16 = vadd.f32 %v4435_v56, %v4226_v49  ;;  %v11348_v38 = vld [vmem:[#allocation228_spill] sm:$0xff]  ;;  %v3698_v56 = vmul.f32 %v7730_v52, %v9550_v1 }
 0x658   : > { %4273 = vmatmul.f32.gmra.mxu0 %v3505_v22  ;;  %4482 = vmatmul.f32.gmra.mxu1 %v3569_v28  ;;  %v3506_v22 = vmul.f32 %v11348_v38, %v9550_v1  ;;  %v3570_v28 = vmul.f32 %v11349_v26, %v9550_v1  ;;  %v11353_v26 = vld [vmem:[#allocation231_spill] sm:$0xff] }
 0x659   : > { %4691 = vmatmul.f32.gmra.mxu2 %v3633_v51  ;;  %v1067_v51 = vsub.f32 1.0, %v1003_v53  ;;  %v864_v53 = vpop.permute.xlu2 %863 }
 0x65a   : > { %4900 = vmatmul.f32.gmra.mxu3 %v3697_v27  ;;  %v3634_v27 = vmul.f32 %v11350_v30, %v9550_v1 }
 0x65b   : > { %v9566_v15 = vmax.f32 %v1067_v51, 0.0  ;;  %v11355_v51 = vld [vmem:[#allocation233_spill] sm:$0xff] }
 0x65c   : > { %v4644_v43 = vpop.f32.mrf.mxu2 }
 0x65d   : > { %v4853_v18 = vpop.f32.mrf.mxu3  ;;  %v4645_v29 = vadd.f32 %v4644_v43, %v4436_v16  ;;  %v4229_v20 = vpop.f32.mrf.mxu0  ;;  %11352 = vst [vmem:[#allocation137_spill] sm:$0xff] %v9566_v15  ;;  %v3507_v30 = vmul.f32 %v11353_v26, %v9566_v15  ;;  %v3635_v35 = vmul.f32 %v11355_v51, %v9566_v15 }
 0x65e   : > { %v4438_v59 = vpop.f32.mrf.mxu1 }
 0x65f   : > { %v9561_v49 = vadd.f32 %v4853_v18, %v4645_v29  ;;  %v4439_v36 = vadd.f32 %v4438_v59, %v4229_v20  ;;  %v1068_v29 = vsub.f32 1.0, %v1004_v57  ;;  %v3699_v20 = vmul.f32 %v7742_v33, %v9566_v15  ;;  %v869_v57 = vpop.permute.xlu0 %868 }
 0x660   : > { %4276 = vmatmul.f32.gmra.mxu0 %v3506_v22  ;;  %4485 = vmatmul.f32.gmra.mxu1 %v3570_v28  ;;  %v11354_v22 = vld [vmem:[#allocation232_spill] sm:$0xff] }
 0x661   : > { %11351 = vst [vmem:[#allocation136_spill] sm:$0xff] %v9561_v49  ;;  %4694 = vmatmul.f32.gmra.mxu2 %v3634_v27  ;;  %v3571_v28 = vmul.f32 %v11354_v22, %v9566_v15  ;;  %v941_v27 = vsub.f32 %v6412_v10, %v864_v53  ;;  %v11357_v49 = vld [vmem:[#allocation234_spill] sm:$0xff] }
 0x662   : > { %4903 = vmatmul.f32.gmra.mxu3 %v3698_v56  ;;  %v9579_v56 = vmax.f32 %v1068_v29, 0.0  ;;  %v11359_v29 = vld [vmem:[#allocation236_spill] sm:$0xff] }
 0x663   : > { %v1005_v17 = vand.u32 2147483647, %v941_v27  ;;  %v11360_v27 = vld [vmem:[#allocation237_spill] sm:$0xff] }
 0x664   : > { %v4647_v16 = vpop.f32.mrf.mxu2  ;;  %v3508_v33 = vmul.f32 %v11357_v49, %v9579_v56 }
 0x665   : > { %v4856_v43 = vpop.f32.mrf.mxu3  ;;  %v4648_v38 = vadd.f32 %v4647_v16, %v4439_v36  ;;  %v4232_v52 = vpop.f32.mrf.mxu0  ;;  %v1069_v51 = vsub.f32 1.0, %v1005_v17 }
 0x666   : > { %v4441_v18 = vpop.f32.mrf.mxu1 }
 0x667   : > { %v9577_v59 = vadd.f32 %v4856_v43, %v4648_v38  ;;  %v4442_v36 = vadd.f32 %v4441_v18, %v4232_v52  ;;  %v11358_v43 = vld [vmem:[#allocation235_spill] sm:$0xff]  ;;  %v3700_v52 = vmul.f32 %v11360_v27, %v9579_v56  ;;  %v879_v27 = vpop.permute.xlu2 %878 }
 0x668   : > { %4279 = vmatmul.f32.gmra.mxu0 %v3507_v30  ;;  %4488 = vmatmul.f32.gmra.mxu1 %v3571_v28  ;;  %v3572_v38 = vmul.f32 %v11358_v43, %v9579_v56  ;;  %v942_v30 = vsub.f32 %v6412_v10, %v869_v57  ;;  %v3636_v28 = vmul.f32 %v11359_v29, %v9579_v56  ;;  %v11361_v29 = vld [vmem:[#allocation238_spill] sm:$0xff] }
 0x669   : > { %11356 = vst [vmem:[#allocation138_spill] sm:$0xff] %v9577_v59  ;;  %4697 = vmatmul.f32.gmra.mxu2 %v3635_v35  ;;  %v9592_v35 = vmax.f32 %v1069_v51, 0.0 }
 0x66a   : > { %4906 = vmatmul.f32.gmra.mxu3 %v3699_v20  ;;  %v1006_v49 = vand.u32 2147483647, %v942_v30  ;;  %v874_v20 = vpop.permute.xlu1 %873 }
 0x66b   : > { %v3509_v59 = vmul.f32 %v11361_v29, %v9592_v35  ;;  %v3637_v51 = vmul.f32 %v7773_v58, %v9592_v35 }
 0x66c   : > { %v4650_v16 = vpop.f32.mrf.mxu2 }
 0x66d   : > { %v4859_v26 = vpop.f32.mrf.mxu3  ;;  %v4651_v53 = vadd.f32 %v4650_v16, %v4442_v36  ;;  %v4235_v22 = vpop.f32.mrf.mxu0 }
 0x66e   : > { %v4444_v1 = vpop.f32.mrf.mxu1 }
 0x66f   : > { %v9590_v18 = vadd.f32 %v4859_v26, %v4651_v53  ;;  %v4445_v17 = vadd.f32 %v4444_v1, %v4235_v22  ;;  %v11362_v26 = vld [vmem:[#allocation239_spill] sm:$0xff]  ;;  %v3701_v1 = vmul.f32 %v7775_v31, %v9592_v35 }
 0x670   : > { %4282 = vmatmul.f32.gmra.mxu0 %v3508_v33  ;;  %4491 = vmatmul.f32.gmra.mxu1 %v3572_v38  ;;  %v3573_v53 = vmul.f32 %v11362_v26, %v9592_v35  ;;  %v1070_v33 = vsub.f32 1.0, %v1006_v49  ;;  %v943_v38 = vsub.f32 %v6412_v10, %v874_v20  ;;  %v11363_v26 = vld [vmem:[#allocation240_spill] sm:$0xff] }
 0x671   : > { %4700 = vmatmul.f32.gmra.mxu2 %v3636_v28 }
 0x672   : > { %4909 = vmatmul.f32.gmra.mxu3 %v3700_v52  ;;  %v9605_v30 = vmax.f32 %v1070_v33, 0.0  ;;  %v1007_v28 = vand.u32 2147483647, %v943_v38 }
 0x674   : > { %v4653_v36 = vpop.f32.mrf.mxu2  ;;  %v1071_v58 = vsub.f32 1.0, %v1007_v28  ;;  %v3510_v31 = vmul.f32 %v11363_v26, %v9605_v30 }
 0x675   : > { %v4862_v16 = vpop.f32.mrf.mxu3  ;;  %v4654_v57 = vadd.f32 %v4653_v36, %v4445_v17  ;;  %v4238_v43 = vpop.f32.mrf.mxu0 }
 0x676   : > { %v4447_v15 = vpop.f32.mrf.mxu1  ;;  %v9618_v38 = vmax.f32 %v1071_v58, 0.0 }
 0x677   : > { %v9603_v22 = vadd.f32 %v4862_v16, %v4654_v57  ;;  %v4448_v52 = vadd.f32 %v4447_v15, %v4238_v43  ;;  %v11364_v16 = vld [vmem:[#allocation241_spill] sm:$0xff]  ;;  %v944_v57 = vsub.f32 %v6412_v10, %v879_v27  ;;  %v3702_v15 = vmul.f32 %v7790_v47, %v9605_v30  ;;  %v11367_v47 = vld [vmem:[#allocation244_spill] sm:$0xff] }
 0x678   : > { %4285 = vmatmul.f32.gmra.mxu0 %v3509_v59  ;;  %4494 = vmatmul.f32.gmra.mxu1 %v3573_v53  ;;  %v3574_v59 = vmul.f32 %v11364_v16, %v9605_v30  ;;  %v11365_v53 = vld [vmem:[#allocation242_spill] sm:$0xff]  ;;  %v11366_v16 = vld [vmem:[#allocation243_spill] sm:$0xff]  ;;  %v3703_v58 = vmul.f32 %v7802_v34, %v9618_v38 }
 0x679   : > { %4703 = vmatmul.f32.gmra.mxu2 %v3637_v51  ;;  %v3638_v33 = vmul.f32 %v11365_v53, %v9605_v30  ;;  %v1008_v51 = vand.u32 2147483647, %v944_v57  ;;  %v3511_v53 = vmul.f32 %v11366_v16, %v9618_v38 }
 0x67a   : > { %4912 = vmatmul.f32.gmra.mxu3 %v3701_v1 }
 0x67b   : > { %v1072_v26 = vsub.f32 1.0, %v1008_v51 }
 0x67c   : > { %v4656_v49 = vpop.f32.mrf.mxu2 }
 0x67d   : > { %v4865_v17 = vpop.f32.mrf.mxu3  ;;  %v4657_v20 = vadd.f32 %v4656_v49, %v4448_v52  ;;  %v4241_v36 = vpop.f32.mrf.mxu0 }
 0x67e   : > { %v4450_v29 = vpop.f32.mrf.mxu1 }
 0x67f   : > { %v9616_v43 = vadd.f32 %v4865_v17, %v4657_v20  ;;  %v4451_v1 = vadd.f32 %v4450_v29, %v4241_v36  ;;  %v3575_v17 = vmul.f32 %v11367_v47, %v9618_v38  ;;  %v11368_v20 = vld [vmem:[#allocation245_spill] sm:$0xff]  ;;  %v9630_v36 = vmax.f32 %v1072_v26, 0.0  ;;  %v11370_v47 = vld [vmem:[#allocation247_spill] sm:$0xff] }
 0x680   : > { %4288 = vmatmul.f32.gmra.mxu0 %v3510_v31  ;;  %4497 = vmatmul.f32.gmra.mxu1 %v3574_v59  ;;  %v3639_v31 = vmul.f32 %v11368_v20, %v9618_v38 }
 0x681   : > { %4706 = vmatmul.f32.gmra.mxu2 %v3638_v33  ;;  %v3576_v34 = vmul.f32 %v11370_v47, %v9630_v36  ;;  %v11374_v47 = vld [vmem:[#allocation251_spill] sm:$0xff] }
 0x682   : > { %4915 = vmatmul.f32.gmra.mxu3 %v3702_v15 }
 0x684   : > { %v4659_v28 = vpop.f32.mrf.mxu2 }
 0x685   : > { %v4868_v52 = vpop.f32.mrf.mxu3  ;;  %v4660_v49 = vadd.f32 %v4659_v28, %v4451_v1  ;;  %v4244_v10 = vpop.f32.mrf.mxu0  ;;  %v11369_v28 = vld [vmem:[#allocation246_spill] sm:$0xff] }
 0x686   : > { %v4453_v27 = vpop.f32.mrf.mxu1  ;;  %v3512_v16 = vmul.f32 %v11369_v28, %v9630_v36 }
 0x687   : > { %v9628_v59 = vadd.f32 %v4868_v52, %v4660_v49  ;;  %v4454_v29 = vadd.f32 %v4453_v27, %v4244_v10  ;;  %v11371_v52 = vld [vmem:[#allocation248_spill] sm:$0xff] }
 0x688   : > { %4291 = vmatmul.f32.gmra.mxu0 %v3511_v53  ;;  %4500 = vmatmul.f32.gmra.mxu1 %v3575_v17  ;;  %v3640_v49 = vmul.f32 %v11371_v52, %v9630_v36  ;;  %v11372_v53 = vld [vmem:[#allocation249_spill] sm:$0xff]  ;;  %v3769_v52 = vmul.f32 %v11374_v47, %v8534_v2 }
 0x689   : > { %4709 = vmatmul.f32.gmra.mxu2 %v3639_v31  ;;  %v3704_v17 = vmul.f32 %v11372_v53, %v9630_v36 }
 0x68a   : > { %4918 = vmatmul.f32.gmra.mxu3 %v3703_v58 }
 0x68c   : > { %v4662_v57 = vpop.f32.mrf.mxu2 }
 0x68d   : > { %v4871_v33 = vpop.f32.mrf.mxu3  ;;  %v4663_v15 = vadd.f32 %v4662_v57, %v4454_v29  ;;  %v4247_v51 = vpop.f32.mrf.mxu0  ;;  %v11373_v57 = vld [vmem:[#allocation250_spill] sm:$0xff] }
 0x68e   : > { %v4456_v1 = vpop.f32.mrf.mxu1  ;;  %v3705_v28 = vmul.f32 %v11373_v57, %v8534_v2 }
 0x68f   : > { %v9640_v26 = vadd.f32 %v4871_v33, %v4663_v15  ;;  %v4457_v10 = vadd.f32 %v4456_v1, %v4247_v51  ;;  %v3833_v33 = vmul.f32 %v7833_v3, %v8534_v2  ;;  %v3897_v15 = vmul.f32 %v7835_v41, %v8534_v2  ;;  %v11376_v3 = vld [vmem:[#allocation253_spill] sm:$0xff]  ;;  %v11377_v41 = vld [vmem:[#allocation254_spill] sm:$0xff] }
 0x690   : > { %4294 = vmatmul.f32.gmra.mxu0 %v3512_v16  ;;  %4503 = vmatmul.f32.gmra.mxu1 %v3576_v34  ;;  %v3770_v57 = vmul.f32 %v11376_v3, %v8562_v11  ;;  %v3834_v2 = vmul.f32 %v11377_v41, %v8562_v11 }
 0x691   : > { %4712 = vmatmul.f32.gmra.mxu2 %v3640_v49 }
 0x692   : > { %4921 = vmatmul.f32.gmra.mxu3 %v3704_v17 }
 0x694   : > { %v4665_v27 = vpop.f32.mrf.mxu2 }
 0x695   : > { %v4874_v20 = vpop.f32.mrf.mxu3  ;;  %v4666_v31 = vadd.f32 %v4665_v27, %v4457_v10  ;;  %v4250_v58 = vpop.f32.mrf.mxu0  ;;  %v11375_v10 = vld [vmem:[#allocation252_spill] sm:$0xff] }
 0x696   : > { %v4459_v29 = vpop.f32.mrf.mxu1  ;;  %v3706_v27 = vmul.f32 %v11375_v10, %v8562_v11 }
 0x697   : > { %v9650_v16 = vadd.f32 %v4874_v20, %v4666_v31  ;;  %v4460_v51 = vadd.f32 %v4459_v29, %v4250_v58  ;;  %v3898_v20 = vmul.f32 %v7850_v9, %v8562_v11  ;;  %v11380_v9 = vld [vmem:[#allocation257_spill] sm:$0xff] }
 0x698   : > { %4941 = vmatmul.f32.vlgmr.msrb.gmra.mxu0 %v3705_v28  ;;  %5150 = vmatmul.f32.vlgmr.msrb.gmra.mxu1 %v3769_v52  ;;  %v3835_v11 = vmul.f32 %v11380_v9, %v8584_v24 }
 0x699   : > { %5359 = vmatmul.f32.vlgmr.msrb.gmra.mxu2 %v3833_v33 }
 0x69a   : > { %5568 = vmatmul.f32.vlgmr.msrb.gmra.mxu3 %v3897_v15  ;;  %v11378_v15 = vld [vmem:[#allocation255_spill] sm:$0xff] }
 0x69c   : > { %v4668_v1 = vpop.f32.mrf.mxu2 }
 0x69d   : > { %v4877_v34 = vpop.f32.mrf.mxu3  ;;  %v4669_v49 = vadd.f32 %v4668_v1, %v4460_v51  ;;  %v4253_v53 = vpop.f32.mrf.mxu0  ;;  %v3707_v51 = vmul.f32 %v11378_v15, %v8584_v24  ;;  %v11379_v1 = vld [vmem:[#allocation256_spill] sm:$0xff] }
 0x69e   : > { %v4462_v17 = vpop.f32.mrf.mxu1  ;;  %v3771_v10 = vmul.f32 %v11379_v1, %v8584_v24 }
 0x69f   : > { %v9660_v31 = vadd.f32 %v4877_v34, %v4669_v49  ;;  %v4463_v58 = vadd.f32 %v4462_v17, %v4253_v53  ;;  %v3899_v34 = vmul.f32 %v7862_v62, %v8584_v24  ;;  %v11383_v62 = vld [vmem:[#allocation260_spill] sm:$0xff] }
 0x6a0   : > { %4944 = vmatmul.f32.gmra.mxu0 %v3706_v27  ;;  %5153 = vmatmul.f32.gmra.mxu1 %v3770_v57  ;;  %v3836_v24 = vmul.f32 %v11383_v62, %v8603_v8  ;;  %v11387_v62 = vld [vmem:[#allocation264_spill] sm:$0xff] }
 0x6a1   : > { %5362 = vmatmul.f32.gmra.mxu2 %v3834_v2  ;;  %v11381_v2 = vld [vmem:[#allocation258_spill] sm:$0xff] }
 0x6a2   : > { %5571 = vmatmul.f32.gmra.mxu3 %v3898_v20  ;;  %v3708_v20 = vmul.f32 %v11381_v2, %v8603_v8 }
 0x6a4   : > { %v4671_v29 = vpop.f32.mrf.mxu2 }
 0x6a5   : > { %v4880_v28 = vpop.f32.mrf.mxu3  ;;  %v4672_v47 = vadd.f32 %v4671_v29, %v4463_v58  ;;  %v4256_v52 = vpop.f32.mrf.mxu0  ;;  %v11382_v58 = vld [vmem:[#allocation259_spill] sm:$0xff] }
 0x6a6   : > { %v4465_v33 = vpop.f32.mrf.mxu1  ;;  %v3772_v29 = vmul.f32 %v11382_v58, %v8603_v8 }
 0x6a7   : > { %v9670_v49 = vadd.f32 %v4880_v28, %v4672_v47  ;;  %v4466_v53 = vadd.f32 %v4465_v33, %v4256_v52  ;;  %v11384_v28 = vld [vmem:[#allocation261_spill] sm:$0xff] }
 0x6a8   : > { %4947 = vmatmul.f32.gmra.mxu0 %v3707_v51  ;;  %5156 = vmatmul.f32.gmra.mxu1 %v3771_v10  ;;  %v3900_v47 = vmul.f32 %v11384_v28, %v8603_v8  ;;  %v3837_v8 = vmul.f32 %v7893_v48, %v8622_v5  ;;  %v11388_v48 = vld [vmem:[#allocation265_spill] sm:$0xff] }
 0x6a9   : > { %5365 = vmatmul.f32.gmra.mxu2 %v3835_v11  ;;  %v11385_v11 = vld [vmem:[#allocation262_spill] sm:$0xff]  ;;  %v3774_v28 = vmul.f32 %v11388_v48, %v8650_v4 }
 0x6aa   : > { %5574 = vmatmul.f32.gmra.mxu3 %v3899_v34  ;;  %v3709_v34 = vmul.f32 %v11385_v11, %v8622_v5 }
 0x6ac   : > { %v4674_v17 = vpop.f32.mrf.mxu2 }
 0x6ad   : > { %v4883_v27 = vpop.f32.mrf.mxu3  ;;  %v4675_v3 = vadd.f32 %v4674_v17, %v4466_v53  ;;  %v4259_v57 = vpop.f32.mrf.mxu0  ;;  %v11386_v53 = vld [vmem:[#allocation263_spill] sm:$0xff] }
 0x6ae   : > { %v4468_v41 = vpop.f32.mrf.mxu1  ;;  %v3773_v17 = vmul.f32 %v11386_v53, %v8622_v5 }
 0x6af   : > { %v9680_v15 = vadd.f32 %v4883_v27, %v4675_v3  ;;  %v4469_v52 = vadd.f32 %v4468_v41, %v4259_v57  ;;  %v3901_v27 = vmul.f32 %v7895_v39, %v8622_v5  ;;  %v11389_v39 = vld [vmem:[#allocation266_spill] sm:$0xff] }
 0x6b0   : > { %4950 = vmatmul.f32.gmra.mxu0 %v3708_v20  ;;  %5159 = vmatmul.f32.gmra.mxu1 %v3772_v29  ;;  %v3838_v5 = vmul.f32 %v11389_v39, %v8650_v4 }
 0x6b1   : > { %5368 = vmatmul.f32.gmra.mxu2 %v3836_v24  ;;  %v3710_v24 = vmul.f32 %v11387_v62, %v8650_v4 }
 0x6b2   : > { %5577 = vmatmul.f32.gmra.mxu3 %v3900_v47  ;;  %v3902_v47 = vmul.f32 %v7910_v40, %v8650_v4  ;;  %v11392_v40 = vld [vmem:[#allocation269_spill] sm:$0xff] }
 0x6b3   : > { %v3839_v4 = vmul.f32 %v11392_v40, %v8672_v21 }
 0x6b4   : > { %v4677_v33 = vpop.f32.mrf.mxu2 }
 0x6b5   : > { %v4886_v51 = vpop.f32.mrf.mxu3  ;;  %v4678_v1 = vadd.f32 %v4677_v33, %v4469_v52  ;;  %v4262_v10 = vpop.f32.mrf.mxu0 }
 0x6b6   : > { %v4471_v9 = vpop.f32.mrf.mxu1 }
 0x6b7   : > { %v9690_v3 = vadd.f32 %v4886_v51, %v4678_v1  ;;  %v4472_v57 = vadd.f32 %v4471_v9, %v4262_v10 }
 0x6b8   : > { %4953 = vmatmul.f32.gmra.mxu0 %v3709_v34  ;;  %5162 = vmatmul.f32.gmra.mxu1 %v3773_v17  ;;  %v11390_v34 = vld [vmem:[#allocation267_spill] sm:$0xff]  ;;  %v11391_v17 = vld [vmem:[#allocation268_spill] sm:$0xff] }
 0x6b9   : > { %5371 = vmatmul.f32.gmra.mxu2 %v3837_v8  ;;  %v3711_v53 = vmul.f32 %v11390_v34, %v8672_v21  ;;  %v3775_v8 = vmul.f32 %v11391_v17, %v8672_v21 }
 0x6ba   : > { %5580 = vmatmul.f32.gmra.mxu3 %v3901_v27  ;;  %v3903_v27 = vmul.f32 %v7922_v6, %v8672_v21  ;;  %v11395_v6 = vld [vmem:[#allocation272_spill] sm:$0xff] }
 0x6bb   : > { %v3840_v21 = vmul.f32 %v11395_v6, %v8691_v19 }
 0x6bc   : > { %v4680_v41 = vpop.f32.mrf.mxu2 }
 0x6bd   : > { %v4889_v2 = vpop.f32.mrf.mxu3  ;;  %v4681_v20 = vadd.f32 %v4680_v41, %v4472_v57  ;;  %v4265_v58 = vpop.f32.mrf.mxu0 }
 0x6be   : > { %v4474_v29 = vpop.f32.mrf.mxu1 }
 0x6bf   : > { %v9700_v52 = vadd.f32 %v4889_v2, %v4681_v20  ;;  %v4475_v33 = vadd.f32 %v4474_v29, %v4265_v58 }
 0x6c0   : > { %4956 = vmatmul.f32.gmra.mxu0 %v3710_v24  ;;  %5165 = vmatmul.f32.gmra.mxu1 %v3774_v28  ;;  %v11393_v24 = vld [vmem:[#allocation270_spill] sm:$0xff]  ;;  %v11394_v28 = vld [vmem:[#allocation271_spill] sm:$0xff] }
 0x6c1   : > { %5374 = vmatmul.f32.gmra.mxu2 %v3838_v5  ;;  %v3712_v48 = vmul.f32 %v11393_v24, %v8691_v19  ;;  %v3776_v39 = vmul.f32 %v11394_v28, %v8691_v19  ;;  %v11396_v5 = vld [vmem:[#allocation273_spill] sm:$0xff]  ;;  %v11399_v24 = vld [vmem:[#allocation276_spill] sm:$0xff] }
 0x6c2   : > { %5583 = vmatmul.f32.gmra.mxu3 %v3902_v47  ;;  %v3904_v47 = vmul.f32 %v11396_v5, %v8691_v19  ;;  %v3841_v19 = vmul.f32 %v7953_v42, %v8710_v44  ;;  %v11400_v42 = vld [vmem:[#allocation277_spill] sm:$0xff] }
 0x6c3   : > { %v3778_v28 = vmul.f32 %v11400_v42, %v8738_v23 }
 0x6c4   : > { %v4683_v51 = vpop.f32.mrf.mxu2 }
 0x6c5   : > { %v4892_v1 = vpop.f32.mrf.mxu3  ;;  %v4684_v10 = vadd.f32 %v4683_v51, %v4475_v33  ;;  %v4268_v9 = vpop.f32.mrf.mxu0 }
 0x6c6   : > { %v4477_v11 = vpop.f32.mrf.mxu1 }
 0x6c7   : > { %v9710_v57 = vadd.f32 %v4892_v1, %v4684_v10  ;;  %v4478_v41 = vadd.f32 %v4477_v11, %v4268_v9 }
 0x6c8   : > { %4959 = vmatmul.f32.gmra.mxu0 %v3711_v53  ;;  %5168 = vmatmul.f32.gmra.mxu1 %v3775_v8  ;;  %v11397_v53 = vld [vmem:[#allocation274_spill] sm:$0xff]  ;;  %v11398_v8 = vld [vmem:[#allocation275_spill] sm:$0xff] }
 0x6c9   : > { %5377 = vmatmul.f32.gmra.mxu2 %v3839_v4  ;;  %v3713_v17 = vmul.f32 %v11397_v53, %v8710_v44  ;;  %v3777_v40 = vmul.f32 %v11398_v8, %v8710_v44  ;;  %v3905_v4 = vmul.f32 %v7955_v46, %v8710_v44  ;;  %v11401_v46 = vld [vmem:[#allocation278_spill] sm:$0xff] }
 0x6ca   : > { %5586 = vmatmul.f32.gmra.mxu3 %v3903_v27  ;;  %v3842_v44 = vmul.f32 %v11401_v46, %v8738_v23  ;;  %v11410_v46 = vld [vmem:[#allocation286_spill] sm:$0xff] }
 0x6cc   : > { %v4686_v2 = vpop.f32.mrf.mxu2 }
 0x6cd   : > { %v4895_v20 = vpop.f32.mrf.mxu3  ;;  %v4687_v58 = vadd.f32 %v4686_v2, %v4478_v41  ;;  %v4271_v29 = vpop.f32.mrf.mxu0 }
 0x6ce   : > { %v4480_v62 = vpop.f32.mrf.mxu1 }
 0x6cf   : > { %v9720_v33 = vadd.f32 %v4895_v20, %v4687_v58  ;;  %v4481_v51 = vadd.f32 %v4480_v62, %v4271_v29 }
 0x6d0   : > { %4962 = vmatmul.f32.gmra.mxu0 %v3712_v48  ;;  %5171 = vmatmul.f32.gmra.mxu1 %v3776_v39  ;;  %v3714_v48 = vmul.f32 %v11399_v24, %v8738_v23  ;;  %v3906_v39 = vmul.f32 %v7970_v60, %v8738_v23  ;;  %v11404_v60 = vld [vmem:[#allocation281_spill] sm:$0xff] }
 0x6d1   : > { %5380 = vmatmul.f32.gmra.mxu2 %v3840_v21  ;;  %v3843_v23 = vmul.f32 %v11404_v60, %v8760_v54 }
 0x6d2   : > { %5589 = vmatmul.f32.gmra.mxu3 %v3904_v47 }
 0x6d4   : > { %v4689_v1 = vpop.f32.mrf.mxu2 }
 0x6d5   : > { %v4898_v10 = vpop.f32.mrf.mxu3  ;;  %v4690_v9 = vadd.f32 %v4689_v1, %v4481_v51  ;;  %v4274_v11 = vpop.f32.mrf.mxu0 }
 0x6d6   : > { %v4483_v34 = vpop.f32.mrf.mxu1 }
 0x6d7   : > { %v9730_v27 = vadd.f32 %v4898_v10, %v4690_v9  ;;  %v4484_v41 = vadd.f32 %v4483_v34, %v4274_v11  ;;  %v11402_v9 = vld [vmem:[#allocation279_spill] sm:$0xff]  ;;  %v11403_v34 = vld [vmem:[#allocation280_spill] sm:$0xff] }
 0x6d8   : > { %4965 = vmatmul.f32.gmra.mxu0 %v3713_v17  ;;  %5174 = vmatmul.f32.gmra.mxu1 %v3777_v40  ;;  %v3715_v11 = vmul.f32 %v11402_v9, %v8760_v54  ;;  %v3779_v53 = vmul.f32 %v11403_v34, %v8760_v54  ;;  %v11405_v17 = vld [vmem:[#allocation282_spill] sm:$0xff]  ;;  %v11411_v9 = vld [vmem:[#allocation49_spill] sm:$0xff] }
 0x6d9   : > { %5383 = vmatmul.f32.gmra.mxu2 %v3841_v19  ;;  %v3907_v8 = vmul.f32 %v11405_v17, %v8760_v54  ;;  %v11409_v54 = vld [vmem:[#allocation285_spill] sm:$0xff] }
 0x6da   : > { %5592 = vmatmul.f32.gmra.mxu3 %v3905_v4 }
 0x6dc   : > { %v4692_v2 = vpop.f32.mrf.mxu2 }
 0x6dd   : > { %v4901_v20 = vpop.f32.mrf.mxu3  ;;  %v4693_v58 = vadd.f32 %v4692_v2, %v4484_v41  ;;  %v4277_v29 = vpop.f32.mrf.mxu0 }
 0x6de   : > { %v4486_v62 = vpop.f32.mrf.mxu1 }
 0x6df   : > { %v9740_v6 = vadd.f32 %v4901_v20, %v4693_v58  ;;  %v4487_v21 = vadd.f32 %v4486_v62, %v4277_v29  ;;  %v11406_v29 = vld [vmem:[#allocation45_spill] sm:$0xff]  ;;  %v11407_v62 = vld [vmem:[#allocation283_spill] sm:$0xff] }
 0x6e0   : > { %4968 = vmatmul.f32.gmra.mxu0 %v3714_v48  ;;  %5177 = vmatmul.f32.gmra.mxu1 %v3778_v28  ;;  %v3716_v24 = vmul.f32 %v11407_v62, %v11406_v29  ;;  %v11408_v48 = vld [vmem:[#allocation284_spill] sm:$0xff]  ;;  %v3844_v28 = vmul.f32 %v11409_v54, %v11406_v29 }
 0x6e1   : > { %5386 = vmatmul.f32.gmra.mxu2 %v3842_v44  ;;  %v3780_v42 = vmul.f32 %v11408_v48, %v11406_v29  ;;  %v3908_v44 = vmul.f32 %v11410_v46, %v11406_v29  ;;  %v11417_v48 = vld [vmem:[#allocation291_spill] sm:$0xff]  ;;  %v11418_v54 = vld [vmem:[#allocation292_spill] sm:$0xff]  ;;  %v11419_v46 = vld [vmem:[#allocation293_spill] sm:$0xff] }
 0x6e2   : > { %5595 = vmatmul.f32.gmra.mxu3 %v3906_v39 }
 0x6e4   : > { %v4695_v5 = vpop.f32.mrf.mxu2 }
 0x6e5   : > { %v4904_v47 = vpop.f32.mrf.mxu3  ;;  %v4696_v51 = vadd.f32 %v4695_v5, %v4487_v21  ;;  %v4280_v1 = vpop.f32.mrf.mxu0 }
 0x6e6   : > { %v4489_v10 = vpop.f32.mrf.mxu1 }
 0x6e7   : > { %v9750_v40 = vadd.f32 %v4904_v47, %v4696_v51  ;;  %v4490_v19 = vadd.f32 %v4489_v10, %v4280_v1 }
 0x6e8   : > { %4971 = vmatmul.f32.gmra.mxu0 %v3715_v11  ;;  %5180 = vmatmul.f32.gmra.mxu1 %v3779_v53  ;;  %v11412_v11 = vld [vmem:[#allocation287_spill] sm:$0xff]  ;;  %v11413_v53 = vld [vmem:[#allocation288_spill] sm:$0xff] }
 0x6e9   : > { %5389 = vmatmul.f32.gmra.mxu2 %v3843_v23  ;;  %v3717_v34 = vmul.f32 %v11412_v11, %v11411_v9  ;;  %v3781_v60 = vmul.f32 %v11413_v53, %v11411_v9  ;;  %v11414_v23 = vld [vmem:[#allocation289_spill] sm:$0xff] }
 0x6ea   : > { %5598 = vmatmul.f32.gmra.mxu3 %v3907_v8  ;;  %v3845_v17 = vmul.f32 %v11414_v23, %v11411_v9  ;;  %v11415_v8 = vld [vmem:[#allocation290_spill] sm:$0xff]  ;;  %v11421_v53 = vld [vmem:[#allocation57_spill] sm:$0xff] }
 0x6ec   : > { %v4698_v4 = vpop.f32.mrf.mxu2 }
 0x6ed   : > { %v4907_v41 = vpop.f32.mrf.mxu3  ;;  %v4699_v2 = vadd.f32 %v4698_v4, %v4490_v19  ;;  %v4283_v20 = vpop.f32.mrf.mxu0  ;;  %v3909_v19 = vmul.f32 %v11415_v8, %v11411_v9 }
 0x6ee   : > { %v4492_v58 = vpop.f32.mrf.mxu1 }
 0x6ef   : > { %v9760_v39 = vadd.f32 %v4907_v41, %v4699_v2  ;;  %v4493_v21 = vadd.f32 %v4492_v58, %v4283_v20 }
 0x6f0   : > { %4974 = vmatmul.f32.gmra.mxu0 %v3716_v24  ;;  %5183 = vmatmul.f32.gmra.mxu1 %v3780_v42  ;;  %v11416_v24 = vld [vmem:[#allocation53_spill] sm:$0xff] }
 0x6f1   : > { %5392 = vmatmul.f32.gmra.mxu2 %v3844_v28  ;;  %v3718_v42 = vmul.f32 %v11417_v48, %v11416_v24  ;;  %v3782_v28 = vmul.f32 %v11418_v54, %v11416_v24 }
 0x6f2   : > { %5601 = vmatmul.f32.gmra.mxu3 %v3908_v44  ;;  %v3846_v44 = vmul.f32 %v11419_v46, %v11416_v24  ;;  %v11427_v46 = vld [vmem:[#allocation299_spill] sm:$0xff] }
 0x6f4   : > { %v4701_v5 = vpop.f32.mrf.mxu2 }
 0x6f5   : > { %v4910_v47 = vpop.f32.mrf.mxu3  ;;  %v4702_v51 = vadd.f32 %v4701_v5, %v4493_v21  ;;  %v4286_v1 = vpop.f32.mrf.mxu0  ;;  %v11420_v21 = vld [vmem:[#allocation294_spill] sm:$0xff] }
 0x6f6   : > { %v4495_v10 = vpop.f32.mrf.mxu1  ;;  %v3910_v5 = vmul.f32 %v11420_v21, %v11416_v24  ;;  %v11428_v21 = vld [vmem:[#allocation300_spill] sm:$0xff] }
 0x6f7   : > { %v9770_v4 = vadd.f32 %v4910_v47, %v4702_v51  ;;  %v4496_v41 = vadd.f32 %v4495_v10, %v4286_v1 }
 0x6f8   : > { %4977 = vmatmul.f32.gmra.mxu0 %v3717_v34  ;;  %5186 = vmatmul.f32.gmra.mxu1 %v3781_v60  ;;  %v11422_v60 = vld [vmem:[#allocation295_spill] sm:$0xff] }
 0x6f9   : > { %5395 = vmatmul.f32.gmra.mxu2 %v3845_v17  ;;  %v3719_v23 = vmul.f32 %v11422_v60, %v11421_v53  ;;  %v11423_v17 = vld [vmem:[#allocation296_spill] sm:$0xff] }
 0x6fa   : > { %5604 = vmatmul.f32.gmra.mxu3 %v3909_v19  ;;  %v3783_v8 = vmul.f32 %v11423_v17, %v11421_v53  ;;  %v11424_v19 = vld [vmem:[#allocation297_spill] sm:$0xff] }
 0x6fc   : > { %v4704_v2 = vpop.f32.mrf.mxu2 }
 0x6fd   : > { %v4913_v20 = vpop.f32.mrf.mxu3  ;;  %v4705_v58 = vadd.f32 %v4704_v2, %v4496_v41  ;;  %v4289_v29 = vpop.f32.mrf.mxu0  ;;  %v3847_v41 = vmul.f32 %v11424_v19, %v11421_v53  ;;  %v11425_v2 = vld [vmem:[#allocation298_spill] sm:$0xff]  ;;  %v11431_v19 = vld [vmem:[#allocation65_spill] sm:$0xff] }
 0x6fe   : > { %v4498_v62 = vpop.f32.mrf.mxu1 }
 0x6ff   : > { %v9780_v47 = vadd.f32 %v4913_v20, %v4705_v58  ;;  %v4499_v51 = vadd.f32 %v4498_v62, %v4289_v29  ;;  %v3911_v20 = vmul.f32 %v11425_v2, %v11421_v53 }
 0x700   : > { %4980 = vmatmul.f32.gmra.mxu0 %v3718_v42  ;;  %5189 = vmatmul.f32.gmra.mxu1 %v3782_v28  ;;  %v11426_v28 = vld [vmem:[#allocation61_spill] sm:$0xff] }
 0x701   : > { %5398 = vmatmul.f32.gmra.mxu2 %v3846_v44  ;;  %v3720_v44 = vmul.f32 %v11427_v46, %v11426_v28 }
 0x702   : > { %5607 = vmatmul.f32.gmra.mxu3 %v3910_v5  ;;  %v3784_v5 = vmul.f32 %v11428_v21, %v11426_v28 }
 0x704   : > { %v4707_v1 = vpop.f32.mrf.mxu2 }
 0x705   : > { %v4916_v10 = vpop.f32.mrf.mxu3  ;;  %v4708_v9 = vadd.f32 %v4707_v1, %v4499_v51  ;;  %v4292_v11 = vpop.f32.mrf.mxu0  ;;  %v11429_v51 = vld [vmem:[#allocation301_spill] sm:$0xff] }
 0x706   : > { %v4501_v34 = vpop.f32.mrf.mxu1  ;;  %v3848_v1 = vmul.f32 %v11429_v51, %v11426_v28 }
 0x707   : > { %v9790_v58 = vadd.f32 %v4916_v10, %v4708_v9  ;;  %v4502_v29 = vadd.f32 %v4501_v34, %v4292_v11  ;;  %v11430_v10 = vld [vmem:[#allocation302_spill] sm:$0xff] }
 0x708   : > { %4983 = vmatmul.f32.gmra.mxu0 %v3719_v23  ;;  %5192 = vmatmul.f32.gmra.mxu1 %v3783_v8  ;;  %v3912_v9 = vmul.f32 %v11430_v10, %v11426_v28 }
 0x709   : > { %5401 = vmatmul.f32.gmra.mxu2 %v3847_v41  ;;  %v11432_v41 = vld [vmem:[#allocation303_spill] sm:$0xff] }
 0x70a   : > { %5610 = vmatmul.f32.gmra.mxu3 %v3911_v20  ;;  %v3721_v2 = vmul.f32 %v11432_v41, %v11431_v19  ;;  %v11433_v20 = vld [vmem:[#allocation304_spill] sm:$0xff] }
 0x70b   : > { %v11439_v41 = vld [vmem:[#allocation308_spill] sm:$0xff] }
 0x70c   : > { %v4710_v62 = vpop.f32.mrf.mxu2 }
 0x70d   : > { %v4919_v24 = vpop.f32.mrf.mxu3  ;;  %v4711_v48 = vadd.f32 %v4710_v62, %v4502_v29  ;;  %v4295_v42 = vpop.f32.mrf.mxu0  ;;  %v3785_v29 = vmul.f32 %v11433_v20, %v11431_v19  ;;  %v11434_v62 = vld [vmem:[#allocation305_spill] sm:$0xff]  ;;  %v11442_v20 = vld [vmem:[#allocation71_spill] sm:$0xff] }
 0x70e   : > { %v4504_v54 = vpop.f32.mrf.mxu1 }
 0x70f   : > { %v9800_v53 = vadd.f32 %v4919_v24, %v4711_v48  ;;  %v4505_v11 = vadd.f32 %v4504_v54, %v4295_v42  ;;  %v3849_v24 = vmul.f32 %v11434_v62, %v11431_v19  ;;  %v11435_v48 = vld [vmem:[#allocation306_spill] sm:$0xff]  ;;  %v11436_v42 = vld [vmem:[#allocation69_spill] sm:$0xff] }
 0x710   : > { %4986 = vmatmul.f32.gmra.mxu0 %v3720_v44  ;;  %5195 = vmatmul.f32.gmra.mxu1 %v3784_v5  ;;  %v3913_v28 = vmul.f32 %v11435_v48, %v11431_v19 }
 0x711   : > { %5404 = vmatmul.f32.gmra.mxu2 %v3848_v1 }
 0x712   : > { %5613 = vmatmul.f32.gmra.mxu3 %v3912_v9  ;;  %v11437_v9 = vld [vmem:[#allocation68_spill] sm:$0xff] }
 0x713   : > { %v3786_v19 = vmul.f32 %v11439_v41, %v11437_v9 }
 0x714   : > { %v4713_v34 = vpop.f32.mrf.mxu2 }
 0x715   : > { %v4922_v60 = vpop.f32.mrf.mxu3  ;;  %v4714_v23 = vadd.f32 %v4713_v34, %v4505_v11  ;;  %v4942_v17 = vpop.f32.mrf.mxu0  ;;  %v11438_v11 = vld [vmem:[#allocation307_spill] sm:$0xff] }
 0x716   : > { %v5151_v8 = vpop.f32.mrf.mxu1  ;;  %v4943_v54 = vadd.f32 %v4942_v17, %v11436_v42  ;;  %v3722_v34 = vmul.f32 %v11438_v11, %v11437_v9  ;;  %v11441_v17 = vld [vmem:[#allocation310_spill] sm:$0xff] }
 0x717   : > { %v9810_v46 = vadd.f32 %v4922_v60, %v4714_v23  ;;  %v11440_v60 = vld [vmem:[#allocation309_spill] sm:$0xff] }
 0x718   : > { %4989 = vmatmul.f32.gmra.mxu0 %v3721_v2  ;;  %5198 = vmatmul.f32.gmra.mxu1 %v3785_v29  ;;  %v5152_v44 = vadd.f32 %v5151_v8, %v4943_v54  ;;  %v3850_v23 = vmul.f32 %v11440_v60, %v11437_v9  ;;  %v3914_v8 = vmul.f32 %v11441_v17, %v11437_v9  ;;  %v11448_v60 = vld [vmem:[#allocation73_spill] sm:$0xff] }
 0x719   : > { %5407 = vmatmul.f32.gmra.mxu2 %v3849_v24 }
 0x71a   : > { %5616 = vmatmul.f32.gmra.mxu3 %v3913_v28 }
 0x71c   : > { %v5360_v21 = vpop.f32.mrf.mxu2 }
 0x71d   : > { %v5569_v5 = vpop.f32.mrf.mxu3  ;;  %v5361_v51 = vadd.f32 %v5360_v21, %v5152_v44  ;;  %v4945_v1 = vpop.f32.mrf.mxu0  ;;  %v11443_v44 = vld [vmem:[#allocation70_spill] sm:$0xff]  ;;  %v11444_v21 = vld [vmem:[#allocation311_spill] sm:$0xff] }
 0x71e   : > { %v5154_v10 = vpop.f32.mrf.mxu1  ;;  %v4946_v29 = vadd.f32 %v4945_v1, %v11442_v20  ;;  %v3723_v11 = vmul.f32 %v11444_v21, %v11443_v44  ;;  %v11446_v1 = vld [vmem:[#allocation313_spill] sm:$0xff] }
 0x71f   : > { %v5570_v2 = vadd.f32 %v5569_v5, %v5361_v51  ;;  %v11445_v5 = vld [vmem:[#allocation312_spill] sm:$0xff]  ;;  %v3851_v9 = vmul.f32 %v11446_v1, %v11443_v44  ;;  %v11454_v1 = vld [vmem:[#allocation75_spill] sm:$0xff] }
 0x720   : > { %4992 = vmatmul.f32.gmra.mxu0 %v3722_v34  ;;  %5201 = vmatmul.f32.gmra.mxu1 %v3786_v19  ;;  %v5155_v62 = vadd.f32 %v5154_v10, %v4946_v29  ;;  %v3787_v51 = vmul.f32 %v11445_v5, %v11443_v44  ;;  %v11447_v34 = vld [vmem:[#allocation314_spill] sm:$0xff] }
 0x721   : > { %5762 = vst.msk [vmem:[%s9822_s7] sm:$0xff] %vm5761_vm0, %v5570_v2  ;;  %5410 = vmatmul.f32.gmra.mxu2 %v3850_v23  ;;  %v3915_v41 = vmul.f32 %v11447_v34, %v11443_v44 }
 0x722   : > { %5619 = vmatmul.f32.gmra.mxu3 %v3914_v8 }
 0x724   : > { %v5363_v24 = vpop.f32.mrf.mxu2 }
 0x725   : > { %v5572_v48 = vpop.f32.mrf.mxu3  ;;  %v5364_v28 = vadd.f32 %v5363_v24, %v5155_v62  ;;  %v4948_v42 = vpop.f32.mrf.mxu0  ;;  %v11449_v62 = vld [vmem:[#allocation72_spill] sm:$0xff]  ;;  %v11450_v24 = vld [vmem:[#allocation315_spill] sm:$0xff] }
 0x726   : > { %v5157_v54 = vpop.f32.mrf.mxu1  ;;  %v4949_v10 = vadd.f32 %v4948_v42, %v11448_v60  ;;  %v3724_v21 = vmul.f32 %v11450_v24, %v11449_v62  ;;  %v11452_v42 = vld [vmem:[#allocation317_spill] sm:$0xff] }
 0x727   : > { %v5573_v19 = vadd.f32 %v5572_v48, %v5364_v28  ;;  %v11451_v48 = vld [vmem:[#allocation316_spill] sm:$0xff]  ;;  %v3852_v44 = vmul.f32 %v11452_v42, %v11449_v62  ;;  %v11460_v42 = vld [vmem:[#allocation77_spill] sm:$0xff] }
 0x728   : > { %4995 = vmatmul.f32.gmra.mxu0 %v3723_v11  ;;  %5204 = vmatmul.f32.gmra.mxu1 %v3787_v51  ;;  %v5158_v23 = vadd.f32 %v5157_v54, %v4949_v10  ;;  %v3788_v28 = vmul.f32 %v11451_v48, %v11449_v62  ;;  %v11453_v11 = vld [vmem:[#allocation318_spill] sm:$0xff] }
 0x729   : > { %5763 = vst.msk [vmem:[%s9822_s7 + $0x8] sm:$0xff] %vm5761_vm0, %v5573_v19  ;;  %5413 = vmatmul.f32.gmra.mxu2 %v3851_v9  ;;  %v3916_v5 = vmul.f32 %v11453_v11, %v11449_v62 }
 0x72a   : > { %5622 = vmatmul.f32.gmra.mxu3 %v3915_v41 }
 0x72c   : > { %v5366_v17 = vpop.f32.mrf.mxu2 }
 0x72d   : > { %v5575_v8 = vpop.f32.mrf.mxu3  ;;  %v5367_v2 = vadd.f32 %v5366_v17, %v5158_v23  ;;  %v4951_v20 = vpop.f32.mrf.mxu0  ;;  %v11455_v23 = vld [vmem:[#allocation74_spill] sm:$0xff]  ;;  %v11456_v17 = vld [vmem:[#allocation319_spill] sm:$0xff] }
 0x72e   : > { %v5160_v29 = vpop.f32.mrf.mxu1  ;;  %v4952_v54 = vadd.f32 %v4951_v20, %v11454_v1  ;;  %v3725_v24 = vmul.f32 %v11456_v17, %v11455_v23  ;;  %v11458_v20 = vld [vmem:[#allocation321_spill] sm:$0xff] }
 0x72f   : > { %v5576_v51 = vadd.f32 %v5575_v8, %v5367_v2  ;;  %v11457_v8 = vld [vmem:[#allocation320_spill] sm:$0xff]  ;;  %v3853_v62 = vmul.f32 %v11458_v20, %v11455_v23  ;;  %v11466_v20 = vld [vmem:[#allocation79_spill] sm:$0xff] }
 0x730   : > { %4998 = vmatmul.f32.gmra.mxu0 %v3724_v21  ;;  %5207 = vmatmul.f32.gmra.mxu1 %v3788_v28  ;;  %v5161_v9 = vadd.f32 %v5160_v29, %v4952_v54  ;;  %v3789_v2 = vmul.f32 %v11457_v8, %v11455_v23  ;;  %v11459_v21 = vld [vmem:[#allocation322_spill] sm:$0xff] }
 0x731   : > { %5764 = vst.msk [vmem:[%s9822_s7 + $0x10] sm:$0xff] %vm5761_vm0, %v5576_v51  ;;  %5416 = vmatmul.f32.gmra.mxu2 %v3852_v44  ;;  %v3917_v48 = vmul.f32 %v11459_v21, %v11455_v23 }
 0x732   : > { %5625 = vmatmul.f32.gmra.mxu3 %v3916_v5 }
 0x734   : > { %v5369_v34 = vpop.f32.mrf.mxu2 }
 0x735   : > { %v5578_v41 = vpop.f32.mrf.mxu3  ;;  %v5370_v19 = vadd.f32 %v5369_v34, %v5161_v9  ;;  %v4954_v60 = vpop.f32.mrf.mxu0  ;;  %v11461_v9 = vld [vmem:[#allocation76_spill] sm:$0xff]  ;;  %v11462_v34 = vld [vmem:[#allocation323_spill] sm:$0xff] }
 0x736   : > { %v5163_v10 = vpop.f32.mrf.mxu1  ;;  %v4955_v29 = vadd.f32 %v4954_v60, %v11460_v42  ;;  %v3726_v17 = vmul.f32 %v11462_v34, %v11461_v9  ;;  %v11464_v60 = vld [vmem:[#allocation325_spill] sm:$0xff] }
 0x737   : > { %v5579_v28 = vadd.f32 %v5578_v41, %v5370_v19  ;;  %v11463_v41 = vld [vmem:[#allocation324_spill] sm:$0xff]  ;;  %v3854_v23 = vmul.f32 %v11464_v60, %v11461_v9  ;;  %v11472_v60 = vld [vmem:[#allocation81_spill] sm:$0xff] }
 0x738   : > { %5001 = vmatmul.f32.gmra.mxu0 %v3725_v24  ;;  %5210 = vmatmul.f32.gmra.mxu1 %v3789_v2  ;;  %v5164_v44 = vadd.f32 %v5163_v10, %v4955_v29  ;;  %v3790_v19 = vmul.f32 %v11463_v41, %v11461_v9  ;;  %v11465_v24 = vld [vmem:[#allocation326_spill] sm:$0xff] }
 0x739   : > { %5765 = vst.msk [vmem:[%s9822_s7 + $0x18] sm:$0xff] %vm5761_vm0, %v5579_v28  ;;  %5419 = vmatmul.f32.gmra.mxu2 %v3853_v62  ;;  %v3918_v8 = vmul.f32 %v11465_v24, %v11461_v9 }
 0x73a   : > { %5628 = vmatmul.f32.gmra.mxu3 %v3917_v48 }
 0x73c   : > { %v5372_v11 = vpop.f32.mrf.mxu2 }
 0x73d   : > { %v5581_v5 = vpop.f32.mrf.mxu3  ;;  %v5373_v51 = vadd.f32 %v5372_v11, %v5164_v44  ;;  %v4957_v1 = vpop.f32.mrf.mxu0  ;;  %v11467_v44 = vld [vmem:[#allocation78_spill] sm:$0xff]  ;;  %v11468_v11 = vld [vmem:[#allocation327_spill] sm:$0xff] }
 0x73e   : > { %v5166_v54 = vpop.f32.mrf.mxu1  ;;  %v4958_v10 = vadd.f32 %v4957_v1, %v11466_v20  ;;  %v3727_v34 = vmul.f32 %v11468_v11, %v11467_v44  ;;  %v11470_v1 = vld [vmem:[#allocation329_spill] sm:$0xff] }
 0x73f   : > { %v5582_v2 = vadd.f32 %v5581_v5, %v5373_v51  ;;  %v11469_v5 = vld [vmem:[#allocation328_spill] sm:$0xff]  ;;  %v3855_v9 = vmul.f32 %v11470_v1, %v11467_v44  ;;  %v11478_v1 = vld [vmem:[#allocation83_spill] sm:$0xff] }
 0x740   : > { %5004 = vmatmul.f32.gmra.mxu0 %v3726_v17  ;;  %5213 = vmatmul.f32.gmra.mxu1 %v3790_v19  ;;  %v5167_v62 = vadd.f32 %v5166_v54, %v4958_v10  ;;  %v3791_v51 = vmul.f32 %v11469_v5, %v11467_v44  ;;  %v11471_v17 = vld [vmem:[#allocation330_spill] sm:$0xff] }
 0x741   : > { %5766 = vst.msk [vmem:[%s9822_s7 + $0x20] sm:$0xff] %vm5761_vm0, %v5582_v2  ;;  %5422 = vmatmul.f32.gmra.mxu2 %v3854_v23  ;;  %v3919_v41 = vmul.f32 %v11471_v17, %v11467_v44 }
 0x742   : > { %5631 = vmatmul.f32.gmra.mxu3 %v3918_v8 }
 0x744   : > { %v5375_v21 = vpop.f32.mrf.mxu2 }
 0x745   : > { %v5584_v48 = vpop.f32.mrf.mxu3  ;;  %v5376_v28 = vadd.f32 %v5375_v21, %v5167_v62  ;;  %v4960_v42 = vpop.f32.mrf.mxu0  ;;  %v11473_v62 = vld [vmem:[#allocation80_spill] sm:$0xff]  ;;  %v11474_v21 = vld [vmem:[#allocation331_spill] sm:$0xff] }
 0x746   : > { %v5169_v29 = vpop.f32.mrf.mxu1  ;;  %v4961_v54 = vadd.f32 %v4960_v42, %v11472_v60  ;;  %v3728_v11 = vmul.f32 %v11474_v21, %v11473_v62  ;;  %v11476_v42 = vld [vmem:[#allocation333_spill] sm:$0xff] }
 0x747   : > { %v5585_v19 = vadd.f32 %v5584_v48, %v5376_v28  ;;  %v11475_v48 = vld [vmem:[#allocation332_spill] sm:$0xff]  ;;  %v3856_v44 = vmul.f32 %v11476_v42, %v11473_v62  ;;  %v11484_v42 = vld [vmem:[#allocation85_spill] sm:$0xff] }
 0x748   : > { %5007 = vmatmul.f32.gmra.mxu0 %v3727_v34  ;;  %5216 = vmatmul.f32.gmra.mxu1 %v3791_v51  ;;  %v5170_v23 = vadd.f32 %v5169_v29, %v4961_v54  ;;  %v3792_v28 = vmul.f32 %v11475_v48, %v11473_v62  ;;  %v11477_v34 = vld [vmem:[#allocation334_spill] sm:$0xff] }
 0x749   : > { %5767 = vst.msk [vmem:[%s9822_s7 + $0x28] sm:$0xff] %vm5761_vm0, %v5585_v19  ;;  %5425 = vmatmul.f32.gmra.mxu2 %v3855_v9  ;;  %v3920_v5 = vmul.f32 %v11477_v34, %v11473_v62 }
 0x74a   : > { %5634 = vmatmul.f32.gmra.mxu3 %v3919_v41 }
 0x74c   : > { %v5378_v24 = vpop.f32.mrf.mxu2 }
 0x74d   : > { %v5587_v8 = vpop.f32.mrf.mxu3  ;;  %v5379_v2 = vadd.f32 %v5378_v24, %v5170_v23  ;;  %v4963_v20 = vpop.f32.mrf.mxu0  ;;  %v11479_v23 = vld [vmem:[#allocation82_spill] sm:$0xff]  ;;  %v11480_v24 = vld [vmem:[#allocation335_spill] sm:$0xff] }
 0x74e   : > { %v5172_v10 = vpop.f32.mrf.mxu1  ;;  %v4964_v29 = vadd.f32 %v4963_v20, %v11478_v1  ;;  %v3729_v21 = vmul.f32 %v11480_v24, %v11479_v23  ;;  %v11482_v20 = vld [vmem:[#allocation337_spill] sm:$0xff] }
 0x74f   : > { %v5588_v51 = vadd.f32 %v5587_v8, %v5379_v2  ;;  %v11481_v8 = vld [vmem:[#allocation336_spill] sm:$0xff]  ;;  %v3857_v62 = vmul.f32 %v11482_v20, %v11479_v23  ;;  %v11490_v20 = vld [vmem:[#allocation87_spill] sm:$0xff] }
 0x750   : > { %5010 = vmatmul.f32.gmra.mxu0 %v3728_v11  ;;  %5219 = vmatmul.f32.gmra.mxu1 %v3792_v28  ;;  %v5173_v9 = vadd.f32 %v5172_v10, %v4964_v29  ;;  %v3793_v2 = vmul.f32 %v11481_v8, %v11479_v23  ;;  %v11483_v11 = vld [vmem:[#allocation338_spill] sm:$0xff] }
 0x751   : > { %5768 = vst.msk [vmem:[%s9822_s7 + $0x30] sm:$0xff] %vm5761_vm0, %v5588_v51  ;;  %5428 = vmatmul.f32.gmra.mxu2 %v3856_v44  ;;  %v3921_v48 = vmul.f32 %v11483_v11, %v11479_v23 }
 0x752   : > { %5637 = vmatmul.f32.gmra.mxu3 %v3920_v5 }
 0x754   : > { %v5381_v17 = vpop.f32.mrf.mxu2 }
 0x755   : > { %v5590_v41 = vpop.f32.mrf.mxu3  ;;  %v5382_v19 = vadd.f32 %v5381_v17, %v5173_v9  ;;  %v4966_v60 = vpop.f32.mrf.mxu0  ;;  %v11485_v9 = vld [vmem:[#allocation84_spill] sm:$0xff]  ;;  %v11486_v17 = vld [vmem:[#allocation339_spill] sm:$0xff] }
 0x756   : > { %v5175_v54 = vpop.f32.mrf.mxu1  ;;  %v4967_v10 = vadd.f32 %v4966_v60, %v11484_v42  ;;  %v3730_v24 = vmul.f32 %v11486_v17, %v11485_v9  ;;  %v11488_v60 = vld [vmem:[#allocation341_spill] sm:$0xff] }
 0x757   : > { %v5591_v28 = vadd.f32 %v5590_v41, %v5382_v19  ;;  %v11487_v41 = vld [vmem:[#allocation340_spill] sm:$0xff]  ;;  %v3858_v23 = vmul.f32 %v11488_v60, %v11485_v9  ;;  %v11496_v60 = vld [vmem:[#allocation89_spill] sm:$0xff] }
 0x758   : > { %5013 = vmatmul.f32.gmra.mxu0 %v3729_v21  ;;  %5222 = vmatmul.f32.gmra.mxu1 %v3793_v2  ;;  %v5176_v44 = vadd.f32 %v5175_v54, %v4967_v10  ;;  %v3794_v19 = vmul.f32 %v11487_v41, %v11485_v9  ;;  %v11489_v21 = vld [vmem:[#allocation342_spill] sm:$0xff] }
 0x759   : > { %5769 = vst.msk [vmem:[%s9822_s7 + $0x38] sm:$0xff] %vm5761_vm0, %v5591_v28  ;;  %5431 = vmatmul.f32.gmra.mxu2 %v3857_v62  ;;  %v3922_v8 = vmul.f32 %v11489_v21, %v11485_v9 }
 0x75a   : > { %5640 = vmatmul.f32.gmra.mxu3 %v3921_v48 }
 0x75c   : > { %v5384_v34 = vpop.f32.mrf.mxu2 }
 0x75d   : > { %v5593_v5 = vpop.f32.mrf.mxu3  ;;  %v5385_v51 = vadd.f32 %v5384_v34, %v5176_v44  ;;  %v4969_v1 = vpop.f32.mrf.mxu0  ;;  %v11491_v44 = vld [vmem:[#allocation86_spill] sm:$0xff]  ;;  %v11492_v34 = vld [vmem:[#allocation343_spill] sm:$0xff] }
 0x75e   : > { %v5178_v29 = vpop.f32.mrf.mxu1  ;;  %v4970_v54 = vadd.f32 %v4969_v1, %v11490_v20  ;;  %v3731_v17 = vmul.f32 %v11492_v34, %v11491_v44  ;;  %v11494_v1 = vld [vmem:[#allocation345_spill] sm:$0xff] }
 0x75f   : > { %v5594_v2 = vadd.f32 %v5593_v5, %v5385_v51  ;;  %v11493_v5 = vld [vmem:[#allocation344_spill] sm:$0xff]  ;;  %v3859_v9 = vmul.f32 %v11494_v1, %v11491_v44  ;;  %v11502_v1 = vld [vmem:[#allocation91_spill] sm:$0xff] }
 0x760   : > { %5016 = vmatmul.f32.gmra.mxu0 %v3730_v24  ;;  %5225 = vmatmul.f32.gmra.mxu1 %v3794_v19  ;;  %v5179_v62 = vadd.f32 %v5178_v29, %v4970_v54  ;;  %v3795_v51 = vmul.f32 %v11493_v5, %v11491_v44  ;;  %v11495_v24 = vld [vmem:[#allocation346_spill] sm:$0xff] }
 0x761   : > { %5770 = vst.msk [vmem:[%s9822_s7 + $0x40] sm:$0xff] %vm5761_vm0, %v5594_v2  ;;  %5434 = vmatmul.f32.gmra.mxu2 %v3858_v23  ;;  %v3923_v41 = vmul.f32 %v11495_v24, %v11491_v44 }
 0x762   : > { %5643 = vmatmul.f32.gmra.mxu3 %v3922_v8 }
 0x764   : > { %v5387_v11 = vpop.f32.mrf.mxu2 }
 0x765   : > { %v5596_v48 = vpop.f32.mrf.mxu3  ;;  %v5388_v28 = vadd.f32 %v5387_v11, %v5179_v62  ;;  %v4972_v42 = vpop.f32.mrf.mxu0  ;;  %v11497_v62 = vld [vmem:[#allocation88_spill] sm:$0xff]  ;;  %v11498_v11 = vld [vmem:[#allocation347_spill] sm:$0xff] }
 0x766   : > { %v5181_v10 = vpop.f32.mrf.mxu1  ;;  %v4973_v29 = vadd.f32 %v4972_v42, %v11496_v60  ;;  %v3732_v34 = vmul.f32 %v11498_v11, %v11497_v62  ;;  %v11500_v42 = vld [vmem:[#allocation349_spill] sm:$0xff] }
 0x767   : > { %v5597_v19 = vadd.f32 %v5596_v48, %v5388_v28  ;;  %v11499_v48 = vld [vmem:[#allocation348_spill] sm:$0xff]  ;;  %v3860_v44 = vmul.f32 %v11500_v42, %v11497_v62  ;;  %v11508_v42 = vld [vmem:[#allocation93_spill] sm:$0xff] }
 0x768   : > { %5019 = vmatmul.f32.gmra.mxu0 %v3731_v17  ;;  %5228 = vmatmul.f32.gmra.mxu1 %v3795_v51  ;;  %v5182_v23 = vadd.f32 %v5181_v10, %v4973_v29  ;;  %v3796_v28 = vmul.f32 %v11499_v48, %v11497_v62  ;;  %v11501_v17 = vld [vmem:[#allocation350_spill] sm:$0xff] }
 0x769   : > { %5771 = vst.msk [vmem:[%s9822_s7 + $0x48] sm:$0xff] %vm5761_vm0, %v5597_v19  ;;  %5437 = vmatmul.f32.gmra.mxu2 %v3859_v9  ;;  %v3924_v5 = vmul.f32 %v11501_v17, %v11497_v62 }
 0x76a   : > { %5646 = vmatmul.f32.gmra.mxu3 %v3923_v41 }
 0x76c   : > { %v5390_v21 = vpop.f32.mrf.mxu2 }
 0x76d   : > { %v5599_v8 = vpop.f32.mrf.mxu3  ;;  %v5391_v2 = vadd.f32 %v5390_v21, %v5182_v23  ;;  %v4975_v20 = vpop.f32.mrf.mxu0  ;;  %v11503_v23 = vld [vmem:[#allocation90_spill] sm:$0xff]  ;;  %v11504_v21 = vld [vmem:[#allocation351_spill] sm:$0xff] }
 0x76e   : > { %v5184_v54 = vpop.f32.mrf.mxu1  ;;  %v4976_v10 = vadd.f32 %v4975_v20, %v11502_v1  ;;  %v3733_v11 = vmul.f32 %v11504_v21, %v11503_v23  ;;  %v11506_v20 = vld [vmem:[#allocation353_spill] sm:$0xff] }
 0x76f   : > { %v5600_v51 = vadd.f32 %v5599_v8, %v5391_v2  ;;  %v11505_v8 = vld [vmem:[#allocation352_spill] sm:$0xff]  ;;  %v3861_v62 = vmul.f32 %v11506_v20, %v11503_v23  ;;  %v11514_v20 = vld [vmem:[#allocation95_spill] sm:$0xff] }
 0x770   : > { %5022 = vmatmul.f32.gmra.mxu0 %v3732_v34  ;;  %5231 = vmatmul.f32.gmra.mxu1 %v3796_v28  ;;  %v5185_v9 = vadd.f32 %v5184_v54, %v4976_v10  ;;  %v3797_v2 = vmul.f32 %v11505_v8, %v11503_v23  ;;  %v11507_v34 = vld [vmem:[#allocation354_spill] sm:$0xff] }
 0x771   : > { %5772 = vst.msk [vmem:[%s9822_s7 + $0x50] sm:$0xff] %vm5761_vm0, %v5600_v51  ;;  %5440 = vmatmul.f32.gmra.mxu2 %v3860_v44  ;;  %v3925_v48 = vmul.f32 %v11507_v34, %v11503_v23 }
 0x772   : > { %5649 = vmatmul.f32.gmra.mxu3 %v3924_v5 }
 0x774   : > { %v5393_v24 = vpop.f32.mrf.mxu2 }
 0x775   : > { %v5602_v41 = vpop.f32.mrf.mxu3  ;;  %v5394_v19 = vadd.f32 %v5393_v24, %v5185_v9  ;;  %v4978_v60 = vpop.f32.mrf.mxu0  ;;  %v11509_v9 = vld [vmem:[#allocation92_spill] sm:$0xff]  ;;  %v11510_v24 = vld [vmem:[#allocation355_spill] sm:$0xff] }
 0x776   : > { %v5187_v29 = vpop.f32.mrf.mxu1  ;;  %v4979_v54 = vadd.f32 %v4978_v60, %v11508_v42  ;;  %v3734_v21 = vmul.f32 %v11510_v24, %v11509_v9  ;;  %v11512_v60 = vld [vmem:[#allocation357_spill] sm:$0xff] }
 0x777   : > { %v5603_v28 = vadd.f32 %v5602_v41, %v5394_v19  ;;  %v11511_v41 = vld [vmem:[#allocation356_spill] sm:$0xff]  ;;  %v3862_v23 = vmul.f32 %v11512_v60, %v11509_v9  ;;  %v11520_v60 = vld [vmem:[#allocation97_spill] sm:$0xff] }
 0x778   : > { %5025 = vmatmul.f32.gmra.mxu0 %v3733_v11  ;;  %5234 = vmatmul.f32.gmra.mxu1 %v3797_v2  ;;  %v5188_v44 = vadd.f32 %v5187_v29, %v4979_v54  ;;  %v3798_v19 = vmul.f32 %v11511_v41, %v11509_v9  ;;  %v11513_v11 = vld [vmem:[#allocation358_spill] sm:$0xff] }
 0x779   : > { %5773 = vst.msk [vmem:[%s9822_s7 + $0x58] sm:$0xff] %vm5761_vm0, %v5603_v28  ;;  %5443 = vmatmul.f32.gmra.mxu2 %v3861_v62  ;;  %v3926_v8 = vmul.f32 %v11513_v11, %v11509_v9 }
 0x77a   : > { %5652 = vmatmul.f32.gmra.mxu3 %v3925_v48 }
 0x77c   : > { %v5396_v17 = vpop.f32.mrf.mxu2 }
 0x77d   : > { %v5605_v5 = vpop.f32.mrf.mxu3  ;;  %v5397_v51 = vadd.f32 %v5396_v17, %v5188_v44  ;;  %v4981_v1 = vpop.f32.mrf.mxu0  ;;  %v11515_v44 = vld [vmem:[#allocation94_spill] sm:$0xff]  ;;  %v11516_v17 = vld [vmem:[#allocation359_spill] sm:$0xff] }
 0x77e   : > { %v5190_v10 = vpop.f32.mrf.mxu1  ;;  %v4982_v29 = vadd.f32 %v4981_v1, %v11514_v20  ;;  %v3735_v24 = vmul.f32 %v11516_v17, %v11515_v44  ;;  %v11518_v1 = vld [vmem:[#allocation361_spill] sm:$0xff] }
 0x77f   : > { %v5606_v2 = vadd.f32 %v5605_v5, %v5397_v51  ;;  %v11517_v5 = vld [vmem:[#allocation360_spill] sm:$0xff]  ;;  %v3863_v9 = vmul.f32 %v11518_v1, %v11515_v44  ;;  %v11526_v1 = vld [vmem:[#allocation99_spill] sm:$0xff] }
 0x780   : > { %5028 = vmatmul.f32.gmra.mxu0 %v3734_v21  ;;  %5237 = vmatmul.f32.gmra.mxu1 %v3798_v19  ;;  %v5191_v62 = vadd.f32 %v5190_v10, %v4982_v29  ;;  %v3799_v51 = vmul.f32 %v11517_v5, %v11515_v44  ;;  %v11519_v21 = vld [vmem:[#allocation362_spill] sm:$0xff] }
 0x781   : > { %5774 = vst.msk [vmem:[%s9822_s7 + $0x60] sm:$0xff] %vm5761_vm0, %v5606_v2  ;;  %5446 = vmatmul.f32.gmra.mxu2 %v3862_v23  ;;  %v3927_v41 = vmul.f32 %v11519_v21, %v11515_v44 }
 0x782   : > { %5655 = vmatmul.f32.gmra.mxu3 %v3926_v8 }
 0x784   : > { %v5399_v34 = vpop.f32.mrf.mxu2 }
 0x785   : > { %v5608_v48 = vpop.f32.mrf.mxu3  ;;  %v5400_v28 = vadd.f32 %v5399_v34, %v5191_v62  ;;  %v4984_v42 = vpop.f32.mrf.mxu0  ;;  %v11521_v62 = vld [vmem:[#allocation96_spill] sm:$0xff]  ;;  %v11522_v34 = vld [vmem:[#allocation363_spill] sm:$0xff] }
 0x786   : > { %v5193_v54 = vpop.f32.mrf.mxu1  ;;  %v4985_v10 = vadd.f32 %v4984_v42, %v11520_v60  ;;  %v3736_v17 = vmul.f32 %v11522_v34, %v11521_v62  ;;  %v11524_v42 = vld [vmem:[#allocation365_spill] sm:$0xff] }
 0x787   : > { %v5609_v19 = vadd.f32 %v5608_v48, %v5400_v28  ;;  %v11523_v48 = vld [vmem:[#allocation364_spill] sm:$0xff]  ;;  %v3864_v44 = vmul.f32 %v11524_v42, %v11521_v62  ;;  %v11532_v42 = vld [vmem:[#allocation101_spill] sm:$0xff] }
 0x788   : > { %5031 = vmatmul.f32.gmra.mxu0 %v3735_v24  ;;  %5240 = vmatmul.f32.gmra.mxu1 %v3799_v51  ;;  %v5194_v23 = vadd.f32 %v5193_v54, %v4985_v10  ;;  %v3800_v28 = vmul.f32 %v11523_v48, %v11521_v62  ;;  %v11525_v24 = vld [vmem:[#allocation366_spill] sm:$0xff] }
 0x789   : > { %5775 = vst.msk [vmem:[%s9822_s7 + $0x68] sm:$0xff] %vm5761_vm0, %v5609_v19  ;;  %5449 = vmatmul.f32.gmra.mxu2 %v3863_v9  ;;  %v3928_v5 = vmul.f32 %v11525_v24, %v11521_v62 }
 0x78a   : > { %5658 = vmatmul.f32.gmra.mxu3 %v3927_v41 }
 0x78c   : > { %v5402_v11 = vpop.f32.mrf.mxu2 }
 0x78d   : > { %v5611_v8 = vpop.f32.mrf.mxu3  ;;  %v5403_v2 = vadd.f32 %v5402_v11, %v5194_v23  ;;  %v4987_v20 = vpop.f32.mrf.mxu0  ;;  %v11527_v23 = vld [vmem:[#allocation98_spill] sm:$0xff]  ;;  %v11528_v11 = vld [vmem:[#allocation367_spill] sm:$0xff] }
 0x78e   : > { %v5196_v29 = vpop.f32.mrf.mxu1  ;;  %v4988_v54 = vadd.f32 %v4987_v20, %v11526_v1  ;;  %v3737_v34 = vmul.f32 %v11528_v11, %v11527_v23  ;;  %v11530_v20 = vld [vmem:[#allocation369_spill] sm:$0xff] }
 0x78f   : > { %v5612_v51 = vadd.f32 %v5611_v8, %v5403_v2  ;;  %v11529_v8 = vld [vmem:[#allocation368_spill] sm:$0xff]  ;;  %v3865_v62 = vmul.f32 %v11530_v20, %v11527_v23  ;;  %v11538_v20 = vld [vmem:[#allocation103_spill] sm:$0xff] }
 0x790   : > { %5034 = vmatmul.f32.gmra.mxu0 %v3736_v17  ;;  %5243 = vmatmul.f32.gmra.mxu1 %v3800_v28  ;;  %v5197_v9 = vadd.f32 %v5196_v29, %v4988_v54  ;;  %v3801_v2 = vmul.f32 %v11529_v8, %v11527_v23  ;;  %v11531_v17 = vld [vmem:[#allocation370_spill] sm:$0xff] }
 0x791   : > { %5776 = vst.msk [vmem:[%s9822_s7 + $0x70] sm:$0xff] %vm5761_vm0, %v5612_v51  ;;  %5452 = vmatmul.f32.gmra.mxu2 %v3864_v44  ;;  %v3929_v48 = vmul.f32 %v11531_v17, %v11527_v23 }
 0x792   : > { %5661 = vmatmul.f32.gmra.mxu3 %v3928_v5 }
 0x794   : > { %v5405_v21 = vpop.f32.mrf.mxu2 }
 0x795   : > { %v5614_v41 = vpop.f32.mrf.mxu3  ;;  %v5406_v19 = vadd.f32 %v5405_v21, %v5197_v9  ;;  %v4990_v60 = vpop.f32.mrf.mxu0  ;;  %v11533_v9 = vld [vmem:[#allocation100_spill] sm:$0xff]  ;;  %v11534_v21 = vld [vmem:[#allocation371_spill] sm:$0xff] }
 0x796   : > { %v5199_v10 = vpop.f32.mrf.mxu1  ;;  %v4991_v29 = vadd.f32 %v4990_v60, %v11532_v42  ;;  %v3738_v11 = vmul.f32 %v11534_v21, %v11533_v9  ;;  %v11536_v60 = vld [vmem:[#allocation373_spill] sm:$0xff] }
 0x797   : > { %v5615_v28 = vadd.f32 %v5614_v41, %v5406_v19  ;;  %v11535_v41 = vld [vmem:[#allocation372_spill] sm:$0xff]  ;;  %v3866_v23 = vmul.f32 %v11536_v60, %v11533_v9  ;;  %v11544_v60 = vld [vmem:[#allocation105_spill] sm:$0xff] }
 0x798   : > { %5037 = vmatmul.f32.gmra.mxu0 %v3737_v34  ;;  %5246 = vmatmul.f32.gmra.mxu1 %v3801_v2  ;;  %v5200_v44 = vadd.f32 %v5199_v10, %v4991_v29  ;;  %v3802_v19 = vmul.f32 %v11535_v41, %v11533_v9  ;;  %v11537_v34 = vld [vmem:[#allocation374_spill] sm:$0xff] }
 0x799   : > { %5777 = vst.msk [vmem:[%s9822_s7 + $0x78] sm:$0xff] %vm5761_vm0, %v5615_v28  ;;  %5455 = vmatmul.f32.gmra.mxu2 %v3865_v62  ;;  %v3930_v8 = vmul.f32 %v11537_v34, %v11533_v9 }
 0x79a   : > { %5664 = vmatmul.f32.gmra.mxu3 %v3929_v48 }
 0x79c   : > { %v5408_v24 = vpop.f32.mrf.mxu2 }
 0x79d   : > { %v5617_v5 = vpop.f32.mrf.mxu3  ;;  %v5409_v51 = vadd.f32 %v5408_v24, %v5200_v44  ;;  %v4993_v1 = vpop.f32.mrf.mxu0  ;;  %v11539_v44 = vld [vmem:[#allocation102_spill] sm:$0xff]  ;;  %v11540_v24 = vld [vmem:[#allocation375_spill] sm:$0xff] }
 0x79e   : > { %v5202_v54 = vpop.f32.mrf.mxu1  ;;  %v4994_v10 = vadd.f32 %v4993_v1, %v11538_v20  ;;  %v3739_v21 = vmul.f32 %v11540_v24, %v11539_v44  ;;  %v11542_v1 = vld [vmem:[#allocation377_spill] sm:$0xff] }
 0x79f   : > { %v5618_v2 = vadd.f32 %v5617_v5, %v5409_v51  ;;  %v11541_v5 = vld [vmem:[#allocation376_spill] sm:$0xff]  ;;  %v3867_v9 = vmul.f32 %v11542_v1, %v11539_v44  ;;  %v11550_v1 = vld [vmem:[#allocation107_spill] sm:$0xff] }
 0x7a0   : > { %5040 = vmatmul.f32.gmra.mxu0 %v3738_v11  ;;  %5249 = vmatmul.f32.gmra.mxu1 %v3802_v19  ;;  %v5203_v62 = vadd.f32 %v5202_v54, %v4994_v10  ;;  %v3803_v51 = vmul.f32 %v11541_v5, %v11539_v44  ;;  %v11543_v11 = vld [vmem:[#allocation378_spill] sm:$0xff] }
 0x7a1   : > { %5778 = vst.msk [vmem:[%s9822_s7 + $0x80] sm:$0xff] %vm5761_vm0, %v5618_v2  ;;  %5458 = vmatmul.f32.gmra.mxu2 %v3866_v23  ;;  %v3931_v41 = vmul.f32 %v11543_v11, %v11539_v44 }
 0x7a2   : > { %5667 = vmatmul.f32.gmra.mxu3 %v3930_v8 }
 0x7a4   : > { %v5411_v17 = vpop.f32.mrf.mxu2 }
 0x7a5   : > { %v5620_v48 = vpop.f32.mrf.mxu3  ;;  %v5412_v28 = vadd.f32 %v5411_v17, %v5203_v62  ;;  %v4996_v42 = vpop.f32.mrf.mxu0  ;;  %v11545_v62 = vld [vmem:[#allocation104_spill] sm:$0xff]  ;;  %v11546_v17 = vld [vmem:[#allocation379_spill] sm:$0xff] }
 0x7a6   : > { %v5205_v29 = vpop.f32.mrf.mxu1  ;;  %v4997_v54 = vadd.f32 %v4996_v42, %v11544_v60  ;;  %v3740_v24 = vmul.f32 %v11546_v17, %v11545_v62  ;;  %v11548_v42 = vld [vmem:[#allocation381_spill] sm:$0xff] }
 0x7a7   : > { %v5621_v19 = vadd.f32 %v5620_v48, %v5412_v28  ;;  %v11547_v48 = vld [vmem:[#allocation380_spill] sm:$0xff]  ;;  %v3868_v44 = vmul.f32 %v11548_v42, %v11545_v62  ;;  %v11556_v42 = vld [vmem:[#allocation109_spill] sm:$0xff] }
 0x7a8   : > { %5043 = vmatmul.f32.gmra.mxu0 %v3739_v21  ;;  %5252 = vmatmul.f32.gmra.mxu1 %v3803_v51  ;;  %v5206_v23 = vadd.f32 %v5205_v29, %v4997_v54  ;;  %v3804_v28 = vmul.f32 %v11547_v48, %v11545_v62  ;;  %v11549_v21 = vld [vmem:[#allocation382_spill] sm:$0xff] }
 0x7a9   : > { %5779 = vst.msk [vmem:[%s9822_s7 + $0x88] sm:$0xff] %vm5761_vm0, %v5621_v19  ;;  %5461 = vmatmul.f32.gmra.mxu2 %v3867_v9  ;;  %v3932_v5 = vmul.f32 %v11549_v21, %v11545_v62 }
 0x7aa   : > { %5670 = vmatmul.f32.gmra.mxu3 %v3931_v41 }
 0x7ac   : > { %v5414_v34 = vpop.f32.mrf.mxu2 }
 0x7ad   : > { %v5623_v8 = vpop.f32.mrf.mxu3  ;;  %v5415_v2 = vadd.f32 %v5414_v34, %v5206_v23  ;;  %v4999_v20 = vpop.f32.mrf.mxu0  ;;  %v11551_v23 = vld [vmem:[#allocation106_spill] sm:$0xff]  ;;  %v11552_v34 = vld [vmem:[#allocation383_spill] sm:$0xff] }
 0x7ae   : > { %v5208_v10 = vpop.f32.mrf.mxu1  ;;  %v5000_v29 = vadd.f32 %v4999_v20, %v11550_v1  ;;  %v3741_v17 = vmul.f32 %v11552_v34, %v11551_v23  ;;  %v11554_v20 = vld [vmem:[#allocation151_spill] sm:$0xff] }
 0x7af   : > { %v5624_v51 = vadd.f32 %v5623_v8, %v5415_v2  ;;  %v11553_v8 = vld [vmem:[#allocation384_spill] sm:$0xff]  ;;  %v3869_v62 = vmul.f32 %v11554_v20, %v11551_v23  ;;  %v11562_v20 = vld [vmem:[#allocation111_spill] sm:$0xff] }
 0x7b0   : > { %5046 = vmatmul.f32.gmra.mxu0 %v3740_v24  ;;  %5255 = vmatmul.f32.gmra.mxu1 %v3804_v28  ;;  %v5209_v9 = vadd.f32 %v5208_v10, %v5000_v29  ;;  %v3805_v2 = vmul.f32 %v11553_v8, %v11551_v23  ;;  %v11555_v24 = vld [vmem:[#allocation385_spill] sm:$0xff] }
 0x7b1   : > { %5780 = vst.msk [vmem:[%s9822_s7 + $0x90] sm:$0xff] %vm5761_vm0, %v5624_v51  ;;  %5464 = vmatmul.f32.gmra.mxu2 %v3868_v44  ;;  %v3933_v48 = vmul.f32 %v11555_v24, %v11551_v23 }
 0x7b2   : > { %5673 = vmatmul.f32.gmra.mxu3 %v3932_v5 }
 0x7b4   : > { %v5417_v11 = vpop.f32.mrf.mxu2 }
 0x7b5   : > { %v5626_v41 = vpop.f32.mrf.mxu3  ;;  %v5418_v19 = vadd.f32 %v5417_v11, %v5209_v9  ;;  %v5002_v60 = vpop.f32.mrf.mxu0  ;;  %v11557_v9 = vld [vmem:[#allocation108_spill] sm:$0xff]  ;;  %v11558_v11 = vld [vmem:[#allocation386_spill] sm:$0xff] }
 0x7b6   : > { %v5211_v54 = vpop.f32.mrf.mxu1  ;;  %v5003_v10 = vadd.f32 %v5002_v60, %v11556_v42  ;;  %v3742_v34 = vmul.f32 %v11558_v11, %v11557_v9  ;;  %v11560_v60 = vld [vmem:[#allocation156_spill] sm:$0xff] }
 0x7b7   : > { %v5627_v28 = vadd.f32 %v5626_v41, %v5418_v19  ;;  %v11559_v41 = vld [vmem:[#allocation387_spill] sm:$0xff]  ;;  %v3870_v23 = vmul.f32 %v11560_v60, %v11557_v9  ;;  %v11568_v60 = vld [vmem:[#allocation113_spill] sm:$0xff] }
 0x7b8   : > { %5049 = vmatmul.f32.gmra.mxu0 %v3741_v17  ;;  %5258 = vmatmul.f32.gmra.mxu1 %v3805_v2  ;;  %v5212_v44 = vadd.f32 %v5211_v54, %v5003_v10  ;;  %v3806_v19 = vmul.f32 %v11559_v41, %v11557_v9  ;;  %v11561_v17 = vld [vmem:[#allocation388_spill] sm:$0xff] }
 0x7b9   : > { %5781 = vst.msk [vmem:[%s9822_s7 + $0x98] sm:$0xff] %vm5761_vm0, %v5627_v28  ;;  %5467 = vmatmul.f32.gmra.mxu2 %v3869_v62  ;;  %v3934_v8 = vmul.f32 %v11561_v17, %v11557_v9 }
 0x7ba   : > { %5676 = vmatmul.f32.gmra.mxu3 %v3933_v48 }
 0x7bc   : > { %v5420_v21 = vpop.f32.mrf.mxu2 }
 0x7bd   : > { %v5629_v5 = vpop.f32.mrf.mxu3  ;;  %v5421_v51 = vadd.f32 %v5420_v21, %v5212_v44  ;;  %v5005_v1 = vpop.f32.mrf.mxu0  ;;  %v11563_v44 = vld [vmem:[#allocation110_spill] sm:$0xff]  ;;  %v11564_v21 = vld [vmem:[#allocation389_spill] sm:$0xff] }
 0x7be   : > { %v5214_v29 = vpop.f32.mrf.mxu1  ;;  %v5006_v54 = vadd.f32 %v5005_v1, %v11562_v20  ;;  %v3743_v11 = vmul.f32 %v11564_v21, %v11563_v44  ;;  %v11566_v1 = vld [vmem:[#allocation161_spill] sm:$0xff] }
 0x7bf   : > { %v5630_v2 = vadd.f32 %v5629_v5, %v5421_v51  ;;  %v11565_v5 = vld [vmem:[#allocation390_spill] sm:$0xff]  ;;  %v3871_v9 = vmul.f32 %v11566_v1, %v11563_v44  ;;  %v11574_v1 = vld [vmem:[#allocation115_spill] sm:$0xff] }
 0x7c0   : > { %5052 = vmatmul.f32.gmra.mxu0 %v3742_v34  ;;  %5261 = vmatmul.f32.gmra.mxu1 %v3806_v19  ;;  %v5215_v62 = vadd.f32 %v5214_v29, %v5006_v54  ;;  %v3807_v51 = vmul.f32 %v11565_v5, %v11563_v44  ;;  %v11567_v34 = vld [vmem:[#allocation391_spill] sm:$0xff] }
 0x7c1   : > { %5782 = vst.msk [vmem:[%s9822_s7 + $0xa0] sm:$0xff] %vm5761_vm0, %v5630_v2  ;;  %5470 = vmatmul.f32.gmra.mxu2 %v3870_v23  ;;  %v3935_v41 = vmul.f32 %v11567_v34, %v11563_v44 }
 0x7c2   : > { %5679 = vmatmul.f32.gmra.mxu3 %v3934_v8 }
 0x7c4   : > { %v5423_v24 = vpop.f32.mrf.mxu2 }
 0x7c5   : > { %v5632_v48 = vpop.f32.mrf.mxu3  ;;  %v5424_v28 = vadd.f32 %v5423_v24, %v5215_v62  ;;  %v5008_v42 = vpop.f32.mrf.mxu0  ;;  %v11569_v62 = vld [vmem:[#allocation112_spill] sm:$0xff] }
 0x7c6   : > { %v5217_v10 = vpop.f32.mrf.mxu1  ;;  %v5009_v29 = vadd.f32 %v5008_v42, %v11568_v60  ;;  %v11570_v24 = vld [vmem:[#allocation392_spill] sm:$0xff]  ;;  %v11572_v42 = vld [vmem:[#allocation166_spill] sm:$0xff] }
 0x7c7   : > { %v5633_v19 = vadd.f32 %v5632_v48, %v5424_v28  ;;  %v3744_v21 = vmul.f32 %v11570_v24, %v11569_v62  ;;  %v11571_v48 = vld [vmem:[#allocation393_spill] sm:$0xff]  ;;  %v3872_v44 = vmul.f32 %v11572_v42, %v11569_v62 }
 0x7c8   : > { %5055 = vmatmul.f32.gmra.mxu0 %v3743_v11  ;;  %5264 = vmatmul.f32.gmra.mxu1 %v3807_v51  ;;  %v5218_v23 = vadd.f32 %v5217_v10, %v5009_v29  ;;  %v3808_v28 = vmul.f32 %v11571_v48, %v11569_v62  ;;  %v11573_v11 = vld [vmem:[#allocation394_spill] sm:$0xff]  ;;  %v11580_v42 = vld [vmem:[#allocation117_spill] sm:$0xff] }
 0x7c9   : > { %5783 = vst.msk [vmem:[%s9822_s7 + $0xa8] sm:$0xff] %vm5761_vm0, %v5633_v19  ;;  %5473 = vmatmul.f32.gmra.mxu2 %v3871_v9  ;;  %v3936_v5 = vmul.f32 %v11573_v11, %v11569_v62 }
 0x7ca   : > { %5682 = vmatmul.f32.gmra.mxu3 %v3935_v41 }
 0x7cc   : > { %v5426_v17 = vpop.f32.mrf.mxu2 }
 0x7cd   : > { %v5635_v8 = vpop.f32.mrf.mxu3  ;;  %v5427_v2 = vadd.f32 %v5426_v17, %v5218_v23  ;;  %v5011_v20 = vpop.f32.mrf.mxu0  ;;  %v11575_v23 = vld [vmem:[#allocation114_spill] sm:$0xff]  ;;  %v11576_v17 = vld [vmem:[#allocation395_spill] sm:$0xff] }
 0x7ce   : > { %v5220_v54 = vpop.f32.mrf.mxu1  ;;  %v5012_v10 = vadd.f32 %v5011_v20, %v11574_v1  ;;  %v3745_v24 = vmul.f32 %v11576_v17, %v11575_v23  ;;  %v11578_v20 = vld [vmem:[#allocation171_spill] sm:$0xff] }
 0x7cf   : > { %v5636_v51 = vadd.f32 %v5635_v8, %v5427_v2  ;;  %v11577_v8 = vld [vmem:[#allocation396_spill] sm:$0xff]  ;;  %v3873_v62 = vmul.f32 %v11578_v20, %v11575_v23  ;;  %v11586_v20 = vld [vmem:[#allocation119_spill] sm:$0xff] }
 0x7d0   : > { %5058 = vmatmul.f32.gmra.mxu0 %v3744_v21  ;;  %5267 = vmatmul.f32.gmra.mxu1 %v3808_v28  ;;  %v5221_v9 = vadd.f32 %v5220_v54, %v5012_v10  ;;  %v3809_v2 = vmul.f32 %v11577_v8, %v11575_v23  ;;  %v11579_v21 = vld [vmem:[#allocation397_spill] sm:$0xff] }
 0x7d1   : > { %5784 = vst.msk [vmem:[%s9822_s7 + $0xb0] sm:$0xff] %vm5761_vm0, %v5636_v51  ;;  %5476 = vmatmul.f32.gmra.mxu2 %v3872_v44  ;;  %v3937_v48 = vmul.f32 %v11579_v21, %v11575_v23 }
 0x7d2   : > { %5685 = vmatmul.f32.gmra.mxu3 %v3936_v5 }
 0x7d4   : > { %v5429_v34 = vpop.f32.mrf.mxu2 }
 0x7d5   : > { %v5638_v41 = vpop.f32.mrf.mxu3  ;;  %v5430_v19 = vadd.f32 %v5429_v34, %v5221_v9  ;;  %v5014_v60 = vpop.f32.mrf.mxu0  ;;  %v11581_v9 = vld [vmem:[#allocation116_spill] sm:$0xff]  ;;  %v11582_v34 = vld [vmem:[#allocation398_spill] sm:$0xff] }
 0x7d6   : > { %v5223_v29 = vpop.f32.mrf.mxu1  ;;  %v5015_v54 = vadd.f32 %v5014_v60, %v11580_v42  ;;  %v3746_v17 = vmul.f32 %v11582_v34, %v11581_v9  ;;  %v11584_v60 = vld [vmem:[#allocation176_spill] sm:$0xff] }
 0x7d7   : > { %v5639_v28 = vadd.f32 %v5638_v41, %v5430_v19  ;;  %v11583_v41 = vld [vmem:[#allocation399_spill] sm:$0xff]  ;;  %v3874_v23 = vmul.f32 %v11584_v60, %v11581_v9 }
 0x7d8   : > { %5061 = vmatmul.f32.gmra.mxu0 %v3745_v24  ;;  %5270 = vmatmul.f32.gmra.mxu1 %v3809_v2  ;;  %v5224_v44 = vadd.f32 %v5223_v29, %v5015_v54  ;;  %v3810_v19 = vmul.f32 %v11583_v41, %v11581_v9  ;;  %v11585_v24 = vld [vmem:[#allocation400_spill] sm:$0xff] }
 0x7d9   : > { %5785 = vst.msk [vmem:[%s9822_s7 + $0xb8] sm:$0xff] %vm5761_vm0, %v5639_v28  ;;  %5479 = vmatmul.f32.gmra.mxu2 %v3873_v62  ;;  %v3938_v8 = vmul.f32 %v11585_v24, %v11581_v9 }
 0x7da   : > { %5688 = vmatmul.f32.gmra.mxu3 %v3937_v48 }
 0x7dc   : > { %v5432_v11 = vpop.f32.mrf.mxu2 }
 0x7dd   : > { %v5641_v5 = vpop.f32.mrf.mxu3  ;;  %v5433_v51 = vadd.f32 %v5432_v11, %v5224_v44  ;;  %v5017_v1 = vpop.f32.mrf.mxu0  ;;  %v11587_v44 = vld [vmem:[#allocation118_spill] sm:$0xff]  ;;  %v11588_v11 = vld [vmem:[#allocation401_spill] sm:$0xff] }
 0x7de   : > { %v5226_v10 = vpop.f32.mrf.mxu1  ;;  %v5018_v29 = vadd.f32 %v5017_v1, %v11586_v20  ;;  %v3747_v34 = vmul.f32 %v11588_v11, %v11587_v44  ;;  %v11590_v1 = vld [vmem:[#allocation181_spill] sm:$0xff] }
 0x7df   : > { %v5642_v2 = vadd.f32 %v5641_v5, %v5433_v51  ;;  %v11589_v5 = vld [vmem:[#allocation402_spill] sm:$0xff]  ;;  %v3875_v9 = vmul.f32 %v11590_v1, %v11587_v44 }
 0x7e0   : > { %5064 = vmatmul.f32.gmra.mxu0 %v3746_v17  ;;  %5273 = vmatmul.f32.gmra.mxu1 %v3810_v19  ;;  %v5227_v62 = vadd.f32 %v5226_v10, %v5018_v29  ;;  %v3811_v51 = vmul.f32 %v11589_v5, %v11587_v44  ;;  %v11591_v17 = vld [vmem:[#allocation403_spill] sm:$0xff]  ;;  %v11592_v29 = vld [vmem:[#allocation404_spill] sm:$0xff] }
 0x7e1   : > { %5786 = vst.msk [vmem:[%s9822_s7 + $0xc0] sm:$0xff] %vm5761_vm0, %v5642_v2  ;;  %5482 = vmatmul.f32.gmra.mxu2 %v3874_v23  ;;  %v3939_v41 = vmul.f32 %v11591_v17, %v11587_v44 }
 0x7e2   : > { %5691 = vmatmul.f32.gmra.mxu3 %v3938_v8 }
 0x7e4   : > { %v5435_v21 = vpop.f32.mrf.mxu2 }
 0x7e5   : > { %v5644_v48 = vpop.f32.mrf.mxu3  ;;  %v5436_v28 = vadd.f32 %v5435_v21, %v5227_v62  ;;  %v5020_v42 = vpop.f32.mrf.mxu0  ;;  %v3748_v62 = vmul.f32 %v11592_v29, %v9323_v25  ;;  %v11593_v21 = vld [vmem:[#allocation405_spill] sm:$0xff] }
 0x7e6   : > { %v5229_v54 = vpop.f32.mrf.mxu1  ;;  %v5021_v10 = vadd.f32 %v5020_v42, %v9334_v61  ;;  %v11594_v61 = vld [vmem:[#allocation186_spill] sm:$0xff] }
 0x7e7   : > { %v5645_v19 = vadd.f32 %v5644_v48, %v5436_v28  ;;  %v3812_v48 = vmul.f32 %v11593_v21, %v9323_v25  ;;  %v3876_v28 = vmul.f32 %v11594_v61, %v9323_v25  ;;  %v11595_v42 = vld [vmem:[#allocation406_spill] sm:$0xff]  ;;  %v11602_v21 = vld [vmem:[#allocation123_spill] sm:$0xff] }
 0x7e8   : > { %5067 = vmatmul.f32.gmra.mxu0 %v3747_v34  ;;  %5276 = vmatmul.f32.gmra.mxu1 %v3811_v51  ;;  %v5230_v60 = vadd.f32 %v5229_v54, %v5021_v10  ;;  %v3940_v44 = vmul.f32 %v11595_v42, %v9323_v25  ;;  %v11596_v34 = vld [vmem:[#allocation121_spill] sm:$0xff]  ;;  %v11598_v10 = vld [vmem:[#allocation407_spill] sm:$0xff]  ;;  %v11599_v25 = vld [vmem:[#allocation408_spill] sm:$0xff] }
 0x7e9   : > { %5787 = vst.msk [vmem:[%s9822_s7 + $0xc8] sm:$0xff] %vm5761_vm0, %v5645_v19  ;;  %5485 = vmatmul.f32.gmra.mxu2 %v3875_v9  ;;  %v11597_v19 = vld [vmem:[#allocation120_spill] sm:$0xff] }
 0x7ea   : > { %5694 = vmatmul.f32.gmra.mxu3 %v3939_v41 }
 0x7ec   : > { %v5438_v23 = vpop.f32.mrf.mxu2 }
 0x7ed   : > { %v5647_v24 = vpop.f32.mrf.mxu3  ;;  %v5439_v8 = vadd.f32 %v5438_v23, %v5230_v60  ;;  %v5023_v2 = vpop.f32.mrf.mxu0  ;;  %v3749_v60 = vmul.f32 %v11598_v10, %v11597_v19  ;;  %v3813_v23 = vmul.f32 %v11599_v25, %v11597_v19  ;;  %v11608_v25 = vld [vmem:[#allocation125_spill] sm:$0xff] }
 0x7ee   : > { %v5232_v20 = vpop.f32.mrf.mxu1  ;;  %v5024_v54 = vadd.f32 %v5023_v2, %v11596_v34  ;;  %v11601_v2 = vld [vmem:[#allocation409_spill] sm:$0xff]  ;;  %v11603_v34 = vld [vmem:[#allocation122_spill] sm:$0xff] }
 0x7ef   : > { %v5648_v11 = vadd.f32 %v5647_v24, %v5439_v8  ;;  %v11600_v24 = vld [vmem:[#allocation191_spill] sm:$0xff]  ;;  %v3941_v29 = vmul.f32 %v11601_v2, %v11597_v19 }
 0x7f0   : > { %5070 = vmatmul.f32.gmra.mxu0 %v3748_v62  ;;  %5279 = vmatmul.f32.gmra.mxu1 %v3812_v48  ;;  %v5233_v5 = vadd.f32 %v5232_v20, %v5024_v54  ;;  %v3877_v8 = vmul.f32 %v11600_v24, %v11597_v19  ;;  %v11604_v54 = vld [vmem:[#allocation410_spill] sm:$0xff]  ;;  %v11607_v19 = vld [vmem:[#allocation413_spill] sm:$0xff] }
 0x7f1   : > { %5788 = vst.msk [vmem:[%s9822_s7 + $0xd0] sm:$0xff] %vm5761_vm0, %v5648_v11  ;;  %5488 = vmatmul.f32.gmra.mxu2 %v3876_v28  ;;  %v3942_v10 = vmul.f32 %v11607_v19, %v11603_v34 }
 0x7f2   : > { %5697 = vmatmul.f32.gmra.mxu3 %v3940_v44 }
 0x7f4   : > { %v5441_v51 = vpop.f32.mrf.mxu2 }
 0x7f5   : > { %v5650_v1 = vpop.f32.mrf.mxu3  ;;  %v5442_v9 = vadd.f32 %v5441_v51, %v5233_v5  ;;  %v5026_v17 = vpop.f32.mrf.mxu0  ;;  %v3750_v5 = vmul.f32 %v11604_v54, %v11603_v34  ;;  %v11605_v51 = vld [vmem:[#allocation411_spill] sm:$0xff] }
 0x7f6   : > { %v5235_v41 = vpop.f32.mrf.mxu1  ;;  %v5027_v20 = vadd.f32 %v5026_v17, %v11602_v21  ;;  %v11609_v21 = vld [vmem:[#allocation124_spill] sm:$0xff] }
 0x7f7   : > { %v5651_v62 = vadd.f32 %v5650_v1, %v5442_v9  ;;  %v3814_v1 = vmul.f32 %v11605_v51, %v11603_v34  ;;  %v11606_v9 = vld [vmem:[#allocation412_spill] sm:$0xff] }
 0x7f8   : > { %5073 = vmatmul.f32.gmra.mxu0 %v3749_v60  ;;  %5282 = vmatmul.f32.gmra.mxu1 %v3813_v23  ;;  %v5236_v48 = vadd.f32 %v5235_v41, %v5027_v20  ;;  %v3878_v17 = vmul.f32 %v11606_v9, %v11603_v34  ;;  %v11610_v20 = vld [vmem:[#allocation414_spill] sm:$0xff]  ;;  %v11613_v34 = vld [vmem:[#allocation417_spill] sm:$0xff] }
 0x7f9   : > { %5789 = vst.msk [vmem:[%s9822_s7 + $0xd8] sm:$0xff] %vm5761_vm0, %v5651_v62  ;;  %5491 = vmatmul.f32.gmra.mxu2 %v3877_v8  ;;  %v3943_v54 = vmul.f32 %v11613_v34, %v11609_v21  ;;  %v11619_v34 = vld [vmem:[#allocation422_spill] sm:$0xff] }
 0x7fa   : > { %5700 = vmatmul.f32.gmra.mxu3 %v3941_v29 }
 0x7fc   : > { %v5444_v61 = vpop.f32.mrf.mxu2 }
 0x7fd   : > { %v5653_v28 = vpop.f32.mrf.mxu3  ;;  %v5445_v42 = vadd.f32 %v5444_v61, %v5236_v48  ;;  %v5029_v44 = vpop.f32.mrf.mxu0  ;;  %v3751_v48 = vmul.f32 %v11610_v20, %v11609_v21  ;;  %v11611_v61 = vld [vmem:[#allocation415_spill] sm:$0xff] }
 0x7fe   : > { %v5238_v11 = vpop.f32.mrf.mxu1  ;;  %v5030_v41 = vadd.f32 %v5029_v44, %v11608_v25 }
 0x7ff   : > { %v5654_v60 = vadd.f32 %v5653_v28, %v5445_v42  ;;  %v3815_v28 = vmul.f32 %v11611_v61, %v11609_v21  ;;  %v11612_v42 = vld [vmem:[#allocation416_spill] sm:$0xff] }
 0x800   : > { %5076 = vmatmul.f32.gmra.mxu0 %v3750_v5  ;;  %5285 = vmatmul.f32.gmra.mxu1 %v3814_v1  ;;  %v5239_v23 = vadd.f32 %v5238_v11, %v5030_v41  ;;  %v3879_v44 = vmul.f32 %v11612_v42, %v11609_v21  ;;  %v11615_v41 = vld [vmem:[#allocation419_spill] sm:$0xff] }
 0x801   : > { %5790 = vst.msk [vmem:[%s9822_s7 + $0xe0] sm:$0xff] %vm5761_vm0, %v5654_v60  ;;  %5494 = vmatmul.f32.gmra.mxu2 %v3878_v17  ;;  %v11614_v60 = vld [vmem:[#allocation418_spill] sm:$0xff] }
 0x802   : > { %5703 = vmatmul.f32.gmra.mxu3 %v3942_v10  ;;  %v3752_v25 = vmul.f32 %v11614_v60, %v9387_v50 }
 0x804   : > { %v5447_v24 = vpop.f32.mrf.mxu2 }
 0x805   : > { %v5656_v8 = vpop.f32.mrf.mxu3  ;;  %v5448_v2 = vadd.f32 %v5447_v24, %v5239_v23  ;;  %v5032_v29 = vpop.f32.mrf.mxu0  ;;  %v3816_v23 = vmul.f32 %v11615_v41, %v9387_v50 }
 0x806   : > { %v5241_v62 = vpop.f32.mrf.mxu1  ;;  %v5033_v11 = vadd.f32 %v5032_v29, %v9398_v55  ;;  %v11616_v55 = vld [vmem:[#allocation420_spill] sm:$0xff] }
 0x807   : > { %v5657_v5 = vadd.f32 %v5656_v8, %v5448_v2  ;;  %v3880_v24 = vmul.f32 %v11616_v55, %v9387_v50  ;;  %v11617_v8 = vld [vmem:[#allocation421_spill] sm:$0xff] }
 0x808   : > { %5079 = vmatmul.f32.gmra.mxu0 %v3751_v48  ;;  %5288 = vmatmul.f32.gmra.mxu1 %v3815_v28  ;;  %v5242_v51 = vadd.f32 %v5241_v62, %v5033_v11  ;;  %v3944_v2 = vmul.f32 %v11617_v8, %v9387_v50  ;;  %v11620_v50 = vld [vmem:[#allocation423_spill] sm:$0xff]  ;;  %v11625_v8 = vld [vmem:[#allocation22_spill] sm:$0xff] }
 0x809   : > { %5791 = vst.msk [vmem:[%s9822_s7 + $0xe8] sm:$0xff] %vm5761_vm0, %v5657_v5  ;;  %5497 = vmatmul.f32.gmra.mxu2 %v3879_v44  ;;  %v11618_v44 = vld [vmem:[#allocation126_spill] sm:$0xff] }
 0x80a   : > { %5706 = vmatmul.f32.gmra.mxu3 %v3943_v54  ;;  %v3753_v54 = vmul.f32 %v11619_v34, %v11618_v44  ;;  %v3817_v5 = vmul.f32 %v11620_v50, %v11618_v44 }
 0x80c   : > { %v5450_v1 = vpop.f32.mrf.mxu2 }
 0x80d   : > { %v5659_v9 = vpop.f32.mrf.mxu3  ;;  %v5451_v17 = vadd.f32 %v5450_v1, %v5242_v51  ;;  %v5035_v19 = vpop.f32.mrf.mxu0  ;;  %v11622_v51 = vld [vmem:[#allocation21_spill] sm:$0xff] }
 0x80e   : > { %v5244_v10 = vpop.f32.mrf.mxu1  ;;  %v5036_v62 = vadd.f32 %v5035_v19, %v9411_v63  ;;  %v11621_v63 = vld [vmem:[#allocation20_spill] sm:$0xff]  ;;  %v3945_v1 = vmul.f32 %v11622_v51, %v11618_v44  ;;  %v11630_v51 = vld [vmem:[#allocation129_spill] sm:$0xff] }
 0x80f   : > { %v5660_v29 = vadd.f32 %v5659_v9, %v5451_v17  ;;  %v3881_v11 = vmul.f32 %v11621_v63, %v11618_v44  ;;  %v11623_v17 = vld [vmem:[#allocation128_spill] sm:$0xff]  ;;  %v11629_v44 = vld [vmem:[#allocation130_spill] sm:$0xff] }
 0x810   : > { %5082 = vmatmul.f32.gmra.mxu0 %v3752_v25  ;;  %5291 = vmatmul.f32.gmra.mxu1 %v3816_v23  ;;  %v5245_v21 = vadd.f32 %v5244_v10, %v5036_v62 }
 0x811   : > { %5792 = vst.msk [vmem:[%s9822_s7 + $0xf0] sm:$0xff] %vm5761_vm0, %v5660_v29  ;;  %5500 = vmatmul.f32.gmra.mxu2 %v3880_v24  ;;  %v11624_v24 = vld [vmem:[#allocation127_spill] sm:$0xff] }
 0x812   : > { %5709 = vmatmul.f32.gmra.mxu3 %v3944_v2  ;;  %v3754_v2 = vmul.f32 %v11625_v8, %v11624_v24  ;;  %v11626_v29 = vld [vmem:[#allocation23_spill] sm:$0xff] }
 0x813   : > { %v3818_v62 = vmul.f32 %v11626_v29, %v11624_v24 }
 0x814   : > { %v5453_v20 = vpop.f32.mrf.mxu2 }
 0x815   : > { %v5662_v48 = vpop.f32.mrf.mxu3  ;;  %v5454_v61 = vadd.f32 %v5453_v20, %v5245_v21  ;;  %v5038_v28 = vpop.f32.mrf.mxu0  ;;  %v11627_v21 = vld [vmem:[#allocation24_spill] sm:$0xff] }
 0x816   : > { %v5247_v42 = vpop.f32.mrf.mxu1  ;;  %v5039_v19 = vadd.f32 %v5038_v28, %v11623_v17  ;;  %v3882_v20 = vmul.f32 %v11627_v21, %v11624_v24  ;;  %v11632_v17 = vld [vmem:[#allocation27_spill] sm:$0xff] }
 0x817   : > { %v5663_v9 = vadd.f32 %v5662_v48, %v5454_v61  ;;  %v11628_v48 = vld [vmem:[#allocation25_spill] sm:$0xff] }
 0x818   : > { %5085 = vmatmul.f32.gmra.mxu0 %v3753_v54  ;;  %5294 = vmatmul.f32.gmra.mxu1 %v3817_v5  ;;  %v5248_v10 = vadd.f32 %v5247_v42, %v5039_v19  ;;  %v3946_v61 = vmul.f32 %v11628_v48, %v11624_v24  ;;  %v3819_v19 = vmul.f32 %v11632_v17, %v11630_v51  ;;  %v11639_v17 = vld [vmem:[#allocation2_spill] sm:$0xff] }
 0x819   : > { %5793 = vst.msk [vmem:[%s9822_s7 + $0xf8] sm:$0xff] %vm5761_vm0, %v5663_v9  ;;  %5503 = vmatmul.f32.gmra.mxu2 %v3881_v11 }
 0x81a   : > { %5712 = vmatmul.f32.gmra.mxu3 %v3945_v1  ;;  %v11631_v1 = vld [vmem:[#allocation26_spill] sm:$0xff] }
 0x81b   : > { %v3755_v9 = vmul.f32 %v11631_v1, %v11630_v51 }
 0x81c   : > { %v5456_v60 = vpop.f32.mrf.mxu2 }
 0x81d   : > { %v5665_v25 = vpop.f32.mrf.mxu3  ;;  %v5457_v41 = vadd.f32 %v5456_v60, %v5248_v10  ;;  %v5041_v23 = vpop.f32.mrf.mxu0  ;;  %v11633_v10 = vld [vmem:[#allocation28_spill] sm:$0xff] }
 0x81e   : > { %v5250_v55 = vpop.f32.mrf.mxu1  ;;  %v5042_v42 = vadd.f32 %v5041_v23, %v11629_v44  ;;  %v3883_v60 = vmul.f32 %v11633_v10, %v11630_v51 }
 0x81f   : > { %v5666_v28 = vadd.f32 %v5665_v25, %v5457_v41  ;;  %v11634_v25 = vld [vmem:[#allocation29_spill] sm:$0xff] }
 0x820   : > { %5088 = vmatmul.f32.gmra.mxu0 %v3754_v2  ;;  %5297 = vmatmul.f32.gmra.mxu1 %v3818_v62  ;;  %v5251_v34 = vadd.f32 %v5250_v55, %v5042_v42  ;;  %v3947_v41 = vmul.f32 %v11634_v25, %v11630_v51  ;;  %v11638_v42 = vld [vmem:[#allocation33_spill] sm:$0xff]  ;;  %v11642_v25 = vld [vmem:[#allocation35_spill] sm:$0xff] }
 0x821   : > { %5794 = vst.msk [vmem:[%s9822_s7 + $0x100] sm:$0xff] %vm5761_vm0, %v5666_v28  ;;  %5506 = vmatmul.f32.gmra.mxu2 %v3882_v20  ;;  %v11635_v20 = vld [vmem:[#allocation30_spill] sm:$0xff] }
 0x822   : > { %5715 = vmatmul.f32.gmra.mxu3 %v3946_v61  ;;  %v3756_v48 = vmul.f32 %v11635_v20, %v9451_v7  ;;  %v11636_v61 = vld [vmem:[#allocation31_spill] sm:$0xff] }
 0x823   : > { %v3820_v28 = vmul.f32 %v11636_v61, %v9451_v7  ;;  %v11645_v61 = vld [vmem:[#allocation7_spill] sm:$0xff] }
 0x824   : > { %v5459_v54 = vpop.f32.mrf.mxu2 }
 0x825   : > { %v5668_v50 = vpop.f32.mrf.mxu3  ;;  %v5460_v5 = vadd.f32 %v5459_v54, %v5251_v34  ;;  %v5044_v63 = vpop.f32.mrf.mxu0  ;;  %v3948_v34 = vmul.f32 %v11638_v42, %v9451_v7 }
 0x826   : > { %v5253_v11 = vpop.f32.mrf.mxu1  ;;  %v5045_v55 = vadd.f32 %v5044_v63, %v9462_v45  ;;  %v11637_v45 = vld [vmem:[#allocation32_spill] sm:$0xff] }
 0x827   : > { %v5669_v23 = vadd.f32 %v5668_v50, %v5460_v5  ;;  %v3884_v44 = vmul.f32 %v11637_v45, %v9451_v7  ;;  %v11640_v7 = vld [vmem:[#allocation4_spill] sm:$0xff] }
 0x828   : > { %5091 = vmatmul.f32.gmra.mxu0 %v3755_v9  ;;  %5300 = vmatmul.f32.gmra.mxu1 %v3819_v19  ;;  %v5254_v24 = vadd.f32 %v5253_v11, %v5045_v55  ;;  %v3757_v19 = vmul.f32 %v11639_v17, %v9464_v12  ;;  %v3821_v10 = vmul.f32 %v11640_v7, %v9464_v12  ;;  %v11643_v55 = vld [vmem:[#allocation132_spill] sm:$0xff]  ;;  %v11650_v7 = vld [vmem:[#allocation133_spill] sm:$0xff] }
 0x829   : > { %5795 = vst.msk [vmem:[%s9822_s7 + $0x108] sm:$0xff] %vm5761_vm0, %v5669_v23  ;;  %5509 = vmatmul.f32.gmra.mxu2 %v3883_v60 }
 0x82a   : > { %5718 = vmatmul.f32.gmra.mxu3 %v3947_v41  ;;  %v3949_v41 = vmul.f32 %v11642_v25, %v9464_v12 }
 0x82c   : > { %v5462_v8 = vpop.f32.mrf.mxu2 }
 0x82d   : > { %v5671_v2 = vpop.f32.mrf.mxu3  ;;  %v5463_v29 = vadd.f32 %v5462_v8, %v5254_v24  ;;  %v5047_v62 = vpop.f32.mrf.mxu0 }
 0x82e   : > { %v5256_v21 = vpop.f32.mrf.mxu1  ;;  %v5048_v50 = vadd.f32 %v5047_v62, %v9475_v32  ;;  %v11641_v32 = vld [vmem:[#allocation34_spill] sm:$0xff] }
 0x82f   : > { %v5672_v54 = vadd.f32 %v5671_v2, %v5463_v29  ;;  %v3885_v60 = vmul.f32 %v11641_v32, %v9464_v12  ;;  %v11646_v12 = vld [vmem:[#allocation3_spill] sm:$0xff] }
 0x830   : > { %5094 = vmatmul.f32.gmra.mxu0 %v3756_v48  ;;  %5303 = vmatmul.f32.gmra.mxu1 %v3820_v28  ;;  %v5257_v5 = vadd.f32 %v5256_v21, %v5048_v50  ;;  %v11644_v48 = vld [vmem:[#allocation131_spill] sm:$0xff] }
 0x831   : > { %5796 = vst.msk [vmem:[%s9822_s7 + $0x110] sm:$0xff] %vm5761_vm0, %v5672_v54  ;;  %5512 = vmatmul.f32.gmra.mxu2 %v3884_v44  ;;  %v3758_v28 = vmul.f32 %v11645_v61, %v11644_v48  ;;  %v3822_v45 = vmul.f32 %v11646_v12, %v11644_v48  ;;  %v11647_v44 = vld [vmem:[#allocation6_spill] sm:$0xff] }
 0x832   : > { %5721 = vmatmul.f32.gmra.mxu3 %v3948_v34  ;;  %v3886_v42 = vmul.f32 %v11647_v44, %v11644_v48  ;;  %v11648_v34 = vld [vmem:[#allocation36_spill] sm:$0xff] }
 0x833   : > { %v3950_v54 = vmul.f32 %v11648_v34, %v11644_v48  ;;  %v11658_v34 = vld [vmem:[#allocation38_spill] sm:$0xff] }
 0x834   : > { %v5465_v63 = vpop.f32.mrf.mxu2 }
 0x835   : > { %v5674_v11 = vpop.f32.mrf.mxu3  ;;  %v5466_v51 = vadd.f32 %v5465_v63, %v5257_v5  ;;  %v5050_v1 = vpop.f32.mrf.mxu0  ;;  %v11649_v5 = vld [vmem:[#allocation134_spill] sm:$0xff] }
 0x836   : > { %v5259_v9 = vpop.f32.mrf.mxu1  ;;  %v5051_v24 = vadd.f32 %v5050_v1, %v11643_v55  ;;  %v11654_v55 = vld [vmem:[#allocation37_spill] sm:$0xff] }
 0x837   : > { %v5675_v23 = vadd.f32 %v5674_v11, %v5466_v51 }
 0x838   : > { %5097 = vmatmul.f32.gmra.mxu0 %v3757_v19  ;;  %5306 = vmatmul.f32.gmra.mxu1 %v3821_v10  ;;  %v5260_v8 = vadd.f32 %v5259_v9, %v5051_v24  ;;  %v11651_v10 = vld [vmem:[#allocation10_spill] sm:$0xff]  ;;  %v3951_v24 = vmul.f32 %v11654_v55, %v11650_v7 }
 0x839   : > { %5797 = vst.msk [vmem:[%s9822_s7 + $0x118] sm:$0xff] %vm5761_vm0, %v5675_v23  ;;  %5515 = vmatmul.f32.gmra.mxu2 %v3885_v60  ;;  %v3759_v32 = vmul.f32 %v11651_v10, %v11650_v7  ;;  %v11652_v60 = vld [vmem:[#allocation5_spill] sm:$0xff] }
 0x83a   : > { %5724 = vmatmul.f32.gmra.mxu3 %v3949_v41  ;;  %v3823_v25 = vmul.f32 %v11652_v60, %v11650_v7  ;;  %v11653_v41 = vld [vmem:[#allocation9_spill] sm:$0xff]  ;;  %v11662_v60 = vld [vmem:[#allocation39_spill] sm:$0xff] }
 0x83b   : > { %v3887_v23 = vmul.f32 %v11653_v41, %v11650_v7 }
 0x83c   : > { %v5468_v2 = vpop.f32.mrf.mxu2 }
 0x83d   : > { %v5677_v29 = vpop.f32.mrf.mxu3  ;;  %v5469_v62 = vadd.f32 %v5468_v2, %v5260_v8  ;;  %v5053_v21 = vpop.f32.mrf.mxu0 }
 0x83e   : > { %v5262_v20 = vpop.f32.mrf.mxu1  ;;  %v5054_v63 = vadd.f32 %v5053_v21, %v11649_v5 }
 0x83f   : > { %v5678_v50 = vadd.f32 %v5677_v29, %v5469_v62 }
 0x840   : > { %5100 = vmatmul.f32.gmra.mxu0 %v3758_v28  ;;  %5309 = vmatmul.f32.gmra.mxu1 %v3822_v45  ;;  %v5263_v11 = vadd.f32 %v5262_v20, %v5054_v63  ;;  %v11655_v28 = vld [vmem:[#allocation14_spill] sm:$0xff]  ;;  %v11656_v45 = vld [vmem:[#allocation8_spill] sm:$0xff] }
 0x841   : > { %5798 = vst.msk [vmem:[%s9822_s7 + $0x120] sm:$0xff] %vm5761_vm0, %v5678_v50  ;;  %5518 = vmatmul.f32.gmra.mxu2 %v3886_v42  ;;  %v3760_v12 = vmul.f32 %v11655_v28, %v9515_v13  ;;  %v3824_v44 = vmul.f32 %v11656_v45, %v9515_v13 }
 0x842   : > { %5727 = vmatmul.f32.gmra.mxu3 %v3950_v54  ;;  %v3952_v54 = vmul.f32 %v11658_v34, %v9515_v13  ;;  %v11669_v34 = vld [vmem:[#allocation138_spill] sm:$0xff] }
 0x844   : > { %v5471_v51 = vpop.f32.mrf.mxu2 }
 0x845   : > { %v5680_v1 = vpop.f32.mrf.mxu3  ;;  %v5472_v9 = vadd.f32 %v5471_v51, %v5263_v11  ;;  %v5056_v17 = vpop.f32.mrf.mxu0 }
 0x846   : > { %v5265_v19 = vpop.f32.mrf.mxu1  ;;  %v5057_v2 = vadd.f32 %v5056_v17, %v9526_v14  ;;  %v11657_v14 = vld [vmem:[#allocation13_spill] sm:$0xff] }
 0x847   : > { %v5681_v8 = vadd.f32 %v5680_v1, %v5472_v9  ;;  %v3888_v42 = vmul.f32 %v11657_v14, %v9515_v13  ;;  %v11660_v13 = vld [vmem:[#allocation12_spill] sm:$0xff] }
 0x848   : > { %5103 = vmatmul.f32.gmra.mxu0 %v3759_v32  ;;  %5312 = vmatmul.f32.gmra.mxu1 %v3823_v25  ;;  %v5266_v29 = vadd.f32 %v5265_v19, %v5057_v2  ;;  %v11659_v19 = vld [vmem:[#allocation18_spill] sm:$0xff]  ;;  %v3825_v10 = vmul.f32 %v11660_v13, %v9528_v37  ;;  %v3953_v25 = vmul.f32 %v11662_v60, %v9528_v37 }
 0x849   : > { %5799 = vst.msk [vmem:[%s9822_s7 + $0x128] sm:$0xff] %vm5761_vm0, %v5681_v8  ;;  %5521 = vmatmul.f32.gmra.mxu2 %v3887_v23  ;;  %v3761_v7 = vmul.f32 %v11659_v19, %v9528_v37  ;;  %v11663_v23 = vld [vmem:[#allocation136_spill] sm:$0xff] }
 0x84a   : > { %5730 = vmatmul.f32.gmra.mxu3 %v3951_v24 }
 0x84c   : > { %v5474_v62 = vpop.f32.mrf.mxu2 }
 0x84d   : > { %v5683_v21 = vpop.f32.mrf.mxu3  ;;  %v5475_v20 = vadd.f32 %v5474_v62, %v5266_v29  ;;  %v5059_v48 = vpop.f32.mrf.mxu0 }
 0x84e   : > { %v5268_v61 = vpop.f32.mrf.mxu1  ;;  %v5060_v5 = vadd.f32 %v5059_v48, %v9539_v0  ;;  %v11661_v0 = vld [vmem:[#allocation17_spill] sm:$0xff]  ;;  %v11665_v48 = vld [vmem:[#allocation16_spill] sm:$0xff] }
 0x84f   : > { %v5684_v50 = vadd.f32 %v5683_v21, %v5475_v20  ;;  %v3889_v32 = vmul.f32 %v11661_v0, %v9528_v37  ;;  %v11664_v20 = vld [vmem:[#allocation135_spill] sm:$0xff]  ;;  %v11666_v37 = vld [vmem:[#allocation40_spill] sm:$0xff] }
 0x850   : > { %5106 = vmatmul.f32.gmra.mxu0 %v3760_v12  ;;  %5315 = vmatmul.f32.gmra.mxu1 %v3824_v44  ;;  %v5269_v63 = vadd.f32 %v5268_v61, %v5060_v5  ;;  %v3762_v61 = vmul.f32 %v11665_v48, %v11664_v20  ;;  %v3826_v28 = vmul.f32 %v11666_v37, %v11664_v20  ;;  %v11667_v12 = vld [vmem:[#allocation41_spill] sm:$0xff]  ;;  %v11668_v44 = vld [vmem:[#allocation42_spill] sm:$0xff]  ;;  %v11678_v37 = vld [vmem:[#allocation51_spill] sm:$0xff] }
 0x851   : > { %5800 = vst.msk [vmem:[%s9822_s7 + $0x130] sm:$0xff] %vm5761_vm0, %v5684_v50  ;;  %5524 = vmatmul.f32.gmra.mxu2 %v3888_v42  ;;  %v3890_v45 = vmul.f32 %v11667_v12, %v11664_v20  ;;  %v3954_v14 = vmul.f32 %v11668_v44, %v11664_v20  ;;  %v11676_v20 = vld [vmem:[#allocation424_spill] sm:$0xff] }
 0x852   : > { %5733 = vmatmul.f32.gmra.mxu3 %v3952_v54  ;;  %v3828_v48 = vmul.f32 %v11676_v20, %v9579_v56 }
 0x854   : > { %v5477_v11 = vpop.f32.mrf.mxu2 }
 0x855   : > { %v5686_v51 = vpop.f32.mrf.mxu3  ;;  %v5478_v1 = vadd.f32 %v5477_v11, %v5269_v63  ;;  %v5062_v9 = vpop.f32.mrf.mxu0 }
 0x856   : > { %v5271_v17 = vpop.f32.mrf.mxu1  ;;  %v5063_v55 = vadd.f32 %v5062_v9, %v11663_v23  ;;  %v11670_v9 = vld [vmem:[#allocation137_spill] sm:$0xff] }
 0x857   : > { %v5687_v41 = vadd.f32 %v5686_v51, %v5478_v1 }
 0x858   : > { %5109 = vmatmul.f32.gmra.mxu0 %v3761_v7  ;;  %5318 = vmatmul.f32.gmra.mxu1 %v3825_v10  ;;  %v5272_v24 = vadd.f32 %v5271_v17, %v5063_v55  ;;  %v11671_v17 = vld [vmem:[#allocation43_spill] sm:$0xff]  ;;  %v11672_v7 = vld [vmem:[#allocation44_spill] sm:$0xff]  ;;  %v11673_v10 = vld [vmem:[#allocation46_spill] sm:$0xff] }
 0x859   : > { %5801 = vst.msk [vmem:[%s9822_s7 + $0x138] sm:$0xff] %vm5761_vm0, %v5687_v41  ;;  %5527 = vmatmul.f32.gmra.mxu2 %v3889_v32  ;;  %v3763_v19 = vmul.f32 %v11671_v17, %v11670_v9  ;;  %v3827_v13 = vmul.f32 %v11672_v7, %v11670_v9  ;;  %v3891_v0 = vmul.f32 %v11673_v10, %v11670_v9  ;;  %v11674_v32 = vld [vmem:[#allocation47_spill] sm:$0xff] }
 0x85a   : > { %5736 = vmatmul.f32.gmra.mxu3 %v3953_v25  ;;  %v3955_v60 = vmul.f32 %v11674_v32, %v11670_v9 }
 0x85c   : > { %v5480_v8 = vpop.f32.mrf.mxu2 }
 0x85d   : > { %v5689_v2 = vpop.f32.mrf.mxu3  ;;  %v5481_v29 = vadd.f32 %v5480_v8, %v5272_v24  ;;  %v5065_v62 = vpop.f32.mrf.mxu0 }
 0x85e   : > { %v5274_v21 = vpop.f32.mrf.mxu1  ;;  %v5066_v54 = vadd.f32 %v5065_v62, %v11669_v34  ;;  %v11675_v62 = vld [vmem:[#allocation48_spill] sm:$0xff] }
 0x85f   : > { %v5690_v42 = vadd.f32 %v5689_v2, %v5481_v29 }
 0x860   : > { %5112 = vmatmul.f32.gmra.mxu0 %v3762_v61  ;;  %5321 = vmatmul.f32.gmra.mxu1 %v3826_v28  ;;  %v5275_v50 = vadd.f32 %v5274_v21, %v5066_v54  ;;  %v3764_v21 = vmul.f32 %v11675_v62, %v9579_v56  ;;  %v3956_v28 = vmul.f32 %v11678_v37, %v9579_v56  ;;  %v11687_v37 = vld [vmem:[#allocation60_spill] sm:$0xff] }
 0x861   : > { %5802 = vst.msk [vmem:[%s9822_s7 + $0x140] sm:$0xff] %vm5761_vm0, %v5690_v42  ;;  %5530 = vmatmul.f32.gmra.mxu2 %v3890_v45 }
 0x862   : > { %5739 = vmatmul.f32.gmra.mxu3 %v3954_v14 }
 0x864   : > { %v5483_v5 = vpop.f32.mrf.mxu2 }
 0x865   : > { %v5692_v63 = vpop.f32.mrf.mxu3  ;;  %v5484_v11 = vadd.f32 %v5483_v5, %v5275_v50  ;;  %v5068_v51 = vpop.f32.mrf.mxu0  ;;  %v11679_v5 = vld [vmem:[#allocation52_spill] sm:$0xff] }
 0x866   : > { %v5277_v1 = vpop.f32.mrf.mxu1  ;;  %v5069_v41 = vadd.f32 %v5068_v51, %v9590_v18  ;;  %v11677_v18 = vld [vmem:[#allocation50_spill] sm:$0xff] }
 0x867   : > { %v5693_v25 = vadd.f32 %v5692_v63, %v5484_v11  ;;  %v3892_v61 = vmul.f32 %v11677_v18, %v9579_v56  ;;  %v3765_v63 = vmul.f32 %v11679_v5, %v9592_v35  ;;  %v11680_v56 = vld [vmem:[#allocation425_spill] sm:$0xff] }
 0x868   : > { %5115 = vmatmul.f32.gmra.mxu0 %v3763_v19  ;;  %5324 = vmatmul.f32.gmra.mxu1 %v3827_v13  ;;  %v5278_v23 = vadd.f32 %v5277_v1, %v5069_v41  ;;  %v3829_v11 = vmul.f32 %v11680_v56, %v9592_v35  ;;  %v11682_v1 = vld [vmem:[#allocation55_spill] sm:$0xff] }
 0x869   : > { %5803 = vst.msk [vmem:[%s9822_s7 + $0x148] sm:$0xff] %vm5761_vm0, %v5693_v25  ;;  %5533 = vmatmul.f32.gmra.mxu2 %v3891_v0  ;;  %v3957_v9 = vmul.f32 %v11682_v1, %v9592_v35  ;;  %v11683_v25 = vld [vmem:[#allocation56_spill] sm:$0xff] }
 0x86a   : > { %5742 = vmatmul.f32.gmra.mxu3 %v3955_v60  ;;  %v3766_v41 = vmul.f32 %v11683_v25, %v9605_v30 }
 0x86c   : > { %v5486_v55 = vpop.f32.mrf.mxu2 }
 0x86d   : > { %v5695_v24 = vpop.f32.mrf.mxu3  ;;  %v5487_v8 = vadd.f32 %v5486_v55, %v5278_v23  ;;  %v5071_v2 = vpop.f32.mrf.mxu0 }
 0x86e   : > { %v5280_v29 = vpop.f32.mrf.mxu1  ;;  %v5072_v45 = vadd.f32 %v5071_v2, %v9603_v22  ;;  %v11681_v22 = vld [vmem:[#allocation54_spill] sm:$0xff] }
 0x86f   : > { %v5696_v12 = vadd.f32 %v5695_v24, %v5487_v8  ;;  %v3893_v51 = vmul.f32 %v11681_v22, %v9592_v35  ;;  %v11684_v35 = vld [vmem:[#allocation426_spill] sm:$0xff]  ;;  %v11686_v24 = vld [vmem:[#allocation59_spill] sm:$0xff]  ;;  %v11691_v22 = vld [vmem:[#allocation64_spill] sm:$0xff] }
 0x870   : > { %5118 = vmatmul.f32.gmra.mxu0 %v3764_v21  ;;  %5327 = vmatmul.f32.gmra.mxu1 %v3828_v48  ;;  %v5281_v44 = vadd.f32 %v5280_v29, %v5072_v45  ;;  %v3830_v23 = vmul.f32 %v11684_v35, %v9605_v30  ;;  %v3958_v8 = vmul.f32 %v11686_v24, %v9605_v30 }
 0x871   : > { %5804 = vst.msk [vmem:[%s9822_s7 + $0x150] sm:$0xff] %vm5761_vm0, %v5696_v12  ;;  %5536 = vmatmul.f32.gmra.mxu2 %v3892_v61 }
 0x872   : > { %5745 = vmatmul.f32.gmra.mxu3 %v3956_v28  ;;  %v3767_v28 = vmul.f32 %v11687_v37, %v9618_v38 }
 0x874   : > { %v5489_v14 = vpop.f32.mrf.mxu2 }
 0x875   : > { %v5698_v42 = vpop.f32.mrf.mxu3  ;;  %v5490_v34 = vadd.f32 %v5489_v14, %v5281_v44  ;;  %v5074_v54 = vpop.f32.mrf.mxu0  ;;  %v11690_v44 = vld [vmem:[#allocation63_spill] sm:$0xff] }
 0x876   : > { %v5283_v50 = vpop.f32.mrf.mxu1  ;;  %v5075_v19 = vadd.f32 %v5074_v54, %v9616_v43  ;;  %v11685_v43 = vld [vmem:[#allocation58_spill] sm:$0xff]  ;;  %v3959_v14 = vmul.f32 %v11690_v44, %v9618_v38 }
 0x877   : > { %v5699_v17 = vadd.f32 %v5698_v42, %v5490_v34  ;;  %v3894_v55 = vmul.f32 %v11685_v43, %v9605_v30  ;;  %v11688_v30 = vld [vmem:[#allocation427_spill] sm:$0xff] }
 0x878   : > { %5121 = vmatmul.f32.gmra.mxu0 %v3765_v63  ;;  %5330 = vmatmul.f32.gmra.mxu1 %v3829_v11  ;;  %v5284_v7 = vadd.f32 %v5283_v50, %v5075_v19  ;;  %v3831_v12 = vmul.f32 %v11688_v30, %v9618_v38 }
 0x879   : > { %5805 = vst.msk [vmem:[%s9822_s7 + $0x158] sm:$0xff] %vm5761_vm0, %v5699_v17  ;;  %5539 = vmatmul.f32.gmra.mxu2 %v3893_v51  ;;  %v3768_v51 = vmul.f32 %v11691_v22, %v9630_v36  ;;  %v11694_v17 = vld [vmem:[#allocation67_spill] sm:$0xff] }
 0x87a   : > { %5748 = vmatmul.f32.gmra.mxu3 %v3957_v9  ;;  %v3960_v19 = vmul.f32 %v11694_v17, %v9630_v36 }
 0x87c   : > { %v5492_v13 = vpop.f32.mrf.mxu2 }
 0x87d   : > { %v5701_v10 = vpop.f32.mrf.mxu3  ;;  %v5493_v0 = vadd.f32 %v5492_v13, %v5284_v7  ;;  %v5077_v32 = vpop.f32.mrf.mxu0 }
 0x87e   : > { %v5286_v60 = vpop.f32.mrf.mxu1  ;;  %v5078_v29 = vadd.f32 %v5077_v32, %v9628_v59  ;;  %v11689_v59 = vld [vmem:[#allocation62_spill] sm:$0xff] }
 0x87f   : > { %v5702_v2 = vadd.f32 %v5701_v10, %v5493_v0  ;;  %v3895_v45 = vmul.f32 %v11689_v59, %v9618_v38  ;;  %v11692_v38 = vld [vmem:[#allocation428_spill] sm:$0xff] }
 0x880   : > { %5124 = vmatmul.f32.gmra.mxu0 %v3766_v41  ;;  %5333 = vmatmul.f32.gmra.mxu1 %v3830_v23  ;;  %v5287_v62 = vadd.f32 %v5286_v60, %v5078_v29  ;;  %v3832_v1 = vmul.f32 %v11692_v38, %v9630_v36 }
 0x881   : > { %5806 = vst.msk [vmem:[%s9822_s7 + $0x160] sm:$0xff] %vm5761_vm0, %v5702_v2  ;;  %5542 = vmatmul.f32.gmra.mxu2 %v3894_v55 }
 0x882   : > { %5751 = vmatmul.f32.gmra.mxu3 %v3958_v8 }
 0x884   : > { %v5495_v21 = vpop.f32.mrf.mxu2 }
 0x885   : > { %v5704_v20 = vpop.f32.mrf.mxu3  ;;  %v5496_v48 = vadd.f32 %v5495_v21, %v5287_v62  ;;  %v5080_v18 = vpop.f32.mrf.mxu0 }
 0x886   : > { %v5289_v61 = vpop.f32.mrf.mxu1  ;;  %v5081_v34 = vadd.f32 %v5080_v18, %v9640_v26  ;;  %v11693_v26 = vld [vmem:[#allocation66_spill] sm:$0xff] }
 0x887   : > { %v5705_v42 = vadd.f32 %v5704_v20, %v5496_v48  ;;  %v3896_v9 = vmul.f32 %v11693_v26, %v9630_v36 }
 0x888   : > { %5127 = vmatmul.f32.gmra.mxu0 %v3767_v28  ;;  %5336 = vmatmul.f32.gmra.mxu1 %v3831_v12  ;;  %v5290_v54 = vadd.f32 %v5289_v61, %v5081_v34 }
 0x889   : > { %5807 = vst.msk [vmem:[%s9822_s7 + $0x168] sm:$0xff] %vm5761_vm0, %v5705_v42  ;;  %5545 = vmatmul.f32.gmra.mxu2 %v3895_v45 }
 0x88a   : > { %5754 = vmatmul.f32.gmra.mxu3 %v3959_v14 }
 0x88c   : > { %v5498_v50 = vpop.f32.mrf.mxu2 }
 0x88d   : > { %v5707_v5 = vpop.f32.mrf.mxu3  ;;  %v5499_v63 = vadd.f32 %v5498_v50, %v5290_v54  ;;  %v5083_v56 = vpop.f32.mrf.mxu0 }
 0x88e   : > { %v5292_v11 = vpop.f32.mrf.mxu1  ;;  %v5084_v13 = vadd.f32 %v5083_v56, %v9650_v16 }
 0x88f   : > { %v5708_v7 = vadd.f32 %v5707_v5, %v5499_v63 }
 0x890   : > { %5130 = vmatmul.f32.gmra.mxu0 %v3768_v51  ;;  %5339 = vmatmul.f32.gmra.mxu1 %v3832_v1  ;;  %v5293_v10 = vadd.f32 %v5292_v11, %v5084_v13 }
 0x891   : > { %5808 = vst.msk [vmem:[%s9822_s7 + $0x170] sm:$0xff] %vm5761_vm0, %v5708_v7  ;;  %5548 = vmatmul.f32.gmra.mxu2 %v3896_v9 }
 0x892   : > { %5757 = vmatmul.f32.gmra.mxu3 %v3960_v19 }
 0x894   : > { %v5501_v0 = vpop.f32.mrf.mxu2 }
 0x895   : > { %v5710_v32 = vpop.f32.mrf.mxu3  ;;  %v5502_v60 = vadd.f32 %v5501_v0, %v5293_v10  ;;  %v5086_v25 = vpop.f32.mrf.mxu0 }
 0x896   : > { %v5295_v41 = vpop.f32.mrf.mxu1  ;;  %v5087_v36 = vadd.f32 %v5086_v25, %v9660_v31 }
 0x897   : > { %v5711_v35 = vadd.f32 %v5710_v32, %v5502_v60 }
 0x898   : > { %v5296_v23 = vadd.f32 %v5295_v41, %v5087_v36 }
 0x899   : > { %5809 = vst.msk [vmem:[%s9822_s7 + $0x178] sm:$0xff] %vm5761_vm0, %v5711_v35 }
 0x89c   : > { %v5504_v16 = vpop.f32.mrf.mxu2 }
 0x89d   : > { %v5713_v43 = vpop.f32.mrf.mxu3  ;;  %v5505_v55 = vadd.f32 %v5504_v16, %v5296_v23  ;;  %v5089_v24 = vpop.f32.mrf.mxu0 }
 0x89e   : > { %v5298_v8 = vpop.f32.mrf.mxu1  ;;  %v5090_v29 = vadd.f32 %v5089_v24, %v9670_v49 }
 0x89f   : > { %v5714_v2 = vadd.f32 %v5713_v43, %v5505_v55 }
 0x8a0   : > { %v5299_v62 = vadd.f32 %v5298_v8, %v5090_v29 }
 0x8a1   : > { %5810 = vst.msk [vmem:[%s9822_s7 + $0x180] sm:$0xff] %vm5761_vm0, %v5714_v2 }
 0x8a4   : > { %v5507_v21 = vpop.f32.mrf.mxu2 }
 0x8a5   : > { %v5716_v20 = vpop.f32.mrf.mxu3  ;;  %v5508_v48 = vadd.f32 %v5507_v21, %v5299_v62  ;;  %v5092_v31 = vpop.f32.mrf.mxu0 }
 0x8a6   : > { %v5301_v18 = vpop.f32.mrf.mxu1  ;;  %v5093_v37 = vadd.f32 %v5092_v31, %v9680_v15 }
 0x8a7   : > { %v5717_v61 = vadd.f32 %v5716_v20, %v5508_v48 }
 0x8a8   : > { %v5302_v28 = vadd.f32 %v5301_v18, %v5093_v37 }
 0x8a9   : > { %5811 = vst.msk [vmem:[%s9822_s7 + $0x188] sm:$0xff] %vm5761_vm0, %v5717_v61 }
 0x8ac   : > { %v5510_v30 = vpop.f32.mrf.mxu2 }
 0x8ad   : > { %v5719_v12 = vpop.f32.mrf.mxu3  ;;  %v5511_v59 = vadd.f32 %v5510_v30, %v5302_v28  ;;  %v5095_v49 = vpop.f32.mrf.mxu0 }
 0x8ae   : > { %v5304_v45 = vpop.f32.mrf.mxu1  ;;  %v5096_v14 = vadd.f32 %v5095_v49, %v9690_v3 }
 0x8af   : > { %v5720_v44 = vadd.f32 %v5719_v12, %v5511_v59 }
 0x8b0   : > { %v5305_v42 = vadd.f32 %v5304_v45, %v5096_v14 }
 0x8b1   : > { %5812 = vst.msk [vmem:[%s9822_s7 + $0x190] sm:$0xff] %vm5761_vm0, %v5720_v44 }
 0x8b4   : > { %v5513_v34 = vpop.f32.mrf.mxu2 }
 0x8b5   : > { %v5722_v54 = vpop.f32.mrf.mxu3  ;;  %v5514_v50 = vadd.f32 %v5513_v34, %v5305_v42  ;;  %v5098_v15 = vpop.f32.mrf.mxu0 }
 0x8b6   : > { %v5307_v5 = vpop.f32.mrf.mxu1  ;;  %v5099_v56 = vadd.f32 %v5098_v15, %v9700_v52 }
 0x8b7   : > { %v5723_v63 = vadd.f32 %v5722_v54, %v5514_v50 }
 0x8b8   : > { %v5308_v11 = vadd.f32 %v5307_v5, %v5099_v56 }
 0x8b9   : > { %5813 = vst.msk [vmem:[%s9822_s7 + $0x198] sm:$0xff] %vm5761_vm0, %v5723_v63 }
 0x8bc   : > { %v5516_v22 = vpop.f32.mrf.mxu2 }
 0x8bd   : > { %v5725_v51 = vpop.f32.mrf.mxu3  ;;  %v5517_v38 = vadd.f32 %v5516_v22, %v5308_v11  ;;  %v5101_v3 = vpop.f32.mrf.mxu0 }
 0x8be   : > { %v5310_v1 = vpop.f32.mrf.mxu1  ;;  %v5102_v9 = vadd.f32 %v5101_v3, %v9710_v57 }
 0x8bf   : > { %v5726_v26 = vadd.f32 %v5725_v51, %v5517_v38 }
 0x8c0   : > { %v5311_v17 = vadd.f32 %v5310_v1, %v5102_v9 }
 0x8c1   : > { %5814 = vst.msk [vmem:[%s9822_s7 + $0x1a0] sm:$0xff] %vm5761_vm0, %v5726_v26 }
 0x8c4   : > { %v5519_v19 = vpop.f32.mrf.mxu2 }
 0x8c5   : > { %v5728_v7 = vpop.f32.mrf.mxu3  ;;  %v5520_v13 = vadd.f32 %v5519_v19, %v5311_v17  ;;  %v5104_v52 = vpop.f32.mrf.mxu0 }
 0x8c6   : > { %v5313_v10 = vpop.f32.mrf.mxu1  ;;  %v5105_v32 = vadd.f32 %v5104_v52, %v9720_v33 }
 0x8c7   : > { %v5729_v0 = vadd.f32 %v5728_v7, %v5520_v13 }
 0x8c8   : > { %v5314_v60 = vadd.f32 %v5313_v10, %v5105_v32 }
 0x8c9   : > { %5815 = vst.msk [vmem:[%s9822_s7 + $0x1a8] sm:$0xff] %vm5761_vm0, %v5729_v0 }
 0x8cc   : > { %v5522_v25 = vpop.f32.mrf.mxu2 }
 0x8cd   : > { %v5731_v41 = vpop.f32.mrf.mxu3  ;;  %v5523_v35 = vadd.f32 %v5522_v25, %v5314_v60  ;;  %v5107_v57 = vpop.f32.mrf.mxu0 }
 0x8ce   : > { %v5316_v36 = vpop.f32.mrf.mxu1  ;;  %v5108_v16 = vadd.f32 %v5107_v57, %v9730_v27 }
 0x8cf   : > { %v5732_v23 = vadd.f32 %v5731_v41, %v5523_v35 }
 0x8d0   : > { %v5317_v43 = vadd.f32 %v5316_v36, %v5108_v16 }
 0x8d1   : > { %5816 = vst.msk [vmem:[%s9822_s7 + $0x1b0] sm:$0xff] %vm5761_vm0, %v5732_v23 }
 0x8d4   : > { %v5525_v55 = vpop.f32.mrf.mxu2 }
 0x8d5   : > { %v5734_v24 = vpop.f32.mrf.mxu3  ;;  %v5526_v8 = vadd.f32 %v5525_v55, %v5317_v43  ;;  %v5110_v33 = vpop.f32.mrf.mxu0 }
 0x8d6   : > { %v5319_v2 = vpop.f32.mrf.mxu1  ;;  %v5111_v62 = vadd.f32 %v5110_v33, %v9740_v6 }
 0x8d7   : > { %v5735_v29 = vadd.f32 %v5734_v24, %v5526_v8 }
 0x8d8   : > { %v5320_v21 = vadd.f32 %v5319_v2, %v5111_v62 }
 0x8d9   : > { %5817 = vst.msk [vmem:[%s9822_s7 + $0x1b8] sm:$0xff] %vm5761_vm0, %v5735_v29 }
 0x8dc   : > { %v5528_v20 = vpop.f32.mrf.mxu2 }
 0x8dd   : > { %v5737_v48 = vpop.f32.mrf.mxu3  ;;  %v5529_v31 = vadd.f32 %v5528_v20, %v5320_v21  ;;  %v5113_v27 = vpop.f32.mrf.mxu0 }
 0x8de   : > { %v5322_v18 = vpop.f32.mrf.mxu1  ;;  %v5114_v37 = vadd.f32 %v5113_v27, %v9750_v40 }
 0x8df   : > { %v5738_v61 = vadd.f32 %v5737_v48, %v5529_v31 }
 0x8e0   : > { %v5323_v28 = vadd.f32 %v5322_v18, %v5114_v37 }
 0x8e1   : > { %5818 = vst.msk [vmem:[%s9822_s7 + $0x1c0] sm:$0xff] %vm5761_vm0, %v5738_v61 }
 0x8e4   : > { %v5531_v30 = vpop.f32.mrf.mxu2 }
 0x8e5   : > { %v5740_v12 = vpop.f32.mrf.mxu3  ;;  %v5532_v59 = vadd.f32 %v5531_v30, %v5323_v28  ;;  %v5116_v6 = vpop.f32.mrf.mxu0 }
 0x8e6   : > { %v5325_v49 = vpop.f32.mrf.mxu1  ;;  %v5117_v44 = vadd.f32 %v5116_v6, %v9760_v39 }
 0x8e7   : > { %v5741_v45 = vadd.f32 %v5740_v12, %v5532_v59 }
 0x8e8   : > { %v5326_v14 = vadd.f32 %v5325_v49, %v5117_v44 }
 0x8e9   : > { %5819 = vst.msk [vmem:[%s9822_s7 + $0x1c8] sm:$0xff] %vm5761_vm0, %v5741_v45 }
 0x8ec   : > { %v5534_v42 = vpop.f32.mrf.mxu2 }
 0x8ed   : > { %v5743_v34 = vpop.f32.mrf.mxu3  ;;  %v5535_v54 = vadd.f32 %v5534_v42, %v5326_v14  ;;  %v5119_v40 = vpop.f32.mrf.mxu0 }
 0x8ee   : > { %v5328_v50 = vpop.f32.mrf.mxu1  ;;  %v5120_v5 = vadd.f32 %v5119_v40, %v9770_v4 }
 0x8ef   : > { %v5744_v15 = vadd.f32 %v5743_v34, %v5535_v54 }
 0x8f0   : > { %v5329_v63 = vadd.f32 %v5328_v50, %v5120_v5 }
 0x8f1   : > { %5820 = vst.msk [vmem:[%s9822_s7 + $0x1d0] sm:$0xff] %vm5761_vm0, %v5744_v15 }
 0x8f4   : > { %v5537_v56 = vpop.f32.mrf.mxu2 }
 0x8f5   : > { %v5746_v11 = vpop.f32.mrf.mxu3  ;;  %v5538_v22 = vadd.f32 %v5537_v56, %v5329_v63  ;;  %v5122_v39 = vpop.f32.mrf.mxu0 }
 0x8f6   : > { %v5331_v51 = vpop.f32.mrf.mxu1  ;;  %v5123_v3 = vadd.f32 %v5122_v39, %v9780_v47 }
 0x8f7   : > { %v5747_v38 = vadd.f32 %v5746_v11, %v5538_v22 }
 0x8f8   : > { %v5332_v1 = vadd.f32 %v5331_v51, %v5123_v3 }
 0x8f9   : > { %5821 = vst.msk [vmem:[%s9822_s7 + $0x1d8] sm:$0xff] %vm5761_vm0, %v5747_v38 }
 0x8fc   : > { %v5540_v26 = vpop.f32.mrf.mxu2 }
 0x8fd   : > { %v5749_v9 = vpop.f32.mrf.mxu3  ;;  %v5541_v17 = vadd.f32 %v5540_v26, %v5332_v1  ;;  %v5125_v4 = vpop.f32.mrf.mxu0 }
 0x8fe   : > { %v5334_v19 = vpop.f32.mrf.mxu1  ;;  %v5126_v13 = vadd.f32 %v5125_v4, %v9790_v58 }
 0x8ff   : > { %v5750_v7 = vadd.f32 %v5749_v9, %v5541_v17 }
 0x900   : > { %v5335_v52 = vadd.f32 %v5334_v19, %v5126_v13 }
 0x901   : > { %5822 = vst.msk [vmem:[%s9822_s7 + $0x1e0] sm:$0xff] %vm5761_vm0, %v5750_v7 }
 0x904   : > { %v5543_v10 = vpop.f32.mrf.mxu2 }
 0x905   : > { %v5752_v0 = vpop.f32.mrf.mxu3  ;;  %v5544_v32 = vadd.f32 %v5543_v10, %v5335_v52  ;;  %v5128_v47 = vpop.f32.mrf.mxu0 }
 0x906   : > { %v5129_v25 = vadd.f32 %v5128_v47, %v9800_v53  ;;  %v5337_v41 = vpop.f32.mrf.mxu1 }
 0x907   : > { %v5753_v60 = vadd.f32 %v5752_v0, %v5544_v32 }
 0x908   : > { %v5338_v35 = vadd.f32 %v5337_v41, %v5129_v25 }
 0x909   : > { %5823 = vst.msk [vmem:[%s9822_s7 + $0x1e8] sm:$0xff] %vm5761_vm0, %v5753_v60 }
 0x90c   : > { %v5546_v57 = vpop.f32.mrf.mxu2 }
 0x90d   : > { %v5755_v36 = vpop.f32.mrf.mxu3  ;;  %v5547_v23 = vadd.f32 %v5546_v57, %v5338_v35  ;;  %v5131_v58 = vpop.f32.mrf.mxu0 }
 0x90e   : > { %v5132_v43 = vadd.f32 %v5131_v58, %v9810_v46  ;;  %v5340_v55 = vpop.f32.mrf.mxu1 }
 0x90f   : > { %v5756_v16 = vadd.f32 %v5755_v36, %v5547_v23 }
 0x910   : > { %v5341_v24 = vadd.f32 %v5340_v55, %v5132_v43 }
 0x911   : > { %5824 = vst.msk [vmem:[%s9822_s7 + $0x1f0] sm:$0xff] %vm5761_vm0, %v5756_v16 }
 0x914   : > { %v5549_v8 = vpop.f32.mrf.mxu2 }
 0x915   : > { %v5550_v33 = vadd.f32 %v5549_v8, %v5341_v24  ;;  %v5758_v2 = vpop.f32.mrf.mxu3 }
 0x917   : > { %v5759_v53 = vadd.f32 %v5758_v2, %v5550_v33 }
 0x919   : > { %5825 = vst.msk [vmem:[%s9822_s7 + $0x1f8] sm:$0xff] %vm5761_vm0, %v5759_v53 }
 0x91a PF: > { %s13_s12 = sadd.s32 1, %s5980_s12  }
 0x91b   : > { %p10_p4 = scmp.ge.s32.totalorder %s13_s12, 5  }
 0x91d   :  { %12 = sbr.rel (!%p10_p4) target bundleno = 1 (0x1), region = 62 }

</bundles_post_ra>
